<compile_context>
chip_gen: v7x
topology: tpu7x:2x2x1
jax: 0.10.0
libtpu: 0.0.40
codegen_flags: <defaults>
</compile_context>

<pallas_src>
import jax
import jax.numpy as jnp
from jax.experimental import pallas as pl
from jax.experimental.pallas import tpu as pltpu

D_IN = 11 * 28 * 28                 # 8624
D_H1, D_H2, D_H3, D_H4, D_OUT = 512, 256, 128, 32, 1
K_PAD = 8704                        # next multiple of 128 >= 8624 (padded ONCE at prep)
N_SPLIT = 2                         # layer-1 column split: maps to v7x's 2 TensorCores
H1_BLK = D_H1 // N_SPLIT            # 256 output columns per grid step


def _layer1_kernel(x_ref, w1_ref, b1_ref, h1_ref):
    # Each grid step (one TensorCore on v7x) computes a 256-column slice of
    # h1 = relu(x @ W1 + b1): bf16 operands on the MXU, f32 accumulation.
    acc = jnp.dot(x_ref[...], w1_ref[...], preferred_element_type=jnp.float32)
    h1_ref[...] = jnp.maximum(acc + b1_ref[...], 0.0)


def _tail_kernel(h1_ref, w2_ref, b2_ref, w3_ref, b3_ref,
                 w4_ref, b4_ref, w5_ref, b5_ref, o_ref):
    # Tiny tail MLP, fully VMEM resident; bf16 operands, f32 accumulate.
    h = jnp.maximum(
        jnp.dot(h1_ref[...].astype(jnp.bfloat16), w2_ref[...],
                preferred_element_type=jnp.float32) + b2_ref[...], 0.0)      # ReLU
    h = jnp.tanh(
        jnp.dot(h.astype(jnp.bfloat16), w3_ref[...],
                preferred_element_type=jnp.float32) + b3_ref[...])           # Tanh
    h = jnp.tanh(
        jnp.dot(h.astype(jnp.bfloat16), w4_ref[...],
                preferred_element_type=jnp.float32) + b4_ref[...])           # Tanh
    logits = (jnp.dot(h, w5_ref[...], preferred_element_type=jnp.float32)
              + b5_ref[...])
    o_ref[...] = (1.0 / (1.0 + jnp.exp(-logits))).astype(o_ref.dtype)        # Sigmoid


@jax.jit
def discriminator_forward(x, params):
    """x: (B, D_IN) float32. params: output of prepare_params (W1..W4 bf16)."""
    B = x.shape[0]
    B_pad = ((B + 7) // 8) * 8
    # Only x is cast/padded per call (~2 MB at B=128) -- negligible next to W1.
    x_p = jnp.pad(x.astype(jnp.bfloat16),
                  ((0, B_pad - B), (0, K_PAD - D_IN)))

    # Stage 1: dominant matmul, 512 output columns split over a parallel grid
    # axis of 2 (both v7x TensorCores each stream half of W1; sequential and
    # traffic-equivalent on single-core v5e/v6e).
    h1 = pl.pallas_call(
        _layer1_kernel,
        out_shape=jax.ShapeDtypeStruct((B_pad, D_H1), jnp.float32),
        grid=(N_SPLIT,),
        in_specs=[
            pl.BlockSpec((B_pad, K_PAD), lambda j: (0, 0)),     # x: same block both steps
            pl.BlockSpec((K_PAD, H1_BLK), lambda j: (0, j)),    # W1 column half
            pl.BlockSpec((1, H1_BLK), lambda j: (0, j)),        # b1 half
        ],
        out_specs=pl.BlockSpec((B_pad, H1_BLK), lambda j: (0, j)),
        compiler_params=pltpu.CompilerParams(
            dimension_semantics=("parallel",),
            vmem_limit_bytes=32 << 20,   # ~13 MB actually used; safe on v5e/v6e/v7x
        ),
    )(x_p, params["w1"], params["b1"])

    # Stage 2: tiny tail, single VMEM-resident step (h1 round-trip ~0.5 MB).
    vmem = pl.BlockSpec(memory_space=pltpu.MemorySpace.VMEM)
    out = pl.pallas_call(
        _tail_kernel,
        out_shape=jax.ShapeDtypeStruct((B_pad, D_OUT), jnp.float32),
        in_specs=[vmem] * 9,
        out_specs=vmem,
        compiler_params=pltpu.CompilerParams(vmem_limit_bytes=32 << 20),
    )(h1, params["w2"], params["b2"], params["w3"], params["b3"],
      params["w4"], params["b4"], params["w5"], params["b5"])

    return out[:B]


def init_params(key):
    """Deterministic init mimicking nn.Linear's U(-1/sqrt(fan_in), 1/sqrt(fan_in)).

    Weights stored as (in_features, out_features) == PyTorch W.T, so y = x @ W + b.
    """
    dims = [(D_IN, D_H1), (D_H1, D_H2), (D_H2, D_H3), (D_H3, D_H4), (D_H4, D_OUT)]
    params = {}
    for i, (fin, fout) in enumerate(dims, start=1):
        key, kw, kb = jax.random.split(key, 3)
        bound = 1.0 / jnp.sqrt(jnp.float32(fin))
        params[f"w{i}"] = jax.random.uniform(kw, (fin, fout), jnp.float32,
                                             -bound, bound)
        params[f"b{i}"] = jax.random.uniform(kb, (1, fout), jnp.float32,
                                             -bound, bound)
    return params


def prepare_params(params):
    """One-time conversion to the kernel's on-device layout:
    W1 zero-padded along K to 8704 and stored bf16 (halves the dominant HBM
    stream, removes the per-call pad); W2/W3/W4 also bf16; W5 and biases f32."""
    q = dict(params)
    q["w1"] = jnp.pad(params["w1"],
                      ((0, K_PAD - D_IN), (0, 0))).astype(jnp.bfloat16)
    for name in ("w2", "w3", "w4"):
        q[name] = params[name].astype(jnp.bfloat16)
    return q


def _reference(x, p):
    """Pure-JAX reference mirroring the kernel's numerics (bf16 operands, f32 acc)."""
    hp = jax.lax.Precision.HIGHEST
    bf = lambda a: a.astype(jnp.bfloat16).astype(jnp.float32)
    h = jnp.maximum(jnp.dot(bf(x), bf(p["w1"]), precision=hp) + p["b1"], 0.0)
    h = jnp.maximum(jnp.dot(bf(h), bf(p["w2"]), precision=hp) + p["b2"], 0.0)
    h = jnp.tanh(jnp.dot(bf(h), bf(p["w3"]), precision=hp) + p["b3"])
    h = jnp.tanh(jnp.dot(bf(h), bf(p["w4"]), precision=hp) + p["b4"])
    return jax.nn.sigmoid(jnp.dot(h, p["w5"], precision=hp) + p["b5"])


if __name__ == "__main__":
    key = jax.random.PRNGKey(0)
    kx, kp = jax.random.split(key)
    B = 128                      # batch 128 per call (perf review: amortize W1 stream)
    x = jax.random.normal(kx, (B, D_IN), jnp.float32)
    params = init_params(kp)
    kernel_params = prepare_params(params)   # one-time: pad + bf16-cast weights

    out = jax.block_until_ready(discriminator_forward(x, kernel_params))

    ref = _reference(x, params)
    assert out.shape == (B, D_OUT)
    assert bool(jnp.all(jnp.isfinite(out)))
    assert jnp.allclose(out, ref, atol=3e-3, rtol=3e-3), "mismatch vs JAX reference"
    print("KERNEL_OK")
</pallas_src>

<mosaic_0001>
module attributes {stable_mosaic.version = 11 : i64} {
  func.func @_layer1_kernel(%arg0: i32, %arg1: memref<128x8704xbf16, #tpu.memory_space<vmem>>, %arg2: memref<8704x256xbf16, #tpu.memory_space<vmem>>, %arg3: memref<1x256xf32, #tpu.memory_space<vmem>>, %arg4: memref<128x256xf32, #tpu.memory_space<vmem>>) attributes {dimension_semantics = [#tpu.dimension_semantics<parallel>], iteration_bounds = array<i64: 2>, scalar_prefetch = 0 : i64, scratch_operands = 0 : i64, tpu.core_type = #tpu.core_type<tc>, window_params = [{pipeline_mode = #tpu.pipeline_mode<synchronous>, transform_indices = @transform_0, window_bounds = array<i64: 128, 8704>}, {transform_indices = @transform_1, window_bounds = array<i64: 8704, 256>}, {transform_indices = @transform_2, window_bounds = array<i64: 1, 256>}, {transform_indices = @transform_3, window_bounds = array<i64: 128, 256>}]} {
    %c0 = arith.constant 0 : index
    %c0_0 = arith.constant 0 : index
    %0 = vector.load %arg1[%c0, %c0_0] : memref<128x8704xbf16, #tpu.memory_space<vmem>>, vector<128x8704xbf16>
    %c0_1 = arith.constant 0 : index
    %c0_2 = arith.constant 0 : index
    %1 = vector.load %arg2[%c0_1, %c0_2] : memref<8704x256xbf16, #tpu.memory_space<vmem>>, vector<8704x256xbf16>
    %cst = arith.constant dense<0.000000e+00> : vector<128x256xf32>
    %2 = tpu.matmul %0, %1, %cst {dimension_numbers = #tpu.dot_dimension_numbers<[1], [0], [0], [1], [0, 0, 1, 1], [], []>} : vector<128x8704xbf16>, vector<8704x256xbf16>, vector<128x256xf32> -> vector<128x256xf32>
    %c0_3 = arith.constant 0 : index
    %c0_4 = arith.constant 0 : index
    %3 = vector.load %arg3[%c0_3, %c0_4] : memref<1x256xf32, #tpu.memory_space<vmem>>, vector<1x256xf32>
    %4 = vector.broadcast %3 : vector<1x256xf32> to vector<128x256xf32>
    %5 = arith.addf %2, %4 : vector<128x256xf32>
    %cst_5 = arith.constant 0.000000e+00 : f32
    %6 = vector.broadcast %cst_5 : f32 to vector<128x256xf32>
    %7 = arith.maximumf %5, %6 : vector<128x256xf32>
    %c0_6 = arith.constant 0 : index
    %c0_7 = arith.constant 0 : index
    %8 = vector.load %arg4[%c0_6, %c0_7] : memref<128x256xf32, #tpu.memory_space<vmem>>, vector<128x256xf32>
    tpu.vector_store %arg4[%c0_6, %c0_7], %7 {strides = array<i32>} : memref<128x256xf32, #tpu.memory_space<vmem>>, vector<128x256xf32>,
    return
  }
  func.func @transform_0(%arg0: i32) -> (i32, i32) {
    %c0_i32 = arith.constant 0 : i32
    %c0_i32_0 = arith.constant 0 : i32
    %c0_i32_1 = arith.constant 0 : i32
    return %c0_i32, %c0_i32_0 : i32, i32
  }
  func.func @transform_1(%arg0: i32) -> (i32, i32) {
    %c0_i32 = arith.constant 0 : i32
    %c0_i32_0 = arith.constant 0 : i32
    return %c0_i32, %arg0 : i32, i32
  }
  func.func @transform_2(%arg0: i32) -> (i32, i32) {
    %c0_i32 = arith.constant 0 : i32
    %c0_i32_0 = arith.constant 0 : i32
    return %c0_i32, %arg0 : i32, i32
  }
  func.func @transform_3(%arg0: i32) -> (i32, i32) {
    %c0_i32 = arith.constant 0 : i32
    %c0_i32_0 = arith.constant 0 : i32
    return %c0_i32, %arg0 : i32, i32
  }
}

module attributes {stable_mosaic.version = 11 : i64} {
  func.func @_tail_kernel(%arg0: memref<128x512xf32, #tpu.memory_space<vmem>>, %arg1: memref<512x256xbf16, #tpu.memory_space<vmem>>, %arg2: memref<1x256xf32, #tpu.memory_space<vmem>>, %arg3: memref<256x128xbf16, #tpu.memory_space<vmem>>, %arg4: memref<1x128xf32, #tpu.memory_space<vmem>>, %arg5: memref<128x32xbf16, #tpu.memory_space<vmem>>, %arg6: memref<1x32xf32, #tpu.memory_space<vmem>>, %arg7: memref<32x1xf32, #tpu.memory_space<vmem>>, %arg8: memref<1x1xf32, #tpu.memory_space<vmem>>, %arg9: memref<128x1xf32, #tpu.memory_space<vmem>>) attributes {dimension_semantics = [], scalar_prefetch = 0 : i64, scratch_operands = 0 : i64, tpu.core_type = #tpu.core_type<tc>} {
    %c0 = arith.constant 0 : index
    %c0_0 = arith.constant 0 : index
    %0 = vector.load %arg0[%c0, %c0_0] : memref<128x512xf32, #tpu.memory_space<vmem>>, vector<128x512xf32>
    %1 = arith.truncf %0 : vector<128x512xf32> to vector<128x512xbf16>
    %c0_1 = arith.constant 0 : index
    %c0_2 = arith.constant 0 : index
    %2 = vector.load %arg1[%c0_1, %c0_2] : memref<512x256xbf16, #tpu.memory_space<vmem>>, vector<512x256xbf16>
    %cst = arith.constant dense<0.000000e+00> : vector<128x256xf32>
    %3 = tpu.matmul %1, %2, %cst {dimension_numbers = #tpu.dot_dimension_numbers<[1], [0], [0], [1], [0, 0, 1, 1], [], []>} : vector<128x512xbf16>, vector<512x256xbf16>, vector<128x256xf32> -> vector<128x256xf32>
    %c0_3 = arith.constant 0 : index
    %c0_4 = arith.constant 0 : index
    %4 = vector.load %arg2[%c0_3, %c0_4] : memref<1x256xf32, #tpu.memory_space<vmem>>, vector<1x256xf32>
    %5 = vector.broadcast %4 : vector<1x256xf32> to vector<128x256xf32>
    %6 = arith.addf %3, %5 : vector<128x256xf32>
    %cst_5 = arith.constant 0.000000e+00 : f32
    %7 = vector.broadcast %cst_5 : f32 to vector<128x256xf32>
    %8 = arith.maximumf %6, %7 : vector<128x256xf32>
    %9 = arith.truncf %8 : vector<128x256xf32> to vector<128x256xbf16>
    %c0_6 = arith.constant 0 : index
    %c0_7 = arith.constant 0 : index
    %10 = vector.load %arg3[%c0_6, %c0_7] : memref<256x128xbf16, #tpu.memory_space<vmem>>, vector<256x128xbf16>
    %cst_8 = arith.constant dense<0.000000e+00> : vector<128x128xf32>
    %11 = tpu.matmul %9, %10, %cst_8 {dimension_numbers = #tpu.dot_dimension_numbers<[1], [0], [0], [1], [0, 0, 1, 1], [], []>} : vector<128x256xbf16>, vector<256x128xbf16>, vector<128x128xf32> -> vector<128x128xf32>
    %c0_9 = arith.constant 0 : index
    %c0_10 = arith.constant 0 : index
    %12 = vector.load %arg4[%c0_9, %c0_10] : memref<1x128xf32, #tpu.memory_space<vmem>>, vector<1x128xf32>
    %13 = vector.broadcast %12 : vector<1x128xf32> to vector<128x128xf32>
    %14 = arith.addf %11, %13 : vector<128x128xf32>
    %15 = math.tanh %14 : vector<128x128xf32>
    %16 = arith.truncf %15 : vector<128x128xf32> to vector<128x128xbf16>
    %c0_11 = arith.constant 0 : index
    %c0_12 = arith.constant 0 : index
    %17 = vector.load %arg5[%c0_11, %c0_12] : memref<128x32xbf16, #tpu.memory_space<vmem>>, vector<128x32xbf16>
    %cst_13 = arith.constant dense<0.000000e+00> : vector<128x32xf32>
    %18 = tpu.matmul %16, %17, %cst_13 {dimension_numbers = #tpu.dot_dimension_numbers<[1], [0], [0], [1], [0, 0, 1, 1], [], []>} : vector<128x128xbf16>, vector<128x32xbf16>, vector<128x32xf32> -> vector<128x32xf32>
    %c0_14 = arith.constant 0 : index
    %c0_15 = arith.constant 0 : index
    %19 = vector.load %arg6[%c0_14, %c0_15] : memref<1x32xf32, #tpu.memory_space<vmem>>, vector<1x32xf32>
    %20 = vector.broadcast %19 : vector<1x32xf32> to vector<128x32xf32>
    %21 = arith.addf %18, %20 : vector<128x32xf32>
    %22 = math.tanh %21 : vector<128x32xf32>
    %c0_16 = arith.constant 0 : index
    %c0_17 = arith.constant 0 : index
    %23 = vector.load %arg7[%c0_16, %c0_17] : memref<32x1xf32, #tpu.memory_space<vmem>>, vector<32x1xf32>
    %cst_18 = arith.constant dense<0.000000e+00> : vector<128x1xf32>
    %24 = tpu.matmul %22, %23, %cst_18 {dimension_numbers = #tpu.dot_dimension_numbers<[1], [0], [0], [1], [0, 0, 1, 1], [], []>} : vector<128x32xf32>, vector<32x1xf32>, vector<128x1xf32> -> vector<128x1xf32>
    %c0_19 = arith.constant 0 : index
    %c0_20 = arith.constant 0 : index
    %25 = vector.load %arg8[%c0_19, %c0_20] : memref<1x1xf32, #tpu.memory_space<vmem>>, vector<1x1xf32>
    %26 = vector.broadcast %25 : vector<1x1xf32> to vector<128x1xf32>
    %27 = arith.addf %24, %26 : vector<128x1xf32>
    %cst_21 = arith.constant 0.000000e+00 : f32
    %28 = vector.broadcast %cst_21 : f32 to vector<128x1xf32>
    %29 = arith.subf %28, %27 : vector<128x1xf32>
    %30 = math.exp %29 : vector<128x1xf32>
    %cst_22 = arith.constant 1.000000e+00 : f32
    %31 = vector.broadcast %cst_22 : f32 to vector<128x1xf32>
    %32 = arith.addf %31, %30 : vector<128x1xf32>
    %cst_23 = arith.constant 1.000000e+00 : f32
    %33 = vector.broadcast %cst_23 : f32 to vector<128x1xf32>
    %34 = arith.divf %33, %32 : vector<128x1xf32>
    %c0_24 = arith.constant 0 : index
    %c0_25 = arith.constant 0 : index
    %35 = vector.load %arg9[%c0_24, %c0_25] : memref<128x1xf32, #tpu.memory_space<vmem>>, vector<128x1xf32>
    tpu.vector_store %arg9[%c0_24, %c0_25], %34 {strides = array<i32>} : memref<128x1xf32, #tpu.memory_space<vmem>>, vector<128x1xf32>,
    return
  }
}

</mosaic_0001>

<bundles_post_ra>
// kernel: discriminator_forward.3
= control target key start
LH: loop header
LB: loop body
LE: loop exit
PB: predicated region body
PF: predicated region fallthrough
CT: control target
= control target key end

     0   :  { %vm1252_vm0 = vcmask 261120   ;;  %vm1542_vm1 = vcmask 7168   ;;  %s2854_s1 = inlined_call_operand.vmem [shape: bf16[512,256], index: 1, kind: input, shape index: {}]   ;;  %s2855_s0 = inlined_call_operand.vmem [shape: f32[128,512], index: 0, kind: input, shape index: {}]   ;;  %s2856_s3 = inlined_call_operand.vmem [shape: bf16[256,128], index: 3, kind: input, shape index: {}]   ;;  %s2857_s5 = inlined_call_operand.vmem [shape: bf16[128,32], index: 5, kind: input, shape index: {}]   ;;  %s2858_s2 = inlined_call_operand.vmem [shape: f32[1,256], index: 2, kind: input, shape index: {}]   ;;  %s2859_s4 = inlined_call_operand.vmem [shape: f32[1,128], index: 4, kind: input, shape index: {}]   ;;  %s2860_s7 = inlined_call_operand.vmem [shape: f32[32,1], index: 7, kind: input, shape index: {}]   ;;  %s2861_s8 = inlined_call_operand.<no memory space> [shape: f32[1,1], index: 8, kind: input, shape index: {}]   ;;  %s2862_s6 = inlined_call_operand.vmem [shape: f32[1,32], index: 6, kind: input, shape index: {}]   ;;  %s2863_s9 = inlined_call_operand.vmem [shape: f32[128,1], index: 9, kind: output, shape index: {}]  }
   0x1   :  { %v1906_v0 = vld [vmem:[%s2854_s1 + $0x4] ss:$8 sps:$4 sm:$0xff]   ;;  %v1908_v1 = vld [vmem:[%s2854_s1] ss:$8 sps:$4 sm:$0xff]   ;;  %v1909_v2 = vld [vmem:[%s2854_s1 + $0x14] ss:$8 sps:$4 sm:$0xff]  }
   0x2   :  { %527 = vmatprep.subr.bf16.mxu0 %v1906_v0  ;;  %v1911_v3 = vld [vmem:[%s2854_s1 + $0x10] ss:$8 sps:$4 sm:$0xff]   ;;  %v1912_v4 = vld [vmem:[%s2854_s1 + $0x24] ss:$8 sps:$4 sm:$0xff]   ;;  %v1914_v5 = vld [vmem:[%s2854_s1 + $0x20] ss:$8 sps:$4 sm:$0xff]  }
   0x3   :  { %528 = vmatpush1.bf16.msra.mxu0 %v1908_v1  ;;  %v1915_v6 = vld [vmem:[%s2854_s1 + $0x34] ss:$8 sps:$4 sm:$0xff]   ;;  %v1917_v7 = vld [vmem:[%s2854_s1 + $0x30] ss:$8 sps:$4 sm:$0xff]   ;;  %v1918_v8 = vld [vmem:[%s2854_s1 + $0x44] ss:$8 sps:$4 sm:$0xff]  }
   0x4   :  { %529 = vmatprep.subr.bf16.mxu0 %v1909_v2  ;;  %v1920_v9 = vld [vmem:[%s2854_s1 + $0x40] ss:$8 sps:$4 sm:$0xff]   ;;  %v1921_v10 = vld [vmem:[%s2854_s1 + $0x54] ss:$8 sps:$4 sm:$0xff]   ;;  %v1923_v11 = vld [vmem:[%s2854_s1 + $0x50] ss:$8 sps:$4 sm:$0xff]  }
   0x5   :  { %v1924_v12 = vld [vmem:[%s2854_s1 + $0x64] ss:$8 sps:$4 sm:$0xff]   ;;  %v1926_v16 = vld [vmem:[%s2854_s1 + $0x60] ss:$8 sps:$4 sm:$0xff]   ;;  %v1927_v17 = vld [vmem:[%s2854_s1 + $0x74] ss:$8 sps:$4 sm:$0xff]  }
   0x6   :  { %v36_v13 = vld [vmem:[%s2855_s0 + $0x8] sm:$0xff]  ;;  %v1929_v18 = vld [vmem:[%s2854_s1 + $0x70] ss:$8 sps:$4 sm:$0xff]   ;;  %v1933_v21 = vld [vmem:[%s2854_s1 + $0x94] ss:$8 sps:$4 sm:$0xff]  }
   0x7   :  { %530 = vmatpush1.bf16.msra.mxu0 %v1911_v3  ;;  %v40_v14 = vld [vmem:[%s2855_s0 + $0x28] sm:$0xff]  ;;  %v1935_v22 = vld [vmem:[%s2854_s1 + $0x90] ss:$8 sps:$4 sm:$0xff]   ;;  %v1939_v25 = vld [vmem:[%s2854_s1 + $0xb4] ss:$8 sps:$4 sm:$0xff]  }
   0x8   :  { %531 = vmatprep.subr.bf16.mxu0 %v1912_v4  ;;  %v100_v15 = vpack.c.bf16 %v40_v14, %v36_v13  ;;  %v1930_v19 = vld [vmem:[%s2854_s1 + $0x84] ss:$8 sps:$4 sm:$0xff]   ;;  %v1932_v20 = vld [vmem:[%s2854_s1 + $0x80] ss:$8 sps:$4 sm:$0xff]   ;;  %v1941_v26 = vld [vmem:[%s2854_s1 + $0xb0] ss:$8 sps:$4 sm:$0xff]  }
   0x9   :  { %v1936_v23 = vld [vmem:[%s2854_s1 + $0xa4] ss:$8 sps:$4 sm:$0xff]   ;;  %v1938_v24 = vld [vmem:[%s2854_s1 + $0xa0] ss:$8 sps:$4 sm:$0xff]   ;;  %v1945_v29 = vld [vmem:[%s2854_s1 + $0xd4] ss:$8 sps:$4 sm:$0xff]  }
   0xa   :  { %559 = vmatprep.mubr.bf16.mxu0 %v100_v15  ;;  %v1942_v27 = vld [vmem:[%s2854_s1 + $0xc4] ss:$8 sps:$4 sm:$0xff]   ;;  %v1944_v28 = vld [vmem:[%s2854_s1 + $0xc0] ss:$8 sps:$4 sm:$0xff]   ;;  %v1947_v30 = vld [vmem:[%s2854_s1 + $0xd0] ss:$8 sps:$4 sm:$0xff]  }
   0xb   :  { %532 = vmatpush1.bf16.msra.mxu0 %v1914_v5  ;;  %v1948_v31 = vld [vmem:[%s2854_s1 + $0xe4] ss:$8 sps:$4 sm:$0xff]   ;;  %v1950_v32 = vld [vmem:[%s2854_s1 + $0xe0] ss:$8 sps:$4 sm:$0xff]   ;;  %v1951_v33 = vld [vmem:[%s2854_s1 + $0xf4] ss:$8 sps:$4 sm:$0xff]  }
   0xc   :  { %533 = vmatprep.subr.bf16.mxu0 %v1915_v6  ;;  %v1953_v34 = vld [vmem:[%s2854_s1 + $0xf0] ss:$8 sps:$4 sm:$0xff]   ;;  %v35_v35 = vld [vmem:[%s2855_s0] sm:$0xff]  ;;  %v44_v38 = vld [vmem:[%s2855_s0 + $0x48] sm:$0xff] }
   0xd   :  { %v39_v36 = vld [vmem:[%s2855_s0 + $0x20] sm:$0xff]  ;;  %v48_v39 = vld [vmem:[%s2855_s0 + $0x68] sm:$0xff]  ;;  %v1959_v42 = vld [vmem:[%s2854_s1 + $0x114] ss:$8 sps:$4 sm:$0xff]  }
   0xe   :  { %v1956_v37 = vld [vmem:[%s2854_s1 + $0x104] ss:$8 sps:$4 sm:$0xff]   ;;  %v99_v40 = vpack.c.bf16 %v39_v36, %v35_v35  ;;  %v1954_v41 = vld [vmem:[%s2854_s1 + $0x100] ss:$8 sps:$4 sm:$0xff]   ;;  %v104_v43 = vpack.c.bf16 %v48_v39, %v44_v38  ;;  %v1957_v45 = vld [vmem:[%s2854_s1 + $0x110] ss:$8 sps:$4 sm:$0xff]  }
   0xf   :  { %534 = vmatpush1.bf16.msra.mxu0 %v1917_v7  ;;  %v2002_v44 = vld [vmem:[%s2856_s3 + $0x40] sm:$0xff]   ;;  %v52_v50 = vld [vmem:[%s2855_s0 + $0x88] sm:$0xff]  ;;  %v2006_v54 = vld [vmem:[%s2856_s3 + $0x50] sm:$0xff]  }
  0x10   :  { %535 = vmatprep.subr.bf16.mxu0 %v1918_v8  ;;  %v43_v46 = vld [vmem:[%s2855_s0 + $0x40] sm:$0xff]  ;;  %1670 = vmatprep.subr.bf16.mxu1 %v2002_v44  ;;  %v2004_v51 = vld [vmem:[%s2856_s3 + $0x48] sm:$0xff]   ;;  %v1965_v57 = vld [vmem:[%s2854_s1 + $0x134] ss:$8 sps:$4 sm:$0xff]  }
  0x11   :  { %v47_v47 = vld [vmem:[%s2855_s0 + $0x60] sm:$0xff]  ;;  %v56_v52 = vld [vmem:[%s2855_s0 + $0xa8] sm:$0xff]  ;;  %v2007_v59 = vld [vmem:[%s2856_s3 + $0x10] sm:$0xff]  }
  0x12   :  { %v2003_v48 = vld [vmem:[%s2856_s3] sm:$0xff]   ;;  %v2005_v53 = vld [vmem:[%s2856_s3 + $0x8] sm:$0xff]   ;;  %v103_v55 = vpack.c.bf16 %v47_v47, %v43_v46  ;;  %v108_v58 = vpack.c.bf16 %v56_v52, %v52_v50  ;;  %v1963_v60 = vld [vmem:[%s2854_s1 + $0x130] ss:$8 sps:$4 sm:$0xff]  }
  0x13   :  { %536 = vmatpush1.bf16.msra.mxu0 %v1920_v9  ;;  %v1962_v49 = vld [vmem:[%s2854_s1 + $0x124] ss:$8 sps:$4 sm:$0xff]   ;;  %1671 = vmatpush3.bf16.msra.mxu1 %v2003_v48  ;;  %v1960_v56 = vld [vmem:[%s2854_s1 + $0x120] ss:$8 sps:$4 sm:$0xff]   ;;  %v2008_v63 = vld [vmem:[%s2856_s3 + $0x58] sm:$0xff]  }
  0x14   :  { %537 = vmatprep.subr.bf16.mxu0 %v1921_v10  ;;  %1672 = vmatprep.subr.bf16.mxu1 %v2004_v51  ;;  %v51_v61 = vld [vmem:[%s2855_s0 + $0x80] sm:$0xff]  ;;  %v60_v1 = vld [vmem:[%s2855_s0 + $0xc8] sm:$0xff]  ;;  %v2009_v3 = vld [vmem:[%s2856_s3 + $0x18] sm:$0xff]  }
  0x15   :  { %v55_v62 = vld [vmem:[%s2855_s0 + $0xa0] sm:$0xff]  ;;  %v64_v2 = vld [vmem:[%s2855_s0 + $0xe8] sm:$0xff]  ;;  %v1971_v8 = vld [vmem:[%s2854_s1 + $0x154] ss:$8 sps:$4 sm:$0xff]  }
  0x16   :  { %v1968_v0 = vld [vmem:[%s2854_s1 + $0x144] ss:$8 sps:$4 sm:$0xff]   ;;  %v107_v5 = vpack.c.bf16 %v55_v62, %v51_v61  ;;  %v1966_v6 = vld [vmem:[%s2854_s1 + $0x140] ss:$8 sps:$4 sm:$0xff]   ;;  %v112_v7 = vpack.c.bf16 %v64_v2, %v60_v1  ;;  %v1995_v50 = vld [vmem:[%s2854_s1 + $0x1d4] ss:$8 sps:$4 sm:$0xff]  }
  0x17   :  { %538 = vmatpush1.bf16.msra.mxu0 %v1923_v11  ;;  %1673 = vmatpush3.bf16.msra.mxu1 %v2005_v53  ;;  %v2010_v4 = vld [vmem:[%s2856_s3 + $0x60] sm:$0xff]   ;;  %v2012_v10 = vld [vmem:[%s2856_s3 + $0x68] sm:$0xff]   ;;  %v1969_v11 = vld [vmem:[%s2854_s1 + $0x150] ss:$8 sps:$4 sm:$0xff]  }
  0x18   :  { %539 = vmatprep.subr.bf16.mxu0 %v1924_v12  ;;  %1674 = vmatprep.subr.bf16.mxu1 %v2006_v54  ;;  %v2011_v9 = vld [vmem:[%s2856_s3 + $0x20] sm:$0xff]   ;;  %v68_v15 = vld [vmem:[%s2855_s0 + $0x108] sm:$0xff]  ;;  %v1993_v51 = vld [vmem:[%s2854_s1 + $0x1d0] ss:$8 sps:$4 sm:$0xff]  }
  0x19   :  { %v59_v12 = vld [vmem:[%s2855_s0 + $0xc0] sm:$0xff]  ;;  %v84_v35 = vld [vmem:[%s2855_s0 + $0x188] sm:$0xff]  ;;  %v1999_v61 = vld [vmem:[%s2854_s1 + $0x1f0] ss:$8 sps:$4 sm:$0xff]  }
  0x1a   :  { %v63_v13 = vld [vmem:[%s2855_s0 + $0xe0] sm:$0xff]  ;;  %v88_v36 = vld [vmem:[%s2855_s0 + $0x1a8] sm:$0xff]  ;;  %v37_v62 = vld [vmem:[%s2855_s0 + $0x10] sm:$0xff] }
  0x1b   :  { %540 = vmatpush1.bf16.msra.mxu0 %v1926_v16  ;;  %1675 = vmatpush3.bf16.msra.mxu1 %v2007_v59  ;;  %v1974_v14 = vld [vmem:[%s2854_s1 + $0x164] ss:$8 sps:$4 sm:$0xff]   ;;  %v1984_v38 = vld [vmem:[%s2854_s1 + $0x1a0] ss:$8 sps:$4 sm:$0xff]   ;;  %v124_v39 = vpack.c.bf16 %v88_v36, %v84_v35  ;;  %v50_v1 = vld [vmem:[%s2855_s0 + $0x78] sm:$0xff] }
  0x1c   :  { %541 = vmatprep.subr.bf16.mxu0 %v1927_v17  ;;  %1676 = vmatprep.subr.bf16.mxu1 %v2008_v63  ;;  %v72_v16 = vld [vmem:[%s2855_s0 + $0x128] sm:$0xff]  ;;  %v111_v17 = vpack.c.bf16 %v63_v13, %v59_v12  ;;  %v91_v52 = vld [vmem:[%s2855_s0 + $0x1c0] sm:$0xff]  ;;  %v41_v63 = vld [vmem:[%s2855_s0 + $0x30] sm:$0xff] }
  0x1d   :  { %v1992_v44 = vld [vmem:[%s2854_s1 + $0x1c4] ss:$8 sps:$4 sm:$0xff]   ;;  %v1990_v48 = vld [vmem:[%s2854_s1 + $0x1c0] ss:$8 sps:$4 sm:$0xff]   ;;  %v101_v2 = vpack.c.bf16 %v41_v63, %v37_v62  ;;  %v62_v12 = vld [vmem:[%s2855_s0 + $0xd8] sm:$0xff] }
  0x1e   :  { %v96_v46 = vld [vmem:[%s2855_s0 + $0x1e8] sm:$0xff]  ;;  %v95_v53 = vld [vmem:[%s2855_s0 + $0x1e0] sm:$0xff]  ;;  %v66_v13 = vld [vmem:[%s2855_s0 + $0xf8] sm:$0xff] }
  0x1f   :  { %542 = vmatpush1.bf16.msra.mxu0 %v1929_v18  ;;  %1677 = vmatpush3.bf16.msra.mxu1 %v2009_v3  ;;  %v1972_v18 = vld [vmem:[%s2854_s1 + $0x160] ss:$8 sps:$4 sm:$0xff]   ;;  %v1998_v54 = vld [vmem:[%s2854_s1 + $0x1e4] ss:$8 sps:$4 sm:$0xff]   ;;  %v89_v35 = vld [vmem:[%s2855_s0 + $0x1b0] sm:$0xff] }
  0x20   :  { %543 = vmatprep.subr.bf16.mxu0 %v1930_v19  ;;  %1678 = vmatprep.subr.bf16.mxu1 %v2010_v4  ;;  %v116_v19 = vpack.c.bf16 %v72_v16, %v68_v15  ;;  %v45_v4 = vld [vmem:[%s2855_s0 + $0x50] sm:$0xff]  ;;  %v114_v15 = vpack.c.bf16 %v66_v13, %v62_v12  ;;  %v94_v36 = vld [vmem:[%s2855_s0 + $0x1d8] sm:$0xff] }
  0x21   :  { %v61_v16 = vld [vmem:[%s2855_s0 + $0xd0] sm:$0xff] }
  0x23   :  { %544 = vmatpush1.bf16.msra.mxu0 %v1932_v20  ;;  %1679 = vmatpush3.bf16.msra.mxu1 %v2011_v9  ;;  %v1977_v20 = vld [vmem:[%s2854_s1 + $0x174] ss:$8 sps:$4 sm:$0xff]  }
  0x24   :  { %545 = vmatprep.subr.bf16.mxu0 %v1933_v21  ;;  %1680 = vmatprep.subr.bf16.mxu1 %v2012_v10  ;;  %v1975_v21 = vld [vmem:[%s2854_s1 + $0x170] ss:$8 sps:$4 sm:$0xff]  }
  0x25   :  { %v53_v10 = vld [vmem:[%s2855_s0 + $0x90] sm:$0xff] }
  0x27   :  { %546 = vmatpush1.bf16.msra.mxu0 %v1935_v22  ;;  %v67_v22 = vld [vmem:[%s2855_s0 + $0x100] sm:$0xff] }
  0x28   :  { %547 = vmatprep.subr.bf16.mxu0 %v1936_v23  ;;  %v71_v23 = vld [vmem:[%s2855_s0 + $0x120] sm:$0xff] }
  0x2b   :  { %548 = vmatpush1.bf16.msra.mxu0 %v1938_v24  ;;  %v1980_v24 = vld [vmem:[%s2854_s1 + $0x184] ss:$8 sps:$4 sm:$0xff]  }
  0x2c   :  { %549 = vmatprep.subr.bf16.mxu0 %v1939_v25  ;;  %v76_v25 = vld [vmem:[%s2855_s0 + $0x148] sm:$0xff] }
  0x2f   :  { %550 = vmatpush1.bf16.msra.mxu0 %v1941_v26  ;;  %v80_v26 = vld [vmem:[%s2855_s0 + $0x168] sm:$0xff] }
  0x30   :  { %551 = vmatprep.subr.bf16.mxu0 %v1942_v27  ;;  %v115_v27 = vpack.c.bf16 %v71_v23, %v67_v22  ;;  %v69_v22 = vld [vmem:[%s2855_s0 + $0x110] sm:$0xff] }
  0x31   :  { %v73_v23 = vld [vmem:[%s2855_s0 + $0x130] sm:$0xff] }
  0x33   :  { %552 = vmatpush1.bf16.msra.mxu0 %v1944_v28  ;;  %v1978_v28 = vld [vmem:[%s2854_s1 + $0x180] ss:$8 sps:$4 sm:$0xff]  }
  0x34   :  { %553 = vmatprep.subr.bf16.mxu0 %v1945_v29  ;;  %v120_v29 = vpack.c.bf16 %v80_v26, %v76_v25  ;;  %v82_v25 = vld [vmem:[%s2855_s0 + $0x178] sm:$0xff]  ;;  %v117_v26 = vpack.c.bf16 %v73_v23, %v69_v22 }
  0x37   :  { %554 = vmatpush1.bf16.msra.mxu0 %v1947_v30  ;;  %v1983_v30 = vld [vmem:[%s2854_s1 + $0x194] ss:$8 sps:$4 sm:$0xff]  }
  0x38   :  { %555 = vmatprep.subr.bf16.mxu0 %v1948_v31  ;;  %v1981_v31 = vld [vmem:[%s2854_s1 + $0x190] ss:$8 sps:$4 sm:$0xff]  }
  0x3b   :  { %556 = vmatpush1.bf16.msra.mxu0 %v1950_v32  ;;  %v75_v32 = vld [vmem:[%s2855_s0 + $0x140] sm:$0xff] }
  0x3c   :  { %557 = vmatprep.subr.bf16.mxu0 %v1951_v33  ;;  %v79_v33 = vld [vmem:[%s2855_s0 + $0x160] sm:$0xff] }
  0x3f   :  { %558 = vmatpush1.bf16.msra.mxu0 %v1953_v34  ;;  %v1986_v34 = vld [vmem:[%s2854_s1 + $0x1a4] ss:$8 sps:$4 sm:$0xff]  }
  0x40   :  { %640 = vmatprep.subr.bf16.mxu0 %v1956_v37  ;;  %v119_v37 = vpack.c.bf16 %v79_v33, %v75_v32 }
  0x42   :  { %560 = vmatmul.mubr.bf16.vlgmr.msra.gmra.mrb[0].mxu0 %v99_v40  ;;  %v1989_v40 = vld [vmem:[%s2854_s1 + $0x1b4] ss:$8 sps:$4 sm:$0xff]  }
  0x43   :  { %641 = vmatpush1.bf16.msra.mxu0 %v1954_v41  ;;  %569 = vmatprep.mubr.bf16.mxu0 %v104_v43  ;;  %v1987_v41 = vld [vmem:[%s2854_s1 + $0x1b0] ss:$8 sps:$4 sm:$0xff]   ;;  %v87_v43 = vld [vmem:[%s2855_s0 + $0x1a0] sm:$0xff] }
  0x44   :  { %642 = vmatprep.subr.bf16.mxu0 %v1959_v42  ;;  %v83_v42 = vld [vmem:[%s2855_s0 + $0x180] sm:$0xff] }
  0x45   :  { %v123_v47 = vpack.c.bf16 %v87_v43, %v83_v42  ;;  %v2013_v43 = vld [vmem:[%s2856_s3 + $0x28] sm:$0xff]  }
  0x46   :  { %1681 = vmatpush3.bf16.msra.mxu1 %v2013_v43 }
  0x47   :  { %643 = vmatpush1.bf16.msra.mxu0 %v1957_v45  ;;  %v92_v45 = vld [vmem:[%s2855_s0 + $0x1c8] sm:$0xff] }
  0x48   :  { %644 = vmatprep.subr.bf16.mxu0 %v1962_v49  ;;  %v128_v49 = vpack.c.bf16 %v96_v46, %v92_v45  ;;  %v2015_v45 = vld [vmem:[%s2856_s3 + $0x30] sm:$0xff]   ;;  %v2016_v46 = vld [vmem:[%s2856_s3 + $0x78] sm:$0xff]  }
  0x4a   :  { %570 = vmatmul.mubr.bf16.gmra.mrb[4].mxu0 %v103_v55  ;;  %v38_v55 = vld [vmem:[%s2855_s0 + $0x18] sm:$0xff] }
  0x4b   :  { %645 = vmatpush1.bf16.msra.mxu0 %v1960_v56  ;;  %579 = vmatprep.mubr.bf16.mxu0 %v108_v58  ;;  %v42_v56 = vld [vmem:[%s2855_s0 + $0x38] sm:$0xff]  ;;  %v1996_v58 = vld [vmem:[%s2854_s1 + $0x1e0] ss:$8 sps:$4 sm:$0xff]  }
  0x4c   :  { %646 = vmatprep.subr.bf16.mxu0 %v1965_v57  ;;  %v127_v57 = vpack.c.bf16 %v95_v53, %v91_v52  ;;  %v102_v59 = vpack.c.bf16 %v42_v56, %v38_v55  ;;  %v195_v52 = vld [vmem:[%s2858_s2] sm:$0x3] }
  0x4f   :  { %647 = vmatpush1.bf16.msra.mxu0 %v1963_v60  ;;  %v2001_v60 = vld [vmem:[%s2854_s1 + $0x1f4] ss:$8 sps:$4 sm:$0xff]  }
  0x50   :  { %648 = vmatprep.subr.bf16.mxu0 %v1968_v0  ;;  %v46_v0 = vld [vmem:[%s2855_s0 + $0x58] sm:$0xff] }
  0x51   :  { %v106_v3 = vpack.c.bf16 %v50_v1, %v46_v0 }
  0x52   :  { %580 = vmatmul.mubr.bf16.gmra.mrb[8].mxu0 %v107_v5  ;;  %v49_v5 = vld [vmem:[%s2855_s0 + $0x70] sm:$0xff] }
  0x53   :  { %649 = vmatpush1.bf16.msra.mxu0 %v1966_v6  ;;  %589 = vmatprep.mubr.bf16.mxu0 %v112_v7  ;;  %v54_v6 = vld [vmem:[%s2855_s0 + $0x98] sm:$0xff] }
  0x54   :  { %650 = vmatprep.subr.bf16.mxu0 %v1971_v8  ;;  %v58_v7 = vld [vmem:[%s2855_s0 + $0xb8] sm:$0xff]  ;;  %v105_v8 = vpack.c.bf16 %v49_v5, %v45_v4 }
  0x55   :  { %v110_v9 = vpack.c.bf16 %v58_v7, %v54_v6 }
  0x57   :  { %651 = vmatpush1.bf16.msra.mxu0 %v1969_v11  ;;  %v57_v11 = vld [vmem:[%s2855_s0 + $0xb0] sm:$0xff] }
  0x58   :  { %652 = vmatprep.subr.bf16.mxu0 %v1974_v14  ;;  %v109_v14 = vpack.c.bf16 %v57_v11, %v53_v10 }
  0x5a   :  { %590 = vmatmul.mubr.bf16.gmra.mrb[12].mxu0 %v111_v17  ;;  %v65_v17 = vld [vmem:[%s2855_s0 + $0xf0] sm:$0xff] }
  0x5b   :  { %653 = vmatpush1.bf16.msra.mxu0 %v1972_v18  ;;  %599 = vmatprep.mubr.bf16.mxu0 %v116_v19  ;;  %v70_v18 = vld [vmem:[%s2855_s0 + $0x118] sm:$0xff] }
  0x5c   :  { %654 = vmatprep.subr.bf16.mxu0 %v1977_v20  ;;  %v74_v19 = vld [vmem:[%s2855_s0 + $0x138] sm:$0xff]  ;;  %v113_v20 = vpack.c.bf16 %v65_v17, %v61_v16 }
  0x5f   :  { %655 = vmatpush1.bf16.msra.mxu0 %v1975_v21  ;;  %v118_v21 = vpack.c.bf16 %v74_v19, %v70_v18 }
  0x60   :  { %656 = vmatprep.subr.bf16.mxu0 %v1980_v24  ;;  %v78_v24 = vld [vmem:[%s2855_s0 + $0x158] sm:$0xff] }
  0x62   :  { %600 = vmatmul.mubr.bf16.gmra.mrb[16].mxu0 %v115_v27  ;;  %v122_v27 = vpack.c.bf16 %v82_v25, %v78_v24 }
  0x63   :  { %657 = vmatpush1.bf16.msra.mxu0 %v1978_v28  ;;  %609 = vmatprep.mubr.bf16.mxu0 %v120_v29  ;;  %v77_v28 = vld [vmem:[%s2855_s0 + $0x150] sm:$0xff] }
  0x64   :  { %658 = vmatprep.subr.bf16.mxu0 %v1983_v30  ;;  %v81_v29 = vld [vmem:[%s2855_s0 + $0x170] sm:$0xff]  ;;  %v86_v30 = vld [vmem:[%s2855_s0 + $0x198] sm:$0xff] }
  0x65   :  { %v121_v32 = vpack.c.bf16 %v81_v29, %v77_v28 }
  0x67   :  { %659 = vmatpush1.bf16.msra.mxu0 %v1981_v31  ;;  %v90_v31 = vld [vmem:[%s2855_s0 + $0x1b8] sm:$0xff] }
  0x68   :  { %660 = vmatprep.subr.bf16.mxu0 %v1986_v34  ;;  %v126_v33 = vpack.c.bf16 %v90_v31, %v86_v30  ;;  %v85_v34 = vld [vmem:[%s2855_s0 + $0x190] sm:$0xff] }
  0x6a   :  { %610 = vmatmul.mubr.bf16.gmra.mrb[20].mxu0 %v119_v37  ;;  %v98_v37 = vld [vmem:[%s2855_s0 + $0x1f8] sm:$0xff] }
  0x6b   :  { %661 = vmatpush1.bf16.msra.mxu0 %v1984_v38  ;;  %619 = vmatprep.mubr.bf16.mxu0 %v124_v39  ;;  %v125_v38 = vpack.c.bf16 %v89_v35, %v85_v34  ;;  %v130_v39 = vpack.c.bf16 %v98_v37, %v94_v36 }
  0x6c   :  { %662 = vmatprep.subr.bf16.mxu0 %v1989_v40  ;;  %v93_v40 = vld [vmem:[%s2855_s0 + $0x1d0] sm:$0xff] }
  0x6f   :  { %663 = vmatpush1.bf16.msra.mxu0 %v1987_v41  ;;  %v97_v41 = vld [vmem:[%s2855_s0 + $0x1f0] sm:$0xff] }
  0x70   :  { %664 = vmatprep.subr.bf16.mxu0 %v1992_v44  ;;  %v129_v42 = vpack.c.bf16 %v97_v41, %v93_v40  ;;  %v2014_v44 = vld [vmem:[%s2856_s3 + $0x70] sm:$0xff]  }
  0x71   :  { %1682 = vmatprep.subr.bf16.mxu1 %v2014_v44 }
  0x72   :  { %620 = vmatmul.mubr.bf16.gmra.mrb[24].mxu0 %v123_v47  ;;  %1683 = vmatpush3.bf16.msra.mxu1 %v2015_v45  ;;  %v2017_v47 = vld [vmem:[%s2856_s3 + $0x38] sm:$0xff]  }
  0x73   :  { %665 = vmatpush1.bf16.msra.mxu0 %v1990_v48  ;;  %629 = vmatprep.mubr.bf16.mxu0 %v128_v49  ;;  %v2018_v48 = vld [vmem:[%s2857_s5] sm:$0xff]   ;;  %v197_v49 = vlaneseq }
  0x74   :  { %666 = vmatprep.subr.bf16.mxu0 %v1995_v50  ;;  %1684 = vmatprep.subr.bf16.mxu1 %v2016_v46 }
  0x75   :  { %v198_v50 = vshrl.u32 %v197_v49, 7 }
  0x76   :  { %1685 = vmatpush3.bf16.msra.mxu1 %v2017_v47 }
  0x77   :  { %667 = vmatpush1.bf16.msra.mxu0 %v1993_v51  ;;  %1770 = vmatprep.subr.bf16.mxu1 %v2018_v48  ;;  %v199_v51 = vsub.s32 0, %v198_v50  ;;  %v203_v53 = vsub.s32 1, %v198_v50 }
  0x78   :  { %668 = vmatprep.subr.bf16.mxu0 %v1998_v54 }
  0x79   :  { %v2642_v54 = vrot.slane %v195_v52, %v199_v51  ;;  %v2644_v55 = vrot.slane %v195_v52, %v203_v53 }
  0x7a   :  { %630 = vmatmul.mubr.bf16.gmra.mrb[28].mxu0 %v127_v57 }
  0x7b   :  { %669 = vmatpush1.bf16.msra.mxu0 %v1996_v58  ;;  %672 = vmatprep.mubr.bf16.mxu0 %v102_v59 }
  0x7c   :  { %670 = vmatprep.subr.bf16.mxu0 %v2001_v60 }
  0x7f   :  { %671 = vmatpush1.bf16.msra.mxu0 %v1999_v61 }
  0x82   :  { %673 = vmatmul.mubr.bf16.vlgmr.msra.gmra.mrb[0].mxu0 %v101_v2 }
  0x83   :  { %682 = vmatprep.mubr.bf16.mxu0 %v106_v3 }
  0x8a   :  { %683 = vmatmul.mubr.bf16.gmra.mrb[4].mxu0 %v105_v8 }
  0x8b   :  { %692 = vmatprep.mubr.bf16.mxu0 %v110_v9  ;;  %v2019_v9 = vld [vmem:[%s2857_s5 + $0x8] sm:$0xff]  }
  0x92   :  { %693 = vmatmul.mubr.bf16.gmra.mrb[8].mxu0 %v109_v14 }
  0x93   :  { %702 = vmatprep.mubr.bf16.mxu0 %v114_v15 }
  0x9a   :  { %703 = vmatmul.mubr.bf16.gmra.mrb[12].mxu0 %v113_v20 }
  0x9b   :  { %712 = vmatprep.mubr.bf16.mxu0 %v118_v21 }
  0xa2   :  { %713 = vmatmul.mubr.bf16.gmra.mrb[16].mxu0 %v117_v26 }
  0xa3   :  { %722 = vmatprep.mubr.bf16.mxu0 %v122_v27 }
  0xaa   :  { %723 = vmatmul.mubr.bf16.gmra.mrb[20].mxu0 %v121_v32 }
  0xab   :  { %732 = vmatprep.mubr.bf16.mxu0 %v126_v33 }
  0xb2   :  { %733 = vmatmul.mubr.bf16.gmra.mrb[24].mxu0 %v125_v38 }
  0xb3   :  { %742 = vmatprep.mubr.bf16.mxu0 %v130_v39 }
  0xba   :  { %743 = vmatmul.mubr.bf16.gmra.mrb[28].mxu0 %v129_v42 }
 0x155   :  { %v674_v56 = vpop.f32.mrb[0].mxu0 }
 0x156   :  { %v1842_v57 = vadd.f32 %v674_v56, %v2642_v54  ;;  %v676_v58 = vpop.f32.mrb[1].mxu0 }
 0x157   :  { %v1843_v59 = vadd.f32 %v676_v58, %v2644_v55  ;;  %v678_v60 = vpop.f32.mrb[2].mxu0 }
 0x158   :  { %v1844_v61 = vadd.f32 %v678_v60, %v2642_v54  ;;  %v680_v62 = vpop.f32.mrb[3].mxu0  ;;  %v753_v0 = vmax.f32 %v1842_v57, 0.0 }
 0x159   :  { %v1845_v63 = vadd.f32 %v680_v62, %v2644_v55  ;;  %v754_v2 = vmax.f32 %v1843_v59, 0.0 }
 0x15a   :  { %v755_v1 = vmax.f32 %v1844_v61, 0.0 }
 0x15b   :  { %v756_v3 = vmax.f32 %v1845_v63, 0.0 }
 0x15c   :  { %v785_v4 = vpack.c.bf16 %v755_v1, %v753_v0 }
 0x15d   :  { %v684_v5 = vpop.f32.mrb[4].mxu0  ;;  %v786_v6 = vpack.c.bf16 %v756_v3, %v754_v2 }
 0x15e   :  { %v1846_v7 = vadd.f32 %v684_v5, %v2642_v54  ;;  %v686_v8 = vpop.f32.mrb[5].mxu0 }
 0x15f   :  { %v1847_v10 = vadd.f32 %v686_v8, %v2644_v55  ;;  %v688_v11 = vpop.f32.mrb[6].mxu0  ;;  %968 = vmatprep.mubr.bf16.mxu1 %v786_v6 }
 0x160   :  { %v1848_v12 = vadd.f32 %v688_v11, %v2642_v54  ;;  %v690_v13 = vpop.f32.mrb[7].mxu0  ;;  %969 = vmatmul.mubr.bf16.vlgmr.msra.gmra.mrb[0].mxu1 %v785_v4  ;;  %v757_v15 = vmax.f32 %v1846_v7, 0.0 }
 0x161   :  { %v1849_v14 = vadd.f32 %v690_v13, %v2644_v55  ;;  %1771 = vmatpush3.bf16.msra.mxu1 %v2018_v48  ;;  %v758_v17 = vmax.f32 %v1847_v10, 0.0 }
 0x162   :  { %v759_v16 = vmax.f32 %v1848_v12, 0.0  ;;  %1772 = vmatprep.subr.bf16.mxu1 %v2019_v9 }
 0x163   :  { %v760_v18 = vmax.f32 %v1849_v14, 0.0 }
 0x164   :  { %v787_v19 = vpack.c.bf16 %v759_v16, %v757_v15 }
 0x165   :  { %v788_v20 = vpack.c.bf16 %v760_v18, %v758_v17  ;;  %v694_v21 = vpop.f32.mrb[8].mxu0  ;;  %1773 = vmatpush3.bf16.msra.mxu1 %v2019_v9 }
 0x166   :  { %v1850_v22 = vadd.f32 %v694_v21, %v2642_v54  ;;  %v696_v23 = vpop.f32.mrb[9].mxu0 }
 0x167   :  { %v1851_v24 = vadd.f32 %v696_v23, %v2644_v55  ;;  %v698_v25 = vpop.f32.mrb[10].mxu0  ;;  %976 = vmatprep.mubr.bf16.mxu1 %v788_v20 }
 0x168   :  { %v1852_v26 = vadd.f32 %v698_v25, %v2642_v54  ;;  %v700_v27 = vpop.f32.mrb[11].mxu0  ;;  %977 = vmatmul.mubr.bf16.gmra.mrb[4].mxu1 %v787_v19  ;;  %v761_v29 = vmax.f32 %v1850_v22, 0.0 }
 0x169   :  { %v1853_v28 = vadd.f32 %v700_v27, %v2644_v55  ;;  %v762_v31 = vmax.f32 %v1851_v24, 0.0 }
 0x16a   :  { %v763_v30 = vmax.f32 %v1852_v26, 0.0 }
 0x16b   :  { %v764_v32 = vmax.f32 %v1853_v28, 0.0 }
 0x16c   :  { %v789_v33 = vpack.c.bf16 %v763_v30, %v761_v29 }
 0x16d   :  { %v790_v34 = vpack.c.bf16 %v764_v32, %v762_v31  ;;  %v704_v35 = vpop.f32.mrb[12].mxu0 }
 0x16e   :  { %v1854_v36 = vadd.f32 %v704_v35, %v2642_v54  ;;  %v706_v37 = vpop.f32.mrb[13].mxu0 }
 0x16f   :  { %v1855_v38 = vadd.f32 %v706_v37, %v2644_v55  ;;  %v708_v39 = vpop.f32.mrb[14].mxu0  ;;  %984 = vmatprep.mubr.bf16.mxu1 %v790_v34 }
 0x170   :  { %v1856_v40 = vadd.f32 %v708_v39, %v2642_v54  ;;  %v710_v41 = vpop.f32.mrb[15].mxu0  ;;  %985 = vmatmul.mubr.bf16.gmra.mrb[8].mxu1 %v789_v33  ;;  %v765_v43 = vmax.f32 %v1854_v36, 0.0 }
 0x171   :  { %v1857_v42 = vadd.f32 %v710_v41, %v2644_v55  ;;  %v766_v45 = vmax.f32 %v1855_v38, 0.0 }
 0x172   :  { %v767_v44 = vmax.f32 %v1856_v40, 0.0 }
 0x173   :  { %v768_v46 = vmax.f32 %v1857_v42, 0.0 }
 0x174   :  { %v791_v47 = vpack.c.bf16 %v767_v44, %v765_v43  ;;  %v2020_v43 = vld [vmem:[%s2857_s5 + $0x10] sm:$0xff]   ;;  %v2023_v44 = vld [vmem:[%s2857_s5 + $0x28] sm:$0xff]  }
 0x175   :  { %v792_v48 = vpack.c.bf16 %v768_v46, %v766_v45  ;;  %v714_v49 = vpop.f32.mrb[16].mxu0  ;;  %1774 = vmatprep.subr.bf16.mxu1 %v2020_v43  ;;  %v2024_v45 = vld [vmem:[%s2857_s5 + $0x30] sm:$0xff]   ;;  %v2025_v46 = vld [vmem:[%s2857_s5 + $0x38] sm:$0xff]  }
 0x176   :  { %v1858_v50 = vadd.f32 %v714_v49, %v2642_v54  ;;  %v716_v51 = vpop.f32.mrb[17].mxu0  ;;  %1775 = vmatpush3.bf16.msra.mxu1 %v2020_v43 }
 0x177   :  { %v1859_v52 = vadd.f32 %v716_v51, %v2644_v55  ;;  %v718_v53 = vpop.f32.mrb[18].mxu0  ;;  %992 = vmatprep.mubr.bf16.mxu1 %v792_v48  ;;  %v2702_v48 = vld [vmem:[%s2859_s4] ss:$0 sm:$0xff] }
 0x178   :  { %v1860_v56 = vadd.f32 %v718_v53, %v2642_v54  ;;  %v720_v57 = vpop.f32.mrb[19].mxu0  ;;  %993 = vmatmul.mubr.bf16.gmra.mrb[12].mxu1 %v791_v47  ;;  %v769_v59 = vmax.f32 %v1858_v50, 0.0 }
 0x179   :  { %v1861_v58 = vadd.f32 %v720_v57, %v2644_v55  ;;  %v770_v61 = vmax.f32 %v1859_v52, 0.0 }
 0x17a   :  { %v771_v60 = vmax.f32 %v1860_v56, 0.0 }
 0x17b   :  { %v772_v62 = vmax.f32 %v1861_v58, 0.0 }
 0x17c   :  { %v793_v63 = vpack.c.bf16 %v771_v60, %v769_v59 }
 0x17d   :  { %v794_v0 = vpack.c.bf16 %v772_v62, %v770_v61  ;;  %v724_v1 = vpop.f32.mrb[20].mxu0 }
 0x17e   :  { %v1862_v2 = vadd.f32 %v724_v1, %v2642_v54  ;;  %v726_v3 = vpop.f32.mrb[21].mxu0 }
 0x17f   :  { %v1863_v4 = vadd.f32 %v726_v3, %v2644_v55  ;;  %v728_v5 = vpop.f32.mrb[22].mxu0  ;;  %1000 = vmatprep.mubr.bf16.mxu1 %v794_v0 }
 0x180   :  { %v1864_v6 = vadd.f32 %v728_v5, %v2642_v54  ;;  %v730_v7 = vpop.f32.mrb[23].mxu0  ;;  %1001 = vmatmul.mubr.bf16.gmra.mrb[16].mxu1 %v793_v63  ;;  %v773_v9 = vmax.f32 %v1862_v2, 0.0 }
 0x181   :  { %v1865_v8 = vadd.f32 %v730_v7, %v2644_v55  ;;  %v774_v11 = vmax.f32 %v1863_v4, 0.0 }
 0x182   :  { %v775_v10 = vmax.f32 %v1864_v6, 0.0 }
 0x183   :  { %v776_v12 = vmax.f32 %v1865_v8, 0.0 }
 0x184   :  { %v795_v13 = vpack.c.bf16 %v775_v10, %v773_v9 }
 0x185   :  { %v796_v14 = vpack.c.bf16 %v776_v12, %v774_v11  ;;  %v734_v15 = vpop.f32.mrb[24].mxu0 }
 0x186   :  { %v1866_v16 = vadd.f32 %v734_v15, %v2642_v54  ;;  %v736_v17 = vpop.f32.mrb[25].mxu0 }
 0x187   :  { %v1867_v18 = vadd.f32 %v736_v17, %v2644_v55  ;;  %v738_v19 = vpop.f32.mrb[26].mxu0  ;;  %1008 = vmatprep.mubr.bf16.mxu1 %v796_v14 }
 0x188   :  { %v1868_v20 = vadd.f32 %v738_v19, %v2642_v54  ;;  %v740_v21 = vpop.f32.mrb[27].mxu0  ;;  %1009 = vmatmul.mubr.bf16.gmra.mrb[20].mxu1 %v795_v13  ;;  %v777_v23 = vmax.f32 %v1866_v16, 0.0 }
 0x189   :  { %v1869_v22 = vadd.f32 %v740_v21, %v2644_v55  ;;  %v778_v25 = vmax.f32 %v1867_v18, 0.0 }
 0x18a   :  { %v779_v24 = vmax.f32 %v1868_v20, 0.0 }
 0x18b   :  { %v780_v26 = vmax.f32 %v1869_v22, 0.0 }
 0x18c   :  { %v797_v27 = vpack.c.bf16 %v779_v24, %v777_v23 }
 0x18d   :  { %v798_v28 = vpack.c.bf16 %v780_v26, %v778_v25  ;;  %v744_v29 = vpop.f32.mrb[28].mxu0 }
 0x18e   :  { %v1870_v30 = vadd.f32 %v744_v29, %v2642_v54  ;;  %v746_v31 = vpop.f32.mrb[29].mxu0 }
 0x18f   :  { %v1871_v32 = vadd.f32 %v746_v31, %v2644_v55  ;;  %v748_v33 = vpop.f32.mrb[30].mxu0  ;;  %1016 = vmatprep.mubr.bf16.mxu1 %v798_v28 }
 0x190   :  { %v1872_v34 = vadd.f32 %v748_v33, %v2642_v54  ;;  %v750_v35 = vpop.f32.mrb[31].mxu0  ;;  %1017 = vmatmul.mubr.bf16.gmra.mrb[24].mxu1 %v797_v27  ;;  %v781_v37 = vmax.f32 %v1870_v30, 0.0  ;;  %v2021_v54 = vld [vmem:[%s2857_s5 + $0x18] sm:$0xff]  }
 0x191   :  { %v1873_v36 = vadd.f32 %v750_v35, %v2644_v55  ;;  %v782_v39 = vmax.f32 %v1871_v32, 0.0  ;;  %1776 = vmatprep.subr.bf16.mxu1 %v2021_v54  ;;  %v2022_v55 = vld [vmem:[%s2857_s5 + $0x20] sm:$0xff]  }
 0x192   :  { %v783_v38 = vmax.f32 %v1872_v34, 0.0  ;;  %1777 = vmatpush3.bf16.msra.mxu1 %v2021_v54 }
 0x193   :  { %v784_v40 = vmax.f32 %v1873_v36, 0.0  ;;  %1778 = vmatprep.subr.bf16.mxu1 %v2022_v55 }
 0x194   :  { %v799_v41 = vpack.c.bf16 %v783_v38, %v781_v37 }
 0x195   :  { %v800_v42 = vpack.c.bf16 %v784_v40, %v782_v39 }
 0x196   :  { %1779 = vmatpush3.bf16.msra.mxu1 %v2022_v55 }
 0x197   :  { %1024 = vmatprep.mubr.bf16.mxu1 %v800_v42  ;;  %1780 = vmatprep.subr.bf16.mxu1 %v2023_v44 }
 0x198   :  { %1025 = vmatmul.mubr.bf16.gmra.mrb[28].mxu1 %v799_v41 }
 0x19a   :  { %1781 = vmatpush3.bf16.msra.mxu1 %v2023_v44 }
 0x19b   :  { %1782 = vmatprep.subr.bf16.mxu1 %v2024_v45 }
 0x19e   :  { %1783 = vmatpush3.bf16.msra.mxu1 %v2024_v45 }
 0x19f   :  { %1784 = vmatprep.subr.bf16.mxu1 %v2025_v46 }
 0x1a2   :  { %1785 = vmatpush3.bf16.msra.mxu1 %v2025_v46 }
 0x233   :  { %v1686_v47 = vpop.f32.mrb[0].mxu1 }
 0x234   :  { %v1687_v49 = vpop.f32.mrb[1].mxu1 }
 0x235   :  { %v1688_v50 = vadd.f32 %v1687_v49, %v1686_v47  ;;  %v1689_v51 = vpop.f32.mrb[2].mxu1 }
 0x236   :  { %v1690_v52 = vpop.f32.mrb[3].mxu1 }
 0x237   :  { %v971_v53 = vadd.f32 %v1688_v50, %v2702_v48  ;;  %v1691_v56 = vadd.f32 %v1690_v52, %v1689_v51 }
 0x239   :  { %v974_v57 = vadd.f32 %v1691_v56, %v2702_v48  ;;  %2026 = vtanh.f32 %v971_v53 }
 0x23b   :  { %2028 = vtanh.f32 %v974_v57  ;;  %v1692_v58 = vpop.f32.mrb[4].mxu1 }
 0x23c   :  { %v1693_v59 = vpop.f32.mrb[5].mxu1 }
 0x23d   :  { %v1694_v60 = vadd.f32 %v1693_v59, %v1692_v58  ;;  %v1695_v61 = vpop.f32.mrb[6].mxu1 }
 0x23e   :  { %v1696_v62 = vpop.f32.mrb[7].mxu1 }
 0x23f   :  { %v979_v63 = vadd.f32 %v1694_v60, %v2702_v48  ;;  %v1697_v0 = vadd.f32 %v1696_v62, %v1695_v61 }
 0x241   :  { %v982_v1 = vadd.f32 %v1697_v0, %v2702_v48  ;;  %2030 = vtanh.f32 %v979_v63 }
 0x243   :  { %2032 = vtanh.f32 %v982_v1  ;;  %v1698_v2 = vpop.f32.mrb[8].mxu1  ;;  %v2027_v3 = vpop.eup %2026 }
 0x244   :  { %v1699_v4 = vpop.f32.mrb[9].mxu1 }
 0x245   :  { %v2029_v5 = vpop.eup %2028  ;;  %v1700_v6 = vadd.f32 %v1699_v4, %v1698_v2  ;;  %v1701_v7 = vpop.f32.mrb[10].mxu1 }
 0x246   :  { %v1702_v8 = vpop.f32.mrb[11].mxu1  ;;  %v1049_v9 = vpack.c.bf16 %v2029_v5, %v2027_v3 }
 0x247   :  { %v987_v10 = vadd.f32 %v1700_v6, %v2702_v48  ;;  %v1703_v11 = vadd.f32 %v1702_v8, %v1701_v7 }
 0x248   :  { %1786 = vmatprep.mubr.bf16.mxu1 %v1049_v9 }
 0x249   :  { %v990_v12 = vadd.f32 %v1703_v11, %v2702_v48  ;;  %2034 = vtanh.f32 %v987_v10  ;;  %v1241_v11 = vld [vmem:[%s2860_s7] sm:$0xff] }
 0x24b   :  { %2036 = vtanh.f32 %v990_v12  ;;  %v1704_v13 = vpop.f32.mrb[12].mxu1  ;;  %v2031_v14 = vpop.eup %2030  ;;  %v1242_v12 = vld [vmem:[%s2860_s7 + $0x8] sm:$0xff] }
 0x24c   :  { %v1705_v15 = vpop.f32.mrb[13].mxu1 }
 0x24d   :  { %v2033_v16 = vpop.eup %2032  ;;  %v1706_v17 = vadd.f32 %v1705_v15, %v1704_v13  ;;  %v1707_v18 = vpop.f32.mrb[14].mxu1  ;;  %v1834_v13 = vpack.c.bf16 %v1242_v12, %v1241_v11 }
 0x24e   :  { %v1708_v19 = vpop.f32.mrb[15].mxu1  ;;  %v1050_v20 = vpack.c.bf16 %v2033_v16, %v2031_v14  ;;  %v1244_v14 = vld [vmem:[%s2860_s7 + $0x18] sm:$0xff]  ;;  %v14_v16 = vstv %s2861_s8 }
 0x24f   :  { %v995_v21 = vadd.f32 %v1706_v17, %v2702_v48  ;;  %v1709_v22 = vadd.f32 %v1708_v19, %v1707_v18  ;;  %1835 = vmatprep.subr.bf16.mxu1 %v1834_v13  ;;  %15 = vst [vmem:[#allocation2] sm:$0x1] %v14_v16  ;;  %v2738_v17 = vld [vmem:[%s2862_s6] ss:$0 sm:$0xff] }
 0x250   :  { %1787 = vmatmul.mubr.bf16.vlgmr.msra.gmra.mrb[32].mxu1 %v1050_v20 }
 0x251   :  { %v998_v23 = vadd.f32 %v1709_v22, %v2702_v48  ;;  %2038 = vtanh.f32 %v995_v21  ;;  %1837 = vmatpush3.bf16.msra.mxu1 %v1834_v13 }
 0x253   :  { %2040 = vtanh.f32 %v998_v23  ;;  %v1710_v24 = vpop.f32.mrb[16].mxu1  ;;  %v2035_v25 = vpop.eup %2034 }
 0x254   :  { %v1711_v26 = vpop.f32.mrb[17].mxu1 }
 0x255   :  { %v2037_v27 = vpop.eup %2036  ;;  %v1712_v28 = vadd.f32 %v1711_v26, %v1710_v24  ;;  %v1713_v29 = vpop.f32.mrb[18].mxu1 }
 0x256   :  { %v1714_v30 = vpop.f32.mrb[19].mxu1  ;;  %v1051_v31 = vpack.c.bf16 %v2037_v27, %v2035_v25 }
 0x257   :  { %v1003_v32 = vadd.f32 %v1712_v28, %v2702_v48  ;;  %v1715_v33 = vadd.f32 %v1714_v30, %v1713_v29 }
 0x258   :  { %1790 = vmatprep.mubr.bf16.mxu1 %v1051_v31 }
 0x259   :  { %v1006_v34 = vadd.f32 %v1715_v33, %v2702_v48  ;;  %2042 = vtanh.f32 %v1003_v32 }
 0x25b   :  { %2044 = vtanh.f32 %v1006_v34  ;;  %v1716_v35 = vpop.f32.mrb[20].mxu1  ;;  %v2039_v36 = vpop.eup %2038 }
 0x25c   :  { %v1717_v37 = vpop.f32.mrb[21].mxu1 }
 0x25d   :  { %v2041_v38 = vpop.eup %2040  ;;  %v1718_v39 = vadd.f32 %v1717_v37, %v1716_v35  ;;  %v1719_v40 = vpop.f32.mrb[22].mxu1 }
 0x25e   :  { %v1720_v41 = vpop.f32.mrb[23].mxu1  ;;  %v1052_v42 = vpack.c.bf16 %v2041_v38, %v2039_v36 }
 0x25f   :  { %v1011_v43 = vadd.f32 %v1718_v39, %v2702_v48  ;;  %v1721_v54 = vadd.f32 %v1720_v41, %v1719_v40 }
 0x260   :  { %1791 = vmatmul.mubr.bf16.gmra.mrb[36].mxu1 %v1052_v42 }
 0x261   :  { %v1014_v55 = vadd.f32 %v1721_v54, %v2702_v48  ;;  %2046 = vtanh.f32 %v1011_v43 }
 0x263   :  { %2048 = vtanh.f32 %v1014_v55  ;;  %v1722_v44 = vpop.f32.mrb[24].mxu1  ;;  %v2043_v45 = vpop.eup %2042 }
 0x264   :  { %v1723_v46 = vpop.f32.mrb[25].mxu1 }
 0x265   :  { %v2045_v47 = vpop.eup %2044  ;;  %v1724_v49 = vadd.f32 %v1723_v46, %v1722_v44  ;;  %v1725_v50 = vpop.f32.mrb[26].mxu1 }
 0x266   :  { %v1726_v51 = vpop.f32.mrb[27].mxu1  ;;  %v1053_v52 = vpack.c.bf16 %v2045_v47, %v2043_v45 }
 0x267   :  { %v1019_v53 = vadd.f32 %v1724_v49, %v2702_v48  ;;  %v1727_v56 = vadd.f32 %v1726_v51, %v1725_v50 }
 0x268   :  { %1794 = vmatprep.mubr.bf16.mxu1 %v1053_v52 }
 0x269   :  { %v1022_v57 = vadd.f32 %v1727_v56, %v2702_v48  ;;  %2050 = vtanh.f32 %v1019_v53 }
 0x26b   :  { %2052 = vtanh.f32 %v1022_v57  ;;  %v1728_v58 = vpop.f32.mrb[28].mxu1  ;;  %v2047_v59 = vpop.eup %2046 }
 0x26c   :  { %v1729_v60 = vpop.f32.mrb[29].mxu1 }
 0x26d   :  { %v2049_v61 = vpop.eup %2048  ;;  %v1730_v62 = vadd.f32 %v1729_v60, %v1728_v58  ;;  %v1731_v63 = vpop.f32.mrb[30].mxu1 }
 0x26e   :  { %v1732_v0 = vpop.f32.mrb[31].mxu1  ;;  %v1054_v1 = vpack.c.bf16 %v2049_v61, %v2047_v59 }
 0x26f   :  { %v1027_v2 = vadd.f32 %v1730_v62, %v2702_v48  ;;  %v1733_v3 = vadd.f32 %v1732_v0, %v1731_v63 }
 0x270   :  { %1795 = vmatmul.mubr.bf16.gmra.mrb[40].mxu1 %v1054_v1 }
 0x271   :  { %v1030_v4 = vadd.f32 %v1733_v3, %v2702_v48  ;;  %2054 = vtanh.f32 %v1027_v2  ;;  %v1243_v48 = vld [vmem:[%s2860_s7 + $0x10] sm:$0xff]  ;;  %v2772_v3 = vld [vmem:[#allocation2] ss:$0 sm:$0xff] }
 0x272   :  { %v1838_v15 = vpack.c.bf16 %v1244_v14, %v1243_v48 }
 0x273   :  { %2056 = vtanh.f32 %v1030_v4  ;;  %v2051_v5 = vpop.eup %2050 }
 0x274   :  { %1839 = vmatprep.subr.bf16.mxu1 %v1838_v15 }
 0x275   :  { %v2053_v6 = vpop.eup %2052  ;;  %1841 = vmatpush3.bf16.msra.mxu1 %v1838_v15 }
 0x276   :  { %v1055_v7 = vpack.c.bf16 %v2053_v6, %v2051_v5 }
 0x278   :  { %1798 = vmatprep.mubr.bf16.mxu1 %v1055_v7 }
 0x27b   :  { %v2055_v8 = vpop.eup %2054 }
 0x27d   :  { %v2057_v9 = vpop.eup %2056 }
 0x27e   :  { %v1056_v10 = vpack.c.bf16 %v2057_v9, %v2055_v8 }
 0x280   :  { %1799 = vmatmul.mubr.bf16.gmra.mrb[44].mxu1 %v1056_v10 }
 0x323   :  { %v1788_v18 = vpop.f32.mrb[32].mxu1 }
 0x324   :  { %v1162_v19 = vpop.f32.mrb[33].mxu1  ;;  %v1171_v22 = vadd.f32 %v1788_v18, %v2738_v17 }
 0x325   :  { %v1163_v20 = vadd.f32 %v2738_v17, %v1162_v19  ;;  %v1789_v21 = vpop.f32.mrb[34].mxu1 }
 0x326   :  { %v1165_v23 = vpop.f32.mrb[35].mxu1  ;;  %v1174_v25 = vadd.f32 %v1789_v21, %v2738_v17 }
 0x327   :  { %2058 = vtanh.f32 %v1163_v20  ;;  %v1166_v24 = vadd.f32 %v2738_v17, %v1165_v23 }
 0x329   :  { %2060 = vtanh.f32 %v1166_v24 }
 0x32a   :  { %2062 = vtanh.f32 %v1171_v22 }
 0x32b   :  { %2064 = vtanh.f32 %v1174_v25 }
 0x331   :  { %v2059_v26 = vpop.eup %2058 }
 0x332   :  { %1810 = vmatprep.mubr.msk.f32.mxu1 %vm1252_vm0, %v2059_v26 }
 0x333   :  { %v2061_v27 = vpop.eup %2060  ;;  %v1792_v28 = vpop.f32.mrb[36].mxu1 }
 0x334   :  { %v2063_v29 = vpop.eup %2062  ;;  %v1178_v30 = vpop.f32.mrb[37].mxu1  ;;  %1811 = vmatmul.mubr.msk.f32.vlgmr.msra.gmra.mrb[48].mxu1 %vm1252_vm0, %v2061_v27  ;;  %v1187_v33 = vadd.f32 %v1792_v28, %v2738_v17 }
 0x335   :  { %v1179_v31 = vadd.f32 %v2738_v17, %v1178_v30  ;;  %v1793_v32 = vpop.f32.mrb[38].mxu1  ;;  %1813 = vmatprep.mubr.msk.f32.mxu1 %vm1252_vm0, %v2063_v29  ;;  %v2065_v35 = vpop.eup %2064 }
 0x336   :  { %v1181_v34 = vpop.f32.mrb[39].mxu1  ;;  %v1190_v37 = vadd.f32 %v1793_v32, %v2738_v17 }
 0x337   :  { %2066 = vtanh.f32 %v1179_v31  ;;  %v1182_v36 = vadd.f32 %v2738_v17, %v1181_v34 }
 0x338   :  { %1814 = vmatmul.mubr.msk.f32.gmra.mrb[50].mxu1 %vm1252_vm0, %v2065_v35 }
 0x339   :  { %2068 = vtanh.f32 %v1182_v36 }
 0x33a   :  { %2070 = vtanh.f32 %v1187_v33 }
 0x33b   :  { %2072 = vtanh.f32 %v1190_v37 }
 0x341   :  { %v2067_v38 = vpop.eup %2066 }
 0x342   :  { %1816 = vmatprep.mubr.msk.f32.mxu1 %vm1252_vm0, %v2067_v38 }
 0x343   :  { %v2069_v39 = vpop.eup %2068  ;;  %v1796_v40 = vpop.f32.mrb[40].mxu1 }
 0x344   :  { %v2071_v41 = vpop.eup %2070  ;;  %v1194_v42 = vpop.f32.mrb[41].mxu1  ;;  %1817 = vmatmul.mubr.msk.f32.gmra.mrb[52].mxu1 %vm1252_vm0, %v2069_v39  ;;  %v1203_v55 = vadd.f32 %v1796_v40, %v2738_v17 }
 0x345   :  { %v1195_v43 = vadd.f32 %v2738_v17, %v1194_v42  ;;  %v1797_v54 = vpop.f32.mrb[42].mxu1  ;;  %1819 = vmatprep.mubr.msk.f32.mxu1 %vm1252_vm0, %v2071_v41  ;;  %v2073_v45 = vpop.eup %2072 }
 0x346   :  { %v1197_v44 = vpop.f32.mrb[43].mxu1  ;;  %v1206_v47 = vadd.f32 %v1797_v54, %v2738_v17 }
 0x347   :  { %2074 = vtanh.f32 %v1195_v43  ;;  %v1198_v46 = vadd.f32 %v2738_v17, %v1197_v44 }
 0x348   :  { %1820 = vmatmul.mubr.msk.f32.gmra.mrb[54].mxu1 %vm1252_vm0, %v2073_v45 }
 0x349   :  { %2076 = vtanh.f32 %v1198_v46 }
 0x34a   :  { %2078 = vtanh.f32 %v1203_v55 }
 0x34b   :  { %2080 = vtanh.f32 %v1206_v47 }
 0x351   :  { %v2075_v49 = vpop.eup %2074 }
 0x352   :  { %1822 = vmatprep.mubr.msk.f32.mxu1 %vm1252_vm0, %v2075_v49 }
 0x353   :  { %v2077_v50 = vpop.eup %2076  ;;  %v1800_v51 = vpop.f32.mrb[44].mxu1 }
 0x354   :  { %v2079_v52 = vpop.eup %2078  ;;  %v1210_v53 = vpop.f32.mrb[45].mxu1  ;;  %1823 = vmatmul.mubr.msk.f32.gmra.mrb[56].mxu1 %vm1252_vm0, %v2077_v50  ;;  %v1219_v58 = vadd.f32 %v1800_v51, %v2738_v17 }
 0x355   :  { %v1211_v56 = vadd.f32 %v2738_v17, %v1210_v53  ;;  %v1801_v57 = vpop.f32.mrb[46].mxu1  ;;  %1825 = vmatprep.mubr.msk.f32.mxu1 %vm1252_vm0, %v2079_v52  ;;  %v2081_v60 = vpop.eup %2080 }
 0x356   :  { %v1213_v59 = vpop.f32.mrb[47].mxu1  ;;  %v1222_v62 = vadd.f32 %v1801_v57, %v2738_v17 }
 0x357   :  { %2082 = vtanh.f32 %v1211_v56  ;;  %v1214_v61 = vadd.f32 %v2738_v17, %v1213_v59 }
 0x358   :  { %1826 = vmatmul.mubr.msk.f32.gmra.mrb[58].mxu1 %vm1252_vm0, %v2081_v60 }
 0x359   :  { %2084 = vtanh.f32 %v1214_v61 }
 0x35a   :  { %2086 = vtanh.f32 %v1219_v58 }
 0x35b   :  { %2088 = vtanh.f32 %v1222_v62 }
 0x361   :  { %v2083_v63 = vpop.eup %2082 }
 0x362   :  { %1828 = vmatprep.mubr.msk.f32.mxu1 %vm1252_vm0, %v2083_v63 }
 0x363   :  { %v2085_v0 = vpop.eup %2084 }
 0x364   :  { %v2087_v1 = vpop.eup %2086  ;;  %1829 = vmatmul.mubr.msk.f32.gmra.mrb[60].mxu1 %vm1252_vm0, %v2085_v0 }
 0x365   :  { %1831 = vmatprep.mubr.msk.f32.mxu1 %vm1252_vm0, %v2087_v1  ;;  %v2089_v2 = vpop.eup %2088 }
 0x368   :  { %1832 = vmatmul.mubr.msk.f32.gmra.mrb[62].mxu1 %vm1252_vm0, %v2089_v2 }
 0x407   :  { %v1812_v4 = vpop.f32.mrb[48].mxu1 }
 0x408   :  { %v1373_v5 = vadd.f32 %v1812_v4, %v2772_v3  ;;  %v1367_v6 = vpop.f32.mrb[49].mxu1 }
 0x409   :  { %v1368_v7 = vadd.f32 %v2772_v3, %v1367_v6 }
 0x40a   :  { %v1447_v8 = vsub.f32 0.0, %v1373_v5 }
 0x40b   :  { %v1446_v9 = vsub.f32 0.0, %v1368_v7  ;;  %v1815_v10 = vpop.f32.mrb[50].mxu1 }
 0x40c   :  { %v1464_v11 = vmul.f32 1.442695, %v1447_v8  ;;  %v1383_v12 = vadd.f32 %v1815_v10, %v2772_v3  ;;  %v1377_v48 = vpop.f32.mrb[51].mxu1 }
 0x40d   :  { %v1462_v13 = vmul.f32 1.442695, %v1446_v9  ;;  %v1378_v14 = vadd.f32 %v2772_v3, %v1377_v48 }
 0x40e   :  { %2090 = vpow2.f32 %v1464_v11  ;;  %v1449_v15 = vsub.f32 0.0, %v1383_v12 }
 0x40f   :  { %2092 = vpow2.f32 %v1462_v13  ;;  %v1448_v16 = vsub.f32 0.0, %v1378_v14 }
 0x410   :  { %v1468_v17 = vmul.f32 1.442695, %v1449_v15 }
 0x411   :  { %v1466_v18 = vmul.f32 1.442695, %v1448_v16 }
 0x412   :  { %2094 = vpow2.f32 %v1468_v17 }
 0x413   :  { %2096 = vpow2.f32 %v1466_v18 }
 0x417   :  { %v1818_v19 = vpop.f32.mrb[52].mxu1 }
 0x418   :  { %v2091_v20 = vpop.eup %2090  ;;  %v1393_v21 = vadd.f32 %v1818_v19, %v2772_v3  ;;  %v1387_v22 = vpop.f32.mrb[53].mxu1 }
 0x419   :  { %v2093_v23 = vpop.eup %2092  ;;  %v1495_v24 = vadd.f32 1.0, %v2091_v20  ;;  %v1388_v25 = vadd.f32 %v2772_v3, %v1387_v22 }
 0x41a   :  { %v1494_v26 = vadd.f32 1.0, %v2093_v23  ;;  %v1451_v27 = vsub.f32 0.0, %v1393_v21 }
 0x41b   :  { %2098 = vrcp.f32 %v1495_v24  ;;  %v1450_v28 = vsub.f32 0.0, %v1388_v25  ;;  %v1821_v29 = vpop.f32.mrb[54].mxu1 }
 0x41c   :  { %v2095_v30 = vpop.eup %2094  ;;  %2100 = vrcp.f32 %v1494_v26  ;;  %v1472_v31 = vmul.f32 1.442695, %v1451_v27  ;;  %v1403_v32 = vadd.f32 %v1821_v29, %v2772_v3  ;;  %v1397_v33 = vpop.f32.mrb[55].mxu1 }
 0x41d   :  { %v2097_v34 = vpop.eup %2096  ;;  %v1497_v35 = vadd.f32 1.0, %v2095_v30  ;;  %v1470_v36 = vmul.f32 1.442695, %v1450_v28  ;;  %v1398_v37 = vadd.f32 %v2772_v3, %v1397_v33 }
 0x41e   :  { %v1496_v38 = vadd.f32 1.0, %v2097_v34  ;;  %2102 = vpow2.f32 %v1472_v31  ;;  %v1453_v39 = vsub.f32 0.0, %v1403_v32 }
 0x41f   :  { %2104 = vrcp.f32 %v1497_v35  ;;  %v1452_v40 = vsub.f32 0.0, %v1398_v37 }
 0x420   :  { %2106 = vrcp.f32 %v1496_v38  ;;  %v1476_v41 = vmul.f32 1.442695, %v1453_v39 }
 0x421   :  { %2108 = vpow2.f32 %v1470_v36  ;;  %v1474_v42 = vmul.f32 1.442695, %v1452_v40 }
 0x422   :  { %2110 = vpow2.f32 %v1476_v41 }
 0x423   :  { %2112 = vpow2.f32 %v1474_v42 }
 0x425   :  { %v2099_v43 = vpop.eup %2098 }
 0x426   :  { %v2101_v54 = vpop.eup %2100  ;;  %1544 = vst.msk [vmem:[%s2863_s9 + $0x8] sm:$0xff] %vm1542_vm1, %v2099_v43 }
 0x427   :  { %1543 = vst.msk [vmem:[%s2863_s9] sm:$0xff] %vm1542_vm1, %v2101_v54  ;;  %v1824_v55 = vpop.f32.mrb[56].mxu1 }
 0x428   :  { %v2103_v44 = vpop.eup %2102  ;;  %v1413_v45 = vadd.f32 %v1824_v55, %v2772_v3  ;;  %v1407_v46 = vpop.f32.mrb[57].mxu1 }
 0x429   :  { %v2105_v47 = vpop.eup %2104  ;;  %v1499_v49 = vadd.f32 1.0, %v2103_v44  ;;  %v1408_v50 = vadd.f32 %v2772_v3, %v1407_v46 }
 0x42a   :  { %v2107_v51 = vpop.eup %2106  ;;  %1546 = vst.msk [vmem:[%s2863_s9 + $0x18] sm:$0xff] %vm1542_vm1, %v2105_v47  ;;  %v1455_v52 = vsub.f32 0.0, %v1413_v45 }
 0x42b   :  { %v2109_v53 = vpop.eup %2108  ;;  %1545 = vst.msk [vmem:[%s2863_s9 + $0x10] sm:$0xff] %vm1542_vm1, %v2107_v51  ;;  %2114 = vrcp.f32 %v1499_v49  ;;  %v1454_v56 = vsub.f32 0.0, %v1408_v50  ;;  %v1827_v57 = vpop.f32.mrb[58].mxu1 }
 0x42c   :  { %v2111_v58 = vpop.eup %2110  ;;  %v1498_v59 = vadd.f32 1.0, %v2109_v53  ;;  %v1423_v60 = vadd.f32 %v1827_v57, %v2772_v3  ;;  %v1417_v61 = vpop.f32.mrb[59].mxu1  ;;  %v1480_v0 = vmul.f32 1.442695, %v1455_v52 }
 0x42d   :  { %v2113_v62 = vpop.eup %2112  ;;  %v1501_v63 = vadd.f32 1.0, %v2111_v58  ;;  %v1418_v1 = vadd.f32 %v2772_v3, %v1417_v61  ;;  %v1478_v4 = vmul.f32 1.442695, %v1454_v56 }
 0x42e   :  { %2116 = vrcp.f32 %v1498_v59  ;;  %v1500_v2 = vadd.f32 1.0, %v2113_v62  ;;  %v1457_v5 = vsub.f32 0.0, %v1423_v60 }
 0x42f   :  { %2118 = vrcp.f32 %v1501_v63  ;;  %v1456_v6 = vsub.f32 0.0, %v1418_v1 }
 0x430   :  { %2120 = vrcp.f32 %v1500_v2  ;;  %v1484_v7 = vmul.f32 1.442695, %v1457_v5 }
 0x431   :  { %2122 = vpow2.f32 %v1480_v0  ;;  %v1482_v8 = vmul.f32 1.442695, %v1456_v6 }
 0x432   :  { %2124 = vpow2.f32 %v1478_v4 }
 0x433   :  { %2126 = vpow2.f32 %v1484_v7 }
 0x434   :  { %2128 = vpow2.f32 %v1482_v8 }
 0x435   :  { %v2115_v9 = vpop.eup %2114 }
 0x436   :  { %1548 = vst.msk [vmem:[%s2863_s9 + $0x28] sm:$0xff] %vm1542_vm1, %v2115_v9 }
 0x437   :  { %v1830_v10 = vpop.f32.mrb[60].mxu1 }
 0x438   :  { %v2117_v11 = vpop.eup %2116  ;;  %v1433_v12 = vadd.f32 %v1830_v10, %v2772_v3  ;;  %v1427_v48 = vpop.f32.mrb[61].mxu1 }
 0x439   :  { %v2119_v13 = vpop.eup %2118  ;;  %1547 = vst.msk [vmem:[%s2863_s9 + $0x20] sm:$0xff] %vm1542_vm1, %v2117_v11  ;;  %v1428_v14 = vadd.f32 %v2772_v3, %v1427_v48 }
 0x43a   :  { %v2121_v15 = vpop.eup %2120  ;;  %1550 = vst.msk [vmem:[%s2863_s9 + $0x38] sm:$0xff] %vm1542_vm1, %v2119_v13  ;;  %v1459_v16 = vsub.f32 0.0, %v1433_v12 }
 0x43b   :  { %v2123_v17 = vpop.eup %2122  ;;  %1549 = vst.msk [vmem:[%s2863_s9 + $0x30] sm:$0xff] %vm1542_vm1, %v2121_v15  ;;  %v1458_v18 = vsub.f32 0.0, %v1428_v14  ;;  %v1833_v19 = vpop.f32.mrb[62].mxu1 }
 0x43c   :  { %v2125_v20 = vpop.eup %2124  ;;  %v1503_v21 = vadd.f32 1.0, %v2123_v17  ;;  %v1443_v22 = vadd.f32 %v1833_v19, %v2772_v3  ;;  %v1437_v23 = vpop.f32.mrb[63].mxu1  ;;  %v1488_v29 = vmul.f32 1.442695, %v1459_v16 }
 0x43d   :  { %v2127_v24 = vpop.eup %2126  ;;  %v1502_v25 = vadd.f32 1.0, %v2125_v20  ;;  %v1438_v26 = vadd.f32 %v2772_v3, %v1437_v23  ;;  %v1486_v32 = vmul.f32 1.442695, %v1458_v18 }
 0x43e   :  { %v2129_v27 = vpop.eup %2128  ;;  %2130 = vrcp.f32 %v1503_v21  ;;  %v1505_v28 = vadd.f32 1.0, %v2127_v24  ;;  %v1461_v30 = vsub.f32 0.0, %v1443_v22 }
 0x43f   :  { %2132 = vrcp.f32 %v1502_v25  ;;  %v1504_v31 = vadd.f32 1.0, %v2129_v27  ;;  %v1460_v33 = vsub.f32 0.0, %v1438_v26 }
 0x440   :  { %2134 = vrcp.f32 %v1505_v28  ;;  %v1492_v34 = vmul.f32 1.442695, %v1461_v30 }
 0x441   :  { %2136 = vrcp.f32 %v1504_v31  ;;  %v1490_v35 = vmul.f32 1.442695, %v1460_v33 }
 0x442   :  { %2138 = vpow2.f32 %v1488_v29 }
 0x443   :  { %2140 = vpow2.f32 %v1486_v32 }
 0x444   :  { %2142 = vpow2.f32 %v1492_v34 }
 0x445   :  { %2144 = vpow2.f32 %v1490_v35 }
 0x448   :  { %v2131_v36 = vpop.eup %2130 }
 0x449   :  { %v2133_v37 = vpop.eup %2132  ;;  %1552 = vst.msk [vmem:[%s2863_s9 + $0x48] sm:$0xff] %vm1542_vm1, %v2131_v36 }
 0x44a   :  { %v2135_v3 = vpop.eup %2134  ;;  %1551 = vst.msk [vmem:[%s2863_s9 + $0x40] sm:$0xff] %vm1542_vm1, %v2133_v37 }
 0x44b   :  { %v2137_v38 = vpop.eup %2136  ;;  %1554 = vst.msk [vmem:[%s2863_s9 + $0x58] sm:$0xff] %vm1542_vm1, %v2135_v3 }
 0x44c   :  { %v2139_v39 = vpop.eup %2138  ;;  %1553 = vst.msk [vmem:[%s2863_s9 + $0x50] sm:$0xff] %vm1542_vm1, %v2137_v38 }
 0x44d   :  { %v2141_v40 = vpop.eup %2140  ;;  %v1507_v41 = vadd.f32 1.0, %v2139_v39 }
 0x44e   :  { %v2143_v42 = vpop.eup %2142  ;;  %v1506_v43 = vadd.f32 1.0, %v2141_v40 }
 0x44f   :  { %v2145_v54 = vpop.eup %2144  ;;  %2146 = vrcp.f32 %v1507_v41  ;;  %v1509_v55 = vadd.f32 1.0, %v2143_v42 }
 0x450   :  { %2148 = vrcp.f32 %v1506_v43  ;;  %v1508_v44 = vadd.f32 1.0, %v2145_v54 }
 0x451   :  { %2150 = vrcp.f32 %v1509_v55 }
 0x452   :  { %2152 = vrcp.f32 %v1508_v44 }
 0x459   :  { %v2147_v45 = vpop.eup %2146 }
 0x45a   :  { %v2149_v46 = vpop.eup %2148  ;;  %1556 = vst.msk [vmem:[%s2863_s9 + $0x68] sm:$0xff] %vm1542_vm1, %v2147_v45 }
 0x45b   :  { %v2151_v47 = vpop.eup %2150  ;;  %1555 = vst.msk [vmem:[%s2863_s9 + $0x60] sm:$0xff] %vm1542_vm1, %v2149_v46 }
 0x45c   :  { %v2153_v49 = vpop.eup %2152  ;;  %1558 = vst.msk [vmem:[%s2863_s9 + $0x78] sm:$0xff] %vm1542_vm1, %v2151_v47 }
 0x45d   :  { %1557 = vst.msk [vmem:[%s2863_s9 + $0x70] sm:$0xff] %vm1542_vm1, %v2153_v49 }

// kernel: discriminator_forward.2
= control target key start
LH: loop header
LB: loop body
LE: loop exit
PB: predicated region body
PF: predicated region fallthrough
CT: control target
= control target key end

     0   :  { %s28087_s12 = smov 0   ;;  %s28089_s13 = smov 0   ;;  %s33193_s0 = inlined_call_operand.vmem [shape: bf16[128,8704], index: 0, kind: input, shape index: {}]   ;;  %s33194_s1 = inlined_call_operand.vmem [shape: bf16[8704,512], index: 1, kind: input, shape index: {}]   ;;  %s33195_s2 = inlined_call_operand.vmem [shape: f32[1,512], index: 2, kind: input, shape index: {}]   ;;  %s33196_s3 = inlined_call_operand.vmem [shape: f32[128,512], index: 3, kind: output, shape index: {}]  }
   0x1   :  { %s28091_s14 = smov 0  }
   0x2 LB: > { %s28103_s15 = sadd.s32 4294967295, %s28065_s14   ;;  %s28106_s16 = sadd.s32 1, %s28065_s14   ;;  %s28065_s14 = sphi %s28091_s14, %s33200_s14   ;;  %s28061_s13 = sphi %s28089_s13, %s33199_s13   ;;  %s28057_s12 = sphi %s28087_s12, %s33198_s12  }
   0x3   : > { %s38_s17 = ssub.s32 %s28065_s14, %s28106_s16  ;;  %s41_s18 = sadd.s32 1, %s28061_s13 }
   0x4   : > { %p39_p0 = scmp.eq.s32.totalorder %s38_s17, 0  ;;  %p48_p1 = scmp.ne.s32.totalorder %s28061_s13, %s28057_s12 }
   0x5   : > { %p49_p2 = scmp.eq.s32.totalorder %s28065_s14, 0  ;;  %p104_p3 = scmp.eq.s32.totalorder %s28103_s15, 1 }
   0x6   : > { %s28116_s19 = scalar_select %p39_p0, %s28061_s13, %s41_s18  }
   0x7   : > { %p50_p4 = por %p49_p2, %p48_p1  ;;  %p28118_p5 = por %p104_p3, %p48_p1 }
   0x8   : > { %p22836_p6 = scmp.ge.s32.totalorder %s28065_s14, 2 }
   0xa   : > { %129 = sbr.rel (%p22836_p6) target bundleno = 565 (0x235), region = 20 }
  0x11   : > { %132 = sbr.rel (!%p50_p4) target bundleno = 565 (0x235), region = 24  ;;  %s134_s21 = sand.u32 (%p50_p4), 1, %s28061_s13  }
  0x12   : > { %s24479_s22 = sshll.u32 (%p50_p4), %s28065_s14, 3  ;;  %s25569_s23 = smul.u32 (%p50_p4), 8704, %s134_s21 }
  0x13   : > { %s28128_s26 = scalar_lea.vmem (%p50_p4), %s33194_s1, %s24479_s22 }
  0x14   : > { %v2344_v0 = vld [vmem:[%s28128_s26] sm:$0xff] (%p50_p4)  ;;  %v2346_v1 = vld [vmem:[%s28128_s26 + $0x10] sm:$0xff] (%p50_p4)  ;;  %s28136_s27 = scalar_lea.vmem (%p50_p4), [#allocation2], %s25569_s23 }
  0x15   : > { %v2348_v2 = vld [vmem:[%s28128_s26 + $0x20] sm:$0xff] (%p50_p4)  ;;  %v2350_v3 = vld [vmem:[%s28128_s26 + $0x30] sm:$0xff] (%p50_p4)  ;;  %2345 = vst [vmem:[%s28136_s27] sm:$0xff] (%p50_p4), %v2344_v0  ;;  %2347 = vst [vmem:[%s28136_s27 + $0x8] sm:$0xff] (%p50_p4), %v2346_v1 }
  0x16   : > { %v2352_v4 = vld [vmem:[%s28128_s26 + $0x40] sm:$0xff] (%p50_p4)  ;;  %v2354_v5 = vld [vmem:[%s28128_s26 + $0x50] sm:$0xff] (%p50_p4)  ;;  %2349 = vst [vmem:[%s28136_s27 + $0x10] sm:$0xff] (%p50_p4), %v2348_v2  ;;  %2351 = vst [vmem:[%s28136_s27 + $0x18] sm:$0xff] (%p50_p4), %v2350_v3 }
  0x17   : > { %2353 = vst [vmem:[%s28136_s27 + $0x20] sm:$0xff] (%p50_p4), %v2352_v4  ;;  %2355 = vst [vmem:[%s28136_s27 + $0x28] sm:$0xff] (%p50_p4), %v2354_v5  ;;  %v2356_v6 = vld [vmem:[%s28128_s26 + $0x60] sm:$0xff] (%p50_p4)  ;;  %v2358_v7 = vld [vmem:[%s28128_s26 + $0x70] sm:$0xff] (%p50_p4) }
  0x18   : > { %v2360_v8 = vld [vmem:[%s28128_s26 + $0x80] sm:$0xff]  ;;  %2357 = vst [vmem:[%s28136_s27 + $0x30] sm:$0xff] %v2356_v6  ;;  %2359 = vst [vmem:[%s28136_s27 + $0x38] sm:$0xff] %v2358_v7  ;;  %v2362_v9 = vld [vmem:[%s28128_s26 + $0x90] sm:$0xff] }
  0x19   : > { %2361 = vst [vmem:[%s28136_s27 + $0x40] sm:$0xff] %v2360_v8  ;;  %v2364_v10 = vld [vmem:[%s28128_s26 + $0xa0] sm:$0xff]  ;;  %v2366_v11 = vld [vmem:[%s28128_s26 + $0xb0] sm:$0xff]  ;;  %2363 = vst [vmem:[%s28136_s27 + $0x48] sm:$0xff] %v2362_v9 }
  0x1a   : > { %2365 = vst [vmem:[%s28136_s27 + $0x50] sm:$0xff] %v2364_v10  ;;  %2367 = vst [vmem:[%s28136_s27 + $0x58] sm:$0xff] %v2366_v11  ;;  %v2368_v12 = vld [vmem:[%s28128_s26 + $0xc0] sm:$0xff]  ;;  %v2370_v13 = vld [vmem:[%s28128_s26 + $0xd0] sm:$0xff] }
  0x1b   : > { %v2372_v14 = vld [vmem:[%s28128_s26 + $0xe0] sm:$0xff]  ;;  %2369 = vst [vmem:[%s28136_s27 + $0x60] sm:$0xff] %v2368_v12  ;;  %2371 = vst [vmem:[%s28136_s27 + $0x68] sm:$0xff] %v2370_v13  ;;  %v2374_v15 = vld [vmem:[%s28128_s26 + $0xf0] sm:$0xff] }
  0x1c   : > { %2373 = vst [vmem:[%s28136_s27 + $0x70] sm:$0xff] %v2372_v14  ;;  %v2376_v16 = vld [vmem:[%s28128_s26 + $0x100] sm:$0xff]  ;;  %v2378_v17 = vld [vmem:[%s28128_s26 + $0x110] sm:$0xff]  ;;  %2375 = vst [vmem:[%s28136_s27 + $0x78] sm:$0xff] %v2374_v15 }
  0x1d   : > { %2377 = vst [vmem:[%s28136_s27 + $0x80] sm:$0xff] %v2376_v16  ;;  %2379 = vst [vmem:[%s28136_s27 + $0x88] sm:$0xff] %v2378_v17  ;;  %v2380_v18 = vld [vmem:[%s28128_s26 + $0x120] sm:$0xff]  ;;  %v2382_v19 = vld [vmem:[%s28128_s26 + $0x130] sm:$0xff] }
  0x1e   : > { %v2384_v20 = vld [vmem:[%s28128_s26 + $0x140] sm:$0xff]  ;;  %2381 = vst [vmem:[%s28136_s27 + $0x90] sm:$0xff] %v2380_v18  ;;  %2383 = vst [vmem:[%s28136_s27 + $0x98] sm:$0xff] %v2382_v19  ;;  %v2386_v21 = vld [vmem:[%s28128_s26 + $0x150] sm:$0xff] }
  0x1f   : > { %2385 = vst [vmem:[%s28136_s27 + $0xa0] sm:$0xff] %v2384_v20  ;;  %v2388_v22 = vld [vmem:[%s28128_s26 + $0x160] sm:$0xff]  ;;  %v2390_v23 = vld [vmem:[%s28128_s26 + $0x170] sm:$0xff]  ;;  %2387 = vst [vmem:[%s28136_s27 + $0xa8] sm:$0xff] %v2386_v21 }
  0x20   : > { %2389 = vst [vmem:[%s28136_s27 + $0xb0] sm:$0xff] %v2388_v22  ;;  %2391 = vst [vmem:[%s28136_s27 + $0xb8] sm:$0xff] %v2390_v23  ;;  %v2392_v24 = vld [vmem:[%s28128_s26 + $0x180] sm:$0xff]  ;;  %v2394_v25 = vld [vmem:[%s28128_s26 + $0x190] sm:$0xff] }
  0x21   : > { %v2396_v26 = vld [vmem:[%s28128_s26 + $0x1a0] sm:$0xff]  ;;  %2393 = vst [vmem:[%s28136_s27 + $0xc0] sm:$0xff] %v2392_v24  ;;  %2395 = vst [vmem:[%s28136_s27 + $0xc8] sm:$0xff] %v2394_v25  ;;  %v2398_v27 = vld [vmem:[%s28128_s26 + $0x1b0] sm:$0xff] }
  0x22   : > { %2397 = vst [vmem:[%s28136_s27 + $0xd0] sm:$0xff] %v2396_v26  ;;  %v2400_v28 = vld [vmem:[%s28128_s26 + $0x1c0] sm:$0xff]  ;;  %v2402_v29 = vld [vmem:[%s28128_s26 + $0x1d0] sm:$0xff]  ;;  %2399 = vst [vmem:[%s28136_s27 + $0xd8] sm:$0xff] %v2398_v27 }
  0x23   : > { %2401 = vst [vmem:[%s28136_s27 + $0xe0] sm:$0xff] %v2400_v28  ;;  %2403 = vst [vmem:[%s28136_s27 + $0xe8] sm:$0xff] %v2402_v29  ;;  %v2404_v30 = vld [vmem:[%s28128_s26 + $0x1e0] sm:$0xff]  ;;  %v2406_v31 = vld [vmem:[%s28128_s26 + $0x1f0] sm:$0xff] }
  0x24   : > { %v2408_v32 = vld [vmem:[%s28128_s26 + $0x200] sm:$0xff]  ;;  %2405 = vst [vmem:[%s28136_s27 + $0xf0] sm:$0xff] %v2404_v30  ;;  %2407 = vst [vmem:[%s28136_s27 + $0xf8] sm:$0xff] %v2406_v31  ;;  %v2410_v33 = vld [vmem:[%s28128_s26 + $0x210] sm:$0xff] }
  0x25   : > { %2409 = vst [vmem:[%s28136_s27 + $0x100] sm:$0xff] %v2408_v32  ;;  %v2412_v34 = vld [vmem:[%s28128_s26 + $0x220] sm:$0xff]  ;;  %v2414_v35 = vld [vmem:[%s28128_s26 + $0x230] sm:$0xff]  ;;  %2411 = vst [vmem:[%s28136_s27 + $0x108] sm:$0xff] %v2410_v33 }
  0x26   : > { %2413 = vst [vmem:[%s28136_s27 + $0x110] sm:$0xff] %v2412_v34  ;;  %2415 = vst [vmem:[%s28136_s27 + $0x118] sm:$0xff] %v2414_v35  ;;  %v2416_v36 = vld [vmem:[%s28128_s26 + $0x240] sm:$0xff]  ;;  %v2418_v37 = vld [vmem:[%s28128_s26 + $0x250] sm:$0xff] }
  0x27   : > { %v2420_v38 = vld [vmem:[%s28128_s26 + $0x260] sm:$0xff]  ;;  %2417 = vst [vmem:[%s28136_s27 + $0x120] sm:$0xff] %v2416_v36  ;;  %2419 = vst [vmem:[%s28136_s27 + $0x128] sm:$0xff] %v2418_v37  ;;  %v2422_v39 = vld [vmem:[%s28128_s26 + $0x270] sm:$0xff] }
  0x28   : > { %2421 = vst [vmem:[%s28136_s27 + $0x130] sm:$0xff] %v2420_v38  ;;  %v2424_v40 = vld [vmem:[%s28128_s26 + $0x280] sm:$0xff]  ;;  %v2426_v41 = vld [vmem:[%s28128_s26 + $0x290] sm:$0xff]  ;;  %2423 = vst [vmem:[%s28136_s27 + $0x138] sm:$0xff] %v2422_v39 }
  0x29   : > { %2425 = vst [vmem:[%s28136_s27 + $0x140] sm:$0xff] %v2424_v40  ;;  %2427 = vst [vmem:[%s28136_s27 + $0x148] sm:$0xff] %v2426_v41  ;;  %v2428_v42 = vld [vmem:[%s28128_s26 + $0x2a0] sm:$0xff]  ;;  %v2430_v43 = vld [vmem:[%s28128_s26 + $0x2b0] sm:$0xff] }
  0x2a   : > { %v2432_v44 = vld [vmem:[%s28128_s26 + $0x2c0] sm:$0xff]  ;;  %2429 = vst [vmem:[%s28136_s27 + $0x150] sm:$0xff] %v2428_v42  ;;  %2431 = vst [vmem:[%s28136_s27 + $0x158] sm:$0xff] %v2430_v43  ;;  %v2434_v45 = vld [vmem:[%s28128_s26 + $0x2d0] sm:$0xff] }
  0x2b   : > { %2433 = vst [vmem:[%s28136_s27 + $0x160] sm:$0xff] %v2432_v44  ;;  %v2436_v46 = vld [vmem:[%s28128_s26 + $0x2e0] sm:$0xff]  ;;  %v2438_v47 = vld [vmem:[%s28128_s26 + $0x2f0] sm:$0xff]  ;;  %2435 = vst [vmem:[%s28136_s27 + $0x168] sm:$0xff] %v2434_v45 }
  0x2c   : > { %2437 = vst [vmem:[%s28136_s27 + $0x170] sm:$0xff] %v2436_v46  ;;  %2439 = vst [vmem:[%s28136_s27 + $0x178] sm:$0xff] %v2438_v47  ;;  %v2440_v48 = vld [vmem:[%s28128_s26 + $0x300] sm:$0xff]  ;;  %v2442_v49 = vld [vmem:[%s28128_s26 + $0x310] sm:$0xff] }
  0x2d   : > { %v2444_v50 = vld [vmem:[%s28128_s26 + $0x320] sm:$0xff]  ;;  %2441 = vst [vmem:[%s28136_s27 + $0x180] sm:$0xff] %v2440_v48  ;;  %2443 = vst [vmem:[%s28136_s27 + $0x188] sm:$0xff] %v2442_v49  ;;  %v2446_v51 = vld [vmem:[%s28128_s26 + $0x330] sm:$0xff] }
  0x2e   : > { %2445 = vst [vmem:[%s28136_s27 + $0x190] sm:$0xff] %v2444_v50  ;;  %v2448_v52 = vld [vmem:[%s28128_s26 + $0x340] sm:$0xff]  ;;  %v2450_v53 = vld [vmem:[%s28128_s26 + $0x350] sm:$0xff]  ;;  %2447 = vst [vmem:[%s28136_s27 + $0x198] sm:$0xff] %v2446_v51 }
  0x2f   : > { %2449 = vst [vmem:[%s28136_s27 + $0x1a0] sm:$0xff] %v2448_v52  ;;  %2451 = vst [vmem:[%s28136_s27 + $0x1a8] sm:$0xff] %v2450_v53  ;;  %v2452_v54 = vld [vmem:[%s28128_s26 + $0x360] sm:$0xff]  ;;  %v2454_v55 = vld [vmem:[%s28128_s26 + $0x370] sm:$0xff] }
  0x30   : > { %v2456_v56 = vld [vmem:[%s28128_s26 + $0x380] sm:$0xff]  ;;  %2453 = vst [vmem:[%s28136_s27 + $0x1b0] sm:$0xff] %v2452_v54  ;;  %2455 = vst [vmem:[%s28136_s27 + $0x1b8] sm:$0xff] %v2454_v55  ;;  %v2458_v57 = vld [vmem:[%s28128_s26 + $0x390] sm:$0xff] }
  0x31   : > { %2457 = vst [vmem:[%s28136_s27 + $0x1c0] sm:$0xff] %v2456_v56  ;;  %v2460_v58 = vld [vmem:[%s28128_s26 + $0x3a0] sm:$0xff]  ;;  %v2462_v59 = vld [vmem:[%s28128_s26 + $0x3b0] sm:$0xff]  ;;  %2459 = vst [vmem:[%s28136_s27 + $0x1c8] sm:$0xff] %v2458_v57 }
  0x32   : > { %2461 = vst [vmem:[%s28136_s27 + $0x1d0] sm:$0xff] %v2460_v58  ;;  %2463 = vst [vmem:[%s28136_s27 + $0x1d8] sm:$0xff] %v2462_v59  ;;  %v2464_v60 = vld [vmem:[%s28128_s26 + $0x3c0] sm:$0xff]  ;;  %v2466_v61 = vld [vmem:[%s28128_s26 + $0x3d0] sm:$0xff] }
  0x33   : > { %v2468_v62 = vld [vmem:[%s28128_s26 + $0x3e0] sm:$0xff]  ;;  %2465 = vst [vmem:[%s28136_s27 + $0x1e0] sm:$0xff] %v2464_v60  ;;  %2467 = vst [vmem:[%s28136_s27 + $0x1e8] sm:$0xff] %v2466_v61  ;;  %v2470_v63 = vld [vmem:[%s28128_s26 + $0x3f0] sm:$0xff] }
  0x34   : > { %2469 = vst [vmem:[%s28136_s27 + $0x1f0] sm:$0xff] %v2468_v62  ;;  %v2472_v0 = vld [vmem:[%s28128_s26 + $0x400] sm:$0xff]  ;;  %v2474_v1 = vld [vmem:[%s28128_s26 + $0x410] sm:$0xff]  ;;  %2471 = vst [vmem:[%s28136_s27 + $0x1f8] sm:$0xff] %v2470_v63 }
  0x35   : > { %2473 = vst [vmem:[%s28136_s27 + $0x200] sm:$0xff] %v2472_v0  ;;  %2475 = vst [vmem:[%s28136_s27 + $0x208] sm:$0xff] %v2474_v1  ;;  %v2476_v2 = vld [vmem:[%s28128_s26 + $0x420] sm:$0xff]  ;;  %v2478_v3 = vld [vmem:[%s28128_s26 + $0x430] sm:$0xff] }
  0x36   : > { %v2480_v4 = vld [vmem:[%s28128_s26 + $0x440] sm:$0xff]  ;;  %2477 = vst [vmem:[%s28136_s27 + $0x210] sm:$0xff] %v2476_v2  ;;  %2479 = vst [vmem:[%s28136_s27 + $0x218] sm:$0xff] %v2478_v3  ;;  %v2482_v5 = vld [vmem:[%s28128_s26 + $0x450] sm:$0xff] }
  0x37   : > { %2481 = vst [vmem:[%s28136_s27 + $0x220] sm:$0xff] %v2480_v4  ;;  %v2484_v6 = vld [vmem:[%s28128_s26 + $0x460] sm:$0xff]  ;;  %v2486_v7 = vld [vmem:[%s28128_s26 + $0x470] sm:$0xff]  ;;  %2483 = vst [vmem:[%s28136_s27 + $0x228] sm:$0xff] %v2482_v5 }
  0x38   : > { %2485 = vst [vmem:[%s28136_s27 + $0x230] sm:$0xff] %v2484_v6  ;;  %2487 = vst [vmem:[%s28136_s27 + $0x238] sm:$0xff] %v2486_v7  ;;  %v2488_v8 = vld [vmem:[%s28128_s26 + $0x480] sm:$0xff]  ;;  %v2490_v9 = vld [vmem:[%s28128_s26 + $0x490] sm:$0xff] }
  0x39   : > { %v2492_v10 = vld [vmem:[%s28128_s26 + $0x4a0] sm:$0xff]  ;;  %2489 = vst [vmem:[%s28136_s27 + $0x240] sm:$0xff] %v2488_v8  ;;  %2491 = vst [vmem:[%s28136_s27 + $0x248] sm:$0xff] %v2490_v9  ;;  %v2494_v11 = vld [vmem:[%s28128_s26 + $0x4b0] sm:$0xff] }
  0x3a   : > { %2493 = vst [vmem:[%s28136_s27 + $0x250] sm:$0xff] %v2492_v10  ;;  %v2496_v12 = vld [vmem:[%s28128_s26 + $0x4c0] sm:$0xff]  ;;  %v2498_v13 = vld [vmem:[%s28128_s26 + $0x4d0] sm:$0xff]  ;;  %2495 = vst [vmem:[%s28136_s27 + $0x258] sm:$0xff] %v2494_v11 }
  0x3b   : > { %2497 = vst [vmem:[%s28136_s27 + $0x260] sm:$0xff] %v2496_v12  ;;  %2499 = vst [vmem:[%s28136_s27 + $0x268] sm:$0xff] %v2498_v13  ;;  %v2500_v14 = vld [vmem:[%s28128_s26 + $0x4e0] sm:$0xff]  ;;  %v2502_v15 = vld [vmem:[%s28128_s26 + $0x4f0] sm:$0xff] }
  0x3c   : > { %v2504_v16 = vld [vmem:[%s28128_s26 + $0x500] sm:$0xff]  ;;  %2501 = vst [vmem:[%s28136_s27 + $0x270] sm:$0xff] %v2500_v14  ;;  %2503 = vst [vmem:[%s28136_s27 + $0x278] sm:$0xff] %v2502_v15  ;;  %v2506_v17 = vld [vmem:[%s28128_s26 + $0x510] sm:$0xff] }
  0x3d   : > { %2505 = vst [vmem:[%s28136_s27 + $0x280] sm:$0xff] %v2504_v16  ;;  %v2508_v18 = vld [vmem:[%s28128_s26 + $0x520] sm:$0xff]  ;;  %v2510_v19 = vld [vmem:[%s28128_s26 + $0x530] sm:$0xff]  ;;  %2507 = vst [vmem:[%s28136_s27 + $0x288] sm:$0xff] %v2506_v17 }
  0x3e   : > { %2509 = vst [vmem:[%s28136_s27 + $0x290] sm:$0xff] %v2508_v18  ;;  %2511 = vst [vmem:[%s28136_s27 + $0x298] sm:$0xff] %v2510_v19  ;;  %v2512_v20 = vld [vmem:[%s28128_s26 + $0x540] sm:$0xff]  ;;  %v2514_v21 = vld [vmem:[%s28128_s26 + $0x550] sm:$0xff] }
  0x3f   : > { %v2516_v22 = vld [vmem:[%s28128_s26 + $0x560] sm:$0xff]  ;;  %2513 = vst [vmem:[%s28136_s27 + $0x2a0] sm:$0xff] %v2512_v20  ;;  %2515 = vst [vmem:[%s28136_s27 + $0x2a8] sm:$0xff] %v2514_v21  ;;  %v2518_v23 = vld [vmem:[%s28128_s26 + $0x570] sm:$0xff] }
  0x40   : > { %2517 = vst [vmem:[%s28136_s27 + $0x2b0] sm:$0xff] %v2516_v22  ;;  %v2520_v24 = vld [vmem:[%s28128_s26 + $0x580] sm:$0xff]  ;;  %v2522_v25 = vld [vmem:[%s28128_s26 + $0x590] sm:$0xff]  ;;  %2519 = vst [vmem:[%s28136_s27 + $0x2b8] sm:$0xff] %v2518_v23 }
  0x41   : > { %2521 = vst [vmem:[%s28136_s27 + $0x2c0] sm:$0xff] %v2520_v24  ;;  %2523 = vst [vmem:[%s28136_s27 + $0x2c8] sm:$0xff] %v2522_v25  ;;  %v2524_v26 = vld [vmem:[%s28128_s26 + $0x5a0] sm:$0xff]  ;;  %v2526_v27 = vld [vmem:[%s28128_s26 + $0x5b0] sm:$0xff] }
  0x42   : > { %v2528_v28 = vld [vmem:[%s28128_s26 + $0x5c0] sm:$0xff]  ;;  %2525 = vst [vmem:[%s28136_s27 + $0x2d0] sm:$0xff] %v2524_v26  ;;  %2527 = vst [vmem:[%s28136_s27 + $0x2d8] sm:$0xff] %v2526_v27  ;;  %v2530_v29 = vld [vmem:[%s28128_s26 + $0x5d0] sm:$0xff] }
  0x43   : > { %2529 = vst [vmem:[%s28136_s27 + $0x2e0] sm:$0xff] %v2528_v28  ;;  %v2532_v30 = vld [vmem:[%s28128_s26 + $0x5e0] sm:$0xff]  ;;  %v2534_v31 = vld [vmem:[%s28128_s26 + $0x5f0] sm:$0xff]  ;;  %2531 = vst [vmem:[%s28136_s27 + $0x2e8] sm:$0xff] %v2530_v29 }
  0x44   : > { %2533 = vst [vmem:[%s28136_s27 + $0x2f0] sm:$0xff] %v2532_v30  ;;  %2535 = vst [vmem:[%s28136_s27 + $0x2f8] sm:$0xff] %v2534_v31  ;;  %v2536_v32 = vld [vmem:[%s28128_s26 + $0x600] sm:$0xff]  ;;  %v2538_v33 = vld [vmem:[%s28128_s26 + $0x610] sm:$0xff] }
  0x45   : > { %v2540_v34 = vld [vmem:[%s28128_s26 + $0x620] sm:$0xff]  ;;  %2537 = vst [vmem:[%s28136_s27 + $0x300] sm:$0xff] %v2536_v32  ;;  %2539 = vst [vmem:[%s28136_s27 + $0x308] sm:$0xff] %v2538_v33  ;;  %v2542_v35 = vld [vmem:[%s28128_s26 + $0x630] sm:$0xff] }
  0x46   : > { %2541 = vst [vmem:[%s28136_s27 + $0x310] sm:$0xff] %v2540_v34  ;;  %v2544_v36 = vld [vmem:[%s28128_s26 + $0x640] sm:$0xff]  ;;  %v2546_v37 = vld [vmem:[%s28128_s26 + $0x650] sm:$0xff]  ;;  %2543 = vst [vmem:[%s28136_s27 + $0x318] sm:$0xff] %v2542_v35 }
  0x47   : > { %2545 = vst [vmem:[%s28136_s27 + $0x320] sm:$0xff] %v2544_v36  ;;  %2547 = vst [vmem:[%s28136_s27 + $0x328] sm:$0xff] %v2546_v37  ;;  %v2548_v38 = vld [vmem:[%s28128_s26 + $0x660] sm:$0xff]  ;;  %v2550_v39 = vld [vmem:[%s28128_s26 + $0x670] sm:$0xff] }
  0x48   : > { %v2552_v40 = vld [vmem:[%s28128_s26 + $0x680] sm:$0xff]  ;;  %2549 = vst [vmem:[%s28136_s27 + $0x330] sm:$0xff] %v2548_v38  ;;  %2551 = vst [vmem:[%s28136_s27 + $0x338] sm:$0xff] %v2550_v39  ;;  %v2554_v41 = vld [vmem:[%s28128_s26 + $0x690] sm:$0xff] }
  0x49   : > { %2553 = vst [vmem:[%s28136_s27 + $0x340] sm:$0xff] %v2552_v40  ;;  %v2556_v42 = vld [vmem:[%s28128_s26 + $0x6a0] sm:$0xff]  ;;  %v2558_v43 = vld [vmem:[%s28128_s26 + $0x6b0] sm:$0xff]  ;;  %2555 = vst [vmem:[%s28136_s27 + $0x348] sm:$0xff] %v2554_v41 }
  0x4a   : > { %2557 = vst [vmem:[%s28136_s27 + $0x350] sm:$0xff] %v2556_v42  ;;  %2559 = vst [vmem:[%s28136_s27 + $0x358] sm:$0xff] %v2558_v43  ;;  %v2560_v44 = vld [vmem:[%s28128_s26 + $0x6c0] sm:$0xff]  ;;  %v2562_v45 = vld [vmem:[%s28128_s26 + $0x6d0] sm:$0xff] }
  0x4b   : > { %v2564_v46 = vld [vmem:[%s28128_s26 + $0x6e0] sm:$0xff]  ;;  %2561 = vst [vmem:[%s28136_s27 + $0x360] sm:$0xff] %v2560_v44  ;;  %2563 = vst [vmem:[%s28136_s27 + $0x368] sm:$0xff] %v2562_v45  ;;  %v2566_v47 = vld [vmem:[%s28128_s26 + $0x6f0] sm:$0xff] }
  0x4c   : > { %2565 = vst [vmem:[%s28136_s27 + $0x370] sm:$0xff] %v2564_v46  ;;  %v2568_v48 = vld [vmem:[%s28128_s26 + $0x700] sm:$0xff]  ;;  %v2570_v49 = vld [vmem:[%s28128_s26 + $0x710] sm:$0xff]  ;;  %2567 = vst [vmem:[%s28136_s27 + $0x378] sm:$0xff] %v2566_v47 }
  0x4d   : > { %2569 = vst [vmem:[%s28136_s27 + $0x380] sm:$0xff] %v2568_v48  ;;  %2571 = vst [vmem:[%s28136_s27 + $0x388] sm:$0xff] %v2570_v49  ;;  %v2572_v50 = vld [vmem:[%s28128_s26 + $0x720] sm:$0xff]  ;;  %v2574_v51 = vld [vmem:[%s28128_s26 + $0x730] sm:$0xff] }
  0x4e   : > { %v2576_v52 = vld [vmem:[%s28128_s26 + $0x740] sm:$0xff]  ;;  %2573 = vst [vmem:[%s28136_s27 + $0x390] sm:$0xff] %v2572_v50  ;;  %2575 = vst [vmem:[%s28136_s27 + $0x398] sm:$0xff] %v2574_v51  ;;  %v2578_v53 = vld [vmem:[%s28128_s26 + $0x750] sm:$0xff] }
  0x4f   : > { %2577 = vst [vmem:[%s28136_s27 + $0x3a0] sm:$0xff] %v2576_v52  ;;  %v2580_v54 = vld [vmem:[%s28128_s26 + $0x760] sm:$0xff]  ;;  %v2582_v55 = vld [vmem:[%s28128_s26 + $0x770] sm:$0xff]  ;;  %2579 = vst [vmem:[%s28136_s27 + $0x3a8] sm:$0xff] %v2578_v53 }
  0x50   : > { %2581 = vst [vmem:[%s28136_s27 + $0x3b0] sm:$0xff] %v2580_v54  ;;  %2583 = vst [vmem:[%s28136_s27 + $0x3b8] sm:$0xff] %v2582_v55  ;;  %v2584_v56 = vld [vmem:[%s28128_s26 + $0x780] sm:$0xff]  ;;  %v2586_v57 = vld [vmem:[%s28128_s26 + $0x790] sm:$0xff] }
  0x51   : > { %v2588_v58 = vld [vmem:[%s28128_s26 + $0x7a0] sm:$0xff]  ;;  %2585 = vst [vmem:[%s28136_s27 + $0x3c0] sm:$0xff] %v2584_v56  ;;  %2587 = vst [vmem:[%s28136_s27 + $0x3c8] sm:$0xff] %v2586_v57  ;;  %v2590_v59 = vld [vmem:[%s28128_s26 + $0x7b0] sm:$0xff] }
  0x52   : > { %2589 = vst [vmem:[%s28136_s27 + $0x3d0] sm:$0xff] %v2588_v58  ;;  %v2592_v60 = vld [vmem:[%s28128_s26 + $0x7c0] sm:$0xff]  ;;  %v2594_v61 = vld [vmem:[%s28128_s26 + $0x7d0] sm:$0xff]  ;;  %2591 = vst [vmem:[%s28136_s27 + $0x3d8] sm:$0xff] %v2590_v59 }
  0x53   : > { %2593 = vst [vmem:[%s28136_s27 + $0x3e0] sm:$0xff] %v2592_v60  ;;  %2595 = vst [vmem:[%s28136_s27 + $0x3e8] sm:$0xff] %v2594_v61  ;;  %v2596_v62 = vld [vmem:[%s28128_s26 + $0x7e0] sm:$0xff]  ;;  %v2598_v63 = vld [vmem:[%s28128_s26 + $0x7f0] sm:$0xff] }
  0x54   : > { %v2600_v0 = vld [vmem:[%s28128_s26 + $0x800] sm:$0xff]  ;;  %2597 = vst [vmem:[%s28136_s27 + $0x3f0] sm:$0xff] %v2596_v62  ;;  %2599 = vst [vmem:[%s28136_s27 + $0x3f8] sm:$0xff] %v2598_v63  ;;  %v2602_v1 = vld [vmem:[%s28128_s26 + $0x810] sm:$0xff] }
  0x55   : > { %2601 = vst [vmem:[%s28136_s27 + $0x400] sm:$0xff] %v2600_v0  ;;  %v2604_v2 = vld [vmem:[%s28128_s26 + $0x820] sm:$0xff]  ;;  %v2606_v3 = vld [vmem:[%s28128_s26 + $0x830] sm:$0xff]  ;;  %2603 = vst [vmem:[%s28136_s27 + $0x408] sm:$0xff] %v2602_v1 }
  0x56   : > { %2605 = vst [vmem:[%s28136_s27 + $0x410] sm:$0xff] %v2604_v2  ;;  %2607 = vst [vmem:[%s28136_s27 + $0x418] sm:$0xff] %v2606_v3  ;;  %v2608_v4 = vld [vmem:[%s28128_s26 + $0x840] sm:$0xff]  ;;  %v2610_v5 = vld [vmem:[%s28128_s26 + $0x850] sm:$0xff] }
  0x57   : > { %v2612_v6 = vld [vmem:[%s28128_s26 + $0x860] sm:$0xff]  ;;  %2609 = vst [vmem:[%s28136_s27 + $0x420] sm:$0xff] %v2608_v4  ;;  %2611 = vst [vmem:[%s28136_s27 + $0x428] sm:$0xff] %v2610_v5  ;;  %v2614_v7 = vld [vmem:[%s28128_s26 + $0x870] sm:$0xff] }
  0x58   : > { %2613 = vst [vmem:[%s28136_s27 + $0x430] sm:$0xff] %v2612_v6  ;;  %v2616_v8 = vld [vmem:[%s28128_s26 + $0x880] sm:$0xff]  ;;  %v2618_v9 = vld [vmem:[%s28128_s26 + $0x890] sm:$0xff]  ;;  %2615 = vst [vmem:[%s28136_s27 + $0x438] sm:$0xff] %v2614_v7 }
  0x59   : > { %2617 = vst [vmem:[%s28136_s27 + $0x440] sm:$0xff] %v2616_v8  ;;  %2619 = vst [vmem:[%s28136_s27 + $0x448] sm:$0xff] %v2618_v9  ;;  %v2620_v10 = vld [vmem:[%s28128_s26 + $0x8a0] sm:$0xff]  ;;  %v2622_v11 = vld [vmem:[%s28128_s26 + $0x8b0] sm:$0xff] }
  0x5a   : > { %v2624_v12 = vld [vmem:[%s28128_s26 + $0x8c0] sm:$0xff]  ;;  %2621 = vst [vmem:[%s28136_s27 + $0x450] sm:$0xff] %v2620_v10  ;;  %2623 = vst [vmem:[%s28136_s27 + $0x458] sm:$0xff] %v2622_v11  ;;  %v2626_v13 = vld [vmem:[%s28128_s26 + $0x8d0] sm:$0xff] }
  0x5b   : > { %2625 = vst [vmem:[%s28136_s27 + $0x460] sm:$0xff] %v2624_v12  ;;  %v2628_v14 = vld [vmem:[%s28128_s26 + $0x8e0] sm:$0xff]  ;;  %v2630_v15 = vld [vmem:[%s28128_s26 + $0x8f0] sm:$0xff]  ;;  %2627 = vst [vmem:[%s28136_s27 + $0x468] sm:$0xff] %v2626_v13 }
  0x5c   : > { %2629 = vst [vmem:[%s28136_s27 + $0x470] sm:$0xff] %v2628_v14  ;;  %2631 = vst [vmem:[%s28136_s27 + $0x478] sm:$0xff] %v2630_v15  ;;  %v2632_v16 = vld [vmem:[%s28128_s26 + $0x900] sm:$0xff]  ;;  %v2634_v17 = vld [vmem:[%s28128_s26 + $0x910] sm:$0xff] }
  0x5d   : > { %v2636_v18 = vld [vmem:[%s28128_s26 + $0x920] sm:$0xff]  ;;  %2633 = vst [vmem:[%s28136_s27 + $0x480] sm:$0xff] %v2632_v16  ;;  %2635 = vst [vmem:[%s28136_s27 + $0x488] sm:$0xff] %v2634_v17  ;;  %v2638_v19 = vld [vmem:[%s28128_s26 + $0x930] sm:$0xff] }
  0x5e   : > { %2637 = vst [vmem:[%s28136_s27 + $0x490] sm:$0xff] %v2636_v18  ;;  %v2640_v20 = vld [vmem:[%s28128_s26 + $0x940] sm:$0xff]  ;;  %v2642_v21 = vld [vmem:[%s28128_s26 + $0x950] sm:$0xff]  ;;  %2639 = vst [vmem:[%s28136_s27 + $0x498] sm:$0xff] %v2638_v19 }
  0x5f   : > { %2641 = vst [vmem:[%s28136_s27 + $0x4a0] sm:$0xff] %v2640_v20  ;;  %2643 = vst [vmem:[%s28136_s27 + $0x4a8] sm:$0xff] %v2642_v21  ;;  %v2644_v22 = vld [vmem:[%s28128_s26 + $0x960] sm:$0xff]  ;;  %v2646_v23 = vld [vmem:[%s28128_s26 + $0x970] sm:$0xff] }
  0x60   : > { %v2648_v24 = vld [vmem:[%s28128_s26 + $0x980] sm:$0xff]  ;;  %2645 = vst [vmem:[%s28136_s27 + $0x4b0] sm:$0xff] %v2644_v22  ;;  %2647 = vst [vmem:[%s28136_s27 + $0x4b8] sm:$0xff] %v2646_v23  ;;  %v2650_v25 = vld [vmem:[%s28128_s26 + $0x990] sm:$0xff] }
  0x61   : > { %2649 = vst [vmem:[%s28136_s27 + $0x4c0] sm:$0xff] %v2648_v24  ;;  %v2652_v26 = vld [vmem:[%s28128_s26 + $0x9a0] sm:$0xff]  ;;  %v2654_v27 = vld [vmem:[%s28128_s26 + $0x9b0] sm:$0xff]  ;;  %2651 = vst [vmem:[%s28136_s27 + $0x4c8] sm:$0xff] %v2650_v25 }
  0x62   : > { %2653 = vst [vmem:[%s28136_s27 + $0x4d0] sm:$0xff] %v2652_v26  ;;  %2655 = vst [vmem:[%s28136_s27 + $0x4d8] sm:$0xff] %v2654_v27  ;;  %v2656_v28 = vld [vmem:[%s28128_s26 + $0x9c0] sm:$0xff]  ;;  %v2658_v29 = vld [vmem:[%s28128_s26 + $0x9d0] sm:$0xff] }
  0x63   : > { %v2660_v30 = vld [vmem:[%s28128_s26 + $0x9e0] sm:$0xff]  ;;  %2657 = vst [vmem:[%s28136_s27 + $0x4e0] sm:$0xff] %v2656_v28  ;;  %2659 = vst [vmem:[%s28136_s27 + $0x4e8] sm:$0xff] %v2658_v29  ;;  %v2662_v31 = vld [vmem:[%s28128_s26 + $0x9f0] sm:$0xff] }
  0x64   : > { %2661 = vst [vmem:[%s28136_s27 + $0x4f0] sm:$0xff] %v2660_v30  ;;  %v2664_v32 = vld [vmem:[%s28128_s26 + $0xa00] sm:$0xff]  ;;  %v2666_v33 = vld [vmem:[%s28128_s26 + $0xa10] sm:$0xff]  ;;  %2663 = vst [vmem:[%s28136_s27 + $0x4f8] sm:$0xff] %v2662_v31 }
  0x65   : > { %2665 = vst [vmem:[%s28136_s27 + $0x500] sm:$0xff] %v2664_v32  ;;  %2667 = vst [vmem:[%s28136_s27 + $0x508] sm:$0xff] %v2666_v33  ;;  %v2668_v34 = vld [vmem:[%s28128_s26 + $0xa20] sm:$0xff]  ;;  %v2670_v35 = vld [vmem:[%s28128_s26 + $0xa30] sm:$0xff] }
  0x66   : > { %v2672_v36 = vld [vmem:[%s28128_s26 + $0xa40] sm:$0xff]  ;;  %2669 = vst [vmem:[%s28136_s27 + $0x510] sm:$0xff] %v2668_v34  ;;  %2671 = vst [vmem:[%s28136_s27 + $0x518] sm:$0xff] %v2670_v35  ;;  %v2674_v37 = vld [vmem:[%s28128_s26 + $0xa50] sm:$0xff] }
  0x67   : > { %2673 = vst [vmem:[%s28136_s27 + $0x520] sm:$0xff] %v2672_v36  ;;  %v2676_v38 = vld [vmem:[%s28128_s26 + $0xa60] sm:$0xff]  ;;  %v2678_v39 = vld [vmem:[%s28128_s26 + $0xa70] sm:$0xff]  ;;  %2675 = vst [vmem:[%s28136_s27 + $0x528] sm:$0xff] %v2674_v37 }
  0x68   : > { %2677 = vst [vmem:[%s28136_s27 + $0x530] sm:$0xff] %v2676_v38  ;;  %2679 = vst [vmem:[%s28136_s27 + $0x538] sm:$0xff] %v2678_v39  ;;  %v2680_v40 = vld [vmem:[%s28128_s26 + $0xa80] sm:$0xff]  ;;  %v2682_v41 = vld [vmem:[%s28128_s26 + $0xa90] sm:$0xff] }
  0x69   : > { %v2684_v42 = vld [vmem:[%s28128_s26 + $0xaa0] sm:$0xff]  ;;  %2681 = vst [vmem:[%s28136_s27 + $0x540] sm:$0xff] %v2680_v40  ;;  %2683 = vst [vmem:[%s28136_s27 + $0x548] sm:$0xff] %v2682_v41  ;;  %v2686_v43 = vld [vmem:[%s28128_s26 + $0xab0] sm:$0xff] }
  0x6a   : > { %2685 = vst [vmem:[%s28136_s27 + $0x550] sm:$0xff] %v2684_v42  ;;  %v2688_v44 = vld [vmem:[%s28128_s26 + $0xac0] sm:$0xff]  ;;  %v2690_v45 = vld [vmem:[%s28128_s26 + $0xad0] sm:$0xff]  ;;  %2687 = vst [vmem:[%s28136_s27 + $0x558] sm:$0xff] %v2686_v43 }
  0x6b   : > { %2689 = vst [vmem:[%s28136_s27 + $0x560] sm:$0xff] %v2688_v44  ;;  %2691 = vst [vmem:[%s28136_s27 + $0x568] sm:$0xff] %v2690_v45  ;;  %v2692_v46 = vld [vmem:[%s28128_s26 + $0xae0] sm:$0xff]  ;;  %v2694_v47 = vld [vmem:[%s28128_s26 + $0xaf0] sm:$0xff] }
  0x6c   : > { %v2696_v48 = vld [vmem:[%s28128_s26 + $0xb00] sm:$0xff]  ;;  %2693 = vst [vmem:[%s28136_s27 + $0x570] sm:$0xff] %v2692_v46  ;;  %2695 = vst [vmem:[%s28136_s27 + $0x578] sm:$0xff] %v2694_v47  ;;  %v2698_v49 = vld [vmem:[%s28128_s26 + $0xb10] sm:$0xff] }
  0x6d   : > { %2697 = vst [vmem:[%s28136_s27 + $0x580] sm:$0xff] %v2696_v48  ;;  %v2700_v50 = vld [vmem:[%s28128_s26 + $0xb20] sm:$0xff]  ;;  %v2702_v51 = vld [vmem:[%s28128_s26 + $0xb30] sm:$0xff]  ;;  %2699 = vst [vmem:[%s28136_s27 + $0x588] sm:$0xff] %v2698_v49 }
  0x6e   : > { %2701 = vst [vmem:[%s28136_s27 + $0x590] sm:$0xff] %v2700_v50  ;;  %2703 = vst [vmem:[%s28136_s27 + $0x598] sm:$0xff] %v2702_v51  ;;  %v2704_v52 = vld [vmem:[%s28128_s26 + $0xb40] sm:$0xff]  ;;  %v2706_v53 = vld [vmem:[%s28128_s26 + $0xb50] sm:$0xff] }
  0x6f   : > { %v2708_v54 = vld [vmem:[%s28128_s26 + $0xb60] sm:$0xff]  ;;  %2705 = vst [vmem:[%s28136_s27 + $0x5a0] sm:$0xff] %v2704_v52  ;;  %2707 = vst [vmem:[%s28136_s27 + $0x5a8] sm:$0xff] %v2706_v53  ;;  %v2710_v55 = vld [vmem:[%s28128_s26 + $0xb70] sm:$0xff] }
  0x70   : > { %2709 = vst [vmem:[%s28136_s27 + $0x5b0] sm:$0xff] %v2708_v54  ;;  %v2712_v56 = vld [vmem:[%s28128_s26 + $0xb80] sm:$0xff]  ;;  %v2714_v57 = vld [vmem:[%s28128_s26 + $0xb90] sm:$0xff]  ;;  %2711 = vst [vmem:[%s28136_s27 + $0x5b8] sm:$0xff] %v2710_v55 }
  0x71   : > { %2713 = vst [vmem:[%s28136_s27 + $0x5c0] sm:$0xff] %v2712_v56  ;;  %2715 = vst [vmem:[%s28136_s27 + $0x5c8] sm:$0xff] %v2714_v57  ;;  %v2716_v58 = vld [vmem:[%s28128_s26 + $0xba0] sm:$0xff]  ;;  %v2718_v59 = vld [vmem:[%s28128_s26 + $0xbb0] sm:$0xff] }
  0x72   : > { %v2720_v60 = vld [vmem:[%s28128_s26 + $0xbc0] sm:$0xff]  ;;  %2717 = vst [vmem:[%s28136_s27 + $0x5d0] sm:$0xff] %v2716_v58  ;;  %2719 = vst [vmem:[%s28136_s27 + $0x5d8] sm:$0xff] %v2718_v59  ;;  %v2722_v61 = vld [vmem:[%s28128_s26 + $0xbd0] sm:$0xff] }
  0x73   : > { %2721 = vst [vmem:[%s28136_s27 + $0x5e0] sm:$0xff] %v2720_v60  ;;  %v2724_v62 = vld [vmem:[%s28128_s26 + $0xbe0] sm:$0xff]  ;;  %v2726_v63 = vld [vmem:[%s28128_s26 + $0xbf0] sm:$0xff]  ;;  %2723 = vst [vmem:[%s28136_s27 + $0x5e8] sm:$0xff] %v2722_v61 }
  0x74   : > { %2725 = vst [vmem:[%s28136_s27 + $0x5f0] sm:$0xff] %v2724_v62  ;;  %2727 = vst [vmem:[%s28136_s27 + $0x5f8] sm:$0xff] %v2726_v63  ;;  %v2728_v0 = vld [vmem:[%s28128_s26 + $0xc00] sm:$0xff]  ;;  %v2730_v1 = vld [vmem:[%s28128_s26 + $0xc10] sm:$0xff] }
  0x75   : > { %v2732_v2 = vld [vmem:[%s28128_s26 + $0xc20] sm:$0xff]  ;;  %2729 = vst [vmem:[%s28136_s27 + $0x600] sm:$0xff] %v2728_v0  ;;  %2731 = vst [vmem:[%s28136_s27 + $0x608] sm:$0xff] %v2730_v1  ;;  %v2734_v3 = vld [vmem:[%s28128_s26 + $0xc30] sm:$0xff] }
  0x76   : > { %2733 = vst [vmem:[%s28136_s27 + $0x610] sm:$0xff] %v2732_v2  ;;  %v2736_v4 = vld [vmem:[%s28128_s26 + $0xc40] sm:$0xff]  ;;  %v2738_v5 = vld [vmem:[%s28128_s26 + $0xc50] sm:$0xff]  ;;  %2735 = vst [vmem:[%s28136_s27 + $0x618] sm:$0xff] %v2734_v3 }
  0x77   : > { %2737 = vst [vmem:[%s28136_s27 + $0x620] sm:$0xff] %v2736_v4  ;;  %2739 = vst [vmem:[%s28136_s27 + $0x628] sm:$0xff] %v2738_v5  ;;  %v2740_v6 = vld [vmem:[%s28128_s26 + $0xc60] sm:$0xff]  ;;  %v2742_v7 = vld [vmem:[%s28128_s26 + $0xc70] sm:$0xff] }
  0x78   : > { %v2744_v8 = vld [vmem:[%s28128_s26 + $0xc80] sm:$0xff]  ;;  %2741 = vst [vmem:[%s28136_s27 + $0x630] sm:$0xff] %v2740_v6  ;;  %2743 = vst [vmem:[%s28136_s27 + $0x638] sm:$0xff] %v2742_v7  ;;  %v2746_v9 = vld [vmem:[%s28128_s26 + $0xc90] sm:$0xff] }
  0x79   : > { %2745 = vst [vmem:[%s28136_s27 + $0x640] sm:$0xff] %v2744_v8  ;;  %v2748_v10 = vld [vmem:[%s28128_s26 + $0xca0] sm:$0xff]  ;;  %v2750_v11 = vld [vmem:[%s28128_s26 + $0xcb0] sm:$0xff]  ;;  %2747 = vst [vmem:[%s28136_s27 + $0x648] sm:$0xff] %v2746_v9 }
  0x7a   : > { %2749 = vst [vmem:[%s28136_s27 + $0x650] sm:$0xff] %v2748_v10  ;;  %2751 = vst [vmem:[%s28136_s27 + $0x658] sm:$0xff] %v2750_v11  ;;  %v2752_v12 = vld [vmem:[%s28128_s26 + $0xcc0] sm:$0xff]  ;;  %v2754_v13 = vld [vmem:[%s28128_s26 + $0xcd0] sm:$0xff] }
  0x7b   : > { %v2756_v14 = vld [vmem:[%s28128_s26 + $0xce0] sm:$0xff]  ;;  %2753 = vst [vmem:[%s28136_s27 + $0x660] sm:$0xff] %v2752_v12  ;;  %2755 = vst [vmem:[%s28136_s27 + $0x668] sm:$0xff] %v2754_v13  ;;  %v2758_v15 = vld [vmem:[%s28128_s26 + $0xcf0] sm:$0xff] }
  0x7c   : > { %2757 = vst [vmem:[%s28136_s27 + $0x670] sm:$0xff] %v2756_v14  ;;  %v2760_v16 = vld [vmem:[%s28128_s26 + $0xd00] sm:$0xff]  ;;  %v2762_v17 = vld [vmem:[%s28128_s26 + $0xd10] sm:$0xff]  ;;  %2759 = vst [vmem:[%s28136_s27 + $0x678] sm:$0xff] %v2758_v15 }
  0x7d   : > { %2761 = vst [vmem:[%s28136_s27 + $0x680] sm:$0xff] %v2760_v16  ;;  %2763 = vst [vmem:[%s28136_s27 + $0x688] sm:$0xff] %v2762_v17  ;;  %v2764_v18 = vld [vmem:[%s28128_s26 + $0xd20] sm:$0xff]  ;;  %v2766_v19 = vld [vmem:[%s28128_s26 + $0xd30] sm:$0xff] }
  0x7e   : > { %v2768_v20 = vld [vmem:[%s28128_s26 + $0xd40] sm:$0xff]  ;;  %2765 = vst [vmem:[%s28136_s27 + $0x690] sm:$0xff] %v2764_v18  ;;  %2767 = vst [vmem:[%s28136_s27 + $0x698] sm:$0xff] %v2766_v19  ;;  %v2770_v21 = vld [vmem:[%s28128_s26 + $0xd50] sm:$0xff] }
  0x7f   : > { %2769 = vst [vmem:[%s28136_s27 + $0x6a0] sm:$0xff] %v2768_v20  ;;  %v2772_v22 = vld [vmem:[%s28128_s26 + $0xd60] sm:$0xff]  ;;  %v2774_v23 = vld [vmem:[%s28128_s26 + $0xd70] sm:$0xff]  ;;  %2771 = vst [vmem:[%s28136_s27 + $0x6a8] sm:$0xff] %v2770_v21 }
  0x80   : > { %2773 = vst [vmem:[%s28136_s27 + $0x6b0] sm:$0xff] %v2772_v22  ;;  %2775 = vst [vmem:[%s28136_s27 + $0x6b8] sm:$0xff] %v2774_v23  ;;  %v2776_v24 = vld [vmem:[%s28128_s26 + $0xd80] sm:$0xff]  ;;  %v2778_v25 = vld [vmem:[%s28128_s26 + $0xd90] sm:$0xff] }
  0x81   : > { %v2780_v26 = vld [vmem:[%s28128_s26 + $0xda0] sm:$0xff]  ;;  %2777 = vst [vmem:[%s28136_s27 + $0x6c0] sm:$0xff] %v2776_v24  ;;  %2779 = vst [vmem:[%s28136_s27 + $0x6c8] sm:$0xff] %v2778_v25  ;;  %v2782_v27 = vld [vmem:[%s28128_s26 + $0xdb0] sm:$0xff] }
  0x82   : > { %2781 = vst [vmem:[%s28136_s27 + $0x6d0] sm:$0xff] %v2780_v26  ;;  %v2784_v28 = vld [vmem:[%s28128_s26 + $0xdc0] sm:$0xff]  ;;  %v2786_v29 = vld [vmem:[%s28128_s26 + $0xdd0] sm:$0xff]  ;;  %2783 = vst [vmem:[%s28136_s27 + $0x6d8] sm:$0xff] %v2782_v27 }
  0x83   : > { %2785 = vst [vmem:[%s28136_s27 + $0x6e0] sm:$0xff] %v2784_v28  ;;  %2787 = vst [vmem:[%s28136_s27 + $0x6e8] sm:$0xff] %v2786_v29  ;;  %v2788_v30 = vld [vmem:[%s28128_s26 + $0xde0] sm:$0xff]  ;;  %v2790_v31 = vld [vmem:[%s28128_s26 + $0xdf0] sm:$0xff] }
  0x84   : > { %v2792_v32 = vld [vmem:[%s28128_s26 + $0xe00] sm:$0xff]  ;;  %2789 = vst [vmem:[%s28136_s27 + $0x6f0] sm:$0xff] %v2788_v30  ;;  %2791 = vst [vmem:[%s28136_s27 + $0x6f8] sm:$0xff] %v2790_v31  ;;  %v2794_v33 = vld [vmem:[%s28128_s26 + $0xe10] sm:$0xff] }
  0x85   : > { %2793 = vst [vmem:[%s28136_s27 + $0x700] sm:$0xff] %v2792_v32  ;;  %v2796_v34 = vld [vmem:[%s28128_s26 + $0xe20] sm:$0xff]  ;;  %v2798_v35 = vld [vmem:[%s28128_s26 + $0xe30] sm:$0xff]  ;;  %2795 = vst [vmem:[%s28136_s27 + $0x708] sm:$0xff] %v2794_v33 }
  0x86   : > { %2797 = vst [vmem:[%s28136_s27 + $0x710] sm:$0xff] %v2796_v34  ;;  %2799 = vst [vmem:[%s28136_s27 + $0x718] sm:$0xff] %v2798_v35  ;;  %v2800_v36 = vld [vmem:[%s28128_s26 + $0xe40] sm:$0xff]  ;;  %v2802_v37 = vld [vmem:[%s28128_s26 + $0xe50] sm:$0xff] }
  0x87   : > { %v2804_v38 = vld [vmem:[%s28128_s26 + $0xe60] sm:$0xff]  ;;  %2801 = vst [vmem:[%s28136_s27 + $0x720] sm:$0xff] %v2800_v36  ;;  %2803 = vst [vmem:[%s28136_s27 + $0x728] sm:$0xff] %v2802_v37  ;;  %v2806_v39 = vld [vmem:[%s28128_s26 + $0xe70] sm:$0xff] }
  0x88   : > { %2805 = vst [vmem:[%s28136_s27 + $0x730] sm:$0xff] %v2804_v38  ;;  %v2808_v40 = vld [vmem:[%s28128_s26 + $0xe80] sm:$0xff]  ;;  %v2810_v41 = vld [vmem:[%s28128_s26 + $0xe90] sm:$0xff]  ;;  %2807 = vst [vmem:[%s28136_s27 + $0x738] sm:$0xff] %v2806_v39 }
  0x89   : > { %2809 = vst [vmem:[%s28136_s27 + $0x740] sm:$0xff] %v2808_v40  ;;  %2811 = vst [vmem:[%s28136_s27 + $0x748] sm:$0xff] %v2810_v41  ;;  %v2812_v42 = vld [vmem:[%s28128_s26 + $0xea0] sm:$0xff]  ;;  %v2814_v43 = vld [vmem:[%s28128_s26 + $0xeb0] sm:$0xff] }
  0x8a   : > { %v2816_v44 = vld [vmem:[%s28128_s26 + $0xec0] sm:$0xff]  ;;  %2813 = vst [vmem:[%s28136_s27 + $0x750] sm:$0xff] %v2812_v42  ;;  %2815 = vst [vmem:[%s28136_s27 + $0x758] sm:$0xff] %v2814_v43  ;;  %v2818_v45 = vld [vmem:[%s28128_s26 + $0xed0] sm:$0xff] }
  0x8b   : > { %2817 = vst [vmem:[%s28136_s27 + $0x760] sm:$0xff] %v2816_v44  ;;  %v2820_v46 = vld [vmem:[%s28128_s26 + $0xee0] sm:$0xff]  ;;  %v2822_v47 = vld [vmem:[%s28128_s26 + $0xef0] sm:$0xff]  ;;  %2819 = vst [vmem:[%s28136_s27 + $0x768] sm:$0xff] %v2818_v45 }
  0x8c   : > { %2821 = vst [vmem:[%s28136_s27 + $0x770] sm:$0xff] %v2820_v46  ;;  %2823 = vst [vmem:[%s28136_s27 + $0x778] sm:$0xff] %v2822_v47  ;;  %v2824_v48 = vld [vmem:[%s28128_s26 + $0xf00] sm:$0xff]  ;;  %v2826_v49 = vld [vmem:[%s28128_s26 + $0xf10] sm:$0xff] }
  0x8d   : > { %v2828_v50 = vld [vmem:[%s28128_s26 + $0xf20] sm:$0xff]  ;;  %2825 = vst [vmem:[%s28136_s27 + $0x780] sm:$0xff] %v2824_v48  ;;  %2827 = vst [vmem:[%s28136_s27 + $0x788] sm:$0xff] %v2826_v49  ;;  %v2830_v51 = vld [vmem:[%s28128_s26 + $0xf30] sm:$0xff] }
  0x8e   : > { %2829 = vst [vmem:[%s28136_s27 + $0x790] sm:$0xff] %v2828_v50  ;;  %v2832_v52 = vld [vmem:[%s28128_s26 + $0xf40] sm:$0xff]  ;;  %v2834_v53 = vld [vmem:[%s28128_s26 + $0xf50] sm:$0xff]  ;;  %2831 = vst [vmem:[%s28136_s27 + $0x798] sm:$0xff] %v2830_v51 }
  0x8f   : > { %2833 = vst [vmem:[%s28136_s27 + $0x7a0] sm:$0xff] %v2832_v52  ;;  %2835 = vst [vmem:[%s28136_s27 + $0x7a8] sm:$0xff] %v2834_v53  ;;  %v2836_v54 = vld [vmem:[%s28128_s26 + $0xf60] sm:$0xff]  ;;  %v2838_v55 = vld [vmem:[%s28128_s26 + $0xf70] sm:$0xff] }
  0x90   : > { %v2840_v56 = vld [vmem:[%s28128_s26 + $0xf80] sm:$0xff]  ;;  %2837 = vst [vmem:[%s28136_s27 + $0x7b0] sm:$0xff] %v2836_v54  ;;  %2839 = vst [vmem:[%s28136_s27 + $0x7b8] sm:$0xff] %v2838_v55  ;;  %v2842_v57 = vld [vmem:[%s28128_s26 + $0xf90] sm:$0xff] }
  0x91   : > { %2841 = vst [vmem:[%s28136_s27 + $0x7c0] sm:$0xff] %v2840_v56  ;;  %v2844_v58 = vld [vmem:[%s28128_s26 + $0xfa0] sm:$0xff]  ;;  %v2846_v59 = vld [vmem:[%s28128_s26 + $0xfb0] sm:$0xff]  ;;  %2843 = vst [vmem:[%s28136_s27 + $0x7c8] sm:$0xff] %v2842_v57 }
  0x92   : > { %2845 = vst [vmem:[%s28136_s27 + $0x7d0] sm:$0xff] %v2844_v58  ;;  %2847 = vst [vmem:[%s28136_s27 + $0x7d8] sm:$0xff] %v2846_v59  ;;  %v2848_v60 = vld [vmem:[%s28128_s26 + $0xfc0] sm:$0xff]  ;;  %v2850_v61 = vld [vmem:[%s28128_s26 + $0xfd0] sm:$0xff] }
  0x93   : > { %v2852_v62 = vld [vmem:[%s28128_s26 + $0xfe0] sm:$0xff]  ;;  %2849 = vst [vmem:[%s28136_s27 + $0x7e0] sm:$0xff] %v2848_v60  ;;  %2851 = vst [vmem:[%s28136_s27 + $0x7e8] sm:$0xff] %v2850_v61  ;;  %v2854_v63 = vld [vmem:[%s28128_s26 + $0xff0] sm:$0xff] }
  0x94   : > { %2853 = vst [vmem:[%s28136_s27 + $0x7f0] sm:$0xff] %v2852_v62  ;;  %v2856_v0 = vld [vmem:[%s28128_s26 + $0x1000] sm:$0xff]  ;;  %v2858_v1 = vld [vmem:[%s28128_s26 + $0x1010] sm:$0xff]  ;;  %2855 = vst [vmem:[%s28136_s27 + $0x7f8] sm:$0xff] %v2854_v63 }
  0x95   : > { %2857 = vst [vmem:[%s28136_s27 + $0x800] sm:$0xff] %v2856_v0  ;;  %2859 = vst [vmem:[%s28136_s27 + $0x808] sm:$0xff] %v2858_v1  ;;  %v2860_v2 = vld [vmem:[%s28128_s26 + $0x1020] sm:$0xff]  ;;  %v2862_v3 = vld [vmem:[%s28128_s26 + $0x1030] sm:$0xff] }
  0x96   : > { %v2864_v4 = vld [vmem:[%s28128_s26 + $0x1040] sm:$0xff]  ;;  %2861 = vst [vmem:[%s28136_s27 + $0x810] sm:$0xff] %v2860_v2  ;;  %2863 = vst [vmem:[%s28136_s27 + $0x818] sm:$0xff] %v2862_v3  ;;  %v2866_v5 = vld [vmem:[%s28128_s26 + $0x1050] sm:$0xff] }
  0x97   : > { %2865 = vst [vmem:[%s28136_s27 + $0x820] sm:$0xff] %v2864_v4  ;;  %v2868_v6 = vld [vmem:[%s28128_s26 + $0x1060] sm:$0xff]  ;;  %v2870_v7 = vld [vmem:[%s28128_s26 + $0x1070] sm:$0xff]  ;;  %2867 = vst [vmem:[%s28136_s27 + $0x828] sm:$0xff] %v2866_v5 }
  0x98   : > { %2869 = vst [vmem:[%s28136_s27 + $0x830] sm:$0xff] %v2868_v6  ;;  %2871 = vst [vmem:[%s28136_s27 + $0x838] sm:$0xff] %v2870_v7  ;;  %v2872_v8 = vld [vmem:[%s28128_s26 + $0x1080] sm:$0xff]  ;;  %v2874_v9 = vld [vmem:[%s28128_s26 + $0x1090] sm:$0xff] }
  0x99   : > { %v2876_v10 = vld [vmem:[%s28128_s26 + $0x10a0] sm:$0xff]  ;;  %2873 = vst [vmem:[%s28136_s27 + $0x840] sm:$0xff] %v2872_v8  ;;  %2875 = vst [vmem:[%s28136_s27 + $0x848] sm:$0xff] %v2874_v9  ;;  %v2878_v11 = vld [vmem:[%s28128_s26 + $0x10b0] sm:$0xff] }
  0x9a   : > { %2877 = vst [vmem:[%s28136_s27 + $0x850] sm:$0xff] %v2876_v10  ;;  %v2880_v12 = vld [vmem:[%s28128_s26 + $0x10c0] sm:$0xff]  ;;  %v2882_v13 = vld [vmem:[%s28128_s26 + $0x10d0] sm:$0xff]  ;;  %2879 = vst [vmem:[%s28136_s27 + $0x858] sm:$0xff] %v2878_v11 }
  0x9b   : > { %2881 = vst [vmem:[%s28136_s27 + $0x860] sm:$0xff] %v2880_v12  ;;  %2883 = vst [vmem:[%s28136_s27 + $0x868] sm:$0xff] %v2882_v13  ;;  %v2884_v14 = vld [vmem:[%s28128_s26 + $0x10e0] sm:$0xff]  ;;  %v2886_v15 = vld [vmem:[%s28128_s26 + $0x10f0] sm:$0xff] }
  0x9c   : > { %v2888_v16 = vld [vmem:[%s28128_s26 + $0x1100] sm:$0xff]  ;;  %2885 = vst [vmem:[%s28136_s27 + $0x870] sm:$0xff] %v2884_v14  ;;  %2887 = vst [vmem:[%s28136_s27 + $0x878] sm:$0xff] %v2886_v15  ;;  %v2890_v17 = vld [vmem:[%s28128_s26 + $0x1110] sm:$0xff] }
  0x9d   : > { %2889 = vst [vmem:[%s28136_s27 + $0x880] sm:$0xff] %v2888_v16  ;;  %v2892_v18 = vld [vmem:[%s28128_s26 + $0x1120] sm:$0xff]  ;;  %v2894_v19 = vld [vmem:[%s28128_s26 + $0x1130] sm:$0xff]  ;;  %2891 = vst [vmem:[%s28136_s27 + $0x888] sm:$0xff] %v2890_v17 }
  0x9e   : > { %2893 = vst [vmem:[%s28136_s27 + $0x890] sm:$0xff] %v2892_v18  ;;  %2895 = vst [vmem:[%s28136_s27 + $0x898] sm:$0xff] %v2894_v19  ;;  %v2896_v20 = vld [vmem:[%s28128_s26 + $0x1140] sm:$0xff]  ;;  %v2898_v21 = vld [vmem:[%s28128_s26 + $0x1150] sm:$0xff] }
  0x9f   : > { %v2900_v22 = vld [vmem:[%s28128_s26 + $0x1160] sm:$0xff]  ;;  %2897 = vst [vmem:[%s28136_s27 + $0x8a0] sm:$0xff] %v2896_v20  ;;  %2899 = vst [vmem:[%s28136_s27 + $0x8a8] sm:$0xff] %v2898_v21  ;;  %v2902_v23 = vld [vmem:[%s28128_s26 + $0x1170] sm:$0xff] }
  0xa0   : > { %2901 = vst [vmem:[%s28136_s27 + $0x8b0] sm:$0xff] %v2900_v22  ;;  %v2904_v24 = vld [vmem:[%s28128_s26 + $0x1180] sm:$0xff]  ;;  %v2906_v25 = vld [vmem:[%s28128_s26 + $0x1190] sm:$0xff]  ;;  %2903 = vst [vmem:[%s28136_s27 + $0x8b8] sm:$0xff] %v2902_v23 }
  0xa1   : > { %2905 = vst [vmem:[%s28136_s27 + $0x8c0] sm:$0xff] %v2904_v24  ;;  %2907 = vst [vmem:[%s28136_s27 + $0x8c8] sm:$0xff] %v2906_v25  ;;  %v2908_v26 = vld [vmem:[%s28128_s26 + $0x11a0] sm:$0xff]  ;;  %v2910_v27 = vld [vmem:[%s28128_s26 + $0x11b0] sm:$0xff] }
  0xa2   : > { %v2912_v28 = vld [vmem:[%s28128_s26 + $0x11c0] sm:$0xff]  ;;  %2909 = vst [vmem:[%s28136_s27 + $0x8d0] sm:$0xff] %v2908_v26  ;;  %2911 = vst [vmem:[%s28136_s27 + $0x8d8] sm:$0xff] %v2910_v27  ;;  %v2914_v29 = vld [vmem:[%s28128_s26 + $0x11d0] sm:$0xff] }
  0xa3   : > { %2913 = vst [vmem:[%s28136_s27 + $0x8e0] sm:$0xff] %v2912_v28  ;;  %v2916_v30 = vld [vmem:[%s28128_s26 + $0x11e0] sm:$0xff]  ;;  %v2918_v31 = vld [vmem:[%s28128_s26 + $0x11f0] sm:$0xff]  ;;  %2915 = vst [vmem:[%s28136_s27 + $0x8e8] sm:$0xff] %v2914_v29 }
  0xa4   : > { %2917 = vst [vmem:[%s28136_s27 + $0x8f0] sm:$0xff] %v2916_v30  ;;  %2919 = vst [vmem:[%s28136_s27 + $0x8f8] sm:$0xff] %v2918_v31  ;;  %v2920_v32 = vld [vmem:[%s28128_s26 + $0x1200] sm:$0xff]  ;;  %v2922_v33 = vld [vmem:[%s28128_s26 + $0x1210] sm:$0xff] }
  0xa5   : > { %v2924_v34 = vld [vmem:[%s28128_s26 + $0x1220] sm:$0xff]  ;;  %2921 = vst [vmem:[%s28136_s27 + $0x900] sm:$0xff] %v2920_v32  ;;  %2923 = vst [vmem:[%s28136_s27 + $0x908] sm:$0xff] %v2922_v33  ;;  %v2926_v35 = vld [vmem:[%s28128_s26 + $0x1230] sm:$0xff] }
  0xa6   : > { %2925 = vst [vmem:[%s28136_s27 + $0x910] sm:$0xff] %v2924_v34  ;;  %v2928_v36 = vld [vmem:[%s28128_s26 + $0x1240] sm:$0xff]  ;;  %v2930_v37 = vld [vmem:[%s28128_s26 + $0x1250] sm:$0xff]  ;;  %2927 = vst [vmem:[%s28136_s27 + $0x918] sm:$0xff] %v2926_v35 }
  0xa7   : > { %2929 = vst [vmem:[%s28136_s27 + $0x920] sm:$0xff] %v2928_v36  ;;  %2931 = vst [vmem:[%s28136_s27 + $0x928] sm:$0xff] %v2930_v37  ;;  %v2932_v38 = vld [vmem:[%s28128_s26 + $0x1260] sm:$0xff]  ;;  %v2934_v39 = vld [vmem:[%s28128_s26 + $0x1270] sm:$0xff] }
  0xa8   : > { %v2936_v40 = vld [vmem:[%s28128_s26 + $0x1280] sm:$0xff]  ;;  %2933 = vst [vmem:[%s28136_s27 + $0x930] sm:$0xff] %v2932_v38  ;;  %2935 = vst [vmem:[%s28136_s27 + $0x938] sm:$0xff] %v2934_v39  ;;  %v2938_v41 = vld [vmem:[%s28128_s26 + $0x1290] sm:$0xff] }
  0xa9   : > { %2937 = vst [vmem:[%s28136_s27 + $0x940] sm:$0xff] %v2936_v40  ;;  %v2940_v42 = vld [vmem:[%s28128_s26 + $0x12a0] sm:$0xff]  ;;  %v2942_v43 = vld [vmem:[%s28128_s26 + $0x12b0] sm:$0xff]  ;;  %2939 = vst [vmem:[%s28136_s27 + $0x948] sm:$0xff] %v2938_v41 }
  0xaa   : > { %2941 = vst [vmem:[%s28136_s27 + $0x950] sm:$0xff] %v2940_v42  ;;  %2943 = vst [vmem:[%s28136_s27 + $0x958] sm:$0xff] %v2942_v43  ;;  %v2944_v44 = vld [vmem:[%s28128_s26 + $0x12c0] sm:$0xff]  ;;  %v2946_v45 = vld [vmem:[%s28128_s26 + $0x12d0] sm:$0xff] }
  0xab   : > { %v2948_v46 = vld [vmem:[%s28128_s26 + $0x12e0] sm:$0xff]  ;;  %2945 = vst [vmem:[%s28136_s27 + $0x960] sm:$0xff] %v2944_v44  ;;  %2947 = vst [vmem:[%s28136_s27 + $0x968] sm:$0xff] %v2946_v45  ;;  %v2950_v47 = vld [vmem:[%s28128_s26 + $0x12f0] sm:$0xff] }
  0xac   : > { %2949 = vst [vmem:[%s28136_s27 + $0x970] sm:$0xff] %v2948_v46  ;;  %v2952_v48 = vld [vmem:[%s28128_s26 + $0x1300] sm:$0xff]  ;;  %v2954_v49 = vld [vmem:[%s28128_s26 + $0x1310] sm:$0xff]  ;;  %2951 = vst [vmem:[%s28136_s27 + $0x978] sm:$0xff] %v2950_v47 }
  0xad   : > { %2953 = vst [vmem:[%s28136_s27 + $0x980] sm:$0xff] %v2952_v48  ;;  %2955 = vst [vmem:[%s28136_s27 + $0x988] sm:$0xff] %v2954_v49  ;;  %v2956_v50 = vld [vmem:[%s28128_s26 + $0x1320] sm:$0xff]  ;;  %v2958_v51 = vld [vmem:[%s28128_s26 + $0x1330] sm:$0xff] }
  0xae   : > { %v2960_v52 = vld [vmem:[%s28128_s26 + $0x1340] sm:$0xff]  ;;  %2957 = vst [vmem:[%s28136_s27 + $0x990] sm:$0xff] %v2956_v50  ;;  %2959 = vst [vmem:[%s28136_s27 + $0x998] sm:$0xff] %v2958_v51  ;;  %v2962_v53 = vld [vmem:[%s28128_s26 + $0x1350] sm:$0xff] }
  0xaf   : > { %2961 = vst [vmem:[%s28136_s27 + $0x9a0] sm:$0xff] %v2960_v52  ;;  %v2964_v54 = vld [vmem:[%s28128_s26 + $0x1360] sm:$0xff]  ;;  %v2966_v55 = vld [vmem:[%s28128_s26 + $0x1370] sm:$0xff]  ;;  %2963 = vst [vmem:[%s28136_s27 + $0x9a8] sm:$0xff] %v2962_v53 }
  0xb0   : > { %2965 = vst [vmem:[%s28136_s27 + $0x9b0] sm:$0xff] %v2964_v54  ;;  %2967 = vst [vmem:[%s28136_s27 + $0x9b8] sm:$0xff] %v2966_v55  ;;  %v2968_v56 = vld [vmem:[%s28128_s26 + $0x1380] sm:$0xff]  ;;  %v2970_v57 = vld [vmem:[%s28128_s26 + $0x1390] sm:$0xff] }
  0xb1   : > { %v2972_v58 = vld [vmem:[%s28128_s26 + $0x13a0] sm:$0xff]  ;;  %2969 = vst [vmem:[%s28136_s27 + $0x9c0] sm:$0xff] %v2968_v56  ;;  %2971 = vst [vmem:[%s28136_s27 + $0x9c8] sm:$0xff] %v2970_v57  ;;  %v2974_v59 = vld [vmem:[%s28128_s26 + $0x13b0] sm:$0xff] }
  0xb2   : > { %2973 = vst [vmem:[%s28136_s27 + $0x9d0] sm:$0xff] %v2972_v58  ;;  %v2976_v60 = vld [vmem:[%s28128_s26 + $0x13c0] sm:$0xff]  ;;  %v2978_v61 = vld [vmem:[%s28128_s26 + $0x13d0] sm:$0xff]  ;;  %2975 = vst [vmem:[%s28136_s27 + $0x9d8] sm:$0xff] %v2974_v59 }
  0xb3   : > { %2977 = vst [vmem:[%s28136_s27 + $0x9e0] sm:$0xff] %v2976_v60  ;;  %2979 = vst [vmem:[%s28136_s27 + $0x9e8] sm:$0xff] %v2978_v61  ;;  %v2980_v62 = vld [vmem:[%s28128_s26 + $0x13e0] sm:$0xff]  ;;  %v2982_v63 = vld [vmem:[%s28128_s26 + $0x13f0] sm:$0xff] }
  0xb4   : > { %v2984_v0 = vld [vmem:[%s28128_s26 + $0x1400] sm:$0xff]  ;;  %2981 = vst [vmem:[%s28136_s27 + $0x9f0] sm:$0xff] %v2980_v62  ;;  %2983 = vst [vmem:[%s28136_s27 + $0x9f8] sm:$0xff] %v2982_v63  ;;  %v2986_v1 = vld [vmem:[%s28128_s26 + $0x1410] sm:$0xff] }
  0xb5   : > { %2985 = vst [vmem:[%s28136_s27 + $0xa00] sm:$0xff] %v2984_v0  ;;  %v2988_v2 = vld [vmem:[%s28128_s26 + $0x1420] sm:$0xff]  ;;  %v2990_v3 = vld [vmem:[%s28128_s26 + $0x1430] sm:$0xff]  ;;  %2987 = vst [vmem:[%s28136_s27 + $0xa08] sm:$0xff] %v2986_v1 }
  0xb6   : > { %2989 = vst [vmem:[%s28136_s27 + $0xa10] sm:$0xff] %v2988_v2  ;;  %2991 = vst [vmem:[%s28136_s27 + $0xa18] sm:$0xff] %v2990_v3  ;;  %v2992_v4 = vld [vmem:[%s28128_s26 + $0x1440] sm:$0xff]  ;;  %v2994_v5 = vld [vmem:[%s28128_s26 + $0x1450] sm:$0xff] }
  0xb7   : > { %v2996_v6 = vld [vmem:[%s28128_s26 + $0x1460] sm:$0xff]  ;;  %2993 = vst [vmem:[%s28136_s27 + $0xa20] sm:$0xff] %v2992_v4  ;;  %2995 = vst [vmem:[%s28136_s27 + $0xa28] sm:$0xff] %v2994_v5  ;;  %v2998_v7 = vld [vmem:[%s28128_s26 + $0x1470] sm:$0xff] }
  0xb8   : > { %2997 = vst [vmem:[%s28136_s27 + $0xa30] sm:$0xff] %v2996_v6  ;;  %v3000_v8 = vld [vmem:[%s28128_s26 + $0x1480] sm:$0xff]  ;;  %v3002_v9 = vld [vmem:[%s28128_s26 + $0x1490] sm:$0xff]  ;;  %2999 = vst [vmem:[%s28136_s27 + $0xa38] sm:$0xff] %v2998_v7 }
  0xb9   : > { %3001 = vst [vmem:[%s28136_s27 + $0xa40] sm:$0xff] %v3000_v8  ;;  %3003 = vst [vmem:[%s28136_s27 + $0xa48] sm:$0xff] %v3002_v9  ;;  %v3004_v10 = vld [vmem:[%s28128_s26 + $0x14a0] sm:$0xff]  ;;  %v3006_v11 = vld [vmem:[%s28128_s26 + $0x14b0] sm:$0xff] }
  0xba   : > { %v3008_v12 = vld [vmem:[%s28128_s26 + $0x14c0] sm:$0xff]  ;;  %3005 = vst [vmem:[%s28136_s27 + $0xa50] sm:$0xff] %v3004_v10  ;;  %3007 = vst [vmem:[%s28136_s27 + $0xa58] sm:$0xff] %v3006_v11  ;;  %v3010_v13 = vld [vmem:[%s28128_s26 + $0x14d0] sm:$0xff] }
  0xbb   : > { %3009 = vst [vmem:[%s28136_s27 + $0xa60] sm:$0xff] %v3008_v12  ;;  %v3012_v14 = vld [vmem:[%s28128_s26 + $0x14e0] sm:$0xff]  ;;  %v3014_v15 = vld [vmem:[%s28128_s26 + $0x14f0] sm:$0xff]  ;;  %3011 = vst [vmem:[%s28136_s27 + $0xa68] sm:$0xff] %v3010_v13 }
  0xbc   : > { %3013 = vst [vmem:[%s28136_s27 + $0xa70] sm:$0xff] %v3012_v14  ;;  %3015 = vst [vmem:[%s28136_s27 + $0xa78] sm:$0xff] %v3014_v15  ;;  %v3016_v16 = vld [vmem:[%s28128_s26 + $0x1500] sm:$0xff]  ;;  %v3018_v17 = vld [vmem:[%s28128_s26 + $0x1510] sm:$0xff] }
  0xbd   : > { %v3020_v18 = vld [vmem:[%s28128_s26 + $0x1520] sm:$0xff]  ;;  %3017 = vst [vmem:[%s28136_s27 + $0xa80] sm:$0xff] %v3016_v16  ;;  %3019 = vst [vmem:[%s28136_s27 + $0xa88] sm:$0xff] %v3018_v17  ;;  %v3022_v19 = vld [vmem:[%s28128_s26 + $0x1530] sm:$0xff] }
  0xbe   : > { %3021 = vst [vmem:[%s28136_s27 + $0xa90] sm:$0xff] %v3020_v18  ;;  %v3024_v20 = vld [vmem:[%s28128_s26 + $0x1540] sm:$0xff]  ;;  %v3026_v21 = vld [vmem:[%s28128_s26 + $0x1550] sm:$0xff]  ;;  %3023 = vst [vmem:[%s28136_s27 + $0xa98] sm:$0xff] %v3022_v19 }
  0xbf   : > { %3025 = vst [vmem:[%s28136_s27 + $0xaa0] sm:$0xff] %v3024_v20  ;;  %3027 = vst [vmem:[%s28136_s27 + $0xaa8] sm:$0xff] %v3026_v21  ;;  %v3028_v22 = vld [vmem:[%s28128_s26 + $0x1560] sm:$0xff]  ;;  %v3030_v23 = vld [vmem:[%s28128_s26 + $0x1570] sm:$0xff] }
  0xc0   : > { %v3032_v24 = vld [vmem:[%s28128_s26 + $0x1580] sm:$0xff]  ;;  %3029 = vst [vmem:[%s28136_s27 + $0xab0] sm:$0xff] %v3028_v22  ;;  %3031 = vst [vmem:[%s28136_s27 + $0xab8] sm:$0xff] %v3030_v23  ;;  %v3034_v25 = vld [vmem:[%s28128_s26 + $0x1590] sm:$0xff] }
  0xc1   : > { %3033 = vst [vmem:[%s28136_s27 + $0xac0] sm:$0xff] %v3032_v24  ;;  %v3036_v26 = vld [vmem:[%s28128_s26 + $0x15a0] sm:$0xff]  ;;  %v3038_v27 = vld [vmem:[%s28128_s26 + $0x15b0] sm:$0xff]  ;;  %3035 = vst [vmem:[%s28136_s27 + $0xac8] sm:$0xff] %v3034_v25 }
  0xc2   : > { %3037 = vst [vmem:[%s28136_s27 + $0xad0] sm:$0xff] %v3036_v26  ;;  %3039 = vst [vmem:[%s28136_s27 + $0xad8] sm:$0xff] %v3038_v27  ;;  %v3040_v28 = vld [vmem:[%s28128_s26 + $0x15c0] sm:$0xff]  ;;  %v3042_v29 = vld [vmem:[%s28128_s26 + $0x15d0] sm:$0xff] }
  0xc3   : > { %v3044_v30 = vld [vmem:[%s28128_s26 + $0x15e0] sm:$0xff]  ;;  %3041 = vst [vmem:[%s28136_s27 + $0xae0] sm:$0xff] %v3040_v28  ;;  %3043 = vst [vmem:[%s28136_s27 + $0xae8] sm:$0xff] %v3042_v29  ;;  %v3046_v31 = vld [vmem:[%s28128_s26 + $0x15f0] sm:$0xff] }
  0xc4   : > { %3045 = vst [vmem:[%s28136_s27 + $0xaf0] sm:$0xff] %v3044_v30  ;;  %v3048_v32 = vld [vmem:[%s28128_s26 + $0x1600] sm:$0xff]  ;;  %v3050_v33 = vld [vmem:[%s28128_s26 + $0x1610] sm:$0xff]  ;;  %3047 = vst [vmem:[%s28136_s27 + $0xaf8] sm:$0xff] %v3046_v31 }
  0xc5   : > { %3049 = vst [vmem:[%s28136_s27 + $0xb00] sm:$0xff] %v3048_v32  ;;  %3051 = vst [vmem:[%s28136_s27 + $0xb08] sm:$0xff] %v3050_v33  ;;  %v3052_v34 = vld [vmem:[%s28128_s26 + $0x1620] sm:$0xff]  ;;  %v3054_v35 = vld [vmem:[%s28128_s26 + $0x1630] sm:$0xff] }
  0xc6   : > { %v3056_v36 = vld [vmem:[%s28128_s26 + $0x1640] sm:$0xff]  ;;  %3053 = vst [vmem:[%s28136_s27 + $0xb10] sm:$0xff] %v3052_v34  ;;  %3055 = vst [vmem:[%s28136_s27 + $0xb18] sm:$0xff] %v3054_v35  ;;  %v3058_v37 = vld [vmem:[%s28128_s26 + $0x1650] sm:$0xff] }
  0xc7   : > { %3057 = vst [vmem:[%s28136_s27 + $0xb20] sm:$0xff] %v3056_v36  ;;  %v3060_v38 = vld [vmem:[%s28128_s26 + $0x1660] sm:$0xff]  ;;  %v3062_v39 = vld [vmem:[%s28128_s26 + $0x1670] sm:$0xff]  ;;  %3059 = vst [vmem:[%s28136_s27 + $0xb28] sm:$0xff] %v3058_v37 }
  0xc8   : > { %3061 = vst [vmem:[%s28136_s27 + $0xb30] sm:$0xff] %v3060_v38  ;;  %3063 = vst [vmem:[%s28136_s27 + $0xb38] sm:$0xff] %v3062_v39  ;;  %v3064_v40 = vld [vmem:[%s28128_s26 + $0x1680] sm:$0xff]  ;;  %v3066_v41 = vld [vmem:[%s28128_s26 + $0x1690] sm:$0xff] }
  0xc9   : > { %v3068_v42 = vld [vmem:[%s28128_s26 + $0x16a0] sm:$0xff]  ;;  %3065 = vst [vmem:[%s28136_s27 + $0xb40] sm:$0xff] %v3064_v40  ;;  %3067 = vst [vmem:[%s28136_s27 + $0xb48] sm:$0xff] %v3066_v41  ;;  %v3070_v43 = vld [vmem:[%s28128_s26 + $0x16b0] sm:$0xff] }
  0xca   : > { %3069 = vst [vmem:[%s28136_s27 + $0xb50] sm:$0xff] %v3068_v42  ;;  %v3072_v44 = vld [vmem:[%s28128_s26 + $0x16c0] sm:$0xff]  ;;  %v3074_v45 = vld [vmem:[%s28128_s26 + $0x16d0] sm:$0xff]  ;;  %3071 = vst [vmem:[%s28136_s27 + $0xb58] sm:$0xff] %v3070_v43 }
  0xcb   : > { %3073 = vst [vmem:[%s28136_s27 + $0xb60] sm:$0xff] %v3072_v44  ;;  %3075 = vst [vmem:[%s28136_s27 + $0xb68] sm:$0xff] %v3074_v45  ;;  %v3076_v46 = vld [vmem:[%s28128_s26 + $0x16e0] sm:$0xff]  ;;  %v3078_v47 = vld [vmem:[%s28128_s26 + $0x16f0] sm:$0xff] }
  0xcc   : > { %v3080_v48 = vld [vmem:[%s28128_s26 + $0x1700] sm:$0xff]  ;;  %3077 = vst [vmem:[%s28136_s27 + $0xb70] sm:$0xff] %v3076_v46  ;;  %3079 = vst [vmem:[%s28136_s27 + $0xb78] sm:$0xff] %v3078_v47  ;;  %v3082_v49 = vld [vmem:[%s28128_s26 + $0x1710] sm:$0xff] }
  0xcd   : > { %3081 = vst [vmem:[%s28136_s27 + $0xb80] sm:$0xff] %v3080_v48  ;;  %v3084_v50 = vld [vmem:[%s28128_s26 + $0x1720] sm:$0xff]  ;;  %v3086_v51 = vld [vmem:[%s28128_s26 + $0x1730] sm:$0xff]  ;;  %3083 = vst [vmem:[%s28136_s27 + $0xb88] sm:$0xff] %v3082_v49 }
  0xce   : > { %3085 = vst [vmem:[%s28136_s27 + $0xb90] sm:$0xff] %v3084_v50  ;;  %3087 = vst [vmem:[%s28136_s27 + $0xb98] sm:$0xff] %v3086_v51  ;;  %v3088_v52 = vld [vmem:[%s28128_s26 + $0x1740] sm:$0xff]  ;;  %v3090_v53 = vld [vmem:[%s28128_s26 + $0x1750] sm:$0xff] }
  0xcf   : > { %v3092_v54 = vld [vmem:[%s28128_s26 + $0x1760] sm:$0xff]  ;;  %3089 = vst [vmem:[%s28136_s27 + $0xba0] sm:$0xff] %v3088_v52  ;;  %3091 = vst [vmem:[%s28136_s27 + $0xba8] sm:$0xff] %v3090_v53  ;;  %v3094_v55 = vld [vmem:[%s28128_s26 + $0x1770] sm:$0xff] }
  0xd0   : > { %3093 = vst [vmem:[%s28136_s27 + $0xbb0] sm:$0xff] %v3092_v54  ;;  %v3096_v56 = vld [vmem:[%s28128_s26 + $0x1780] sm:$0xff]  ;;  %v3098_v57 = vld [vmem:[%s28128_s26 + $0x1790] sm:$0xff]  ;;  %3095 = vst [vmem:[%s28136_s27 + $0xbb8] sm:$0xff] %v3094_v55 }
  0xd1   : > { %3097 = vst [vmem:[%s28136_s27 + $0xbc0] sm:$0xff] %v3096_v56  ;;  %3099 = vst [vmem:[%s28136_s27 + $0xbc8] sm:$0xff] %v3098_v57  ;;  %v3100_v58 = vld [vmem:[%s28128_s26 + $0x17a0] sm:$0xff]  ;;  %v3102_v59 = vld [vmem:[%s28128_s26 + $0x17b0] sm:$0xff] }
  0xd2   : > { %v3104_v60 = vld [vmem:[%s28128_s26 + $0x17c0] sm:$0xff]  ;;  %3101 = vst [vmem:[%s28136_s27 + $0xbd0] sm:$0xff] %v3100_v58  ;;  %3103 = vst [vmem:[%s28136_s27 + $0xbd8] sm:$0xff] %v3102_v59  ;;  %v3106_v61 = vld [vmem:[%s28128_s26 + $0x17d0] sm:$0xff] }
  0xd3   : > { %3105 = vst [vmem:[%s28136_s27 + $0xbe0] sm:$0xff] %v3104_v60  ;;  %v3108_v62 = vld [vmem:[%s28128_s26 + $0x17e0] sm:$0xff]  ;;  %v3110_v63 = vld [vmem:[%s28128_s26 + $0x17f0] sm:$0xff]  ;;  %3107 = vst [vmem:[%s28136_s27 + $0xbe8] sm:$0xff] %v3106_v61 }
  0xd4   : > { %3109 = vst [vmem:[%s28136_s27 + $0xbf0] sm:$0xff] %v3108_v62  ;;  %3111 = vst [vmem:[%s28136_s27 + $0xbf8] sm:$0xff] %v3110_v63  ;;  %v3112_v0 = vld [vmem:[%s28128_s26 + $0x1800] sm:$0xff]  ;;  %v3114_v1 = vld [vmem:[%s28128_s26 + $0x1810] sm:$0xff] }
  0xd5   : > { %v3116_v2 = vld [vmem:[%s28128_s26 + $0x1820] sm:$0xff]  ;;  %3113 = vst [vmem:[%s28136_s27 + $0xc00] sm:$0xff] %v3112_v0  ;;  %3115 = vst [vmem:[%s28136_s27 + $0xc08] sm:$0xff] %v3114_v1  ;;  %v3118_v3 = vld [vmem:[%s28128_s26 + $0x1830] sm:$0xff] }
  0xd6   : > { %3117 = vst [vmem:[%s28136_s27 + $0xc10] sm:$0xff] %v3116_v2  ;;  %v3120_v4 = vld [vmem:[%s28128_s26 + $0x1840] sm:$0xff]  ;;  %v3122_v5 = vld [vmem:[%s28128_s26 + $0x1850] sm:$0xff]  ;;  %3119 = vst [vmem:[%s28136_s27 + $0xc18] sm:$0xff] %v3118_v3 }
  0xd7   : > { %3121 = vst [vmem:[%s28136_s27 + $0xc20] sm:$0xff] %v3120_v4  ;;  %3123 = vst [vmem:[%s28136_s27 + $0xc28] sm:$0xff] %v3122_v5  ;;  %v3124_v6 = vld [vmem:[%s28128_s26 + $0x1860] sm:$0xff]  ;;  %v3126_v7 = vld [vmem:[%s28128_s26 + $0x1870] sm:$0xff] }
  0xd8   : > { %v3128_v8 = vld [vmem:[%s28128_s26 + $0x1880] sm:$0xff]  ;;  %3125 = vst [vmem:[%s28136_s27 + $0xc30] sm:$0xff] %v3124_v6  ;;  %3127 = vst [vmem:[%s28136_s27 + $0xc38] sm:$0xff] %v3126_v7  ;;  %v3130_v9 = vld [vmem:[%s28128_s26 + $0x1890] sm:$0xff] }
  0xd9   : > { %3129 = vst [vmem:[%s28136_s27 + $0xc40] sm:$0xff] %v3128_v8  ;;  %v3132_v10 = vld [vmem:[%s28128_s26 + $0x18a0] sm:$0xff]  ;;  %v3134_v11 = vld [vmem:[%s28128_s26 + $0x18b0] sm:$0xff]  ;;  %3131 = vst [vmem:[%s28136_s27 + $0xc48] sm:$0xff] %v3130_v9 }
  0xda   : > { %3133 = vst [vmem:[%s28136_s27 + $0xc50] sm:$0xff] %v3132_v10  ;;  %3135 = vst [vmem:[%s28136_s27 + $0xc58] sm:$0xff] %v3134_v11  ;;  %v3136_v12 = vld [vmem:[%s28128_s26 + $0x18c0] sm:$0xff]  ;;  %v3138_v13 = vld [vmem:[%s28128_s26 + $0x18d0] sm:$0xff] }
  0xdb   : > { %v3140_v14 = vld [vmem:[%s28128_s26 + $0x18e0] sm:$0xff]  ;;  %3137 = vst [vmem:[%s28136_s27 + $0xc60] sm:$0xff] %v3136_v12  ;;  %3139 = vst [vmem:[%s28136_s27 + $0xc68] sm:$0xff] %v3138_v13  ;;  %v3142_v15 = vld [vmem:[%s28128_s26 + $0x18f0] sm:$0xff] }
  0xdc   : > { %3141 = vst [vmem:[%s28136_s27 + $0xc70] sm:$0xff] %v3140_v14  ;;  %v3144_v16 = vld [vmem:[%s28128_s26 + $0x1900] sm:$0xff]  ;;  %v3146_v17 = vld [vmem:[%s28128_s26 + $0x1910] sm:$0xff]  ;;  %3143 = vst [vmem:[%s28136_s27 + $0xc78] sm:$0xff] %v3142_v15 }
  0xdd   : > { %3145 = vst [vmem:[%s28136_s27 + $0xc80] sm:$0xff] %v3144_v16  ;;  %3147 = vst [vmem:[%s28136_s27 + $0xc88] sm:$0xff] %v3146_v17  ;;  %v3148_v18 = vld [vmem:[%s28128_s26 + $0x1920] sm:$0xff]  ;;  %v3150_v19 = vld [vmem:[%s28128_s26 + $0x1930] sm:$0xff] }
  0xde   : > { %v3152_v20 = vld [vmem:[%s28128_s26 + $0x1940] sm:$0xff]  ;;  %3149 = vst [vmem:[%s28136_s27 + $0xc90] sm:$0xff] %v3148_v18  ;;  %3151 = vst [vmem:[%s28136_s27 + $0xc98] sm:$0xff] %v3150_v19  ;;  %v3154_v21 = vld [vmem:[%s28128_s26 + $0x1950] sm:$0xff] }
  0xdf   : > { %3153 = vst [vmem:[%s28136_s27 + $0xca0] sm:$0xff] %v3152_v20  ;;  %v3156_v22 = vld [vmem:[%s28128_s26 + $0x1960] sm:$0xff]  ;;  %v3158_v23 = vld [vmem:[%s28128_s26 + $0x1970] sm:$0xff]  ;;  %3155 = vst [vmem:[%s28136_s27 + $0xca8] sm:$0xff] %v3154_v21 }
  0xe0   : > { %3157 = vst [vmem:[%s28136_s27 + $0xcb0] sm:$0xff] %v3156_v22  ;;  %3159 = vst [vmem:[%s28136_s27 + $0xcb8] sm:$0xff] %v3158_v23  ;;  %v3160_v24 = vld [vmem:[%s28128_s26 + $0x1980] sm:$0xff]  ;;  %v3162_v25 = vld [vmem:[%s28128_s26 + $0x1990] sm:$0xff] }
  0xe1   : > { %v3164_v26 = vld [vmem:[%s28128_s26 + $0x19a0] sm:$0xff]  ;;  %3161 = vst [vmem:[%s28136_s27 + $0xcc0] sm:$0xff] %v3160_v24  ;;  %3163 = vst [vmem:[%s28136_s27 + $0xcc8] sm:$0xff] %v3162_v25  ;;  %v3166_v27 = vld [vmem:[%s28128_s26 + $0x19b0] sm:$0xff] }
  0xe2   : > { %3165 = vst [vmem:[%s28136_s27 + $0xcd0] sm:$0xff] %v3164_v26  ;;  %v3168_v28 = vld [vmem:[%s28128_s26 + $0x19c0] sm:$0xff]  ;;  %v3170_v29 = vld [vmem:[%s28128_s26 + $0x19d0] sm:$0xff]  ;;  %3167 = vst [vmem:[%s28136_s27 + $0xcd8] sm:$0xff] %v3166_v27 }
  0xe3   : > { %3169 = vst [vmem:[%s28136_s27 + $0xce0] sm:$0xff] %v3168_v28  ;;  %3171 = vst [vmem:[%s28136_s27 + $0xce8] sm:$0xff] %v3170_v29  ;;  %v3172_v30 = vld [vmem:[%s28128_s26 + $0x19e0] sm:$0xff]  ;;  %v3174_v31 = vld [vmem:[%s28128_s26 + $0x19f0] sm:$0xff] }
  0xe4   : > { %v3176_v32 = vld [vmem:[%s28128_s26 + $0x1a00] sm:$0xff]  ;;  %3173 = vst [vmem:[%s28136_s27 + $0xcf0] sm:$0xff] %v3172_v30  ;;  %3175 = vst [vmem:[%s28136_s27 + $0xcf8] sm:$0xff] %v3174_v31  ;;  %v3178_v33 = vld [vmem:[%s28128_s26 + $0x1a10] sm:$0xff] }
  0xe5   : > { %3177 = vst [vmem:[%s28136_s27 + $0xd00] sm:$0xff] %v3176_v32  ;;  %v3180_v34 = vld [vmem:[%s28128_s26 + $0x1a20] sm:$0xff]  ;;  %v3182_v35 = vld [vmem:[%s28128_s26 + $0x1a30] sm:$0xff]  ;;  %3179 = vst [vmem:[%s28136_s27 + $0xd08] sm:$0xff] %v3178_v33 }
  0xe6   : > { %3181 = vst [vmem:[%s28136_s27 + $0xd10] sm:$0xff] %v3180_v34  ;;  %3183 = vst [vmem:[%s28136_s27 + $0xd18] sm:$0xff] %v3182_v35  ;;  %v3184_v36 = vld [vmem:[%s28128_s26 + $0x1a40] sm:$0xff]  ;;  %v3186_v37 = vld [vmem:[%s28128_s26 + $0x1a50] sm:$0xff] }
  0xe7   : > { %v3188_v38 = vld [vmem:[%s28128_s26 + $0x1a60] sm:$0xff]  ;;  %3185 = vst [vmem:[%s28136_s27 + $0xd20] sm:$0xff] %v3184_v36  ;;  %3187 = vst [vmem:[%s28136_s27 + $0xd28] sm:$0xff] %v3186_v37  ;;  %v3190_v39 = vld [vmem:[%s28128_s26 + $0x1a70] sm:$0xff] }
  0xe8   : > { %3189 = vst [vmem:[%s28136_s27 + $0xd30] sm:$0xff] %v3188_v38  ;;  %v3192_v40 = vld [vmem:[%s28128_s26 + $0x1a80] sm:$0xff]  ;;  %v3194_v41 = vld [vmem:[%s28128_s26 + $0x1a90] sm:$0xff]  ;;  %3191 = vst [vmem:[%s28136_s27 + $0xd38] sm:$0xff] %v3190_v39 }
  0xe9   : > { %3193 = vst [vmem:[%s28136_s27 + $0xd40] sm:$0xff] %v3192_v40  ;;  %3195 = vst [vmem:[%s28136_s27 + $0xd48] sm:$0xff] %v3194_v41  ;;  %v3196_v42 = vld [vmem:[%s28128_s26 + $0x1aa0] sm:$0xff]  ;;  %v3198_v43 = vld [vmem:[%s28128_s26 + $0x1ab0] sm:$0xff] }
  0xea   : > { %v3200_v44 = vld [vmem:[%s28128_s26 + $0x1ac0] sm:$0xff]  ;;  %3197 = vst [vmem:[%s28136_s27 + $0xd50] sm:$0xff] %v3196_v42  ;;  %3199 = vst [vmem:[%s28136_s27 + $0xd58] sm:$0xff] %v3198_v43  ;;  %v3202_v45 = vld [vmem:[%s28128_s26 + $0x1ad0] sm:$0xff] }
  0xeb   : > { %3201 = vst [vmem:[%s28136_s27 + $0xd60] sm:$0xff] %v3200_v44  ;;  %v3204_v46 = vld [vmem:[%s28128_s26 + $0x1ae0] sm:$0xff]  ;;  %v3206_v47 = vld [vmem:[%s28128_s26 + $0x1af0] sm:$0xff]  ;;  %3203 = vst [vmem:[%s28136_s27 + $0xd68] sm:$0xff] %v3202_v45 }
  0xec   : > { %3205 = vst [vmem:[%s28136_s27 + $0xd70] sm:$0xff] %v3204_v46  ;;  %3207 = vst [vmem:[%s28136_s27 + $0xd78] sm:$0xff] %v3206_v47  ;;  %v3208_v48 = vld [vmem:[%s28128_s26 + $0x1b00] sm:$0xff]  ;;  %v3210_v49 = vld [vmem:[%s28128_s26 + $0x1b10] sm:$0xff] }
  0xed   : > { %v3212_v50 = vld [vmem:[%s28128_s26 + $0x1b20] sm:$0xff]  ;;  %3209 = vst [vmem:[%s28136_s27 + $0xd80] sm:$0xff] %v3208_v48  ;;  %3211 = vst [vmem:[%s28136_s27 + $0xd88] sm:$0xff] %v3210_v49  ;;  %v3214_v51 = vld [vmem:[%s28128_s26 + $0x1b30] sm:$0xff] }
  0xee   : > { %3213 = vst [vmem:[%s28136_s27 + $0xd90] sm:$0xff] %v3212_v50  ;;  %v3216_v52 = vld [vmem:[%s28128_s26 + $0x1b40] sm:$0xff]  ;;  %v3218_v53 = vld [vmem:[%s28128_s26 + $0x1b50] sm:$0xff]  ;;  %3215 = vst [vmem:[%s28136_s27 + $0xd98] sm:$0xff] %v3214_v51 }
  0xef   : > { %3217 = vst [vmem:[%s28136_s27 + $0xda0] sm:$0xff] %v3216_v52  ;;  %3219 = vst [vmem:[%s28136_s27 + $0xda8] sm:$0xff] %v3218_v53  ;;  %v3220_v54 = vld [vmem:[%s28128_s26 + $0x1b60] sm:$0xff]  ;;  %v3222_v55 = vld [vmem:[%s28128_s26 + $0x1b70] sm:$0xff] }
  0xf0   : > { %v3224_v56 = vld [vmem:[%s28128_s26 + $0x1b80] sm:$0xff]  ;;  %3221 = vst [vmem:[%s28136_s27 + $0xdb0] sm:$0xff] %v3220_v54  ;;  %3223 = vst [vmem:[%s28136_s27 + $0xdb8] sm:$0xff] %v3222_v55  ;;  %v3226_v57 = vld [vmem:[%s28128_s26 + $0x1b90] sm:$0xff] }
  0xf1   : > { %3225 = vst [vmem:[%s28136_s27 + $0xdc0] sm:$0xff] %v3224_v56  ;;  %v3228_v58 = vld [vmem:[%s28128_s26 + $0x1ba0] sm:$0xff]  ;;  %v3230_v59 = vld [vmem:[%s28128_s26 + $0x1bb0] sm:$0xff]  ;;  %3227 = vst [vmem:[%s28136_s27 + $0xdc8] sm:$0xff] %v3226_v57 }
  0xf2   : > { %3229 = vst [vmem:[%s28136_s27 + $0xdd0] sm:$0xff] %v3228_v58  ;;  %3231 = vst [vmem:[%s28136_s27 + $0xdd8] sm:$0xff] %v3230_v59  ;;  %v3232_v60 = vld [vmem:[%s28128_s26 + $0x1bc0] sm:$0xff]  ;;  %v3234_v61 = vld [vmem:[%s28128_s26 + $0x1bd0] sm:$0xff] }
  0xf3   : > { %v3236_v62 = vld [vmem:[%s28128_s26 + $0x1be0] sm:$0xff]  ;;  %3233 = vst [vmem:[%s28136_s27 + $0xde0] sm:$0xff] %v3232_v60  ;;  %3235 = vst [vmem:[%s28136_s27 + $0xde8] sm:$0xff] %v3234_v61  ;;  %v3238_v63 = vld [vmem:[%s28128_s26 + $0x1bf0] sm:$0xff] }
  0xf4   : > { %3237 = vst [vmem:[%s28136_s27 + $0xdf0] sm:$0xff] %v3236_v62  ;;  %v3240_v0 = vld [vmem:[%s28128_s26 + $0x1c00] sm:$0xff]  ;;  %v3242_v1 = vld [vmem:[%s28128_s26 + $0x1c10] sm:$0xff]  ;;  %3239 = vst [vmem:[%s28136_s27 + $0xdf8] sm:$0xff] %v3238_v63 }
  0xf5   : > { %3241 = vst [vmem:[%s28136_s27 + $0xe00] sm:$0xff] %v3240_v0  ;;  %3243 = vst [vmem:[%s28136_s27 + $0xe08] sm:$0xff] %v3242_v1  ;;  %v3244_v2 = vld [vmem:[%s28128_s26 + $0x1c20] sm:$0xff]  ;;  %v3246_v3 = vld [vmem:[%s28128_s26 + $0x1c30] sm:$0xff] }
  0xf6   : > { %v3248_v4 = vld [vmem:[%s28128_s26 + $0x1c40] sm:$0xff]  ;;  %3245 = vst [vmem:[%s28136_s27 + $0xe10] sm:$0xff] %v3244_v2  ;;  %3247 = vst [vmem:[%s28136_s27 + $0xe18] sm:$0xff] %v3246_v3  ;;  %v3250_v5 = vld [vmem:[%s28128_s26 + $0x1c50] sm:$0xff] }
  0xf7   : > { %3249 = vst [vmem:[%s28136_s27 + $0xe20] sm:$0xff] %v3248_v4  ;;  %v3252_v6 = vld [vmem:[%s28128_s26 + $0x1c60] sm:$0xff]  ;;  %v3254_v7 = vld [vmem:[%s28128_s26 + $0x1c70] sm:$0xff]  ;;  %3251 = vst [vmem:[%s28136_s27 + $0xe28] sm:$0xff] %v3250_v5 }
  0xf8   : > { %3253 = vst [vmem:[%s28136_s27 + $0xe30] sm:$0xff] %v3252_v6  ;;  %3255 = vst [vmem:[%s28136_s27 + $0xe38] sm:$0xff] %v3254_v7  ;;  %v3256_v8 = vld [vmem:[%s28128_s26 + $0x1c80] sm:$0xff]  ;;  %v3258_v9 = vld [vmem:[%s28128_s26 + $0x1c90] sm:$0xff] }
  0xf9   : > { %v3260_v10 = vld [vmem:[%s28128_s26 + $0x1ca0] sm:$0xff]  ;;  %3257 = vst [vmem:[%s28136_s27 + $0xe40] sm:$0xff] %v3256_v8  ;;  %3259 = vst [vmem:[%s28136_s27 + $0xe48] sm:$0xff] %v3258_v9  ;;  %v3262_v11 = vld [vmem:[%s28128_s26 + $0x1cb0] sm:$0xff] }
  0xfa   : > { %3261 = vst [vmem:[%s28136_s27 + $0xe50] sm:$0xff] %v3260_v10  ;;  %v3264_v12 = vld [vmem:[%s28128_s26 + $0x1cc0] sm:$0xff]  ;;  %v3266_v13 = vld [vmem:[%s28128_s26 + $0x1cd0] sm:$0xff]  ;;  %3263 = vst [vmem:[%s28136_s27 + $0xe58] sm:$0xff] %v3262_v11 }
  0xfb   : > { %3265 = vst [vmem:[%s28136_s27 + $0xe60] sm:$0xff] %v3264_v12  ;;  %3267 = vst [vmem:[%s28136_s27 + $0xe68] sm:$0xff] %v3266_v13  ;;  %v3268_v14 = vld [vmem:[%s28128_s26 + $0x1ce0] sm:$0xff]  ;;  %v3270_v15 = vld [vmem:[%s28128_s26 + $0x1cf0] sm:$0xff] }
  0xfc   : > { %v3272_v16 = vld [vmem:[%s28128_s26 + $0x1d00] sm:$0xff]  ;;  %3269 = vst [vmem:[%s28136_s27 + $0xe70] sm:$0xff] %v3268_v14  ;;  %3271 = vst [vmem:[%s28136_s27 + $0xe78] sm:$0xff] %v3270_v15  ;;  %v3274_v17 = vld [vmem:[%s28128_s26 + $0x1d10] sm:$0xff] }
  0xfd   : > { %3273 = vst [vmem:[%s28136_s27 + $0xe80] sm:$0xff] %v3272_v16  ;;  %v3276_v18 = vld [vmem:[%s28128_s26 + $0x1d20] sm:$0xff]  ;;  %v3278_v19 = vld [vmem:[%s28128_s26 + $0x1d30] sm:$0xff]  ;;  %3275 = vst [vmem:[%s28136_s27 + $0xe88] sm:$0xff] %v3274_v17 }
  0xfe   : > { %3277 = vst [vmem:[%s28136_s27 + $0xe90] sm:$0xff] %v3276_v18  ;;  %3279 = vst [vmem:[%s28136_s27 + $0xe98] sm:$0xff] %v3278_v19  ;;  %v3280_v20 = vld [vmem:[%s28128_s26 + $0x1d40] sm:$0xff]  ;;  %v3282_v21 = vld [vmem:[%s28128_s26 + $0x1d50] sm:$0xff] }
  0xff   : > { %v3284_v22 = vld [vmem:[%s28128_s26 + $0x1d60] sm:$0xff]  ;;  %3281 = vst [vmem:[%s28136_s27 + $0xea0] sm:$0xff] %v3280_v20  ;;  %3283 = vst [vmem:[%s28136_s27 + $0xea8] sm:$0xff] %v3282_v21  ;;  %v3286_v23 = vld [vmem:[%s28128_s26 + $0x1d70] sm:$0xff] }
 0x100   : > { %3285 = vst [vmem:[%s28136_s27 + $0xeb0] sm:$0xff] %v3284_v22  ;;  %v3288_v24 = vld [vmem:[%s28128_s26 + $0x1d80] sm:$0xff]  ;;  %v3290_v25 = vld [vmem:[%s28128_s26 + $0x1d90] sm:$0xff]  ;;  %3287 = vst [vmem:[%s28136_s27 + $0xeb8] sm:$0xff] %v3286_v23 }
 0x101   : > { %3289 = vst [vmem:[%s28136_s27 + $0xec0] sm:$0xff] %v3288_v24  ;;  %3291 = vst [vmem:[%s28136_s27 + $0xec8] sm:$0xff] %v3290_v25  ;;  %v3292_v26 = vld [vmem:[%s28128_s26 + $0x1da0] sm:$0xff]  ;;  %v3294_v27 = vld [vmem:[%s28128_s26 + $0x1db0] sm:$0xff] }
 0x102   : > { %v3296_v28 = vld [vmem:[%s28128_s26 + $0x1dc0] sm:$0xff]  ;;  %3293 = vst [vmem:[%s28136_s27 + $0xed0] sm:$0xff] %v3292_v26  ;;  %3295 = vst [vmem:[%s28136_s27 + $0xed8] sm:$0xff] %v3294_v27  ;;  %v3298_v29 = vld [vmem:[%s28128_s26 + $0x1dd0] sm:$0xff] }
 0x103   : > { %3297 = vst [vmem:[%s28136_s27 + $0xee0] sm:$0xff] %v3296_v28  ;;  %v3300_v30 = vld [vmem:[%s28128_s26 + $0x1de0] sm:$0xff]  ;;  %v3302_v31 = vld [vmem:[%s28128_s26 + $0x1df0] sm:$0xff]  ;;  %3299 = vst [vmem:[%s28136_s27 + $0xee8] sm:$0xff] %v3298_v29 }
 0x104   : > { %3301 = vst [vmem:[%s28136_s27 + $0xef0] sm:$0xff] %v3300_v30  ;;  %3303 = vst [vmem:[%s28136_s27 + $0xef8] sm:$0xff] %v3302_v31  ;;  %v3304_v32 = vld [vmem:[%s28128_s26 + $0x1e00] sm:$0xff]  ;;  %v3306_v33 = vld [vmem:[%s28128_s26 + $0x1e10] sm:$0xff] }
 0x105   : > { %v3308_v34 = vld [vmem:[%s28128_s26 + $0x1e20] sm:$0xff]  ;;  %3305 = vst [vmem:[%s28136_s27 + $0xf00] sm:$0xff] %v3304_v32  ;;  %3307 = vst [vmem:[%s28136_s27 + $0xf08] sm:$0xff] %v3306_v33  ;;  %v3310_v35 = vld [vmem:[%s28128_s26 + $0x1e30] sm:$0xff] }
 0x106   : > { %3309 = vst [vmem:[%s28136_s27 + $0xf10] sm:$0xff] %v3308_v34  ;;  %v3312_v36 = vld [vmem:[%s28128_s26 + $0x1e40] sm:$0xff]  ;;  %v3314_v37 = vld [vmem:[%s28128_s26 + $0x1e50] sm:$0xff]  ;;  %3311 = vst [vmem:[%s28136_s27 + $0xf18] sm:$0xff] %v3310_v35 }
 0x107   : > { %3313 = vst [vmem:[%s28136_s27 + $0xf20] sm:$0xff] %v3312_v36  ;;  %3315 = vst [vmem:[%s28136_s27 + $0xf28] sm:$0xff] %v3314_v37  ;;  %v3316_v38 = vld [vmem:[%s28128_s26 + $0x1e60] sm:$0xff]  ;;  %v3318_v39 = vld [vmem:[%s28128_s26 + $0x1e70] sm:$0xff] }
 0x108   : > { %v3320_v40 = vld [vmem:[%s28128_s26 + $0x1e80] sm:$0xff]  ;;  %3317 = vst [vmem:[%s28136_s27 + $0xf30] sm:$0xff] %v3316_v38  ;;  %3319 = vst [vmem:[%s28136_s27 + $0xf38] sm:$0xff] %v3318_v39  ;;  %v3322_v41 = vld [vmem:[%s28128_s26 + $0x1e90] sm:$0xff] }
 0x109   : > { %3321 = vst [vmem:[%s28136_s27 + $0xf40] sm:$0xff] %v3320_v40  ;;  %v3324_v42 = vld [vmem:[%s28128_s26 + $0x1ea0] sm:$0xff]  ;;  %v3326_v43 = vld [vmem:[%s28128_s26 + $0x1eb0] sm:$0xff]  ;;  %3323 = vst [vmem:[%s28136_s27 + $0xf48] sm:$0xff] %v3322_v41 }
 0x10a   : > { %3325 = vst [vmem:[%s28136_s27 + $0xf50] sm:$0xff] %v3324_v42  ;;  %3327 = vst [vmem:[%s28136_s27 + $0xf58] sm:$0xff] %v3326_v43  ;;  %v3328_v44 = vld [vmem:[%s28128_s26 + $0x1ec0] sm:$0xff]  ;;  %v3330_v45 = vld [vmem:[%s28128_s26 + $0x1ed0] sm:$0xff] }
 0x10b   : > { %v3332_v46 = vld [vmem:[%s28128_s26 + $0x1ee0] sm:$0xff]  ;;  %3329 = vst [vmem:[%s28136_s27 + $0xf60] sm:$0xff] %v3328_v44  ;;  %3331 = vst [vmem:[%s28136_s27 + $0xf68] sm:$0xff] %v3330_v45  ;;  %v3334_v47 = vld [vmem:[%s28128_s26 + $0x1ef0] sm:$0xff] }
 0x10c   : > { %3333 = vst [vmem:[%s28136_s27 + $0xf70] sm:$0xff] %v3332_v46  ;;  %v3336_v48 = vld [vmem:[%s28128_s26 + $0x1f00] sm:$0xff]  ;;  %v3338_v49 = vld [vmem:[%s28128_s26 + $0x1f10] sm:$0xff]  ;;  %3335 = vst [vmem:[%s28136_s27 + $0xf78] sm:$0xff] %v3334_v47 }
 0x10d   : > { %3337 = vst [vmem:[%s28136_s27 + $0xf80] sm:$0xff] %v3336_v48  ;;  %3339 = vst [vmem:[%s28136_s27 + $0xf88] sm:$0xff] %v3338_v49  ;;  %v3340_v50 = vld [vmem:[%s28128_s26 + $0x1f20] sm:$0xff]  ;;  %v3342_v51 = vld [vmem:[%s28128_s26 + $0x1f30] sm:$0xff] }
 0x10e   : > { %v3344_v52 = vld [vmem:[%s28128_s26 + $0x1f40] sm:$0xff]  ;;  %3341 = vst [vmem:[%s28136_s27 + $0xf90] sm:$0xff] %v3340_v50  ;;  %3343 = vst [vmem:[%s28136_s27 + $0xf98] sm:$0xff] %v3342_v51  ;;  %v3346_v53 = vld [vmem:[%s28128_s26 + $0x1f50] sm:$0xff] }
 0x10f   : > { %3345 = vst [vmem:[%s28136_s27 + $0xfa0] sm:$0xff] %v3344_v52  ;;  %v3348_v54 = vld [vmem:[%s28128_s26 + $0x1f60] sm:$0xff]  ;;  %v3350_v55 = vld [vmem:[%s28128_s26 + $0x1f70] sm:$0xff]  ;;  %3347 = vst [vmem:[%s28136_s27 + $0xfa8] sm:$0xff] %v3346_v53 }
 0x110   : > { %3349 = vst [vmem:[%s28136_s27 + $0xfb0] sm:$0xff] %v3348_v54  ;;  %3351 = vst [vmem:[%s28136_s27 + $0xfb8] sm:$0xff] %v3350_v55  ;;  %v3352_v56 = vld [vmem:[%s28128_s26 + $0x1f80] sm:$0xff]  ;;  %v3354_v57 = vld [vmem:[%s28128_s26 + $0x1f90] sm:$0xff] }
 0x111   : > { %v3356_v58 = vld [vmem:[%s28128_s26 + $0x1fa0] sm:$0xff]  ;;  %3353 = vst [vmem:[%s28136_s27 + $0xfc0] sm:$0xff] %v3352_v56  ;;  %3355 = vst [vmem:[%s28136_s27 + $0xfc8] sm:$0xff] %v3354_v57  ;;  %v3358_v59 = vld [vmem:[%s28128_s26 + $0x1fb0] sm:$0xff] }
 0x112   : > { %3357 = vst [vmem:[%s28136_s27 + $0xfd0] sm:$0xff] %v3356_v58  ;;  %v3360_v60 = vld [vmem:[%s28128_s26 + $0x1fc0] sm:$0xff]  ;;  %v3362_v61 = vld [vmem:[%s28128_s26 + $0x1fd0] sm:$0xff]  ;;  %3359 = vst [vmem:[%s28136_s27 + $0xfd8] sm:$0xff] %v3358_v59 }
 0x113   : > { %3361 = vst [vmem:[%s28136_s27 + $0xfe0] sm:$0xff] %v3360_v60  ;;  %3363 = vst [vmem:[%s28136_s27 + $0xfe8] sm:$0xff] %v3362_v61  ;;  %v3364_v62 = vld [vmem:[%s28128_s26 + $0x1fe0] sm:$0xff]  ;;  %v3366_v63 = vld [vmem:[%s28128_s26 + $0x1ff0] sm:$0xff] }
 0x114   : > { %v3368_v0 = vld [vmem:[%s28128_s26 + $0x2000] sm:$0xff]  ;;  %3365 = vst [vmem:[%s28136_s27 + $0xff0] sm:$0xff] %v3364_v62  ;;  %3367 = vst [vmem:[%s28136_s27 + $0xff8] sm:$0xff] %v3366_v63  ;;  %v3370_v1 = vld [vmem:[%s28128_s26 + $0x2010] sm:$0xff] }
 0x115   : > { %3369 = vst [vmem:[%s28136_s27 + $0x1000] sm:$0xff] %v3368_v0  ;;  %v3372_v2 = vld [vmem:[%s28128_s26 + $0x2020] sm:$0xff]  ;;  %v3374_v3 = vld [vmem:[%s28128_s26 + $0x2030] sm:$0xff]  ;;  %3371 = vst [vmem:[%s28136_s27 + $0x1008] sm:$0xff] %v3370_v1 }
 0x116   : > { %3373 = vst [vmem:[%s28136_s27 + $0x1010] sm:$0xff] %v3372_v2  ;;  %3375 = vst [vmem:[%s28136_s27 + $0x1018] sm:$0xff] %v3374_v3  ;;  %v3376_v4 = vld [vmem:[%s28128_s26 + $0x2040] sm:$0xff]  ;;  %v3378_v5 = vld [vmem:[%s28128_s26 + $0x2050] sm:$0xff] }
 0x117   : > { %v3380_v6 = vld [vmem:[%s28128_s26 + $0x2060] sm:$0xff]  ;;  %3377 = vst [vmem:[%s28136_s27 + $0x1020] sm:$0xff] %v3376_v4  ;;  %3379 = vst [vmem:[%s28136_s27 + $0x1028] sm:$0xff] %v3378_v5  ;;  %v3382_v7 = vld [vmem:[%s28128_s26 + $0x2070] sm:$0xff] }
 0x118   : > { %3381 = vst [vmem:[%s28136_s27 + $0x1030] sm:$0xff] %v3380_v6  ;;  %v3384_v8 = vld [vmem:[%s28128_s26 + $0x2080] sm:$0xff]  ;;  %v3386_v9 = vld [vmem:[%s28128_s26 + $0x2090] sm:$0xff]  ;;  %3383 = vst [vmem:[%s28136_s27 + $0x1038] sm:$0xff] %v3382_v7 }
 0x119   : > { %3385 = vst [vmem:[%s28136_s27 + $0x1040] sm:$0xff] %v3384_v8  ;;  %3387 = vst [vmem:[%s28136_s27 + $0x1048] sm:$0xff] %v3386_v9  ;;  %v3388_v10 = vld [vmem:[%s28128_s26 + $0x20a0] sm:$0xff]  ;;  %v3390_v11 = vld [vmem:[%s28128_s26 + $0x20b0] sm:$0xff] }
 0x11a   : > { %v3392_v12 = vld [vmem:[%s28128_s26 + $0x20c0] sm:$0xff]  ;;  %3389 = vst [vmem:[%s28136_s27 + $0x1050] sm:$0xff] %v3388_v10  ;;  %3391 = vst [vmem:[%s28136_s27 + $0x1058] sm:$0xff] %v3390_v11  ;;  %v3394_v13 = vld [vmem:[%s28128_s26 + $0x20d0] sm:$0xff] }
 0x11b   : > { %3393 = vst [vmem:[%s28136_s27 + $0x1060] sm:$0xff] %v3392_v12  ;;  %v3396_v14 = vld [vmem:[%s28128_s26 + $0x20e0] sm:$0xff]  ;;  %v3398_v15 = vld [vmem:[%s28128_s26 + $0x20f0] sm:$0xff]  ;;  %3395 = vst [vmem:[%s28136_s27 + $0x1068] sm:$0xff] %v3394_v13 }
 0x11c   : > { %3397 = vst [vmem:[%s28136_s27 + $0x1070] sm:$0xff] %v3396_v14  ;;  %3399 = vst [vmem:[%s28136_s27 + $0x1078] sm:$0xff] %v3398_v15  ;;  %v3400_v16 = vld [vmem:[%s28128_s26 + $0x2100] sm:$0xff]  ;;  %v3402_v17 = vld [vmem:[%s28128_s26 + $0x2110] sm:$0xff] }
 0x11d   : > { %v3404_v18 = vld [vmem:[%s28128_s26 + $0x2120] sm:$0xff]  ;;  %3401 = vst [vmem:[%s28136_s27 + $0x1080] sm:$0xff] %v3400_v16  ;;  %3403 = vst [vmem:[%s28136_s27 + $0x1088] sm:$0xff] %v3402_v17  ;;  %v3406_v19 = vld [vmem:[%s28128_s26 + $0x2130] sm:$0xff] }
 0x11e   : > { %3405 = vst [vmem:[%s28136_s27 + $0x1090] sm:$0xff] %v3404_v18  ;;  %v3408_v20 = vld [vmem:[%s28128_s26 + $0x2140] sm:$0xff]  ;;  %v3410_v21 = vld [vmem:[%s28128_s26 + $0x2150] sm:$0xff]  ;;  %3407 = vst [vmem:[%s28136_s27 + $0x1098] sm:$0xff] %v3406_v19 }
 0x11f   : > { %3409 = vst [vmem:[%s28136_s27 + $0x10a0] sm:$0xff] %v3408_v20  ;;  %3411 = vst [vmem:[%s28136_s27 + $0x10a8] sm:$0xff] %v3410_v21  ;;  %v3412_v22 = vld [vmem:[%s28128_s26 + $0x2160] sm:$0xff]  ;;  %v3414_v23 = vld [vmem:[%s28128_s26 + $0x2170] sm:$0xff] }
 0x120   : > { %v3416_v24 = vld [vmem:[%s28128_s26 + $0x2180] sm:$0xff]  ;;  %3413 = vst [vmem:[%s28136_s27 + $0x10b0] sm:$0xff] %v3412_v22  ;;  %3415 = vst [vmem:[%s28136_s27 + $0x10b8] sm:$0xff] %v3414_v23  ;;  %v3418_v25 = vld [vmem:[%s28128_s26 + $0x2190] sm:$0xff] }
 0x121   : > { %3417 = vst [vmem:[%s28136_s27 + $0x10c0] sm:$0xff] %v3416_v24  ;;  %v3420_v26 = vld [vmem:[%s28128_s26 + $0x21a0] sm:$0xff]  ;;  %v3422_v27 = vld [vmem:[%s28128_s26 + $0x21b0] sm:$0xff]  ;;  %3419 = vst [vmem:[%s28136_s27 + $0x10c8] sm:$0xff] %v3418_v25 }
 0x122   : > { %3421 = vst [vmem:[%s28136_s27 + $0x10d0] sm:$0xff] %v3420_v26  ;;  %3423 = vst [vmem:[%s28136_s27 + $0x10d8] sm:$0xff] %v3422_v27  ;;  %v3424_v28 = vld [vmem:[%s28128_s26 + $0x21c0] sm:$0xff]  ;;  %v3426_v29 = vld [vmem:[%s28128_s26 + $0x21d0] sm:$0xff] }
 0x123   : > { %v3428_v30 = vld [vmem:[%s28128_s26 + $0x21e0] sm:$0xff]  ;;  %3425 = vst [vmem:[%s28136_s27 + $0x10e0] sm:$0xff] %v3424_v28  ;;  %3427 = vst [vmem:[%s28136_s27 + $0x10e8] sm:$0xff] %v3426_v29  ;;  %v3430_v31 = vld [vmem:[%s28128_s26 + $0x21f0] sm:$0xff] }
 0x124   : > { %3429 = vst [vmem:[%s28136_s27 + $0x10f0] sm:$0xff] %v3428_v30  ;;  %v3432_v32 = vld [vmem:[%s28128_s26 + $0x2200] sm:$0xff]  ;;  %v3434_v33 = vld [vmem:[%s28128_s26 + $0x2210] sm:$0xff]  ;;  %3431 = vst [vmem:[%s28136_s27 + $0x10f8] sm:$0xff] %v3430_v31 }
 0x125   : > { %3433 = vst [vmem:[%s28136_s27 + $0x1100] sm:$0xff] %v3432_v32  ;;  %3435 = vst [vmem:[%s28136_s27 + $0x1108] sm:$0xff] %v3434_v33  ;;  %v3436_v34 = vld [vmem:[%s28128_s26 + $0x2220] sm:$0xff]  ;;  %v3438_v35 = vld [vmem:[%s28128_s26 + $0x2230] sm:$0xff] }
 0x126   : > { %v3440_v36 = vld [vmem:[%s28128_s26 + $0x2240] sm:$0xff]  ;;  %3437 = vst [vmem:[%s28136_s27 + $0x1110] sm:$0xff] %v3436_v34  ;;  %3439 = vst [vmem:[%s28136_s27 + $0x1118] sm:$0xff] %v3438_v35  ;;  %v3442_v37 = vld [vmem:[%s28128_s26 + $0x2250] sm:$0xff] }
 0x127   : > { %3441 = vst [vmem:[%s28136_s27 + $0x1120] sm:$0xff] %v3440_v36  ;;  %v3444_v38 = vld [vmem:[%s28128_s26 + $0x2260] sm:$0xff]  ;;  %v3446_v39 = vld [vmem:[%s28128_s26 + $0x2270] sm:$0xff]  ;;  %3443 = vst [vmem:[%s28136_s27 + $0x1128] sm:$0xff] %v3442_v37 }
 0x128   : > { %3445 = vst [vmem:[%s28136_s27 + $0x1130] sm:$0xff] %v3444_v38  ;;  %3447 = vst [vmem:[%s28136_s27 + $0x1138] sm:$0xff] %v3446_v39  ;;  %v3448_v40 = vld [vmem:[%s28128_s26 + $0x2280] sm:$0xff]  ;;  %v3450_v41 = vld [vmem:[%s28128_s26 + $0x2290] sm:$0xff] }
 0x129   : > { %v3452_v42 = vld [vmem:[%s28128_s26 + $0x22a0] sm:$0xff]  ;;  %3449 = vst [vmem:[%s28136_s27 + $0x1140] sm:$0xff] %v3448_v40  ;;  %3451 = vst [vmem:[%s28136_s27 + $0x1148] sm:$0xff] %v3450_v41  ;;  %v3454_v43 = vld [vmem:[%s28128_s26 + $0x22b0] sm:$0xff] }
 0x12a   : > { %3453 = vst [vmem:[%s28136_s27 + $0x1150] sm:$0xff] %v3452_v42  ;;  %v3456_v44 = vld [vmem:[%s28128_s26 + $0x22c0] sm:$0xff]  ;;  %v3458_v45 = vld [vmem:[%s28128_s26 + $0x22d0] sm:$0xff]  ;;  %3455 = vst [vmem:[%s28136_s27 + $0x1158] sm:$0xff] %v3454_v43 }
 0x12b   : > { %3457 = vst [vmem:[%s28136_s27 + $0x1160] sm:$0xff] %v3456_v44  ;;  %3459 = vst [vmem:[%s28136_s27 + $0x1168] sm:$0xff] %v3458_v45  ;;  %v3460_v46 = vld [vmem:[%s28128_s26 + $0x22e0] sm:$0xff]  ;;  %v3462_v47 = vld [vmem:[%s28128_s26 + $0x22f0] sm:$0xff] }
 0x12c   : > { %v3464_v48 = vld [vmem:[%s28128_s26 + $0x2300] sm:$0xff]  ;;  %3461 = vst [vmem:[%s28136_s27 + $0x1170] sm:$0xff] %v3460_v46  ;;  %3463 = vst [vmem:[%s28136_s27 + $0x1178] sm:$0xff] %v3462_v47  ;;  %v3466_v49 = vld [vmem:[%s28128_s26 + $0x2310] sm:$0xff] }
 0x12d   : > { %3465 = vst [vmem:[%s28136_s27 + $0x1180] sm:$0xff] %v3464_v48  ;;  %v3468_v50 = vld [vmem:[%s28128_s26 + $0x2320] sm:$0xff]  ;;  %v3470_v51 = vld [vmem:[%s28128_s26 + $0x2330] sm:$0xff]  ;;  %3467 = vst [vmem:[%s28136_s27 + $0x1188] sm:$0xff] %v3466_v49 }
 0x12e   : > { %3469 = vst [vmem:[%s28136_s27 + $0x1190] sm:$0xff] %v3468_v50  ;;  %3471 = vst [vmem:[%s28136_s27 + $0x1198] sm:$0xff] %v3470_v51  ;;  %v3472_v52 = vld [vmem:[%s28128_s26 + $0x2340] sm:$0xff]  ;;  %v3474_v53 = vld [vmem:[%s28128_s26 + $0x2350] sm:$0xff] }
 0x12f   : > { %v3476_v54 = vld [vmem:[%s28128_s26 + $0x2360] sm:$0xff]  ;;  %3473 = vst [vmem:[%s28136_s27 + $0x11a0] sm:$0xff] %v3472_v52  ;;  %3475 = vst [vmem:[%s28136_s27 + $0x11a8] sm:$0xff] %v3474_v53  ;;  %v3478_v55 = vld [vmem:[%s28128_s26 + $0x2370] sm:$0xff] }
 0x130   : > { %3477 = vst [vmem:[%s28136_s27 + $0x11b0] sm:$0xff] %v3476_v54  ;;  %v3480_v56 = vld [vmem:[%s28128_s26 + $0x2380] sm:$0xff]  ;;  %v3482_v57 = vld [vmem:[%s28128_s26 + $0x2390] sm:$0xff]  ;;  %3479 = vst [vmem:[%s28136_s27 + $0x11b8] sm:$0xff] %v3478_v55 }
 0x131   : > { %3481 = vst [vmem:[%s28136_s27 + $0x11c0] sm:$0xff] %v3480_v56  ;;  %3483 = vst [vmem:[%s28136_s27 + $0x11c8] sm:$0xff] %v3482_v57  ;;  %v3484_v58 = vld [vmem:[%s28128_s26 + $0x23a0] sm:$0xff]  ;;  %v3486_v59 = vld [vmem:[%s28128_s26 + $0x23b0] sm:$0xff] }
 0x132   : > { %v3488_v60 = vld [vmem:[%s28128_s26 + $0x23c0] sm:$0xff]  ;;  %3485 = vst [vmem:[%s28136_s27 + $0x11d0] sm:$0xff] %v3484_v58  ;;  %3487 = vst [vmem:[%s28136_s27 + $0x11d8] sm:$0xff] %v3486_v59  ;;  %v3490_v61 = vld [vmem:[%s28128_s26 + $0x23d0] sm:$0xff] }
 0x133   : > { %3489 = vst [vmem:[%s28136_s27 + $0x11e0] sm:$0xff] %v3488_v60  ;;  %v3492_v62 = vld [vmem:[%s28128_s26 + $0x23e0] sm:$0xff]  ;;  %v3494_v63 = vld [vmem:[%s28128_s26 + $0x23f0] sm:$0xff]  ;;  %3491 = vst [vmem:[%s28136_s27 + $0x11e8] sm:$0xff] %v3490_v61 }
 0x134   : > { %3493 = vst [vmem:[%s28136_s27 + $0x11f0] sm:$0xff] %v3492_v62  ;;  %3495 = vst [vmem:[%s28136_s27 + $0x11f8] sm:$0xff] %v3494_v63  ;;  %v3496_v0 = vld [vmem:[%s28128_s26 + $0x2400] sm:$0xff]  ;;  %v3498_v1 = vld [vmem:[%s28128_s26 + $0x2410] sm:$0xff] }
 0x135   : > { %v3500_v2 = vld [vmem:[%s28128_s26 + $0x2420] sm:$0xff]  ;;  %3497 = vst [vmem:[%s28136_s27 + $0x1200] sm:$0xff] %v3496_v0  ;;  %3499 = vst [vmem:[%s28136_s27 + $0x1208] sm:$0xff] %v3498_v1  ;;  %v3502_v3 = vld [vmem:[%s28128_s26 + $0x2430] sm:$0xff] }
 0x136   : > { %3501 = vst [vmem:[%s28136_s27 + $0x1210] sm:$0xff] %v3500_v2  ;;  %v3504_v4 = vld [vmem:[%s28128_s26 + $0x2440] sm:$0xff]  ;;  %v3506_v5 = vld [vmem:[%s28128_s26 + $0x2450] sm:$0xff]  ;;  %3503 = vst [vmem:[%s28136_s27 + $0x1218] sm:$0xff] %v3502_v3 }
 0x137   : > { %3505 = vst [vmem:[%s28136_s27 + $0x1220] sm:$0xff] %v3504_v4  ;;  %3507 = vst [vmem:[%s28136_s27 + $0x1228] sm:$0xff] %v3506_v5  ;;  %v3508_v6 = vld [vmem:[%s28128_s26 + $0x2460] sm:$0xff]  ;;  %v3510_v7 = vld [vmem:[%s28128_s26 + $0x2470] sm:$0xff] }
 0x138   : > { %v3512_v8 = vld [vmem:[%s28128_s26 + $0x2480] sm:$0xff]  ;;  %3509 = vst [vmem:[%s28136_s27 + $0x1230] sm:$0xff] %v3508_v6  ;;  %3511 = vst [vmem:[%s28136_s27 + $0x1238] sm:$0xff] %v3510_v7  ;;  %v3514_v9 = vld [vmem:[%s28128_s26 + $0x2490] sm:$0xff] }
 0x139   : > { %3513 = vst [vmem:[%s28136_s27 + $0x1240] sm:$0xff] %v3512_v8  ;;  %v3516_v10 = vld [vmem:[%s28128_s26 + $0x24a0] sm:$0xff]  ;;  %v3518_v11 = vld [vmem:[%s28128_s26 + $0x24b0] sm:$0xff]  ;;  %3515 = vst [vmem:[%s28136_s27 + $0x1248] sm:$0xff] %v3514_v9 }
 0x13a   : > { %3517 = vst [vmem:[%s28136_s27 + $0x1250] sm:$0xff] %v3516_v10  ;;  %3519 = vst [vmem:[%s28136_s27 + $0x1258] sm:$0xff] %v3518_v11  ;;  %v3520_v12 = vld [vmem:[%s28128_s26 + $0x24c0] sm:$0xff]  ;;  %v3522_v13 = vld [vmem:[%s28128_s26 + $0x24d0] sm:$0xff] }
 0x13b   : > { %v3524_v14 = vld [vmem:[%s28128_s26 + $0x24e0] sm:$0xff]  ;;  %3521 = vst [vmem:[%s28136_s27 + $0x1260] sm:$0xff] %v3520_v12  ;;  %3523 = vst [vmem:[%s28136_s27 + $0x1268] sm:$0xff] %v3522_v13  ;;  %v3526_v15 = vld [vmem:[%s28128_s26 + $0x24f0] sm:$0xff] }
 0x13c   : > { %3525 = vst [vmem:[%s28136_s27 + $0x1270] sm:$0xff] %v3524_v14  ;;  %v3528_v16 = vld [vmem:[%s28128_s26 + $0x2500] sm:$0xff]  ;;  %v3530_v17 = vld [vmem:[%s28128_s26 + $0x2510] sm:$0xff]  ;;  %3527 = vst [vmem:[%s28136_s27 + $0x1278] sm:$0xff] %v3526_v15 }
 0x13d   : > { %3529 = vst [vmem:[%s28136_s27 + $0x1280] sm:$0xff] %v3528_v16  ;;  %3531 = vst [vmem:[%s28136_s27 + $0x1288] sm:$0xff] %v3530_v17  ;;  %v3532_v18 = vld [vmem:[%s28128_s26 + $0x2520] sm:$0xff]  ;;  %v3534_v19 = vld [vmem:[%s28128_s26 + $0x2530] sm:$0xff] }
 0x13e   : > { %v3536_v20 = vld [vmem:[%s28128_s26 + $0x2540] sm:$0xff]  ;;  %3533 = vst [vmem:[%s28136_s27 + $0x1290] sm:$0xff] %v3532_v18  ;;  %3535 = vst [vmem:[%s28136_s27 + $0x1298] sm:$0xff] %v3534_v19  ;;  %v3538_v21 = vld [vmem:[%s28128_s26 + $0x2550] sm:$0xff] }
 0x13f   : > { %3537 = vst [vmem:[%s28136_s27 + $0x12a0] sm:$0xff] %v3536_v20  ;;  %v3540_v22 = vld [vmem:[%s28128_s26 + $0x2560] sm:$0xff]  ;;  %v3542_v23 = vld [vmem:[%s28128_s26 + $0x2570] sm:$0xff]  ;;  %3539 = vst [vmem:[%s28136_s27 + $0x12a8] sm:$0xff] %v3538_v21 }
 0x140   : > { %3541 = vst [vmem:[%s28136_s27 + $0x12b0] sm:$0xff] %v3540_v22  ;;  %3543 = vst [vmem:[%s28136_s27 + $0x12b8] sm:$0xff] %v3542_v23  ;;  %v3544_v24 = vld [vmem:[%s28128_s26 + $0x2580] sm:$0xff]  ;;  %v3546_v25 = vld [vmem:[%s28128_s26 + $0x2590] sm:$0xff] }
 0x141   : > { %v3548_v26 = vld [vmem:[%s28128_s26 + $0x25a0] sm:$0xff]  ;;  %3545 = vst [vmem:[%s28136_s27 + $0x12c0] sm:$0xff] %v3544_v24  ;;  %3547 = vst [vmem:[%s28136_s27 + $0x12c8] sm:$0xff] %v3546_v25  ;;  %v3550_v27 = vld [vmem:[%s28128_s26 + $0x25b0] sm:$0xff] }
 0x142   : > { %3549 = vst [vmem:[%s28136_s27 + $0x12d0] sm:$0xff] %v3548_v26  ;;  %v3552_v28 = vld [vmem:[%s28128_s26 + $0x25c0] sm:$0xff]  ;;  %v3554_v29 = vld [vmem:[%s28128_s26 + $0x25d0] sm:$0xff]  ;;  %3551 = vst [vmem:[%s28136_s27 + $0x12d8] sm:$0xff] %v3550_v27 }
 0x143   : > { %3553 = vst [vmem:[%s28136_s27 + $0x12e0] sm:$0xff] %v3552_v28  ;;  %3555 = vst [vmem:[%s28136_s27 + $0x12e8] sm:$0xff] %v3554_v29  ;;  %v3556_v30 = vld [vmem:[%s28128_s26 + $0x25e0] sm:$0xff]  ;;  %v3558_v31 = vld [vmem:[%s28128_s26 + $0x25f0] sm:$0xff] }
 0x144   : > { %v3560_v32 = vld [vmem:[%s28128_s26 + $0x2600] sm:$0xff]  ;;  %3557 = vst [vmem:[%s28136_s27 + $0x12f0] sm:$0xff] %v3556_v30  ;;  %3559 = vst [vmem:[%s28136_s27 + $0x12f8] sm:$0xff] %v3558_v31  ;;  %v3562_v33 = vld [vmem:[%s28128_s26 + $0x2610] sm:$0xff] }
 0x145   : > { %3561 = vst [vmem:[%s28136_s27 + $0x1300] sm:$0xff] %v3560_v32  ;;  %v3564_v34 = vld [vmem:[%s28128_s26 + $0x2620] sm:$0xff]  ;;  %v3566_v35 = vld [vmem:[%s28128_s26 + $0x2630] sm:$0xff]  ;;  %3563 = vst [vmem:[%s28136_s27 + $0x1308] sm:$0xff] %v3562_v33 }
 0x146   : > { %3565 = vst [vmem:[%s28136_s27 + $0x1310] sm:$0xff] %v3564_v34  ;;  %3567 = vst [vmem:[%s28136_s27 + $0x1318] sm:$0xff] %v3566_v35  ;;  %v3568_v36 = vld [vmem:[%s28128_s26 + $0x2640] sm:$0xff]  ;;  %v3570_v37 = vld [vmem:[%s28128_s26 + $0x2650] sm:$0xff] }
 0x147   : > { %v3572_v38 = vld [vmem:[%s28128_s26 + $0x2660] sm:$0xff]  ;;  %3569 = vst [vmem:[%s28136_s27 + $0x1320] sm:$0xff] %v3568_v36  ;;  %3571 = vst [vmem:[%s28136_s27 + $0x1328] sm:$0xff] %v3570_v37  ;;  %v3574_v39 = vld [vmem:[%s28128_s26 + $0x2670] sm:$0xff] }
 0x148   : > { %3573 = vst [vmem:[%s28136_s27 + $0x1330] sm:$0xff] %v3572_v38  ;;  %v3576_v40 = vld [vmem:[%s28128_s26 + $0x2680] sm:$0xff]  ;;  %v3578_v41 = vld [vmem:[%s28128_s26 + $0x2690] sm:$0xff]  ;;  %3575 = vst [vmem:[%s28136_s27 + $0x1338] sm:$0xff] %v3574_v39 }
 0x149   : > { %3577 = vst [vmem:[%s28136_s27 + $0x1340] sm:$0xff] %v3576_v40  ;;  %3579 = vst [vmem:[%s28136_s27 + $0x1348] sm:$0xff] %v3578_v41  ;;  %v3580_v42 = vld [vmem:[%s28128_s26 + $0x26a0] sm:$0xff]  ;;  %v3582_v43 = vld [vmem:[%s28128_s26 + $0x26b0] sm:$0xff] }
 0x14a   : > { %v3584_v44 = vld [vmem:[%s28128_s26 + $0x26c0] sm:$0xff]  ;;  %3581 = vst [vmem:[%s28136_s27 + $0x1350] sm:$0xff] %v3580_v42  ;;  %3583 = vst [vmem:[%s28136_s27 + $0x1358] sm:$0xff] %v3582_v43  ;;  %v3586_v45 = vld [vmem:[%s28128_s26 + $0x26d0] sm:$0xff] }
 0x14b   : > { %3585 = vst [vmem:[%s28136_s27 + $0x1360] sm:$0xff] %v3584_v44  ;;  %v3588_v46 = vld [vmem:[%s28128_s26 + $0x26e0] sm:$0xff]  ;;  %v3590_v47 = vld [vmem:[%s28128_s26 + $0x26f0] sm:$0xff]  ;;  %3587 = vst [vmem:[%s28136_s27 + $0x1368] sm:$0xff] %v3586_v45 }
 0x14c   : > { %3589 = vst [vmem:[%s28136_s27 + $0x1370] sm:$0xff] %v3588_v46  ;;  %3591 = vst [vmem:[%s28136_s27 + $0x1378] sm:$0xff] %v3590_v47  ;;  %v3592_v48 = vld [vmem:[%s28128_s26 + $0x2700] sm:$0xff]  ;;  %v3594_v49 = vld [vmem:[%s28128_s26 + $0x2710] sm:$0xff] }
 0x14d   : > { %v3596_v50 = vld [vmem:[%s28128_s26 + $0x2720] sm:$0xff]  ;;  %3593 = vst [vmem:[%s28136_s27 + $0x1380] sm:$0xff] %v3592_v48  ;;  %3595 = vst [vmem:[%s28136_s27 + $0x1388] sm:$0xff] %v3594_v49  ;;  %v3598_v51 = vld [vmem:[%s28128_s26 + $0x2730] sm:$0xff] }
 0x14e   : > { %3597 = vst [vmem:[%s28136_s27 + $0x1390] sm:$0xff] %v3596_v50  ;;  %v3600_v52 = vld [vmem:[%s28128_s26 + $0x2740] sm:$0xff]  ;;  %v3602_v53 = vld [vmem:[%s28128_s26 + $0x2750] sm:$0xff]  ;;  %3599 = vst [vmem:[%s28136_s27 + $0x1398] sm:$0xff] %v3598_v51 }
 0x14f   : > { %3601 = vst [vmem:[%s28136_s27 + $0x13a0] sm:$0xff] %v3600_v52  ;;  %3603 = vst [vmem:[%s28136_s27 + $0x13a8] sm:$0xff] %v3602_v53  ;;  %v3604_v54 = vld [vmem:[%s28128_s26 + $0x2760] sm:$0xff]  ;;  %v3606_v55 = vld [vmem:[%s28128_s26 + $0x2770] sm:$0xff] }
 0x150   : > { %v3608_v56 = vld [vmem:[%s28128_s26 + $0x2780] sm:$0xff]  ;;  %3605 = vst [vmem:[%s28136_s27 + $0x13b0] sm:$0xff] %v3604_v54  ;;  %3607 = vst [vmem:[%s28136_s27 + $0x13b8] sm:$0xff] %v3606_v55  ;;  %v3610_v57 = vld [vmem:[%s28128_s26 + $0x2790] sm:$0xff] }
 0x151   : > { %3609 = vst [vmem:[%s28136_s27 + $0x13c0] sm:$0xff] %v3608_v56  ;;  %v3612_v58 = vld [vmem:[%s28128_s26 + $0x27a0] sm:$0xff]  ;;  %v3614_v59 = vld [vmem:[%s28128_s26 + $0x27b0] sm:$0xff]  ;;  %3611 = vst [vmem:[%s28136_s27 + $0x13c8] sm:$0xff] %v3610_v57 }
 0x152   : > { %3613 = vst [vmem:[%s28136_s27 + $0x13d0] sm:$0xff] %v3612_v58  ;;  %3615 = vst [vmem:[%s28136_s27 + $0x13d8] sm:$0xff] %v3614_v59  ;;  %v3616_v60 = vld [vmem:[%s28128_s26 + $0x27c0] sm:$0xff]  ;;  %v3618_v61 = vld [vmem:[%s28128_s26 + $0x27d0] sm:$0xff] }
 0x153   : > { %v3620_v62 = vld [vmem:[%s28128_s26 + $0x27e0] sm:$0xff]  ;;  %3617 = vst [vmem:[%s28136_s27 + $0x13e0] sm:$0xff] %v3616_v60  ;;  %3619 = vst [vmem:[%s28136_s27 + $0x13e8] sm:$0xff] %v3618_v61  ;;  %v3622_v63 = vld [vmem:[%s28128_s26 + $0x27f0] sm:$0xff] }
 0x154   : > { %3621 = vst [vmem:[%s28136_s27 + $0x13f0] sm:$0xff] %v3620_v62  ;;  %v3624_v0 = vld [vmem:[%s28128_s26 + $0x2800] sm:$0xff]  ;;  %v3626_v1 = vld [vmem:[%s28128_s26 + $0x2810] sm:$0xff]  ;;  %3623 = vst [vmem:[%s28136_s27 + $0x13f8] sm:$0xff] %v3622_v63 }
 0x155   : > { %3625 = vst [vmem:[%s28136_s27 + $0x1400] sm:$0xff] %v3624_v0  ;;  %3627 = vst [vmem:[%s28136_s27 + $0x1408] sm:$0xff] %v3626_v1  ;;  %v3628_v2 = vld [vmem:[%s28128_s26 + $0x2820] sm:$0xff]  ;;  %v3630_v3 = vld [vmem:[%s28128_s26 + $0x2830] sm:$0xff] }
 0x156   : > { %v3632_v4 = vld [vmem:[%s28128_s26 + $0x2840] sm:$0xff]  ;;  %3629 = vst [vmem:[%s28136_s27 + $0x1410] sm:$0xff] %v3628_v2  ;;  %3631 = vst [vmem:[%s28136_s27 + $0x1418] sm:$0xff] %v3630_v3  ;;  %v3634_v5 = vld [vmem:[%s28128_s26 + $0x2850] sm:$0xff] }
 0x157   : > { %3633 = vst [vmem:[%s28136_s27 + $0x1420] sm:$0xff] %v3632_v4  ;;  %v3636_v6 = vld [vmem:[%s28128_s26 + $0x2860] sm:$0xff]  ;;  %v3638_v7 = vld [vmem:[%s28128_s26 + $0x2870] sm:$0xff]  ;;  %3635 = vst [vmem:[%s28136_s27 + $0x1428] sm:$0xff] %v3634_v5 }
 0x158   : > { %3637 = vst [vmem:[%s28136_s27 + $0x1430] sm:$0xff] %v3636_v6  ;;  %3639 = vst [vmem:[%s28136_s27 + $0x1438] sm:$0xff] %v3638_v7  ;;  %v3640_v8 = vld [vmem:[%s28128_s26 + $0x2880] sm:$0xff]  ;;  %v3642_v9 = vld [vmem:[%s28128_s26 + $0x2890] sm:$0xff] }
 0x159   : > { %v3644_v10 = vld [vmem:[%s28128_s26 + $0x28a0] sm:$0xff]  ;;  %3641 = vst [vmem:[%s28136_s27 + $0x1440] sm:$0xff] %v3640_v8  ;;  %3643 = vst [vmem:[%s28136_s27 + $0x1448] sm:$0xff] %v3642_v9  ;;  %v3646_v11 = vld [vmem:[%s28128_s26 + $0x28b0] sm:$0xff] }
 0x15a   : > { %3645 = vst [vmem:[%s28136_s27 + $0x1450] sm:$0xff] %v3644_v10  ;;  %v3648_v12 = vld [vmem:[%s28128_s26 + $0x28c0] sm:$0xff]  ;;  %v3650_v13 = vld [vmem:[%s28128_s26 + $0x28d0] sm:$0xff]  ;;  %3647 = vst [vmem:[%s28136_s27 + $0x1458] sm:$0xff] %v3646_v11 }
 0x15b   : > { %3649 = vst [vmem:[%s28136_s27 + $0x1460] sm:$0xff] %v3648_v12  ;;  %3651 = vst [vmem:[%s28136_s27 + $0x1468] sm:$0xff] %v3650_v13  ;;  %v3652_v14 = vld [vmem:[%s28128_s26 + $0x28e0] sm:$0xff]  ;;  %v3654_v15 = vld [vmem:[%s28128_s26 + $0x28f0] sm:$0xff] }
 0x15c   : > { %v3656_v16 = vld [vmem:[%s28128_s26 + $0x2900] sm:$0xff]  ;;  %3653 = vst [vmem:[%s28136_s27 + $0x1470] sm:$0xff] %v3652_v14  ;;  %3655 = vst [vmem:[%s28136_s27 + $0x1478] sm:$0xff] %v3654_v15  ;;  %v3658_v17 = vld [vmem:[%s28128_s26 + $0x2910] sm:$0xff] }
 0x15d   : > { %3657 = vst [vmem:[%s28136_s27 + $0x1480] sm:$0xff] %v3656_v16  ;;  %v3660_v18 = vld [vmem:[%s28128_s26 + $0x2920] sm:$0xff]  ;;  %v3662_v19 = vld [vmem:[%s28128_s26 + $0x2930] sm:$0xff]  ;;  %3659 = vst [vmem:[%s28136_s27 + $0x1488] sm:$0xff] %v3658_v17 }
 0x15e   : > { %3661 = vst [vmem:[%s28136_s27 + $0x1490] sm:$0xff] %v3660_v18  ;;  %3663 = vst [vmem:[%s28136_s27 + $0x1498] sm:$0xff] %v3662_v19  ;;  %v3664_v20 = vld [vmem:[%s28128_s26 + $0x2940] sm:$0xff]  ;;  %v3666_v21 = vld [vmem:[%s28128_s26 + $0x2950] sm:$0xff] }
 0x15f   : > { %v3668_v22 = vld [vmem:[%s28128_s26 + $0x2960] sm:$0xff]  ;;  %3665 = vst [vmem:[%s28136_s27 + $0x14a0] sm:$0xff] %v3664_v20  ;;  %3667 = vst [vmem:[%s28136_s27 + $0x14a8] sm:$0xff] %v3666_v21  ;;  %v3670_v23 = vld [vmem:[%s28128_s26 + $0x2970] sm:$0xff] }
 0x160   : > { %3669 = vst [vmem:[%s28136_s27 + $0x14b0] sm:$0xff] %v3668_v22  ;;  %v3672_v24 = vld [vmem:[%s28128_s26 + $0x2980] sm:$0xff]  ;;  %v3674_v25 = vld [vmem:[%s28128_s26 + $0x2990] sm:$0xff]  ;;  %3671 = vst [vmem:[%s28136_s27 + $0x14b8] sm:$0xff] %v3670_v23 }
 0x161   : > { %3673 = vst [vmem:[%s28136_s27 + $0x14c0] sm:$0xff] %v3672_v24  ;;  %3675 = vst [vmem:[%s28136_s27 + $0x14c8] sm:$0xff] %v3674_v25  ;;  %v3676_v26 = vld [vmem:[%s28128_s26 + $0x29a0] sm:$0xff]  ;;  %v3678_v27 = vld [vmem:[%s28128_s26 + $0x29b0] sm:$0xff] }
 0x162   : > { %v3680_v28 = vld [vmem:[%s28128_s26 + $0x29c0] sm:$0xff]  ;;  %3677 = vst [vmem:[%s28136_s27 + $0x14d0] sm:$0xff] %v3676_v26  ;;  %3679 = vst [vmem:[%s28136_s27 + $0x14d8] sm:$0xff] %v3678_v27  ;;  %v3682_v29 = vld [vmem:[%s28128_s26 + $0x29d0] sm:$0xff] }
 0x163   : > { %3681 = vst [vmem:[%s28136_s27 + $0x14e0] sm:$0xff] %v3680_v28  ;;  %v3684_v30 = vld [vmem:[%s28128_s26 + $0x29e0] sm:$0xff]  ;;  %v3686_v31 = vld [vmem:[%s28128_s26 + $0x29f0] sm:$0xff]  ;;  %3683 = vst [vmem:[%s28136_s27 + $0x14e8] sm:$0xff] %v3682_v29 }
 0x164   : > { %3685 = vst [vmem:[%s28136_s27 + $0x14f0] sm:$0xff] %v3684_v30  ;;  %3687 = vst [vmem:[%s28136_s27 + $0x14f8] sm:$0xff] %v3686_v31  ;;  %v3688_v32 = vld [vmem:[%s28128_s26 + $0x2a00] sm:$0xff]  ;;  %v3690_v33 = vld [vmem:[%s28128_s26 + $0x2a10] sm:$0xff] }
 0x165   : > { %v3692_v34 = vld [vmem:[%s28128_s26 + $0x2a20] sm:$0xff]  ;;  %3689 = vst [vmem:[%s28136_s27 + $0x1500] sm:$0xff] %v3688_v32  ;;  %3691 = vst [vmem:[%s28136_s27 + $0x1508] sm:$0xff] %v3690_v33  ;;  %v3694_v35 = vld [vmem:[%s28128_s26 + $0x2a30] sm:$0xff] }
 0x166   : > { %3693 = vst [vmem:[%s28136_s27 + $0x1510] sm:$0xff] %v3692_v34  ;;  %v3696_v36 = vld [vmem:[%s28128_s26 + $0x2a40] sm:$0xff]  ;;  %v3698_v37 = vld [vmem:[%s28128_s26 + $0x2a50] sm:$0xff]  ;;  %3695 = vst [vmem:[%s28136_s27 + $0x1518] sm:$0xff] %v3694_v35 }
 0x167   : > { %3697 = vst [vmem:[%s28136_s27 + $0x1520] sm:$0xff] %v3696_v36  ;;  %3699 = vst [vmem:[%s28136_s27 + $0x1528] sm:$0xff] %v3698_v37  ;;  %v3700_v38 = vld [vmem:[%s28128_s26 + $0x2a60] sm:$0xff]  ;;  %v3702_v39 = vld [vmem:[%s28128_s26 + $0x2a70] sm:$0xff] }
 0x168   : > { %v3704_v40 = vld [vmem:[%s28128_s26 + $0x2a80] sm:$0xff]  ;;  %3701 = vst [vmem:[%s28136_s27 + $0x1530] sm:$0xff] %v3700_v38  ;;  %3703 = vst [vmem:[%s28136_s27 + $0x1538] sm:$0xff] %v3702_v39  ;;  %v3706_v41 = vld [vmem:[%s28128_s26 + $0x2a90] sm:$0xff] }
 0x169   : > { %3705 = vst [vmem:[%s28136_s27 + $0x1540] sm:$0xff] %v3704_v40  ;;  %v3708_v42 = vld [vmem:[%s28128_s26 + $0x2aa0] sm:$0xff]  ;;  %v3710_v43 = vld [vmem:[%s28128_s26 + $0x2ab0] sm:$0xff]  ;;  %3707 = vst [vmem:[%s28136_s27 + $0x1548] sm:$0xff] %v3706_v41 }
 0x16a   : > { %3709 = vst [vmem:[%s28136_s27 + $0x1550] sm:$0xff] %v3708_v42  ;;  %3711 = vst [vmem:[%s28136_s27 + $0x1558] sm:$0xff] %v3710_v43  ;;  %v3712_v44 = vld [vmem:[%s28128_s26 + $0x2ac0] sm:$0xff]  ;;  %v3714_v45 = vld [vmem:[%s28128_s26 + $0x2ad0] sm:$0xff] }
 0x16b   : > { %v3716_v46 = vld [vmem:[%s28128_s26 + $0x2ae0] sm:$0xff]  ;;  %3713 = vst [vmem:[%s28136_s27 + $0x1560] sm:$0xff] %v3712_v44  ;;  %3715 = vst [vmem:[%s28136_s27 + $0x1568] sm:$0xff] %v3714_v45  ;;  %v3718_v47 = vld [vmem:[%s28128_s26 + $0x2af0] sm:$0xff] }
 0x16c   : > { %3717 = vst [vmem:[%s28136_s27 + $0x1570] sm:$0xff] %v3716_v46  ;;  %v3720_v48 = vld [vmem:[%s28128_s26 + $0x2b00] sm:$0xff]  ;;  %v3722_v49 = vld [vmem:[%s28128_s26 + $0x2b10] sm:$0xff]  ;;  %3719 = vst [vmem:[%s28136_s27 + $0x1578] sm:$0xff] %v3718_v47 }
 0x16d   : > { %3721 = vst [vmem:[%s28136_s27 + $0x1580] sm:$0xff] %v3720_v48  ;;  %3723 = vst [vmem:[%s28136_s27 + $0x1588] sm:$0xff] %v3722_v49  ;;  %v3724_v50 = vld [vmem:[%s28128_s26 + $0x2b20] sm:$0xff]  ;;  %v3726_v51 = vld [vmem:[%s28128_s26 + $0x2b30] sm:$0xff] }
 0x16e   : > { %v3728_v52 = vld [vmem:[%s28128_s26 + $0x2b40] sm:$0xff]  ;;  %3725 = vst [vmem:[%s28136_s27 + $0x1590] sm:$0xff] %v3724_v50  ;;  %3727 = vst [vmem:[%s28136_s27 + $0x1598] sm:$0xff] %v3726_v51  ;;  %v3730_v53 = vld [vmem:[%s28128_s26 + $0x2b50] sm:$0xff] }
 0x16f   : > { %3729 = vst [vmem:[%s28136_s27 + $0x15a0] sm:$0xff] %v3728_v52  ;;  %v3732_v54 = vld [vmem:[%s28128_s26 + $0x2b60] sm:$0xff]  ;;  %v3734_v55 = vld [vmem:[%s28128_s26 + $0x2b70] sm:$0xff]  ;;  %3731 = vst [vmem:[%s28136_s27 + $0x15a8] sm:$0xff] %v3730_v53 }
 0x170   : > { %3733 = vst [vmem:[%s28136_s27 + $0x15b0] sm:$0xff] %v3732_v54  ;;  %3735 = vst [vmem:[%s28136_s27 + $0x15b8] sm:$0xff] %v3734_v55  ;;  %v3736_v56 = vld [vmem:[%s28128_s26 + $0x2b80] sm:$0xff]  ;;  %v3738_v57 = vld [vmem:[%s28128_s26 + $0x2b90] sm:$0xff] }
 0x171   : > { %v3740_v58 = vld [vmem:[%s28128_s26 + $0x2ba0] sm:$0xff]  ;;  %3737 = vst [vmem:[%s28136_s27 + $0x15c0] sm:$0xff] %v3736_v56  ;;  %3739 = vst [vmem:[%s28136_s27 + $0x15c8] sm:$0xff] %v3738_v57  ;;  %v3742_v59 = vld [vmem:[%s28128_s26 + $0x2bb0] sm:$0xff] }
 0x172   : > { %3741 = vst [vmem:[%s28136_s27 + $0x15d0] sm:$0xff] %v3740_v58  ;;  %v3744_v60 = vld [vmem:[%s28128_s26 + $0x2bc0] sm:$0xff]  ;;  %v3746_v61 = vld [vmem:[%s28128_s26 + $0x2bd0] sm:$0xff]  ;;  %3743 = vst [vmem:[%s28136_s27 + $0x15d8] sm:$0xff] %v3742_v59 }
 0x173   : > { %3745 = vst [vmem:[%s28136_s27 + $0x15e0] sm:$0xff] %v3744_v60  ;;  %3747 = vst [vmem:[%s28136_s27 + $0x15e8] sm:$0xff] %v3746_v61  ;;  %v3748_v62 = vld [vmem:[%s28128_s26 + $0x2be0] sm:$0xff]  ;;  %v3750_v63 = vld [vmem:[%s28128_s26 + $0x2bf0] sm:$0xff] }
 0x174   : > { %v3752_v0 = vld [vmem:[%s28128_s26 + $0x2c00] sm:$0xff]  ;;  %3749 = vst [vmem:[%s28136_s27 + $0x15f0] sm:$0xff] %v3748_v62  ;;  %3751 = vst [vmem:[%s28136_s27 + $0x15f8] sm:$0xff] %v3750_v63  ;;  %v3754_v1 = vld [vmem:[%s28128_s26 + $0x2c10] sm:$0xff] }
 0x175   : > { %3753 = vst [vmem:[%s28136_s27 + $0x1600] sm:$0xff] %v3752_v0  ;;  %v3756_v2 = vld [vmem:[%s28128_s26 + $0x2c20] sm:$0xff]  ;;  %v3758_v3 = vld [vmem:[%s28128_s26 + $0x2c30] sm:$0xff]  ;;  %3755 = vst [vmem:[%s28136_s27 + $0x1608] sm:$0xff] %v3754_v1 }
 0x176   : > { %3757 = vst [vmem:[%s28136_s27 + $0x1610] sm:$0xff] %v3756_v2  ;;  %3759 = vst [vmem:[%s28136_s27 + $0x1618] sm:$0xff] %v3758_v3  ;;  %v3760_v4 = vld [vmem:[%s28128_s26 + $0x2c40] sm:$0xff]  ;;  %v3762_v5 = vld [vmem:[%s28128_s26 + $0x2c50] sm:$0xff] }
 0x177   : > { %v3764_v6 = vld [vmem:[%s28128_s26 + $0x2c60] sm:$0xff]  ;;  %3761 = vst [vmem:[%s28136_s27 + $0x1620] sm:$0xff] %v3760_v4  ;;  %3763 = vst [vmem:[%s28136_s27 + $0x1628] sm:$0xff] %v3762_v5  ;;  %v3766_v7 = vld [vmem:[%s28128_s26 + $0x2c70] sm:$0xff] }
 0x178   : > { %3765 = vst [vmem:[%s28136_s27 + $0x1630] sm:$0xff] %v3764_v6  ;;  %v3768_v8 = vld [vmem:[%s28128_s26 + $0x2c80] sm:$0xff]  ;;  %v3770_v9 = vld [vmem:[%s28128_s26 + $0x2c90] sm:$0xff]  ;;  %3767 = vst [vmem:[%s28136_s27 + $0x1638] sm:$0xff] %v3766_v7 }
 0x179   : > { %3769 = vst [vmem:[%s28136_s27 + $0x1640] sm:$0xff] %v3768_v8  ;;  %3771 = vst [vmem:[%s28136_s27 + $0x1648] sm:$0xff] %v3770_v9  ;;  %v3772_v10 = vld [vmem:[%s28128_s26 + $0x2ca0] sm:$0xff]  ;;  %v3774_v11 = vld [vmem:[%s28128_s26 + $0x2cb0] sm:$0xff] }
 0x17a   : > { %v3776_v12 = vld [vmem:[%s28128_s26 + $0x2cc0] sm:$0xff]  ;;  %3773 = vst [vmem:[%s28136_s27 + $0x1650] sm:$0xff] %v3772_v10  ;;  %3775 = vst [vmem:[%s28136_s27 + $0x1658] sm:$0xff] %v3774_v11  ;;  %v3778_v13 = vld [vmem:[%s28128_s26 + $0x2cd0] sm:$0xff] }
 0x17b   : > { %3777 = vst [vmem:[%s28136_s27 + $0x1660] sm:$0xff] %v3776_v12  ;;  %v3780_v14 = vld [vmem:[%s28128_s26 + $0x2ce0] sm:$0xff]  ;;  %v3782_v15 = vld [vmem:[%s28128_s26 + $0x2cf0] sm:$0xff]  ;;  %3779 = vst [vmem:[%s28136_s27 + $0x1668] sm:$0xff] %v3778_v13 }
 0x17c   : > { %3781 = vst [vmem:[%s28136_s27 + $0x1670] sm:$0xff] %v3780_v14  ;;  %3783 = vst [vmem:[%s28136_s27 + $0x1678] sm:$0xff] %v3782_v15  ;;  %v3784_v16 = vld [vmem:[%s28128_s26 + $0x2d00] sm:$0xff]  ;;  %v3786_v17 = vld [vmem:[%s28128_s26 + $0x2d10] sm:$0xff] }
 0x17d   : > { %v3788_v18 = vld [vmem:[%s28128_s26 + $0x2d20] sm:$0xff]  ;;  %3785 = vst [vmem:[%s28136_s27 + $0x1680] sm:$0xff] %v3784_v16  ;;  %3787 = vst [vmem:[%s28136_s27 + $0x1688] sm:$0xff] %v3786_v17  ;;  %v3790_v19 = vld [vmem:[%s28128_s26 + $0x2d30] sm:$0xff] }
 0x17e   : > { %3789 = vst [vmem:[%s28136_s27 + $0x1690] sm:$0xff] %v3788_v18  ;;  %v3792_v20 = vld [vmem:[%s28128_s26 + $0x2d40] sm:$0xff]  ;;  %v3794_v21 = vld [vmem:[%s28128_s26 + $0x2d50] sm:$0xff]  ;;  %3791 = vst [vmem:[%s28136_s27 + $0x1698] sm:$0xff] %v3790_v19 }
 0x17f   : > { %3793 = vst [vmem:[%s28136_s27 + $0x16a0] sm:$0xff] %v3792_v20  ;;  %3795 = vst [vmem:[%s28136_s27 + $0x16a8] sm:$0xff] %v3794_v21  ;;  %v3796_v22 = vld [vmem:[%s28128_s26 + $0x2d60] sm:$0xff]  ;;  %v3798_v23 = vld [vmem:[%s28128_s26 + $0x2d70] sm:$0xff] }
 0x180   : > { %v3800_v24 = vld [vmem:[%s28128_s26 + $0x2d80] sm:$0xff]  ;;  %3797 = vst [vmem:[%s28136_s27 + $0x16b0] sm:$0xff] %v3796_v22  ;;  %3799 = vst [vmem:[%s28136_s27 + $0x16b8] sm:$0xff] %v3798_v23  ;;  %v3802_v25 = vld [vmem:[%s28128_s26 + $0x2d90] sm:$0xff] }
 0x181   : > { %3801 = vst [vmem:[%s28136_s27 + $0x16c0] sm:$0xff] %v3800_v24  ;;  %v3804_v26 = vld [vmem:[%s28128_s26 + $0x2da0] sm:$0xff]  ;;  %v3806_v27 = vld [vmem:[%s28128_s26 + $0x2db0] sm:$0xff]  ;;  %3803 = vst [vmem:[%s28136_s27 + $0x16c8] sm:$0xff] %v3802_v25 }
 0x182   : > { %3805 = vst [vmem:[%s28136_s27 + $0x16d0] sm:$0xff] %v3804_v26  ;;  %3807 = vst [vmem:[%s28136_s27 + $0x16d8] sm:$0xff] %v3806_v27  ;;  %v3808_v28 = vld [vmem:[%s28128_s26 + $0x2dc0] sm:$0xff]  ;;  %v3810_v29 = vld [vmem:[%s28128_s26 + $0x2dd0] sm:$0xff] }
 0x183   : > { %v3812_v30 = vld [vmem:[%s28128_s26 + $0x2de0] sm:$0xff]  ;;  %3809 = vst [vmem:[%s28136_s27 + $0x16e0] sm:$0xff] %v3808_v28  ;;  %3811 = vst [vmem:[%s28136_s27 + $0x16e8] sm:$0xff] %v3810_v29  ;;  %v3814_v31 = vld [vmem:[%s28128_s26 + $0x2df0] sm:$0xff] }
 0x184   : > { %3813 = vst [vmem:[%s28136_s27 + $0x16f0] sm:$0xff] %v3812_v30  ;;  %v3816_v32 = vld [vmem:[%s28128_s26 + $0x2e00] sm:$0xff]  ;;  %v3818_v33 = vld [vmem:[%s28128_s26 + $0x2e10] sm:$0xff]  ;;  %3815 = vst [vmem:[%s28136_s27 + $0x16f8] sm:$0xff] %v3814_v31 }
 0x185   : > { %3817 = vst [vmem:[%s28136_s27 + $0x1700] sm:$0xff] %v3816_v32  ;;  %3819 = vst [vmem:[%s28136_s27 + $0x1708] sm:$0xff] %v3818_v33  ;;  %v3820_v34 = vld [vmem:[%s28128_s26 + $0x2e20] sm:$0xff]  ;;  %v3822_v35 = vld [vmem:[%s28128_s26 + $0x2e30] sm:$0xff] }
 0x186   : > { %v3824_v36 = vld [vmem:[%s28128_s26 + $0x2e40] sm:$0xff]  ;;  %3821 = vst [vmem:[%s28136_s27 + $0x1710] sm:$0xff] %v3820_v34  ;;  %3823 = vst [vmem:[%s28136_s27 + $0x1718] sm:$0xff] %v3822_v35  ;;  %v3826_v37 = vld [vmem:[%s28128_s26 + $0x2e50] sm:$0xff] }
 0x187   : > { %3825 = vst [vmem:[%s28136_s27 + $0x1720] sm:$0xff] %v3824_v36  ;;  %v3828_v38 = vld [vmem:[%s28128_s26 + $0x2e60] sm:$0xff]  ;;  %v3830_v39 = vld [vmem:[%s28128_s26 + $0x2e70] sm:$0xff]  ;;  %3827 = vst [vmem:[%s28136_s27 + $0x1728] sm:$0xff] %v3826_v37 }
 0x188   : > { %3829 = vst [vmem:[%s28136_s27 + $0x1730] sm:$0xff] %v3828_v38  ;;  %3831 = vst [vmem:[%s28136_s27 + $0x1738] sm:$0xff] %v3830_v39  ;;  %v3832_v40 = vld [vmem:[%s28128_s26 + $0x2e80] sm:$0xff]  ;;  %v3834_v41 = vld [vmem:[%s28128_s26 + $0x2e90] sm:$0xff] }
 0x189   : > { %v3836_v42 = vld [vmem:[%s28128_s26 + $0x2ea0] sm:$0xff]  ;;  %3833 = vst [vmem:[%s28136_s27 + $0x1740] sm:$0xff] %v3832_v40  ;;  %3835 = vst [vmem:[%s28136_s27 + $0x1748] sm:$0xff] %v3834_v41  ;;  %v3838_v43 = vld [vmem:[%s28128_s26 + $0x2eb0] sm:$0xff] }
 0x18a   : > { %3837 = vst [vmem:[%s28136_s27 + $0x1750] sm:$0xff] %v3836_v42  ;;  %v3840_v44 = vld [vmem:[%s28128_s26 + $0x2ec0] sm:$0xff]  ;;  %v3842_v45 = vld [vmem:[%s28128_s26 + $0x2ed0] sm:$0xff]  ;;  %3839 = vst [vmem:[%s28136_s27 + $0x1758] sm:$0xff] %v3838_v43 }
 0x18b   : > { %3841 = vst [vmem:[%s28136_s27 + $0x1760] sm:$0xff] %v3840_v44  ;;  %3843 = vst [vmem:[%s28136_s27 + $0x1768] sm:$0xff] %v3842_v45  ;;  %v3844_v46 = vld [vmem:[%s28128_s26 + $0x2ee0] sm:$0xff]  ;;  %v3846_v47 = vld [vmem:[%s28128_s26 + $0x2ef0] sm:$0xff] }
 0x18c   : > { %v3848_v48 = vld [vmem:[%s28128_s26 + $0x2f00] sm:$0xff]  ;;  %3845 = vst [vmem:[%s28136_s27 + $0x1770] sm:$0xff] %v3844_v46  ;;  %3847 = vst [vmem:[%s28136_s27 + $0x1778] sm:$0xff] %v3846_v47  ;;  %v3850_v49 = vld [vmem:[%s28128_s26 + $0x2f10] sm:$0xff] }
 0x18d   : > { %3849 = vst [vmem:[%s28136_s27 + $0x1780] sm:$0xff] %v3848_v48  ;;  %v3852_v50 = vld [vmem:[%s28128_s26 + $0x2f20] sm:$0xff]  ;;  %v3854_v51 = vld [vmem:[%s28128_s26 + $0x2f30] sm:$0xff]  ;;  %3851 = vst [vmem:[%s28136_s27 + $0x1788] sm:$0xff] %v3850_v49 }
 0x18e   : > { %3853 = vst [vmem:[%s28136_s27 + $0x1790] sm:$0xff] %v3852_v50  ;;  %3855 = vst [vmem:[%s28136_s27 + $0x1798] sm:$0xff] %v3854_v51  ;;  %v3856_v52 = vld [vmem:[%s28128_s26 + $0x2f40] sm:$0xff]  ;;  %v3858_v53 = vld [vmem:[%s28128_s26 + $0x2f50] sm:$0xff] }
 0x18f   : > { %v3860_v54 = vld [vmem:[%s28128_s26 + $0x2f60] sm:$0xff]  ;;  %3857 = vst [vmem:[%s28136_s27 + $0x17a0] sm:$0xff] %v3856_v52  ;;  %3859 = vst [vmem:[%s28136_s27 + $0x17a8] sm:$0xff] %v3858_v53  ;;  %v3862_v55 = vld [vmem:[%s28128_s26 + $0x2f70] sm:$0xff] }
 0x190   : > { %3861 = vst [vmem:[%s28136_s27 + $0x17b0] sm:$0xff] %v3860_v54  ;;  %v3864_v56 = vld [vmem:[%s28128_s26 + $0x2f80] sm:$0xff]  ;;  %v3866_v57 = vld [vmem:[%s28128_s26 + $0x2f90] sm:$0xff]  ;;  %3863 = vst [vmem:[%s28136_s27 + $0x17b8] sm:$0xff] %v3862_v55 }
 0x191   : > { %3865 = vst [vmem:[%s28136_s27 + $0x17c0] sm:$0xff] %v3864_v56  ;;  %3867 = vst [vmem:[%s28136_s27 + $0x17c8] sm:$0xff] %v3866_v57  ;;  %v3868_v58 = vld [vmem:[%s28128_s26 + $0x2fa0] sm:$0xff]  ;;  %v3870_v59 = vld [vmem:[%s28128_s26 + $0x2fb0] sm:$0xff] }
 0x192   : > { %v3872_v60 = vld [vmem:[%s28128_s26 + $0x2fc0] sm:$0xff]  ;;  %3869 = vst [vmem:[%s28136_s27 + $0x17d0] sm:$0xff] %v3868_v58  ;;  %3871 = vst [vmem:[%s28136_s27 + $0x17d8] sm:$0xff] %v3870_v59  ;;  %v3874_v61 = vld [vmem:[%s28128_s26 + $0x2fd0] sm:$0xff] }
 0x193   : > { %3873 = vst [vmem:[%s28136_s27 + $0x17e0] sm:$0xff] %v3872_v60  ;;  %v3876_v62 = vld [vmem:[%s28128_s26 + $0x2fe0] sm:$0xff]  ;;  %v3878_v63 = vld [vmem:[%s28128_s26 + $0x2ff0] sm:$0xff]  ;;  %3875 = vst [vmem:[%s28136_s27 + $0x17e8] sm:$0xff] %v3874_v61 }
 0x194   : > { %3877 = vst [vmem:[%s28136_s27 + $0x17f0] sm:$0xff] %v3876_v62  ;;  %3879 = vst [vmem:[%s28136_s27 + $0x17f8] sm:$0xff] %v3878_v63  ;;  %v3880_v0 = vld [vmem:[%s28128_s26 + $0x3000] sm:$0xff]  ;;  %v3882_v1 = vld [vmem:[%s28128_s26 + $0x3010] sm:$0xff] }
 0x195   : > { %v3884_v2 = vld [vmem:[%s28128_s26 + $0x3020] sm:$0xff]  ;;  %3881 = vst [vmem:[%s28136_s27 + $0x1800] sm:$0xff] %v3880_v0  ;;  %3883 = vst [vmem:[%s28136_s27 + $0x1808] sm:$0xff] %v3882_v1  ;;  %v3886_v3 = vld [vmem:[%s28128_s26 + $0x3030] sm:$0xff] }
 0x196   : > { %3885 = vst [vmem:[%s28136_s27 + $0x1810] sm:$0xff] %v3884_v2  ;;  %v3888_v4 = vld [vmem:[%s28128_s26 + $0x3040] sm:$0xff]  ;;  %v3890_v5 = vld [vmem:[%s28128_s26 + $0x3050] sm:$0xff]  ;;  %3887 = vst [vmem:[%s28136_s27 + $0x1818] sm:$0xff] %v3886_v3 }
 0x197   : > { %3889 = vst [vmem:[%s28136_s27 + $0x1820] sm:$0xff] %v3888_v4  ;;  %3891 = vst [vmem:[%s28136_s27 + $0x1828] sm:$0xff] %v3890_v5  ;;  %v3892_v6 = vld [vmem:[%s28128_s26 + $0x3060] sm:$0xff]  ;;  %v3894_v7 = vld [vmem:[%s28128_s26 + $0x3070] sm:$0xff] }
 0x198   : > { %v3896_v8 = vld [vmem:[%s28128_s26 + $0x3080] sm:$0xff]  ;;  %3893 = vst [vmem:[%s28136_s27 + $0x1830] sm:$0xff] %v3892_v6  ;;  %3895 = vst [vmem:[%s28136_s27 + $0x1838] sm:$0xff] %v3894_v7  ;;  %v3898_v9 = vld [vmem:[%s28128_s26 + $0x3090] sm:$0xff] }
 0x199   : > { %3897 = vst [vmem:[%s28136_s27 + $0x1840] sm:$0xff] %v3896_v8  ;;  %v3900_v10 = vld [vmem:[%s28128_s26 + $0x30a0] sm:$0xff]  ;;  %v3902_v11 = vld [vmem:[%s28128_s26 + $0x30b0] sm:$0xff]  ;;  %3899 = vst [vmem:[%s28136_s27 + $0x1848] sm:$0xff] %v3898_v9 }
 0x19a   : > { %3901 = vst [vmem:[%s28136_s27 + $0x1850] sm:$0xff] %v3900_v10  ;;  %3903 = vst [vmem:[%s28136_s27 + $0x1858] sm:$0xff] %v3902_v11  ;;  %v3904_v12 = vld [vmem:[%s28128_s26 + $0x30c0] sm:$0xff]  ;;  %v3906_v13 = vld [vmem:[%s28128_s26 + $0x30d0] sm:$0xff] }
 0x19b   : > { %v3908_v14 = vld [vmem:[%s28128_s26 + $0x30e0] sm:$0xff]  ;;  %3905 = vst [vmem:[%s28136_s27 + $0x1860] sm:$0xff] %v3904_v12  ;;  %3907 = vst [vmem:[%s28136_s27 + $0x1868] sm:$0xff] %v3906_v13  ;;  %v3910_v15 = vld [vmem:[%s28128_s26 + $0x30f0] sm:$0xff] }
 0x19c   : > { %3909 = vst [vmem:[%s28136_s27 + $0x1870] sm:$0xff] %v3908_v14  ;;  %v3912_v16 = vld [vmem:[%s28128_s26 + $0x3100] sm:$0xff]  ;;  %v3914_v17 = vld [vmem:[%s28128_s26 + $0x3110] sm:$0xff]  ;;  %3911 = vst [vmem:[%s28136_s27 + $0x1878] sm:$0xff] %v3910_v15 }
 0x19d   : > { %3913 = vst [vmem:[%s28136_s27 + $0x1880] sm:$0xff] %v3912_v16  ;;  %3915 = vst [vmem:[%s28136_s27 + $0x1888] sm:$0xff] %v3914_v17  ;;  %v3916_v18 = vld [vmem:[%s28128_s26 + $0x3120] sm:$0xff]  ;;  %v3918_v19 = vld [vmem:[%s28128_s26 + $0x3130] sm:$0xff] }
 0x19e   : > { %v3920_v20 = vld [vmem:[%s28128_s26 + $0x3140] sm:$0xff]  ;;  %3917 = vst [vmem:[%s28136_s27 + $0x1890] sm:$0xff] %v3916_v18  ;;  %3919 = vst [vmem:[%s28136_s27 + $0x1898] sm:$0xff] %v3918_v19  ;;  %v3922_v21 = vld [vmem:[%s28128_s26 + $0x3150] sm:$0xff] }
 0x19f   : > { %3921 = vst [vmem:[%s28136_s27 + $0x18a0] sm:$0xff] %v3920_v20  ;;  %v3924_v22 = vld [vmem:[%s28128_s26 + $0x3160] sm:$0xff]  ;;  %v3926_v23 = vld [vmem:[%s28128_s26 + $0x3170] sm:$0xff]  ;;  %3923 = vst [vmem:[%s28136_s27 + $0x18a8] sm:$0xff] %v3922_v21 }
 0x1a0   : > { %3925 = vst [vmem:[%s28136_s27 + $0x18b0] sm:$0xff] %v3924_v22  ;;  %3927 = vst [vmem:[%s28136_s27 + $0x18b8] sm:$0xff] %v3926_v23  ;;  %v3928_v24 = vld [vmem:[%s28128_s26 + $0x3180] sm:$0xff]  ;;  %v3930_v25 = vld [vmem:[%s28128_s26 + $0x3190] sm:$0xff] }
 0x1a1   : > { %v3932_v26 = vld [vmem:[%s28128_s26 + $0x31a0] sm:$0xff]  ;;  %3929 = vst [vmem:[%s28136_s27 + $0x18c0] sm:$0xff] %v3928_v24  ;;  %3931 = vst [vmem:[%s28136_s27 + $0x18c8] sm:$0xff] %v3930_v25  ;;  %v3934_v27 = vld [vmem:[%s28128_s26 + $0x31b0] sm:$0xff] }
 0x1a2   : > { %3933 = vst [vmem:[%s28136_s27 + $0x18d0] sm:$0xff] %v3932_v26  ;;  %v3936_v28 = vld [vmem:[%s28128_s26 + $0x31c0] sm:$0xff]  ;;  %v3938_v29 = vld [vmem:[%s28128_s26 + $0x31d0] sm:$0xff]  ;;  %3935 = vst [vmem:[%s28136_s27 + $0x18d8] sm:$0xff] %v3934_v27 }
 0x1a3   : > { %3937 = vst [vmem:[%s28136_s27 + $0x18e0] sm:$0xff] %v3936_v28  ;;  %3939 = vst [vmem:[%s28136_s27 + $0x18e8] sm:$0xff] %v3938_v29  ;;  %v3940_v30 = vld [vmem:[%s28128_s26 + $0x31e0] sm:$0xff]  ;;  %v3942_v31 = vld [vmem:[%s28128_s26 + $0x31f0] sm:$0xff] }
 0x1a4   : > { %v3944_v32 = vld [vmem:[%s28128_s26 + $0x3200] sm:$0xff]  ;;  %3941 = vst [vmem:[%s28136_s27 + $0x18f0] sm:$0xff] %v3940_v30  ;;  %3943 = vst [vmem:[%s28136_s27 + $0x18f8] sm:$0xff] %v3942_v31  ;;  %v3946_v33 = vld [vmem:[%s28128_s26 + $0x3210] sm:$0xff] }
 0x1a5   : > { %3945 = vst [vmem:[%s28136_s27 + $0x1900] sm:$0xff] %v3944_v32  ;;  %v3948_v34 = vld [vmem:[%s28128_s26 + $0x3220] sm:$0xff]  ;;  %v3950_v35 = vld [vmem:[%s28128_s26 + $0x3230] sm:$0xff]  ;;  %3947 = vst [vmem:[%s28136_s27 + $0x1908] sm:$0xff] %v3946_v33 }
 0x1a6   : > { %3949 = vst [vmem:[%s28136_s27 + $0x1910] sm:$0xff] %v3948_v34  ;;  %3951 = vst [vmem:[%s28136_s27 + $0x1918] sm:$0xff] %v3950_v35  ;;  %v3952_v36 = vld [vmem:[%s28128_s26 + $0x3240] sm:$0xff]  ;;  %v3954_v37 = vld [vmem:[%s28128_s26 + $0x3250] sm:$0xff] }
 0x1a7   : > { %v3956_v38 = vld [vmem:[%s28128_s26 + $0x3260] sm:$0xff]  ;;  %3953 = vst [vmem:[%s28136_s27 + $0x1920] sm:$0xff] %v3952_v36  ;;  %3955 = vst [vmem:[%s28136_s27 + $0x1928] sm:$0xff] %v3954_v37  ;;  %v3958_v39 = vld [vmem:[%s28128_s26 + $0x3270] sm:$0xff] }
 0x1a8   : > { %3957 = vst [vmem:[%s28136_s27 + $0x1930] sm:$0xff] %v3956_v38  ;;  %v3960_v40 = vld [vmem:[%s28128_s26 + $0x3280] sm:$0xff]  ;;  %v3962_v41 = vld [vmem:[%s28128_s26 + $0x3290] sm:$0xff]  ;;  %3959 = vst [vmem:[%s28136_s27 + $0x1938] sm:$0xff] %v3958_v39 }
 0x1a9   : > { %3961 = vst [vmem:[%s28136_s27 + $0x1940] sm:$0xff] %v3960_v40  ;;  %3963 = vst [vmem:[%s28136_s27 + $0x1948] sm:$0xff] %v3962_v41  ;;  %v3964_v42 = vld [vmem:[%s28128_s26 + $0x32a0] sm:$0xff]  ;;  %v3966_v43 = vld [vmem:[%s28128_s26 + $0x32b0] sm:$0xff] }
 0x1aa   : > { %v3968_v44 = vld [vmem:[%s28128_s26 + $0x32c0] sm:$0xff]  ;;  %3965 = vst [vmem:[%s28136_s27 + $0x1950] sm:$0xff] %v3964_v42  ;;  %3967 = vst [vmem:[%s28136_s27 + $0x1958] sm:$0xff] %v3966_v43  ;;  %v3970_v45 = vld [vmem:[%s28128_s26 + $0x32d0] sm:$0xff] }
 0x1ab   : > { %3969 = vst [vmem:[%s28136_s27 + $0x1960] sm:$0xff] %v3968_v44  ;;  %v3972_v46 = vld [vmem:[%s28128_s26 + $0x32e0] sm:$0xff]  ;;  %v3974_v47 = vld [vmem:[%s28128_s26 + $0x32f0] sm:$0xff]  ;;  %3971 = vst [vmem:[%s28136_s27 + $0x1968] sm:$0xff] %v3970_v45 }
 0x1ac   : > { %3973 = vst [vmem:[%s28136_s27 + $0x1970] sm:$0xff] %v3972_v46  ;;  %3975 = vst [vmem:[%s28136_s27 + $0x1978] sm:$0xff] %v3974_v47  ;;  %v3976_v48 = vld [vmem:[%s28128_s26 + $0x3300] sm:$0xff]  ;;  %v3978_v49 = vld [vmem:[%s28128_s26 + $0x3310] sm:$0xff] }
 0x1ad   : > { %v3980_v50 = vld [vmem:[%s28128_s26 + $0x3320] sm:$0xff]  ;;  %3977 = vst [vmem:[%s28136_s27 + $0x1980] sm:$0xff] %v3976_v48  ;;  %3979 = vst [vmem:[%s28136_s27 + $0x1988] sm:$0xff] %v3978_v49  ;;  %v3982_v51 = vld [vmem:[%s28128_s26 + $0x3330] sm:$0xff] }
 0x1ae   : > { %3981 = vst [vmem:[%s28136_s27 + $0x1990] sm:$0xff] %v3980_v50  ;;  %v3984_v52 = vld [vmem:[%s28128_s26 + $0x3340] sm:$0xff]  ;;  %v3986_v53 = vld [vmem:[%s28128_s26 + $0x3350] sm:$0xff]  ;;  %3983 = vst [vmem:[%s28136_s27 + $0x1998] sm:$0xff] %v3982_v51 }
 0x1af   : > { %3985 = vst [vmem:[%s28136_s27 + $0x19a0] sm:$0xff] %v3984_v52  ;;  %3987 = vst [vmem:[%s28136_s27 + $0x19a8] sm:$0xff] %v3986_v53  ;;  %v3988_v54 = vld [vmem:[%s28128_s26 + $0x3360] sm:$0xff]  ;;  %v3990_v55 = vld [vmem:[%s28128_s26 + $0x3370] sm:$0xff] }
 0x1b0   : > { %v3992_v56 = vld [vmem:[%s28128_s26 + $0x3380] sm:$0xff]  ;;  %3989 = vst [vmem:[%s28136_s27 + $0x19b0] sm:$0xff] %v3988_v54  ;;  %3991 = vst [vmem:[%s28136_s27 + $0x19b8] sm:$0xff] %v3990_v55  ;;  %v3994_v57 = vld [vmem:[%s28128_s26 + $0x3390] sm:$0xff] }
 0x1b1   : > { %3993 = vst [vmem:[%s28136_s27 + $0x19c0] sm:$0xff] %v3992_v56  ;;  %v3996_v58 = vld [vmem:[%s28128_s26 + $0x33a0] sm:$0xff]  ;;  %v3998_v59 = vld [vmem:[%s28128_s26 + $0x33b0] sm:$0xff]  ;;  %3995 = vst [vmem:[%s28136_s27 + $0x19c8] sm:$0xff] %v3994_v57 }
 0x1b2   : > { %3997 = vst [vmem:[%s28136_s27 + $0x19d0] sm:$0xff] %v3996_v58  ;;  %3999 = vst [vmem:[%s28136_s27 + $0x19d8] sm:$0xff] %v3998_v59  ;;  %v4000_v60 = vld [vmem:[%s28128_s26 + $0x33c0] sm:$0xff]  ;;  %v4002_v61 = vld [vmem:[%s28128_s26 + $0x33d0] sm:$0xff] }
 0x1b3   : > { %v4004_v62 = vld [vmem:[%s28128_s26 + $0x33e0] sm:$0xff]  ;;  %4001 = vst [vmem:[%s28136_s27 + $0x19e0] sm:$0xff] %v4000_v60  ;;  %4003 = vst [vmem:[%s28136_s27 + $0x19e8] sm:$0xff] %v4002_v61  ;;  %v4006_v63 = vld [vmem:[%s28128_s26 + $0x33f0] sm:$0xff] }
 0x1b4   : > { %4005 = vst [vmem:[%s28136_s27 + $0x19f0] sm:$0xff] %v4004_v62  ;;  %v4008_v0 = vld [vmem:[%s28128_s26 + $0x3400] sm:$0xff]  ;;  %v4010_v1 = vld [vmem:[%s28128_s26 + $0x3410] sm:$0xff]  ;;  %4007 = vst [vmem:[%s28136_s27 + $0x19f8] sm:$0xff] %v4006_v63 }
 0x1b5   : > { %4009 = vst [vmem:[%s28136_s27 + $0x1a00] sm:$0xff] %v4008_v0  ;;  %4011 = vst [vmem:[%s28136_s27 + $0x1a08] sm:$0xff] %v4010_v1  ;;  %v4012_v2 = vld [vmem:[%s28128_s26 + $0x3420] sm:$0xff]  ;;  %v4014_v3 = vld [vmem:[%s28128_s26 + $0x3430] sm:$0xff] }
 0x1b6   : > { %v4016_v4 = vld [vmem:[%s28128_s26 + $0x3440] sm:$0xff]  ;;  %4013 = vst [vmem:[%s28136_s27 + $0x1a10] sm:$0xff] %v4012_v2  ;;  %4015 = vst [vmem:[%s28136_s27 + $0x1a18] sm:$0xff] %v4014_v3  ;;  %v4018_v5 = vld [vmem:[%s28128_s26 + $0x3450] sm:$0xff] }
 0x1b7   : > { %4017 = vst [vmem:[%s28136_s27 + $0x1a20] sm:$0xff] %v4016_v4  ;;  %v4020_v6 = vld [vmem:[%s28128_s26 + $0x3460] sm:$0xff]  ;;  %v4022_v7 = vld [vmem:[%s28128_s26 + $0x3470] sm:$0xff]  ;;  %4019 = vst [vmem:[%s28136_s27 + $0x1a28] sm:$0xff] %v4018_v5 }
 0x1b8   : > { %4021 = vst [vmem:[%s28136_s27 + $0x1a30] sm:$0xff] %v4020_v6  ;;  %4023 = vst [vmem:[%s28136_s27 + $0x1a38] sm:$0xff] %v4022_v7  ;;  %v4024_v8 = vld [vmem:[%s28128_s26 + $0x3480] sm:$0xff]  ;;  %v4026_v9 = vld [vmem:[%s28128_s26 + $0x3490] sm:$0xff] }
 0x1b9   : > { %v4028_v10 = vld [vmem:[%s28128_s26 + $0x34a0] sm:$0xff]  ;;  %4025 = vst [vmem:[%s28136_s27 + $0x1a40] sm:$0xff] %v4024_v8  ;;  %4027 = vst [vmem:[%s28136_s27 + $0x1a48] sm:$0xff] %v4026_v9  ;;  %v4030_v11 = vld [vmem:[%s28128_s26 + $0x34b0] sm:$0xff] }
 0x1ba   : > { %4029 = vst [vmem:[%s28136_s27 + $0x1a50] sm:$0xff] %v4028_v10  ;;  %v4032_v12 = vld [vmem:[%s28128_s26 + $0x34c0] sm:$0xff]  ;;  %v4034_v13 = vld [vmem:[%s28128_s26 + $0x34d0] sm:$0xff]  ;;  %4031 = vst [vmem:[%s28136_s27 + $0x1a58] sm:$0xff] %v4030_v11 }
 0x1bb   : > { %4033 = vst [vmem:[%s28136_s27 + $0x1a60] sm:$0xff] %v4032_v12  ;;  %4035 = vst [vmem:[%s28136_s27 + $0x1a68] sm:$0xff] %v4034_v13  ;;  %v4036_v14 = vld [vmem:[%s28128_s26 + $0x34e0] sm:$0xff]  ;;  %v4038_v15 = vld [vmem:[%s28128_s26 + $0x34f0] sm:$0xff] }
 0x1bc   : > { %v4040_v16 = vld [vmem:[%s28128_s26 + $0x3500] sm:$0xff]  ;;  %4037 = vst [vmem:[%s28136_s27 + $0x1a70] sm:$0xff] %v4036_v14  ;;  %4039 = vst [vmem:[%s28136_s27 + $0x1a78] sm:$0xff] %v4038_v15  ;;  %v4042_v17 = vld [vmem:[%s28128_s26 + $0x3510] sm:$0xff] }
 0x1bd   : > { %4041 = vst [vmem:[%s28136_s27 + $0x1a80] sm:$0xff] %v4040_v16  ;;  %v4044_v18 = vld [vmem:[%s28128_s26 + $0x3520] sm:$0xff]  ;;  %v4046_v19 = vld [vmem:[%s28128_s26 + $0x3530] sm:$0xff]  ;;  %4043 = vst [vmem:[%s28136_s27 + $0x1a88] sm:$0xff] %v4042_v17 }
 0x1be   : > { %4045 = vst [vmem:[%s28136_s27 + $0x1a90] sm:$0xff] %v4044_v18  ;;  %4047 = vst [vmem:[%s28136_s27 + $0x1a98] sm:$0xff] %v4046_v19  ;;  %v4048_v20 = vld [vmem:[%s28128_s26 + $0x3540] sm:$0xff]  ;;  %v4050_v21 = vld [vmem:[%s28128_s26 + $0x3550] sm:$0xff] }
 0x1bf   : > { %v4052_v22 = vld [vmem:[%s28128_s26 + $0x3560] sm:$0xff]  ;;  %4049 = vst [vmem:[%s28136_s27 + $0x1aa0] sm:$0xff] %v4048_v20  ;;  %4051 = vst [vmem:[%s28136_s27 + $0x1aa8] sm:$0xff] %v4050_v21  ;;  %v4054_v23 = vld [vmem:[%s28128_s26 + $0x3570] sm:$0xff] }
 0x1c0   : > { %4053 = vst [vmem:[%s28136_s27 + $0x1ab0] sm:$0xff] %v4052_v22  ;;  %v4056_v24 = vld [vmem:[%s28128_s26 + $0x3580] sm:$0xff]  ;;  %v4058_v25 = vld [vmem:[%s28128_s26 + $0x3590] sm:$0xff]  ;;  %4055 = vst [vmem:[%s28136_s27 + $0x1ab8] sm:$0xff] %v4054_v23 }
 0x1c1   : > { %4057 = vst [vmem:[%s28136_s27 + $0x1ac0] sm:$0xff] %v4056_v24  ;;  %4059 = vst [vmem:[%s28136_s27 + $0x1ac8] sm:$0xff] %v4058_v25  ;;  %v4060_v26 = vld [vmem:[%s28128_s26 + $0x35a0] sm:$0xff]  ;;  %v4062_v27 = vld [vmem:[%s28128_s26 + $0x35b0] sm:$0xff] }
 0x1c2   : > { %v4064_v28 = vld [vmem:[%s28128_s26 + $0x35c0] sm:$0xff]  ;;  %4061 = vst [vmem:[%s28136_s27 + $0x1ad0] sm:$0xff] %v4060_v26  ;;  %4063 = vst [vmem:[%s28136_s27 + $0x1ad8] sm:$0xff] %v4062_v27  ;;  %v4066_v29 = vld [vmem:[%s28128_s26 + $0x35d0] sm:$0xff] }
 0x1c3   : > { %4065 = vst [vmem:[%s28136_s27 + $0x1ae0] sm:$0xff] %v4064_v28  ;;  %v4068_v30 = vld [vmem:[%s28128_s26 + $0x35e0] sm:$0xff]  ;;  %v4070_v31 = vld [vmem:[%s28128_s26 + $0x35f0] sm:$0xff]  ;;  %4067 = vst [vmem:[%s28136_s27 + $0x1ae8] sm:$0xff] %v4066_v29 }
 0x1c4   : > { %4069 = vst [vmem:[%s28136_s27 + $0x1af0] sm:$0xff] %v4068_v30  ;;  %4071 = vst [vmem:[%s28136_s27 + $0x1af8] sm:$0xff] %v4070_v31  ;;  %v4072_v32 = vld [vmem:[%s28128_s26 + $0x3600] sm:$0xff]  ;;  %v4074_v33 = vld [vmem:[%s28128_s26 + $0x3610] sm:$0xff] }
 0x1c5   : > { %v4076_v34 = vld [vmem:[%s28128_s26 + $0x3620] sm:$0xff]  ;;  %4073 = vst [vmem:[%s28136_s27 + $0x1b00] sm:$0xff] %v4072_v32  ;;  %4075 = vst [vmem:[%s28136_s27 + $0x1b08] sm:$0xff] %v4074_v33  ;;  %v4078_v35 = vld [vmem:[%s28128_s26 + $0x3630] sm:$0xff] }
 0x1c6   : > { %4077 = vst [vmem:[%s28136_s27 + $0x1b10] sm:$0xff] %v4076_v34  ;;  %v4080_v36 = vld [vmem:[%s28128_s26 + $0x3640] sm:$0xff]  ;;  %v4082_v37 = vld [vmem:[%s28128_s26 + $0x3650] sm:$0xff]  ;;  %4079 = vst [vmem:[%s28136_s27 + $0x1b18] sm:$0xff] %v4078_v35 }
 0x1c7   : > { %4081 = vst [vmem:[%s28136_s27 + $0x1b20] sm:$0xff] %v4080_v36  ;;  %4083 = vst [vmem:[%s28136_s27 + $0x1b28] sm:$0xff] %v4082_v37  ;;  %v4084_v38 = vld [vmem:[%s28128_s26 + $0x3660] sm:$0xff]  ;;  %v4086_v39 = vld [vmem:[%s28128_s26 + $0x3670] sm:$0xff] }
 0x1c8   : > { %v4088_v40 = vld [vmem:[%s28128_s26 + $0x3680] sm:$0xff]  ;;  %4085 = vst [vmem:[%s28136_s27 + $0x1b30] sm:$0xff] %v4084_v38  ;;  %4087 = vst [vmem:[%s28136_s27 + $0x1b38] sm:$0xff] %v4086_v39  ;;  %v4090_v41 = vld [vmem:[%s28128_s26 + $0x3690] sm:$0xff] }
 0x1c9   : > { %4089 = vst [vmem:[%s28136_s27 + $0x1b40] sm:$0xff] %v4088_v40  ;;  %v4092_v42 = vld [vmem:[%s28128_s26 + $0x36a0] sm:$0xff]  ;;  %v4094_v43 = vld [vmem:[%s28128_s26 + $0x36b0] sm:$0xff]  ;;  %4091 = vst [vmem:[%s28136_s27 + $0x1b48] sm:$0xff] %v4090_v41 }
 0x1ca   : > { %4093 = vst [vmem:[%s28136_s27 + $0x1b50] sm:$0xff] %v4092_v42  ;;  %4095 = vst [vmem:[%s28136_s27 + $0x1b58] sm:$0xff] %v4094_v43  ;;  %v4096_v44 = vld [vmem:[%s28128_s26 + $0x36c0] sm:$0xff]  ;;  %v4098_v45 = vld [vmem:[%s28128_s26 + $0x36d0] sm:$0xff] }
 0x1cb   : > { %v4100_v46 = vld [vmem:[%s28128_s26 + $0x36e0] sm:$0xff]  ;;  %4097 = vst [vmem:[%s28136_s27 + $0x1b60] sm:$0xff] %v4096_v44  ;;  %4099 = vst [vmem:[%s28136_s27 + $0x1b68] sm:$0xff] %v4098_v45  ;;  %v4102_v47 = vld [vmem:[%s28128_s26 + $0x36f0] sm:$0xff] }
 0x1cc   : > { %4101 = vst [vmem:[%s28136_s27 + $0x1b70] sm:$0xff] %v4100_v46  ;;  %v4104_v48 = vld [vmem:[%s28128_s26 + $0x3700] sm:$0xff]  ;;  %v4106_v49 = vld [vmem:[%s28128_s26 + $0x3710] sm:$0xff]  ;;  %4103 = vst [vmem:[%s28136_s27 + $0x1b78] sm:$0xff] %v4102_v47 }
 0x1cd   : > { %4105 = vst [vmem:[%s28136_s27 + $0x1b80] sm:$0xff] %v4104_v48  ;;  %4107 = vst [vmem:[%s28136_s27 + $0x1b88] sm:$0xff] %v4106_v49  ;;  %v4108_v50 = vld [vmem:[%s28128_s26 + $0x3720] sm:$0xff]  ;;  %v4110_v51 = vld [vmem:[%s28128_s26 + $0x3730] sm:$0xff] }
 0x1ce   : > { %v4112_v52 = vld [vmem:[%s28128_s26 + $0x3740] sm:$0xff]  ;;  %4109 = vst [vmem:[%s28136_s27 + $0x1b90] sm:$0xff] %v4108_v50  ;;  %4111 = vst [vmem:[%s28136_s27 + $0x1b98] sm:$0xff] %v4110_v51  ;;  %v4114_v53 = vld [vmem:[%s28128_s26 + $0x3750] sm:$0xff] }
 0x1cf   : > { %4113 = vst [vmem:[%s28136_s27 + $0x1ba0] sm:$0xff] %v4112_v52  ;;  %v4116_v54 = vld [vmem:[%s28128_s26 + $0x3760] sm:$0xff]  ;;  %v4118_v55 = vld [vmem:[%s28128_s26 + $0x3770] sm:$0xff]  ;;  %4115 = vst [vmem:[%s28136_s27 + $0x1ba8] sm:$0xff] %v4114_v53 }
 0x1d0   : > { %4117 = vst [vmem:[%s28136_s27 + $0x1bb0] sm:$0xff] %v4116_v54  ;;  %4119 = vst [vmem:[%s28136_s27 + $0x1bb8] sm:$0xff] %v4118_v55  ;;  %v4120_v56 = vld [vmem:[%s28128_s26 + $0x3780] sm:$0xff]  ;;  %v4122_v57 = vld [vmem:[%s28128_s26 + $0x3790] sm:$0xff] }
 0x1d1   : > { %v4124_v58 = vld [vmem:[%s28128_s26 + $0x37a0] sm:$0xff]  ;;  %4121 = vst [vmem:[%s28136_s27 + $0x1bc0] sm:$0xff] %v4120_v56  ;;  %4123 = vst [vmem:[%s28136_s27 + $0x1bc8] sm:$0xff] %v4122_v57  ;;  %v4126_v59 = vld [vmem:[%s28128_s26 + $0x37b0] sm:$0xff] }
 0x1d2   : > { %4125 = vst [vmem:[%s28136_s27 + $0x1bd0] sm:$0xff] %v4124_v58  ;;  %v4128_v60 = vld [vmem:[%s28128_s26 + $0x37c0] sm:$0xff]  ;;  %v4130_v61 = vld [vmem:[%s28128_s26 + $0x37d0] sm:$0xff]  ;;  %4127 = vst [vmem:[%s28136_s27 + $0x1bd8] sm:$0xff] %v4126_v59 }
 0x1d3   : > { %4129 = vst [vmem:[%s28136_s27 + $0x1be0] sm:$0xff] %v4128_v60  ;;  %4131 = vst [vmem:[%s28136_s27 + $0x1be8] sm:$0xff] %v4130_v61  ;;  %v4132_v62 = vld [vmem:[%s28128_s26 + $0x37e0] sm:$0xff]  ;;  %v4134_v63 = vld [vmem:[%s28128_s26 + $0x37f0] sm:$0xff] }
 0x1d4   : > { %v4136_v0 = vld [vmem:[%s28128_s26 + $0x3800] sm:$0xff]  ;;  %4133 = vst [vmem:[%s28136_s27 + $0x1bf0] sm:$0xff] %v4132_v62  ;;  %4135 = vst [vmem:[%s28136_s27 + $0x1bf8] sm:$0xff] %v4134_v63  ;;  %v4138_v1 = vld [vmem:[%s28128_s26 + $0x3810] sm:$0xff] }
 0x1d5   : > { %4137 = vst [vmem:[%s28136_s27 + $0x1c00] sm:$0xff] %v4136_v0  ;;  %v4140_v2 = vld [vmem:[%s28128_s26 + $0x3820] sm:$0xff]  ;;  %v4142_v3 = vld [vmem:[%s28128_s26 + $0x3830] sm:$0xff]  ;;  %4139 = vst [vmem:[%s28136_s27 + $0x1c08] sm:$0xff] %v4138_v1 }
 0x1d6   : > { %4141 = vst [vmem:[%s28136_s27 + $0x1c10] sm:$0xff] %v4140_v2  ;;  %4143 = vst [vmem:[%s28136_s27 + $0x1c18] sm:$0xff] %v4142_v3  ;;  %v4144_v4 = vld [vmem:[%s28128_s26 + $0x3840] sm:$0xff]  ;;  %v4146_v5 = vld [vmem:[%s28128_s26 + $0x3850] sm:$0xff] }
 0x1d7   : > { %v4148_v6 = vld [vmem:[%s28128_s26 + $0x3860] sm:$0xff]  ;;  %4145 = vst [vmem:[%s28136_s27 + $0x1c20] sm:$0xff] %v4144_v4  ;;  %4147 = vst [vmem:[%s28136_s27 + $0x1c28] sm:$0xff] %v4146_v5  ;;  %v4150_v7 = vld [vmem:[%s28128_s26 + $0x3870] sm:$0xff] }
 0x1d8   : > { %4149 = vst [vmem:[%s28136_s27 + $0x1c30] sm:$0xff] %v4148_v6  ;;  %v4152_v8 = vld [vmem:[%s28128_s26 + $0x3880] sm:$0xff]  ;;  %v4154_v9 = vld [vmem:[%s28128_s26 + $0x3890] sm:$0xff]  ;;  %4151 = vst [vmem:[%s28136_s27 + $0x1c38] sm:$0xff] %v4150_v7 }
 0x1d9   : > { %4153 = vst [vmem:[%s28136_s27 + $0x1c40] sm:$0xff] %v4152_v8  ;;  %4155 = vst [vmem:[%s28136_s27 + $0x1c48] sm:$0xff] %v4154_v9  ;;  %v4156_v10 = vld [vmem:[%s28128_s26 + $0x38a0] sm:$0xff]  ;;  %v4158_v11 = vld [vmem:[%s28128_s26 + $0x38b0] sm:$0xff] }
 0x1da   : > { %v4160_v12 = vld [vmem:[%s28128_s26 + $0x38c0] sm:$0xff]  ;;  %4157 = vst [vmem:[%s28136_s27 + $0x1c50] sm:$0xff] %v4156_v10  ;;  %4159 = vst [vmem:[%s28136_s27 + $0x1c58] sm:$0xff] %v4158_v11  ;;  %v4162_v13 = vld [vmem:[%s28128_s26 + $0x38d0] sm:$0xff] }
 0x1db   : > { %4161 = vst [vmem:[%s28136_s27 + $0x1c60] sm:$0xff] %v4160_v12  ;;  %v4164_v14 = vld [vmem:[%s28128_s26 + $0x38e0] sm:$0xff]  ;;  %v4166_v15 = vld [vmem:[%s28128_s26 + $0x38f0] sm:$0xff]  ;;  %4163 = vst [vmem:[%s28136_s27 + $0x1c68] sm:$0xff] %v4162_v13 }
 0x1dc   : > { %4165 = vst [vmem:[%s28136_s27 + $0x1c70] sm:$0xff] %v4164_v14  ;;  %4167 = vst [vmem:[%s28136_s27 + $0x1c78] sm:$0xff] %v4166_v15  ;;  %v4168_v16 = vld [vmem:[%s28128_s26 + $0x3900] sm:$0xff]  ;;  %v4170_v17 = vld [vmem:[%s28128_s26 + $0x3910] sm:$0xff] }
 0x1dd   : > { %v4172_v18 = vld [vmem:[%s28128_s26 + $0x3920] sm:$0xff]  ;;  %4169 = vst [vmem:[%s28136_s27 + $0x1c80] sm:$0xff] %v4168_v16  ;;  %4171 = vst [vmem:[%s28136_s27 + $0x1c88] sm:$0xff] %v4170_v17  ;;  %v4174_v19 = vld [vmem:[%s28128_s26 + $0x3930] sm:$0xff] }
 0x1de   : > { %4173 = vst [vmem:[%s28136_s27 + $0x1c90] sm:$0xff] %v4172_v18  ;;  %v4176_v20 = vld [vmem:[%s28128_s26 + $0x3940] sm:$0xff]  ;;  %v4178_v21 = vld [vmem:[%s28128_s26 + $0x3950] sm:$0xff]  ;;  %4175 = vst [vmem:[%s28136_s27 + $0x1c98] sm:$0xff] %v4174_v19 }
 0x1df   : > { %4177 = vst [vmem:[%s28136_s27 + $0x1ca0] sm:$0xff] %v4176_v20  ;;  %4179 = vst [vmem:[%s28136_s27 + $0x1ca8] sm:$0xff] %v4178_v21  ;;  %v4180_v22 = vld [vmem:[%s28128_s26 + $0x3960] sm:$0xff]  ;;  %v4182_v23 = vld [vmem:[%s28128_s26 + $0x3970] sm:$0xff] }
 0x1e0   : > { %v4184_v24 = vld [vmem:[%s28128_s26 + $0x3980] sm:$0xff]  ;;  %4181 = vst [vmem:[%s28136_s27 + $0x1cb0] sm:$0xff] %v4180_v22  ;;  %4183 = vst [vmem:[%s28136_s27 + $0x1cb8] sm:$0xff] %v4182_v23  ;;  %v4186_v25 = vld [vmem:[%s28128_s26 + $0x3990] sm:$0xff] }
 0x1e1   : > { %4185 = vst [vmem:[%s28136_s27 + $0x1cc0] sm:$0xff] %v4184_v24  ;;  %v4188_v26 = vld [vmem:[%s28128_s26 + $0x39a0] sm:$0xff]  ;;  %v4190_v27 = vld [vmem:[%s28128_s26 + $0x39b0] sm:$0xff]  ;;  %4187 = vst [vmem:[%s28136_s27 + $0x1cc8] sm:$0xff] %v4186_v25 }
 0x1e2   : > { %4189 = vst [vmem:[%s28136_s27 + $0x1cd0] sm:$0xff] %v4188_v26  ;;  %4191 = vst [vmem:[%s28136_s27 + $0x1cd8] sm:$0xff] %v4190_v27  ;;  %v4192_v28 = vld [vmem:[%s28128_s26 + $0x39c0] sm:$0xff]  ;;  %v4194_v29 = vld [vmem:[%s28128_s26 + $0x39d0] sm:$0xff] }
 0x1e3   : > { %v4196_v30 = vld [vmem:[%s28128_s26 + $0x39e0] sm:$0xff]  ;;  %4193 = vst [vmem:[%s28136_s27 + $0x1ce0] sm:$0xff] %v4192_v28  ;;  %4195 = vst [vmem:[%s28136_s27 + $0x1ce8] sm:$0xff] %v4194_v29  ;;  %v4198_v31 = vld [vmem:[%s28128_s26 + $0x39f0] sm:$0xff] }
 0x1e4   : > { %4197 = vst [vmem:[%s28136_s27 + $0x1cf0] sm:$0xff] %v4196_v30  ;;  %v4200_v32 = vld [vmem:[%s28128_s26 + $0x3a00] sm:$0xff]  ;;  %v4202_v33 = vld [vmem:[%s28128_s26 + $0x3a10] sm:$0xff]  ;;  %4199 = vst [vmem:[%s28136_s27 + $0x1cf8] sm:$0xff] %v4198_v31 }
 0x1e5   : > { %4201 = vst [vmem:[%s28136_s27 + $0x1d00] sm:$0xff] %v4200_v32  ;;  %4203 = vst [vmem:[%s28136_s27 + $0x1d08] sm:$0xff] %v4202_v33  ;;  %v4204_v34 = vld [vmem:[%s28128_s26 + $0x3a20] sm:$0xff]  ;;  %v4206_v35 = vld [vmem:[%s28128_s26 + $0x3a30] sm:$0xff] }
 0x1e6   : > { %v4208_v36 = vld [vmem:[%s28128_s26 + $0x3a40] sm:$0xff]  ;;  %4205 = vst [vmem:[%s28136_s27 + $0x1d10] sm:$0xff] %v4204_v34  ;;  %4207 = vst [vmem:[%s28136_s27 + $0x1d18] sm:$0xff] %v4206_v35  ;;  %v4210_v37 = vld [vmem:[%s28128_s26 + $0x3a50] sm:$0xff] }
 0x1e7   : > { %4209 = vst [vmem:[%s28136_s27 + $0x1d20] sm:$0xff] %v4208_v36  ;;  %v4212_v38 = vld [vmem:[%s28128_s26 + $0x3a60] sm:$0xff]  ;;  %v4214_v39 = vld [vmem:[%s28128_s26 + $0x3a70] sm:$0xff]  ;;  %4211 = vst [vmem:[%s28136_s27 + $0x1d28] sm:$0xff] %v4210_v37 }
 0x1e8   : > { %4213 = vst [vmem:[%s28136_s27 + $0x1d30] sm:$0xff] %v4212_v38  ;;  %4215 = vst [vmem:[%s28136_s27 + $0x1d38] sm:$0xff] %v4214_v39  ;;  %v4216_v40 = vld [vmem:[%s28128_s26 + $0x3a80] sm:$0xff]  ;;  %v4218_v41 = vld [vmem:[%s28128_s26 + $0x3a90] sm:$0xff] }
 0x1e9   : > { %v4220_v42 = vld [vmem:[%s28128_s26 + $0x3aa0] sm:$0xff]  ;;  %4217 = vst [vmem:[%s28136_s27 + $0x1d40] sm:$0xff] %v4216_v40  ;;  %4219 = vst [vmem:[%s28136_s27 + $0x1d48] sm:$0xff] %v4218_v41  ;;  %v4222_v43 = vld [vmem:[%s28128_s26 + $0x3ab0] sm:$0xff] }
 0x1ea   : > { %4221 = vst [vmem:[%s28136_s27 + $0x1d50] sm:$0xff] %v4220_v42  ;;  %v4224_v44 = vld [vmem:[%s28128_s26 + $0x3ac0] sm:$0xff]  ;;  %v4226_v45 = vld [vmem:[%s28128_s26 + $0x3ad0] sm:$0xff]  ;;  %4223 = vst [vmem:[%s28136_s27 + $0x1d58] sm:$0xff] %v4222_v43 }
 0x1eb   : > { %4225 = vst [vmem:[%s28136_s27 + $0x1d60] sm:$0xff] %v4224_v44  ;;  %4227 = vst [vmem:[%s28136_s27 + $0x1d68] sm:$0xff] %v4226_v45  ;;  %v4228_v46 = vld [vmem:[%s28128_s26 + $0x3ae0] sm:$0xff]  ;;  %v4230_v47 = vld [vmem:[%s28128_s26 + $0x3af0] sm:$0xff] }
 0x1ec   : > { %v4232_v48 = vld [vmem:[%s28128_s26 + $0x3b00] sm:$0xff]  ;;  %4229 = vst [vmem:[%s28136_s27 + $0x1d70] sm:$0xff] %v4228_v46  ;;  %4231 = vst [vmem:[%s28136_s27 + $0x1d78] sm:$0xff] %v4230_v47  ;;  %v4234_v49 = vld [vmem:[%s28128_s26 + $0x3b10] sm:$0xff] }
 0x1ed   : > { %4233 = vst [vmem:[%s28136_s27 + $0x1d80] sm:$0xff] %v4232_v48  ;;  %v4236_v50 = vld [vmem:[%s28128_s26 + $0x3b20] sm:$0xff]  ;;  %v4238_v51 = vld [vmem:[%s28128_s26 + $0x3b30] sm:$0xff]  ;;  %4235 = vst [vmem:[%s28136_s27 + $0x1d88] sm:$0xff] %v4234_v49 }
 0x1ee   : > { %4237 = vst [vmem:[%s28136_s27 + $0x1d90] sm:$0xff] %v4236_v50  ;;  %4239 = vst [vmem:[%s28136_s27 + $0x1d98] sm:$0xff] %v4238_v51  ;;  %v4240_v52 = vld [vmem:[%s28128_s26 + $0x3b40] sm:$0xff]  ;;  %v4242_v53 = vld [vmem:[%s28128_s26 + $0x3b50] sm:$0xff] }
 0x1ef   : > { %v4244_v54 = vld [vmem:[%s28128_s26 + $0x3b60] sm:$0xff]  ;;  %4241 = vst [vmem:[%s28136_s27 + $0x1da0] sm:$0xff] %v4240_v52  ;;  %4243 = vst [vmem:[%s28136_s27 + $0x1da8] sm:$0xff] %v4242_v53  ;;  %v4246_v55 = vld [vmem:[%s28128_s26 + $0x3b70] sm:$0xff] }
 0x1f0   : > { %4245 = vst [vmem:[%s28136_s27 + $0x1db0] sm:$0xff] %v4244_v54  ;;  %v4248_v56 = vld [vmem:[%s28128_s26 + $0x3b80] sm:$0xff]  ;;  %v4250_v57 = vld [vmem:[%s28128_s26 + $0x3b90] sm:$0xff]  ;;  %4247 = vst [vmem:[%s28136_s27 + $0x1db8] sm:$0xff] %v4246_v55 }
 0x1f1   : > { %4249 = vst [vmem:[%s28136_s27 + $0x1dc0] sm:$0xff] %v4248_v56  ;;  %4251 = vst [vmem:[%s28136_s27 + $0x1dc8] sm:$0xff] %v4250_v57  ;;  %v4252_v58 = vld [vmem:[%s28128_s26 + $0x3ba0] sm:$0xff]  ;;  %v4254_v59 = vld [vmem:[%s28128_s26 + $0x3bb0] sm:$0xff] }
 0x1f2   : > { %v4256_v60 = vld [vmem:[%s28128_s26 + $0x3bc0] sm:$0xff]  ;;  %4253 = vst [vmem:[%s28136_s27 + $0x1dd0] sm:$0xff] %v4252_v58  ;;  %4255 = vst [vmem:[%s28136_s27 + $0x1dd8] sm:$0xff] %v4254_v59  ;;  %v4258_v61 = vld [vmem:[%s28128_s26 + $0x3bd0] sm:$0xff] }
 0x1f3   : > { %4257 = vst [vmem:[%s28136_s27 + $0x1de0] sm:$0xff] %v4256_v60  ;;  %v4260_v62 = vld [vmem:[%s28128_s26 + $0x3be0] sm:$0xff]  ;;  %v4262_v63 = vld [vmem:[%s28128_s26 + $0x3bf0] sm:$0xff]  ;;  %4259 = vst [vmem:[%s28136_s27 + $0x1de8] sm:$0xff] %v4258_v61 }
 0x1f4   : > { %4261 = vst [vmem:[%s28136_s27 + $0x1df0] sm:$0xff] %v4260_v62  ;;  %4263 = vst [vmem:[%s28136_s27 + $0x1df8] sm:$0xff] %v4262_v63  ;;  %v4264_v0 = vld [vmem:[%s28128_s26 + $0x3c00] sm:$0xff]  ;;  %v4266_v1 = vld [vmem:[%s28128_s26 + $0x3c10] sm:$0xff] }
 0x1f5   : > { %v4268_v2 = vld [vmem:[%s28128_s26 + $0x3c20] sm:$0xff]  ;;  %4265 = vst [vmem:[%s28136_s27 + $0x1e00] sm:$0xff] %v4264_v0  ;;  %4267 = vst [vmem:[%s28136_s27 + $0x1e08] sm:$0xff] %v4266_v1  ;;  %v4270_v3 = vld [vmem:[%s28128_s26 + $0x3c30] sm:$0xff] }
 0x1f6   : > { %4269 = vst [vmem:[%s28136_s27 + $0x1e10] sm:$0xff] %v4268_v2  ;;  %v4272_v4 = vld [vmem:[%s28128_s26 + $0x3c40] sm:$0xff]  ;;  %v4274_v5 = vld [vmem:[%s28128_s26 + $0x3c50] sm:$0xff]  ;;  %4271 = vst [vmem:[%s28136_s27 + $0x1e18] sm:$0xff] %v4270_v3 }
 0x1f7   : > { %4273 = vst [vmem:[%s28136_s27 + $0x1e20] sm:$0xff] %v4272_v4  ;;  %4275 = vst [vmem:[%s28136_s27 + $0x1e28] sm:$0xff] %v4274_v5  ;;  %v4276_v6 = vld [vmem:[%s28128_s26 + $0x3c60] sm:$0xff]  ;;  %v4278_v7 = vld [vmem:[%s28128_s26 + $0x3c70] sm:$0xff] }
 0x1f8   : > { %v4280_v8 = vld [vmem:[%s28128_s26 + $0x3c80] sm:$0xff]  ;;  %4277 = vst [vmem:[%s28136_s27 + $0x1e30] sm:$0xff] %v4276_v6  ;;  %4279 = vst [vmem:[%s28136_s27 + $0x1e38] sm:$0xff] %v4278_v7  ;;  %v4282_v9 = vld [vmem:[%s28128_s26 + $0x3c90] sm:$0xff] }
 0x1f9   : > { %4281 = vst [vmem:[%s28136_s27 + $0x1e40] sm:$0xff] %v4280_v8  ;;  %v4284_v10 = vld [vmem:[%s28128_s26 + $0x3ca0] sm:$0xff]  ;;  %v4286_v11 = vld [vmem:[%s28128_s26 + $0x3cb0] sm:$0xff]  ;;  %4283 = vst [vmem:[%s28136_s27 + $0x1e48] sm:$0xff] %v4282_v9 }
 0x1fa   : > { %4285 = vst [vmem:[%s28136_s27 + $0x1e50] sm:$0xff] %v4284_v10  ;;  %4287 = vst [vmem:[%s28136_s27 + $0x1e58] sm:$0xff] %v4286_v11  ;;  %v4288_v12 = vld [vmem:[%s28128_s26 + $0x3cc0] sm:$0xff]  ;;  %v4290_v13 = vld [vmem:[%s28128_s26 + $0x3cd0] sm:$0xff] }
 0x1fb   : > { %v4292_v14 = vld [vmem:[%s28128_s26 + $0x3ce0] sm:$0xff]  ;;  %4289 = vst [vmem:[%s28136_s27 + $0x1e60] sm:$0xff] %v4288_v12  ;;  %4291 = vst [vmem:[%s28136_s27 + $0x1e68] sm:$0xff] %v4290_v13  ;;  %v4294_v15 = vld [vmem:[%s28128_s26 + $0x3cf0] sm:$0xff] }
 0x1fc   : > { %4293 = vst [vmem:[%s28136_s27 + $0x1e70] sm:$0xff] %v4292_v14  ;;  %v4296_v16 = vld [vmem:[%s28128_s26 + $0x3d00] sm:$0xff]  ;;  %v4298_v17 = vld [vmem:[%s28128_s26 + $0x3d10] sm:$0xff]  ;;  %4295 = vst [vmem:[%s28136_s27 + $0x1e78] sm:$0xff] %v4294_v15 }
 0x1fd   : > { %4297 = vst [vmem:[%s28136_s27 + $0x1e80] sm:$0xff] %v4296_v16  ;;  %4299 = vst [vmem:[%s28136_s27 + $0x1e88] sm:$0xff] %v4298_v17  ;;  %v4300_v18 = vld [vmem:[%s28128_s26 + $0x3d20] sm:$0xff]  ;;  %v4302_v19 = vld [vmem:[%s28128_s26 + $0x3d30] sm:$0xff] }
 0x1fe   : > { %v4304_v20 = vld [vmem:[%s28128_s26 + $0x3d40] sm:$0xff]  ;;  %4301 = vst [vmem:[%s28136_s27 + $0x1e90] sm:$0xff] %v4300_v18  ;;  %4303 = vst [vmem:[%s28136_s27 + $0x1e98] sm:$0xff] %v4302_v19  ;;  %v4306_v21 = vld [vmem:[%s28128_s26 + $0x3d50] sm:$0xff] }
 0x1ff   : > { %4305 = vst [vmem:[%s28136_s27 + $0x1ea0] sm:$0xff] %v4304_v20  ;;  %v4308_v22 = vld [vmem:[%s28128_s26 + $0x3d60] sm:$0xff]  ;;  %v4310_v23 = vld [vmem:[%s28128_s26 + $0x3d70] sm:$0xff]  ;;  %4307 = vst [vmem:[%s28136_s27 + $0x1ea8] sm:$0xff] %v4306_v21 }
 0x200   : > { %4309 = vst [vmem:[%s28136_s27 + $0x1eb0] sm:$0xff] %v4308_v22  ;;  %4311 = vst [vmem:[%s28136_s27 + $0x1eb8] sm:$0xff] %v4310_v23  ;;  %v4312_v24 = vld [vmem:[%s28128_s26 + $0x3d80] sm:$0xff]  ;;  %v4314_v25 = vld [vmem:[%s28128_s26 + $0x3d90] sm:$0xff] }
 0x201   : > { %v4316_v26 = vld [vmem:[%s28128_s26 + $0x3da0] sm:$0xff]  ;;  %4313 = vst [vmem:[%s28136_s27 + $0x1ec0] sm:$0xff] %v4312_v24  ;;  %4315 = vst [vmem:[%s28136_s27 + $0x1ec8] sm:$0xff] %v4314_v25  ;;  %v4318_v27 = vld [vmem:[%s28128_s26 + $0x3db0] sm:$0xff] }
 0x202   : > { %4317 = vst [vmem:[%s28136_s27 + $0x1ed0] sm:$0xff] %v4316_v26  ;;  %v4320_v28 = vld [vmem:[%s28128_s26 + $0x3dc0] sm:$0xff]  ;;  %v4322_v29 = vld [vmem:[%s28128_s26 + $0x3dd0] sm:$0xff]  ;;  %4319 = vst [vmem:[%s28136_s27 + $0x1ed8] sm:$0xff] %v4318_v27 }
 0x203   : > { %4321 = vst [vmem:[%s28136_s27 + $0x1ee0] sm:$0xff] %v4320_v28  ;;  %4323 = vst [vmem:[%s28136_s27 + $0x1ee8] sm:$0xff] %v4322_v29  ;;  %v4324_v30 = vld [vmem:[%s28128_s26 + $0x3de0] sm:$0xff]  ;;  %v4326_v31 = vld [vmem:[%s28128_s26 + $0x3df0] sm:$0xff] }
 0x204   : > { %v4328_v32 = vld [vmem:[%s28128_s26 + $0x3e00] sm:$0xff]  ;;  %4325 = vst [vmem:[%s28136_s27 + $0x1ef0] sm:$0xff] %v4324_v30  ;;  %4327 = vst [vmem:[%s28136_s27 + $0x1ef8] sm:$0xff] %v4326_v31  ;;  %v4330_v33 = vld [vmem:[%s28128_s26 + $0x3e10] sm:$0xff] }
 0x205   : > { %4329 = vst [vmem:[%s28136_s27 + $0x1f00] sm:$0xff] %v4328_v32  ;;  %v4332_v34 = vld [vmem:[%s28128_s26 + $0x3e20] sm:$0xff]  ;;  %v4334_v35 = vld [vmem:[%s28128_s26 + $0x3e30] sm:$0xff]  ;;  %4331 = vst [vmem:[%s28136_s27 + $0x1f08] sm:$0xff] %v4330_v33 }
 0x206   : > { %4333 = vst [vmem:[%s28136_s27 + $0x1f10] sm:$0xff] %v4332_v34  ;;  %4335 = vst [vmem:[%s28136_s27 + $0x1f18] sm:$0xff] %v4334_v35  ;;  %v4336_v36 = vld [vmem:[%s28128_s26 + $0x3e40] sm:$0xff]  ;;  %v4338_v37 = vld [vmem:[%s28128_s26 + $0x3e50] sm:$0xff] }
 0x207   : > { %v4340_v38 = vld [vmem:[%s28128_s26 + $0x3e60] sm:$0xff]  ;;  %4337 = vst [vmem:[%s28136_s27 + $0x1f20] sm:$0xff] %v4336_v36  ;;  %4339 = vst [vmem:[%s28136_s27 + $0x1f28] sm:$0xff] %v4338_v37  ;;  %v4342_v39 = vld [vmem:[%s28128_s26 + $0x3e70] sm:$0xff] }
 0x208   : > { %4341 = vst [vmem:[%s28136_s27 + $0x1f30] sm:$0xff] %v4340_v38  ;;  %v4344_v40 = vld [vmem:[%s28128_s26 + $0x3e80] sm:$0xff]  ;;  %v4346_v41 = vld [vmem:[%s28128_s26 + $0x3e90] sm:$0xff]  ;;  %4343 = vst [vmem:[%s28136_s27 + $0x1f38] sm:$0xff] %v4342_v39 }
 0x209   : > { %4345 = vst [vmem:[%s28136_s27 + $0x1f40] sm:$0xff] %v4344_v40  ;;  %4347 = vst [vmem:[%s28136_s27 + $0x1f48] sm:$0xff] %v4346_v41  ;;  %v4348_v42 = vld [vmem:[%s28128_s26 + $0x3ea0] sm:$0xff]  ;;  %v4350_v43 = vld [vmem:[%s28128_s26 + $0x3eb0] sm:$0xff] }
 0x20a   : > { %v4352_v44 = vld [vmem:[%s28128_s26 + $0x3ec0] sm:$0xff]  ;;  %4349 = vst [vmem:[%s28136_s27 + $0x1f50] sm:$0xff] %v4348_v42  ;;  %4351 = vst [vmem:[%s28136_s27 + $0x1f58] sm:$0xff] %v4350_v43  ;;  %v4354_v45 = vld [vmem:[%s28128_s26 + $0x3ed0] sm:$0xff] }
 0x20b   : > { %4353 = vst [vmem:[%s28136_s27 + $0x1f60] sm:$0xff] %v4352_v44  ;;  %v4356_v46 = vld [vmem:[%s28128_s26 + $0x3ee0] sm:$0xff]  ;;  %v4358_v47 = vld [vmem:[%s28128_s26 + $0x3ef0] sm:$0xff]  ;;  %4355 = vst [vmem:[%s28136_s27 + $0x1f68] sm:$0xff] %v4354_v45 }
 0x20c   : > { %4357 = vst [vmem:[%s28136_s27 + $0x1f70] sm:$0xff] %v4356_v46  ;;  %4359 = vst [vmem:[%s28136_s27 + $0x1f78] sm:$0xff] %v4358_v47  ;;  %v4360_v48 = vld [vmem:[%s28128_s26 + $0x3f00] sm:$0xff]  ;;  %v4362_v49 = vld [vmem:[%s28128_s26 + $0x3f10] sm:$0xff] }
 0x20d   : > { %v4364_v50 = vld [vmem:[%s28128_s26 + $0x3f20] sm:$0xff]  ;;  %4361 = vst [vmem:[%s28136_s27 + $0x1f80] sm:$0xff] %v4360_v48  ;;  %4363 = vst [vmem:[%s28136_s27 + $0x1f88] sm:$0xff] %v4362_v49  ;;  %v4366_v51 = vld [vmem:[%s28128_s26 + $0x3f30] sm:$0xff] }
 0x20e   : > { %4365 = vst [vmem:[%s28136_s27 + $0x1f90] sm:$0xff] %v4364_v50  ;;  %v4368_v52 = vld [vmem:[%s28128_s26 + $0x3f40] sm:$0xff]  ;;  %v4370_v53 = vld [vmem:[%s28128_s26 + $0x3f50] sm:$0xff]  ;;  %4367 = vst [vmem:[%s28136_s27 + $0x1f98] sm:$0xff] %v4366_v51 }
 0x20f   : > { %4369 = vst [vmem:[%s28136_s27 + $0x1fa0] sm:$0xff] %v4368_v52  ;;  %4371 = vst [vmem:[%s28136_s27 + $0x1fa8] sm:$0xff] %v4370_v53  ;;  %v4372_v54 = vld [vmem:[%s28128_s26 + $0x3f60] sm:$0xff]  ;;  %v4374_v55 = vld [vmem:[%s28128_s26 + $0x3f70] sm:$0xff] }
 0x210   : > { %v4376_v56 = vld [vmem:[%s28128_s26 + $0x3f80] sm:$0xff]  ;;  %4373 = vst [vmem:[%s28136_s27 + $0x1fb0] sm:$0xff] %v4372_v54  ;;  %4375 = vst [vmem:[%s28136_s27 + $0x1fb8] sm:$0xff] %v4374_v55  ;;  %v4378_v57 = vld [vmem:[%s28128_s26 + $0x3f90] sm:$0xff] }
 0x211   : > { %4377 = vst [vmem:[%s28136_s27 + $0x1fc0] sm:$0xff] %v4376_v56  ;;  %v4380_v58 = vld [vmem:[%s28128_s26 + $0x3fa0] sm:$0xff]  ;;  %v4382_v59 = vld [vmem:[%s28128_s26 + $0x3fb0] sm:$0xff]  ;;  %4379 = vst [vmem:[%s28136_s27 + $0x1fc8] sm:$0xff] %v4378_v57 }
 0x212   : > { %4381 = vst [vmem:[%s28136_s27 + $0x1fd0] sm:$0xff] %v4380_v58  ;;  %4383 = vst [vmem:[%s28136_s27 + $0x1fd8] sm:$0xff] %v4382_v59  ;;  %v4384_v60 = vld [vmem:[%s28128_s26 + $0x3fc0] sm:$0xff]  ;;  %v4386_v61 = vld [vmem:[%s28128_s26 + $0x3fd0] sm:$0xff] }
 0x213   : > { %v4388_v62 = vld [vmem:[%s28128_s26 + $0x3fe0] sm:$0xff]  ;;  %4385 = vst [vmem:[%s28136_s27 + $0x1fe0] sm:$0xff] %v4384_v60  ;;  %4387 = vst [vmem:[%s28136_s27 + $0x1fe8] sm:$0xff] %v4386_v61  ;;  %v4390_v63 = vld [vmem:[%s28128_s26 + $0x3ff0] sm:$0xff] }
 0x214   : > { %4389 = vst [vmem:[%s28136_s27 + $0x1ff0] sm:$0xff] %v4388_v62  ;;  %v4392_v0 = vld [vmem:[%s28128_s26 + $0x4000] sm:$0xff]  ;;  %v4394_v1 = vld [vmem:[%s28128_s26 + $0x4010] sm:$0xff]  ;;  %4391 = vst [vmem:[%s28136_s27 + $0x1ff8] sm:$0xff] %v4390_v63 }
 0x215   : > { %4393 = vst [vmem:[%s28136_s27 + $0x2000] sm:$0xff] %v4392_v0  ;;  %4395 = vst [vmem:[%s28136_s27 + $0x2008] sm:$0xff] %v4394_v1  ;;  %v4396_v2 = vld [vmem:[%s28128_s26 + $0x4020] sm:$0xff]  ;;  %v4398_v3 = vld [vmem:[%s28128_s26 + $0x4030] sm:$0xff] }
 0x216   : > { %v4400_v4 = vld [vmem:[%s28128_s26 + $0x4040] sm:$0xff]  ;;  %4397 = vst [vmem:[%s28136_s27 + $0x2010] sm:$0xff] %v4396_v2  ;;  %4399 = vst [vmem:[%s28136_s27 + $0x2018] sm:$0xff] %v4398_v3  ;;  %v4402_v5 = vld [vmem:[%s28128_s26 + $0x4050] sm:$0xff] }
 0x217   : > { %4401 = vst [vmem:[%s28136_s27 + $0x2020] sm:$0xff] %v4400_v4  ;;  %v4404_v6 = vld [vmem:[%s28128_s26 + $0x4060] sm:$0xff]  ;;  %v4406_v7 = vld [vmem:[%s28128_s26 + $0x4070] sm:$0xff]  ;;  %4403 = vst [vmem:[%s28136_s27 + $0x2028] sm:$0xff] %v4402_v5 }
 0x218   : > { %4405 = vst [vmem:[%s28136_s27 + $0x2030] sm:$0xff] %v4404_v6  ;;  %4407 = vst [vmem:[%s28136_s27 + $0x2038] sm:$0xff] %v4406_v7  ;;  %v4408_v8 = vld [vmem:[%s28128_s26 + $0x4080] sm:$0xff]  ;;  %v4410_v9 = vld [vmem:[%s28128_s26 + $0x4090] sm:$0xff] }
 0x219   : > { %v4412_v10 = vld [vmem:[%s28128_s26 + $0x40a0] sm:$0xff]  ;;  %4409 = vst [vmem:[%s28136_s27 + $0x2040] sm:$0xff] %v4408_v8  ;;  %4411 = vst [vmem:[%s28136_s27 + $0x2048] sm:$0xff] %v4410_v9  ;;  %v4414_v11 = vld [vmem:[%s28128_s26 + $0x40b0] sm:$0xff] }
 0x21a   : > { %4413 = vst [vmem:[%s28136_s27 + $0x2050] sm:$0xff] %v4412_v10  ;;  %v4416_v12 = vld [vmem:[%s28128_s26 + $0x40c0] sm:$0xff]  ;;  %v4418_v13 = vld [vmem:[%s28128_s26 + $0x40d0] sm:$0xff]  ;;  %4415 = vst [vmem:[%s28136_s27 + $0x2058] sm:$0xff] %v4414_v11 }
 0x21b   : > { %4417 = vst [vmem:[%s28136_s27 + $0x2060] sm:$0xff] %v4416_v12  ;;  %4419 = vst [vmem:[%s28136_s27 + $0x2068] sm:$0xff] %v4418_v13  ;;  %v4420_v14 = vld [vmem:[%s28128_s26 + $0x40e0] sm:$0xff]  ;;  %v4422_v15 = vld [vmem:[%s28128_s26 + $0x40f0] sm:$0xff] }
 0x21c   : > { %v4424_v16 = vld [vmem:[%s28128_s26 + $0x4100] sm:$0xff]  ;;  %4421 = vst [vmem:[%s28136_s27 + $0x2070] sm:$0xff] %v4420_v14  ;;  %4423 = vst [vmem:[%s28136_s27 + $0x2078] sm:$0xff] %v4422_v15  ;;  %v4426_v17 = vld [vmem:[%s28128_s26 + $0x4110] sm:$0xff] }
 0x21d   : > { %4425 = vst [vmem:[%s28136_s27 + $0x2080] sm:$0xff] %v4424_v16  ;;  %v4428_v18 = vld [vmem:[%s28128_s26 + $0x4120] sm:$0xff]  ;;  %v4430_v19 = vld [vmem:[%s28128_s26 + $0x4130] sm:$0xff]  ;;  %4427 = vst [vmem:[%s28136_s27 + $0x2088] sm:$0xff] %v4426_v17 }
 0x21e   : > { %4429 = vst [vmem:[%s28136_s27 + $0x2090] sm:$0xff] %v4428_v18  ;;  %4431 = vst [vmem:[%s28136_s27 + $0x2098] sm:$0xff] %v4430_v19  ;;  %v4432_v20 = vld [vmem:[%s28128_s26 + $0x4140] sm:$0xff]  ;;  %v4434_v21 = vld [vmem:[%s28128_s26 + $0x4150] sm:$0xff] }
 0x21f   : > { %v4436_v22 = vld [vmem:[%s28128_s26 + $0x4160] sm:$0xff]  ;;  %4433 = vst [vmem:[%s28136_s27 + $0x20a0] sm:$0xff] %v4432_v20  ;;  %4435 = vst [vmem:[%s28136_s27 + $0x20a8] sm:$0xff] %v4434_v21  ;;  %v4438_v23 = vld [vmem:[%s28128_s26 + $0x4170] sm:$0xff] }
 0x220   : > { %4437 = vst [vmem:[%s28136_s27 + $0x20b0] sm:$0xff] %v4436_v22  ;;  %v4440_v24 = vld [vmem:[%s28128_s26 + $0x4180] sm:$0xff]  ;;  %v4442_v25 = vld [vmem:[%s28128_s26 + $0x4190] sm:$0xff]  ;;  %4439 = vst [vmem:[%s28136_s27 + $0x20b8] sm:$0xff] %v4438_v23 }
 0x221   : > { %4441 = vst [vmem:[%s28136_s27 + $0x20c0] sm:$0xff] %v4440_v24  ;;  %4443 = vst [vmem:[%s28136_s27 + $0x20c8] sm:$0xff] %v4442_v25  ;;  %v4444_v26 = vld [vmem:[%s28128_s26 + $0x41a0] sm:$0xff]  ;;  %v4446_v27 = vld [vmem:[%s28128_s26 + $0x41b0] sm:$0xff] }
 0x222   : > { %v4448_v28 = vld [vmem:[%s28128_s26 + $0x41c0] sm:$0xff]  ;;  %4445 = vst [vmem:[%s28136_s27 + $0x20d0] sm:$0xff] %v4444_v26  ;;  %4447 = vst [vmem:[%s28136_s27 + $0x20d8] sm:$0xff] %v4446_v27  ;;  %v4450_v29 = vld [vmem:[%s28128_s26 + $0x41d0] sm:$0xff] }
 0x223   : > { %4449 = vst [vmem:[%s28136_s27 + $0x20e0] sm:$0xff] %v4448_v28  ;;  %v4452_v30 = vld [vmem:[%s28128_s26 + $0x41e0] sm:$0xff]  ;;  %v4454_v31 = vld [vmem:[%s28128_s26 + $0x41f0] sm:$0xff]  ;;  %4451 = vst [vmem:[%s28136_s27 + $0x20e8] sm:$0xff] %v4450_v29 }
 0x224   : > { %4453 = vst [vmem:[%s28136_s27 + $0x20f0] sm:$0xff] %v4452_v30  ;;  %4455 = vst [vmem:[%s28136_s27 + $0x20f8] sm:$0xff] %v4454_v31  ;;  %v4456_v32 = vld [vmem:[%s28128_s26 + $0x4200] sm:$0xff]  ;;  %v4458_v33 = vld [vmem:[%s28128_s26 + $0x4210] sm:$0xff] }
 0x225   : > { %v4460_v34 = vld [vmem:[%s28128_s26 + $0x4220] sm:$0xff]  ;;  %4457 = vst [vmem:[%s28136_s27 + $0x2100] sm:$0xff] %v4456_v32  ;;  %4459 = vst [vmem:[%s28136_s27 + $0x2108] sm:$0xff] %v4458_v33  ;;  %v4462_v35 = vld [vmem:[%s28128_s26 + $0x4230] sm:$0xff] }
 0x226   : > { %4461 = vst [vmem:[%s28136_s27 + $0x2110] sm:$0xff] %v4460_v34  ;;  %v4464_v36 = vld [vmem:[%s28128_s26 + $0x4240] sm:$0xff]  ;;  %v4466_v37 = vld [vmem:[%s28128_s26 + $0x4250] sm:$0xff]  ;;  %4463 = vst [vmem:[%s28136_s27 + $0x2118] sm:$0xff] %v4462_v35 }
 0x227   : > { %4465 = vst [vmem:[%s28136_s27 + $0x2120] sm:$0xff] %v4464_v36  ;;  %4467 = vst [vmem:[%s28136_s27 + $0x2128] sm:$0xff] %v4466_v37  ;;  %v4468_v38 = vld [vmem:[%s28128_s26 + $0x4260] sm:$0xff]  ;;  %v4470_v39 = vld [vmem:[%s28128_s26 + $0x4270] sm:$0xff] }
 0x228   : > { %v4472_v40 = vld [vmem:[%s28128_s26 + $0x4280] sm:$0xff]  ;;  %4469 = vst [vmem:[%s28136_s27 + $0x2130] sm:$0xff] %v4468_v38  ;;  %4471 = vst [vmem:[%s28136_s27 + $0x2138] sm:$0xff] %v4470_v39  ;;  %v4474_v41 = vld [vmem:[%s28128_s26 + $0x4290] sm:$0xff] }
 0x229   : > { %4473 = vst [vmem:[%s28136_s27 + $0x2140] sm:$0xff] %v4472_v40  ;;  %v4476_v42 = vld [vmem:[%s28128_s26 + $0x42a0] sm:$0xff]  ;;  %v4478_v43 = vld [vmem:[%s28128_s26 + $0x42b0] sm:$0xff]  ;;  %4475 = vst [vmem:[%s28136_s27 + $0x2148] sm:$0xff] %v4474_v41 }
 0x22a   : > { %4477 = vst [vmem:[%s28136_s27 + $0x2150] sm:$0xff] %v4476_v42  ;;  %4479 = vst [vmem:[%s28136_s27 + $0x2158] sm:$0xff] %v4478_v43  ;;  %v4480_v44 = vld [vmem:[%s28128_s26 + $0x42c0] sm:$0xff]  ;;  %v4482_v45 = vld [vmem:[%s28128_s26 + $0x42d0] sm:$0xff] }
 0x22b   : > { %v4484_v46 = vld [vmem:[%s28128_s26 + $0x42e0] sm:$0xff]  ;;  %4481 = vst [vmem:[%s28136_s27 + $0x2160] sm:$0xff] %v4480_v44  ;;  %4483 = vst [vmem:[%s28136_s27 + $0x2168] sm:$0xff] %v4482_v45  ;;  %v4486_v47 = vld [vmem:[%s28128_s26 + $0x42f0] sm:$0xff] }
 0x22c   : > { %4485 = vst [vmem:[%s28136_s27 + $0x2170] sm:$0xff] %v4484_v46  ;;  %v4488_v48 = vld [vmem:[%s28128_s26 + $0x4300] sm:$0xff]  ;;  %v4490_v49 = vld [vmem:[%s28128_s26 + $0x4310] sm:$0xff]  ;;  %4487 = vst [vmem:[%s28136_s27 + $0x2178] sm:$0xff] %v4486_v47 }
 0x22d   : > { %4489 = vst [vmem:[%s28136_s27 + $0x2180] sm:$0xff] %v4488_v48  ;;  %4491 = vst [vmem:[%s28136_s27 + $0x2188] sm:$0xff] %v4490_v49  ;;  %v4492_v50 = vld [vmem:[%s28128_s26 + $0x4320] sm:$0xff]  ;;  %v4494_v51 = vld [vmem:[%s28128_s26 + $0x4330] sm:$0xff] }
 0x22e   : > { %v4496_v52 = vld [vmem:[%s28128_s26 + $0x4340] sm:$0xff]  ;;  %4493 = vst [vmem:[%s28136_s27 + $0x2190] sm:$0xff] %v4492_v50  ;;  %4495 = vst [vmem:[%s28136_s27 + $0x2198] sm:$0xff] %v4494_v51  ;;  %v4498_v53 = vld [vmem:[%s28128_s26 + $0x4350] sm:$0xff] }
 0x22f   : > { %4497 = vst [vmem:[%s28136_s27 + $0x21a0] sm:$0xff] %v4496_v52  ;;  %v4500_v54 = vld [vmem:[%s28128_s26 + $0x4360] sm:$0xff]  ;;  %v4502_v55 = vld [vmem:[%s28128_s26 + $0x4370] sm:$0xff]  ;;  %4499 = vst [vmem:[%s28136_s27 + $0x21a8] sm:$0xff] %v4498_v53 }
 0x230   : > { %4501 = vst [vmem:[%s28136_s27 + $0x21b0] sm:$0xff] %v4500_v54  ;;  %4503 = vst [vmem:[%s28136_s27 + $0x21b8] sm:$0xff] %v4502_v55  ;;  %v4504_v56 = vld [vmem:[%s28128_s26 + $0x4380] sm:$0xff]  ;;  %v4506_v57 = vld [vmem:[%s28128_s26 + $0x4390] sm:$0xff] }
 0x231   : > { %v4508_v58 = vld [vmem:[%s28128_s26 + $0x43a0] sm:$0xff]  ;;  %4505 = vst [vmem:[%s28136_s27 + $0x21c0] sm:$0xff] %v4504_v56  ;;  %4507 = vst [vmem:[%s28136_s27 + $0x21c8] sm:$0xff] %v4506_v57  ;;  %v4510_v59 = vld [vmem:[%s28128_s26 + $0x43b0] sm:$0xff] }
 0x232   : > { %4509 = vst [vmem:[%s28136_s27 + $0x21d0] sm:$0xff] %v4508_v58  ;;  %v4512_v60 = vld [vmem:[%s28128_s26 + $0x43c0] sm:$0xff]  ;;  %v4514_v61 = vld [vmem:[%s28128_s26 + $0x43d0] sm:$0xff]  ;;  %4511 = vst [vmem:[%s28136_s27 + $0x21d8] sm:$0xff] %v4510_v59 }
 0x233   : > { %4513 = vst [vmem:[%s28136_s27 + $0x21e0] sm:$0xff] %v4512_v60  ;;  %4515 = vst [vmem:[%s28136_s27 + $0x21e8] sm:$0xff] %v4514_v61  ;;  %v4516_v62 = vld [vmem:[%s28128_s26 + $0x43e0] sm:$0xff]  ;;  %v4518_v63 = vld [vmem:[%s28128_s26 + $0x43f0] sm:$0xff] }
 0x234   : > { %4517 = vst [vmem:[%s28136_s27 + $0x21f0] sm:$0xff] %v4516_v62  ;;  %4519 = vst [vmem:[%s28136_s27 + $0x21f8] sm:$0xff] %v4518_v63 }
 0x235 PF: > { %p22839_p7 = scmp.ge.s32.totalorder %s28065_s14, 1  ;;  %p8920_p8 = scmp.lt.s32.totalorder %s28065_s14, 3 }
 0x237   : > { %p8921_p9 = pnand %p22839_p7, %p8920_p8 }
 0x238   : > { %s8927_s28 = sand.u32 (!%p8921_p9), 1, %s28057_s12   ;;  %v25693_v0 = vld [vmem:[%s33193_s0 + $0x4] ss:$272 sps:$4 sm:$0xff] (!%p8921_p9)   ;;  %v25696_v1 = vld [vmem:[%s33193_s0 + $0x8c] ss:$272 sps:$4 sm:$0xff] (!%p8921_p9)   ;;  %s22841_s5 = sshll.u32 (!%p8921_p9), %s28103_s15, 1 }
 0x239   : > { %8924 = sbr.rel (%p8921_p9) target bundleno = 1948 (0x79c), region = 80  ;;  %18796 = vmatprep.mubr.bf16.mxu1 (!%p8921_p9), %v25693_v0  ;;  %20717 = vmatprep.mubr.bf16.mxu0 (!%p8921_p9), %v25696_v1  ;;  %p8955_p10 = scmp.lt.s32.totalorder (!%p8921_p9), %s22841_s5, 3 }
 0x23a   : > { %s25570_s29 = smul.u32 (!%p8921_p9), 8704, %s8927_s28  ;;  %s22840_s10 = sshll.u32 (!%p8921_p9), %s8927_s28, 8 }
 0x23b   : > { %s33049_s12 = scalar_lea.vmem (!%p8921_p9), [#allocation3], %s22840_s10 }
 0x23c   : > { %s30319_s7 = scalar_lea.vmem (!%p8921_p9), [#allocation2], %s25570_s29 }
 0x23d   : > { %v25595_v2 = vld [vmem:[%s30319_s7 + $0x4] ss:$8 sps:$4 sm:$0xff] (!%p8921_p9)   ;;  %v25599_v4 = vld [vmem:[%s30319_s7] ss:$8 sps:$4 sm:$0xff] (!%p8921_p9)   ;;  %v25601_v6 = vld [vmem:[%s30319_s7 + $0x14] ss:$8 sps:$4 sm:$0xff] (!%p8921_p9)  }
 0x23e   : > { %v25597_v3 = vld [vmem:[%s30319_s7 + $0x1104] ss:$8 sps:$4 sm:$0xff] (!%p8921_p9)   ;;  %18764 = vmatprep.subr.bf16.mxu1 (!%p8921_p9), %v25595_v2  ;;  %v25600_v5 = vld [vmem:[%s30319_s7 + $0x1100] ss:$8 sps:$4 sm:$0xff] (!%p8921_p9)   ;;  %v25603_v7 = vld [vmem:[%s30319_s7 + $0x1114] ss:$8 sps:$4 sm:$0xff] (!%p8921_p9)  }
 0x23f   : > { %20685 = vmatprep.subr.bf16.mxu0 (!%p8921_p9), %v25597_v3  ;;  %18765 = vmatpush1.bf16.msra.mxu1 (!%p8921_p9), %v25599_v4  ;;  %v25605_v8 = vld [vmem:[%s30319_s7 + $0x10] ss:$8 sps:$4 sm:$0xff] (!%p8921_p9)   ;;  %v25607_v10 = vld [vmem:[%s30319_s7 + $0x24] ss:$8 sps:$4 sm:$0xff] (!%p8921_p9)   ;;  %v25611_v12 = vld [vmem:[%s30319_s7 + $0x20] ss:$8 sps:$4 sm:$0xff] (!%p8921_p9)  }
 0x240   : > { %20686 = vmatpush1.bf16.msra.mxu0 %v25600_v5  ;;  %18766 = vmatprep.subr.bf16.mxu1 %v25601_v6  ;;  %v25606_v9 = vld [vmem:[%s30319_s7 + $0x1110] ss:$8 sps:$4 sm:$0xff]   ;;  %v25609_v11 = vld [vmem:[%s30319_s7 + $0x1124] ss:$8 sps:$4 sm:$0xff]   ;;  %v25612_v13 = vld [vmem:[%s30319_s7 + $0x1120] ss:$8 sps:$4 sm:$0xff]  }
 0x241   : > { %20687 = vmatprep.subr.bf16.mxu0 %v25603_v7  ;;  %v25613_v14 = vld [vmem:[%s30319_s7 + $0x34] ss:$8 sps:$4 sm:$0xff]   ;;  %v25617_v16 = vld [vmem:[%s30319_s7 + $0x30] ss:$8 sps:$4 sm:$0xff]   ;;  %v25619_v18 = vld [vmem:[%s30319_s7 + $0x44] ss:$8 sps:$4 sm:$0xff]  }
 0x242   : > { %v25615_v15 = vld [vmem:[%s30319_s7 + $0x1134] ss:$8 sps:$4 sm:$0xff]   ;;  %v25618_v17 = vld [vmem:[%s30319_s7 + $0x1130] ss:$8 sps:$4 sm:$0xff]   ;;  %v25621_v19 = vld [vmem:[%s30319_s7 + $0x1144] ss:$8 sps:$4 sm:$0xff]  }
 0x243   : > { %18767 = vmatpush1.bf16.msra.mxu1 %v25605_v8  ;;  %v25623_v20 = vld [vmem:[%s30319_s7 + $0x40] ss:$8 sps:$4 sm:$0xff]   ;;  %v25625_v22 = vld [vmem:[%s30319_s7 + $0x54] ss:$8 sps:$4 sm:$0xff]   ;;  %v25629_v24 = vld [vmem:[%s30319_s7 + $0x50] ss:$8 sps:$4 sm:$0xff]  }
 0x244   : > { %20688 = vmatpush1.bf16.msra.mxu0 %v25606_v9  ;;  %18768 = vmatprep.subr.bf16.mxu1 %v25607_v10  ;;  %v25624_v21 = vld [vmem:[%s30319_s7 + $0x1140] ss:$8 sps:$4 sm:$0xff]   ;;  %v25627_v23 = vld [vmem:[%s30319_s7 + $0x1154] ss:$8 sps:$4 sm:$0xff]   ;;  %v25630_v25 = vld [vmem:[%s30319_s7 + $0x1150] ss:$8 sps:$4 sm:$0xff]  }
 0x245   : > { %20689 = vmatprep.subr.bf16.mxu0 %v25609_v11  ;;  %v25631_v26 = vld [vmem:[%s30319_s7 + $0x64] ss:$8 sps:$4 sm:$0xff]   ;;  %v25635_v28 = vld [vmem:[%s30319_s7 + $0x60] ss:$8 sps:$4 sm:$0xff]   ;;  %v25637_v30 = vld [vmem:[%s30319_s7 + $0x74] ss:$8 sps:$4 sm:$0xff]  }
 0x246   : > { %v25633_v27 = vld [vmem:[%s30319_s7 + $0x1164] ss:$8 sps:$4 sm:$0xff]   ;;  %v25636_v29 = vld [vmem:[%s30319_s7 + $0x1160] ss:$8 sps:$4 sm:$0xff]   ;;  %v25639_v31 = vld [vmem:[%s30319_s7 + $0x1174] ss:$8 sps:$4 sm:$0xff]  }
 0x247   : > { %18769 = vmatpush1.bf16.msra.mxu1 %v25611_v12  ;;  %v25641_v32 = vld [vmem:[%s30319_s7 + $0x70] ss:$8 sps:$4 sm:$0xff]   ;;  %v25643_v34 = vld [vmem:[%s30319_s7 + $0x84] ss:$8 sps:$4 sm:$0xff]   ;;  %v25647_v36 = vld [vmem:[%s30319_s7 + $0x80] ss:$8 sps:$4 sm:$0xff]  }
 0x248   : > { %20690 = vmatpush1.bf16.msra.mxu0 %v25612_v13  ;;  %18770 = vmatprep.subr.bf16.mxu1 %v25613_v14  ;;  %v25642_v33 = vld [vmem:[%s30319_s7 + $0x1170] ss:$8 sps:$4 sm:$0xff]   ;;  %v25645_v35 = vld [vmem:[%s30319_s7 + $0x1184] ss:$8 sps:$4 sm:$0xff]   ;;  %v25648_v37 = vld [vmem:[%s30319_s7 + $0x1180] ss:$8 sps:$4 sm:$0xff]  }
 0x249   : > { %20691 = vmatprep.subr.bf16.mxu0 %v25615_v15  ;;  %v25649_v38 = vld [vmem:[%s30319_s7 + $0x94] ss:$8 sps:$4 sm:$0xff]   ;;  %v25653_v40 = vld [vmem:[%s30319_s7 + $0x90] ss:$8 sps:$4 sm:$0xff]   ;;  %v25655_v42 = vld [vmem:[%s30319_s7 + $0xa4] ss:$8 sps:$4 sm:$0xff]  }
 0x24a   : > { %v25651_v39 = vld [vmem:[%s30319_s7 + $0x1194] ss:$8 sps:$4 sm:$0xff]   ;;  %v25654_v41 = vld [vmem:[%s30319_s7 + $0x1190] ss:$8 sps:$4 sm:$0xff]   ;;  %v25657_v43 = vld [vmem:[%s30319_s7 + $0x11a4] ss:$8 sps:$4 sm:$0xff]  }
 0x24b   : > { %18771 = vmatpush1.bf16.msra.mxu1 %v25617_v16  ;;  %v25659_v44 = vld [vmem:[%s30319_s7 + $0xa0] ss:$8 sps:$4 sm:$0xff]   ;;  %v25661_v46 = vld [vmem:[%s30319_s7 + $0xb4] ss:$8 sps:$4 sm:$0xff]   ;;  %v25665_v48 = vld [vmem:[%s30319_s7 + $0xb0] ss:$8 sps:$4 sm:$0xff]  }
 0x24c   : > { %20692 = vmatpush1.bf16.msra.mxu0 %v25618_v17  ;;  %18772 = vmatprep.subr.bf16.mxu1 %v25619_v18  ;;  %v25660_v45 = vld [vmem:[%s30319_s7 + $0x11a0] ss:$8 sps:$4 sm:$0xff]   ;;  %v25663_v47 = vld [vmem:[%s30319_s7 + $0x11b4] ss:$8 sps:$4 sm:$0xff]   ;;  %v25666_v49 = vld [vmem:[%s30319_s7 + $0x11b0] ss:$8 sps:$4 sm:$0xff]  }
 0x24d   : > { %20693 = vmatprep.subr.bf16.mxu0 %v25621_v19  ;;  %v25667_v50 = vld [vmem:[%s30319_s7 + $0xc4] ss:$8 sps:$4 sm:$0xff]   ;;  %v25671_v52 = vld [vmem:[%s30319_s7 + $0xc0] ss:$8 sps:$4 sm:$0xff]   ;;  %v25673_v54 = vld [vmem:[%s30319_s7 + $0xd4] ss:$8 sps:$4 sm:$0xff]  }
 0x24e   : > { %v25669_v51 = vld [vmem:[%s30319_s7 + $0x11c4] ss:$8 sps:$4 sm:$0xff]   ;;  %v25672_v53 = vld [vmem:[%s30319_s7 + $0x11c0] ss:$8 sps:$4 sm:$0xff]   ;;  %v25675_v55 = vld [vmem:[%s30319_s7 + $0x11d4] ss:$8 sps:$4 sm:$0xff]  }
 0x24f   : > { %18773 = vmatpush1.bf16.msra.mxu1 %v25623_v20  ;;  %v25677_v56 = vld [vmem:[%s30319_s7 + $0xd0] ss:$8 sps:$4 sm:$0xff]   ;;  %v25679_v58 = vld [vmem:[%s30319_s7 + $0xe4] ss:$8 sps:$4 sm:$0xff]   ;;  %v25683_v60 = vld [vmem:[%s30319_s7 + $0xe0] ss:$8 sps:$4 sm:$0xff]  }
 0x250   : > { %20694 = vmatpush1.bf16.msra.mxu0 %v25624_v21  ;;  %18774 = vmatprep.subr.bf16.mxu1 %v25625_v22  ;;  %v25678_v57 = vld [vmem:[%s30319_s7 + $0x11d0] ss:$8 sps:$4 sm:$0xff]   ;;  %v25681_v59 = vld [vmem:[%s30319_s7 + $0x11e4] ss:$8 sps:$4 sm:$0xff]   ;;  %v25684_v61 = vld [vmem:[%s30319_s7 + $0x11e0] ss:$8 sps:$4 sm:$0xff]  }
 0x251   : > { %20695 = vmatprep.subr.bf16.mxu0 %v25627_v23  ;;  %v25685_v62 = vld [vmem:[%s30319_s7 + $0xf4] ss:$8 sps:$4 sm:$0xff]   ;;  %v25689_v0 = vld [vmem:[%s30319_s7 + $0xf0] ss:$8 sps:$4 sm:$0xff]   ;;  %v25699_v2 = vld [vmem:[%s30319_s7 + $0x104] ss:$8 sps:$4 sm:$0xff]  }
 0x252   : > { %v25687_v63 = vld [vmem:[%s30319_s7 + $0x11f4] ss:$8 sps:$4 sm:$0xff]   ;;  %v25690_v1 = vld [vmem:[%s30319_s7 + $0x11f0] ss:$8 sps:$4 sm:$0xff]   ;;  %v25702_v3 = vld [vmem:[%s30319_s7 + $0x1204] ss:$8 sps:$4 sm:$0xff]  }
 0x253   : > { %18775 = vmatpush1.bf16.msra.mxu1 %v25629_v24  ;;  %v25691_v4 = vld [vmem:[%s33193_s0] ss:$272 sps:$4 sm:$0xff]   ;;  %v25694_v5 = vld [vmem:[%s33193_s0 + $0x88] ss:$272 sps:$4 sm:$0xff]   ;;  %v25705_v8 = vld [vmem:[%s30319_s7 + $0x114] ss:$8 sps:$4 sm:$0xff]  }
 0x254   : > { %20696 = vmatpush1.bf16.msra.mxu0 %v25630_v25  ;;  %18776 = vmatprep.subr.bf16.mxu1 %v25631_v26  ;;  %v25697_v6 = vld [vmem:[%s30319_s7 + $0x100] ss:$8 sps:$4 sm:$0xff]   ;;  %v25708_v9 = vld [vmem:[%s30319_s7 + $0x1214] ss:$8 sps:$4 sm:$0xff]   ;;  %v25703_v12 = vld [vmem:[%s30319_s7 + $0x110] ss:$8 sps:$4 sm:$0xff]  }
 0x255   : > { %20697 = vmatprep.subr.bf16.mxu0 %v25633_v27  ;;  %v25700_v7 = vld [vmem:[%s30319_s7 + $0x1200] ss:$8 sps:$4 sm:$0xff]   ;;  %v25709_v10 = vld [vmem:[%s33193_s0 + $0x224] ss:$272 sps:$4 sm:$0xff]   ;;  %v25711_v11 = vld [vmem:[%s33193_s0 + $0x2ac] ss:$272 sps:$4 sm:$0xff]  }
 0x256   : > { %v25706_v13 = vld [vmem:[%s30319_s7 + $0x1210] ss:$8 sps:$4 sm:$0xff]   ;;  %v25716_v14 = vld [vmem:[%s30319_s7 + $0x124] ss:$8 sps:$4 sm:$0xff]   ;;  %v25714_v17 = vld [vmem:[%s30319_s7 + $0x120] ss:$8 sps:$4 sm:$0xff]  }
 0x257   : > { %18777 = vmatpush1.bf16.msra.mxu1 %v25635_v28  ;;  %v25720_v15 = vld [vmem:[%s30319_s7 + $0x1224] ss:$8 sps:$4 sm:$0xff]   ;;  %v25713_v16 = vld [vmem:[%s33193_s0 + $0x220] ss:$272 sps:$4 sm:$0xff]   ;;  %v25717_v18 = vld [vmem:[%s33193_s0 + $0x2a8] ss:$272 sps:$4 sm:$0xff]  }
 0x258   : > { %20698 = vmatpush1.bf16.msra.mxu0 %v25636_v29  ;;  %18778 = vmatprep.subr.bf16.mxu1 %v25637_v30  ;;  %v25718_v19 = vld [vmem:[%s30319_s7 + $0x1220] ss:$8 sps:$4 sm:$0xff]   ;;  %v25723_v20 = vld [vmem:[%s30319_s7 + $0x134] ss:$8 sps:$4 sm:$0xff]   ;;  %v25721_v24 = vld [vmem:[%s30319_s7 + $0x130] ss:$8 sps:$4 sm:$0xff]  }
 0x259   : > { %20699 = vmatprep.subr.bf16.mxu0 %v25639_v31  ;;  %v25726_v21 = vld [vmem:[%s30319_s7 + $0x1234] ss:$8 sps:$4 sm:$0xff]   ;;  %v25724_v25 = vld [vmem:[%s30319_s7 + $0x1230] ss:$8 sps:$4 sm:$0xff]   ;;  %v25734_v26 = vld [vmem:[%s30319_s7 + $0x144] ss:$8 sps:$4 sm:$0xff]  }
 0x25a   : > { %v25727_v22 = vld [vmem:[%s33193_s0 + $0x444] ss:$272 sps:$4 sm:$0xff]   ;;  %v25729_v23 = vld [vmem:[%s33193_s0 + $0x4cc] ss:$272 sps:$4 sm:$0xff]   ;;  %v25731_v28 = vld [vmem:[%s33193_s0 + $0x440] ss:$272 sps:$4 sm:$0xff]  }
 0x25b   : > { %18779 = vmatpush1.bf16.msra.mxu1 %v25641_v32  ;;  %v25738_v27 = vld [vmem:[%s30319_s7 + $0x1244] ss:$8 sps:$4 sm:$0xff]   ;;  %v25732_v29 = vld [vmem:[%s30319_s7 + $0x140] ss:$8 sps:$4 sm:$0xff]   ;;  %v25741_v32 = vld [vmem:[%s30319_s7 + $0x154] ss:$8 sps:$4 sm:$0xff]  }
 0x25c   : > { %20700 = vmatpush1.bf16.msra.mxu0 %v25642_v33  ;;  %18780 = vmatprep.subr.bf16.mxu1 %v25643_v34  ;;  %v25735_v30 = vld [vmem:[%s33193_s0 + $0x4c8] ss:$272 sps:$4 sm:$0xff]   ;;  %v25744_v33 = vld [vmem:[%s30319_s7 + $0x1254] ss:$8 sps:$4 sm:$0xff]   ;;  %s33202_s5 = smov (!%p8955_p10, %s22841_s5), 3  ;;  %s24480_s28 = sshll.u32 (%p28118_p5), %s28103_s15, 4 }
 0x25d   : > { %20701 = vmatprep.subr.bf16.mxu0 %v25645_v35  ;;  %v25736_v31 = vld [vmem:[%s30319_s7 + $0x1240] ss:$8 sps:$4 sm:$0xff]   ;;  %v25745_v34 = vld [vmem:[%s33193_s0 + $0x664] ss:$272 sps:$4 sm:$0xff]   ;;  %v25747_v35 = vld [vmem:[%s33193_s0 + $0x6ec] ss:$272 sps:$4 sm:$0xff]   ;;  %s8957_s9 = scalar_lea.vmem %s33195_s2, %s33202_s5 }
 0x25f   : > { %18781 = vmatpush1.bf16.msra.mxu1 %v25647_v36  ;;  %v25739_v36 = vld [vmem:[%s30319_s7 + $0x150] ss:$8 sps:$4 sm:$0xff]  }
 0x260   : > { %20702 = vmatpush1.bf16.msra.mxu0 %v25648_v37  ;;  %18782 = vmatprep.subr.bf16.mxu1 %v25649_v38  ;;  %v25742_v37 = vld [vmem:[%s30319_s7 + $0x1250] ss:$8 sps:$4 sm:$0xff]   ;;  %v25752_v38 = vld [vmem:[%s30319_s7 + $0x164] ss:$8 sps:$4 sm:$0xff]  }
 0x261   : > { %20703 = vmatprep.subr.bf16.mxu0 %v25651_v39  ;;  %v25756_v39 = vld [vmem:[%s30319_s7 + $0x1264] ss:$8 sps:$4 sm:$0xff]  }
 0x263   : > { %18783 = vmatpush1.bf16.msra.mxu1 %v25653_v40  ;;  %v25749_v40 = vld [vmem:[%s33193_s0 + $0x660] ss:$272 sps:$4 sm:$0xff]  }
 0x264   : > { %20704 = vmatpush1.bf16.msra.mxu0 %v25654_v41  ;;  %18784 = vmatprep.subr.bf16.mxu1 %v25655_v42  ;;  %v25750_v41 = vld [vmem:[%s30319_s7 + $0x160] ss:$8 sps:$4 sm:$0xff]  }
 0x265   : > { %20705 = vmatprep.subr.bf16.mxu0 %v25657_v43  ;;  %v25753_v42 = vld [vmem:[%s33193_s0 + $0x6e8] ss:$272 sps:$4 sm:$0xff]  }
 0x266   : > { %v25754_v43 = vld [vmem:[%s30319_s7 + $0x1260] ss:$8 sps:$4 sm:$0xff]  }
 0x267   : > { %18785 = vmatpush1.bf16.msra.mxu1 %v25659_v44  ;;  %v25759_v44 = vld [vmem:[%s30319_s7 + $0x174] ss:$8 sps:$4 sm:$0xff]  }
 0x268   : > { %20706 = vmatpush1.bf16.msra.mxu0 %v25660_v45  ;;  %18786 = vmatprep.subr.bf16.mxu1 %v25661_v46  ;;  %v25762_v45 = vld [vmem:[%s30319_s7 + $0x1274] ss:$8 sps:$4 sm:$0xff]  }
 0x269   : > { %20707 = vmatprep.subr.bf16.mxu0 %v25663_v47  ;;  %v25763_v46 = vld [vmem:[%s33193_s0 + $0x884] ss:$272 sps:$4 sm:$0xff]   ;;  %v25765_v47 = vld [vmem:[%s33193_s0 + $0x90c] ss:$272 sps:$4 sm:$0xff]  }
 0x26b   : > { %18787 = vmatpush1.bf16.msra.mxu1 %v25665_v48  ;;  %v25757_v48 = vld [vmem:[%s30319_s7 + $0x170] ss:$8 sps:$4 sm:$0xff]  }
 0x26c   : > { %20708 = vmatpush1.bf16.msra.mxu0 %v25666_v49  ;;  %18788 = vmatprep.subr.bf16.mxu1 %v25667_v50  ;;  %v25760_v49 = vld [vmem:[%s30319_s7 + $0x1270] ss:$8 sps:$4 sm:$0xff]   ;;  %v25770_v50 = vld [vmem:[%s30319_s7 + $0x184] ss:$8 sps:$4 sm:$0xff]  }
 0x26d   : > { %20709 = vmatprep.subr.bf16.mxu0 %v25669_v51  ;;  %v25774_v51 = vld [vmem:[%s30319_s7 + $0x1284] ss:$8 sps:$4 sm:$0xff]  }
 0x26f   : > { %18789 = vmatpush1.bf16.msra.mxu1 %v25671_v52  ;;  %v25767_v52 = vld [vmem:[%s33193_s0 + $0x880] ss:$272 sps:$4 sm:$0xff]  }
 0x270   : > { %20710 = vmatpush1.bf16.msra.mxu0 %v25672_v53  ;;  %18790 = vmatprep.subr.bf16.mxu1 %v25673_v54  ;;  %v25768_v53 = vld [vmem:[%s30319_s7 + $0x180] ss:$8 sps:$4 sm:$0xff]  }
 0x271   : > { %20711 = vmatprep.subr.bf16.mxu0 %v25675_v55  ;;  %v25771_v54 = vld [vmem:[%s33193_s0 + $0x908] ss:$272 sps:$4 sm:$0xff]  }
 0x272   : > { %v25772_v55 = vld [vmem:[%s30319_s7 + $0x1280] ss:$8 sps:$4 sm:$0xff]  }
 0x273   : > { %18791 = vmatpush1.bf16.msra.mxu1 %v25677_v56  ;;  %v25777_v56 = vld [vmem:[%s30319_s7 + $0x194] ss:$8 sps:$4 sm:$0xff]  }
 0x274   : > { %20712 = vmatpush1.bf16.msra.mxu0 %v25678_v57  ;;  %18792 = vmatprep.subr.bf16.mxu1 %v25679_v58  ;;  %v25780_v57 = vld [vmem:[%s30319_s7 + $0x1294] ss:$8 sps:$4 sm:$0xff]  }
 0x275   : > { %20713 = vmatprep.subr.bf16.mxu0 %v25681_v59  ;;  %v25781_v58 = vld [vmem:[%s33193_s0 + $0xaa4] ss:$272 sps:$4 sm:$0xff]   ;;  %v25783_v59 = vld [vmem:[%s33193_s0 + $0xb2c] ss:$272 sps:$4 sm:$0xff]  }
 0x277   : > { %18793 = vmatpush1.bf16.msra.mxu1 %v25683_v60  ;;  %v25775_v60 = vld [vmem:[%s30319_s7 + $0x190] ss:$8 sps:$4 sm:$0xff]  }
 0x278   : > { %20714 = vmatpush1.bf16.msra.mxu0 %v25684_v61  ;;  %18794 = vmatprep.subr.bf16.mxu1 %v25685_v62  ;;  %v25778_v61 = vld [vmem:[%s30319_s7 + $0x1290] ss:$8 sps:$4 sm:$0xff]   ;;  %v25788_v62 = vld [vmem:[%s30319_s7 + $0x1a4] ss:$8 sps:$4 sm:$0xff]  }
 0x279   : > { %20715 = vmatprep.subr.bf16.mxu0 %v25687_v63  ;;  %v25792_v63 = vld [vmem:[%s30319_s7 + $0x12a4] ss:$8 sps:$4 sm:$0xff]  }
 0x27b   : > { %18795 = vmatpush1.bf16.msra.mxu1 %v25689_v0  ;;  %v25785_v0 = vld [vmem:[%s33193_s0 + $0xaa0] ss:$272 sps:$4 sm:$0xff]  }
 0x27c   : > { %20716 = vmatpush1.bf16.msra.mxu0 %v25690_v1  ;;  %18877 = vmatprep.subr.bf16.mxu1 %v25699_v2  ;;  %v25786_v1 = vld [vmem:[%s30319_s7 + $0x1a0] ss:$8 sps:$4 sm:$0xff]  }
 0x27d   : > { %20798 = vmatprep.subr.bf16.mxu0 %v25702_v3  ;;  %v25789_v2 = vld [vmem:[%s33193_s0 + $0xb28] ss:$272 sps:$4 sm:$0xff]  }
 0x27e   : > { %18797 = vmatmul.mubr.bf16.vlgmr.msra.gmra.mrb[0].mxu1 %v25691_v4  ;;  %v25790_v3 = vld [vmem:[%s30319_s7 + $0x12a0] ss:$8 sps:$4 sm:$0xff]   ;;  %v25795_v4 = vld [vmem:[%s30319_s7 + $0x1b4] ss:$8 sps:$4 sm:$0xff]  }
 0x27f   : > { %20718 = vmatmul.mubr.bf16.vlgmr.msra.gmra.mrb[0].mxu0 %v25694_v5  ;;  %18878 = vmatpush1.bf16.msra.mxu1 %v25697_v6  ;;  %v25798_v5 = vld [vmem:[%s30319_s7 + $0x12b4] ss:$8 sps:$4 sm:$0xff]  }
 0x280   : > { %20799 = vmatpush1.bf16.msra.mxu0 %v25700_v7  ;;  %18879 = vmatprep.subr.bf16.mxu1 %v25705_v8  ;;  %v25799_v6 = vld [vmem:[%s33193_s0 + $0xcc4] ss:$272 sps:$4 sm:$0xff]   ;;  %v25801_v7 = vld [vmem:[%s33193_s0 + $0xd4c] ss:$272 sps:$4 sm:$0xff]   ;;  %v25793_v8 = vld [vmem:[%s30319_s7 + $0x1b0] ss:$8 sps:$4 sm:$0xff]  }
 0x281   : > { %20800 = vmatprep.subr.bf16.mxu0 %v25708_v9  ;;  %18806 = vmatprep.mubr.bf16.mxu1 %v25709_v10  ;;  %v25796_v9 = vld [vmem:[%s30319_s7 + $0x12b0] ss:$8 sps:$4 sm:$0xff]   ;;  %v25806_v10 = vld [vmem:[%s30319_s7 + $0x1c4] ss:$8 sps:$4 sm:$0xff]  }
 0x282   : > { %20727 = vmatprep.mubr.bf16.mxu0 %v25711_v11  ;;  %v25810_v11 = vld [vmem:[%s30319_s7 + $0x12c4] ss:$8 sps:$4 sm:$0xff]  }
 0x283   : > { %18880 = vmatpush1.bf16.msra.mxu1 %v25703_v12  ;;  %v25803_v12 = vld [vmem:[%s33193_s0 + $0xcc0] ss:$272 sps:$4 sm:$0xff]  }
 0x284   : > { %20801 = vmatpush1.bf16.msra.mxu0 %v25706_v13  ;;  %18881 = vmatprep.subr.bf16.mxu1 %v25716_v14  ;;  %v25804_v13 = vld [vmem:[%s30319_s7 + $0x1c0] ss:$8 sps:$4 sm:$0xff]  }
 0x285   : > { %20802 = vmatprep.subr.bf16.mxu0 %v25720_v15  ;;  %v25807_v14 = vld [vmem:[%s33193_s0 + $0xd48] ss:$272 sps:$4 sm:$0xff]  }
 0x286   : > { %18807 = vmatmul.mubr.bf16.gmra.mrb[4].mxu1 %v25713_v16  ;;  %v25808_v15 = vld [vmem:[%s30319_s7 + $0x12c0] ss:$8 sps:$4 sm:$0xff]   ;;  %v25813_v16 = vld [vmem:[%s30319_s7 + $0x1d4] ss:$8 sps:$4 sm:$0xff]  }
 0x287   : > { %20728 = vmatmul.mubr.bf16.gmra.mrb[4].mxu0 %v25717_v18  ;;  %18882 = vmatpush1.bf16.msra.mxu1 %v25714_v17  ;;  %v25816_v17 = vld [vmem:[%s30319_s7 + $0x12d4] ss:$8 sps:$4 sm:$0xff]  }
 0x288   : > { %20803 = vmatpush1.bf16.msra.mxu0 %v25718_v19  ;;  %18883 = vmatprep.subr.bf16.mxu1 %v25723_v20  ;;  %v25817_v18 = vld [vmem:[%s33193_s0 + $0xee4] ss:$272 sps:$4 sm:$0xff]   ;;  %v25819_v19 = vld [vmem:[%s33193_s0 + $0xf6c] ss:$272 sps:$4 sm:$0xff]   ;;  %v25811_v20 = vld [vmem:[%s30319_s7 + $0x1d0] ss:$8 sps:$4 sm:$0xff]  }
 0x289   : > { %20804 = vmatprep.subr.bf16.mxu0 %v25726_v21  ;;  %18816 = vmatprep.mubr.bf16.mxu1 %v25727_v22  ;;  %v25814_v21 = vld [vmem:[%s30319_s7 + $0x12d0] ss:$8 sps:$4 sm:$0xff]   ;;  %v25824_v22 = vld [vmem:[%s30319_s7 + $0x1e4] ss:$8 sps:$4 sm:$0xff]  }
 0x28a   : > { %20737 = vmatprep.mubr.bf16.mxu0 %v25729_v23  ;;  %v25828_v23 = vld [vmem:[%s30319_s7 + $0x12e4] ss:$8 sps:$4 sm:$0xff]  }
 0x28b   : > { %18884 = vmatpush1.bf16.msra.mxu1 %v25721_v24  ;;  %v25821_v24 = vld [vmem:[%s33193_s0 + $0xee0] ss:$272 sps:$4 sm:$0xff]  }
 0x28c   : > { %20805 = vmatpush1.bf16.msra.mxu0 %v25724_v25  ;;  %18885 = vmatprep.subr.bf16.mxu1 %v25734_v26  ;;  %v25822_v25 = vld [vmem:[%s30319_s7 + $0x1e0] ss:$8 sps:$4 sm:$0xff]  }
 0x28d   : > { %20806 = vmatprep.subr.bf16.mxu0 %v25738_v27  ;;  %v25825_v26 = vld [vmem:[%s33193_s0 + $0xf68] ss:$272 sps:$4 sm:$0xff]  }
 0x28e   : > { %18817 = vmatmul.mubr.bf16.gmra.mrb[8].mxu1 %v25731_v28  ;;  %v25826_v27 = vld [vmem:[%s30319_s7 + $0x12e0] ss:$8 sps:$4 sm:$0xff]   ;;  %v25831_v28 = vld [vmem:[%s30319_s7 + $0x1f4] ss:$8 sps:$4 sm:$0xff]  }
 0x28f   : > { %20738 = vmatmul.mubr.bf16.gmra.mrb[8].mxu0 %v25735_v30  ;;  %18886 = vmatpush1.bf16.msra.mxu1 %v25732_v29  ;;  %v25834_v29 = vld [vmem:[%s30319_s7 + $0x12f4] ss:$8 sps:$4 sm:$0xff]  }
 0x290   : > { %20807 = vmatpush1.bf16.msra.mxu0 %v25736_v31  ;;  %18887 = vmatprep.subr.bf16.mxu1 %v25741_v32  ;;  %v25837_v30 = vld [vmem:[%s33193_s0 + $0xc] ss:$272 sps:$4 sm:$0xff]   ;;  %v25840_v31 = vld [vmem:[%s33193_s0 + $0x94] ss:$272 sps:$4 sm:$0xff]   ;;  %v25829_v32 = vld [vmem:[%s30319_s7 + $0x1f0] ss:$8 sps:$4 sm:$0xff]  }
 0x291   : > { %20808 = vmatprep.subr.bf16.mxu0 %v25744_v33  ;;  %18826 = vmatprep.mubr.bf16.mxu1 %v25745_v34  ;;  %v25832_v33 = vld [vmem:[%s30319_s7 + $0x12f0] ss:$8 sps:$4 sm:$0xff]   ;;  %v25843_v34 = vld [vmem:[%s30319_s7 + $0x204] ss:$8 sps:$4 sm:$0xff]  }
 0x292   : > { %20747 = vmatprep.mubr.bf16.mxu0 %v25747_v35  ;;  %v25846_v35 = vld [vmem:[%s30319_s7 + $0x1304] ss:$8 sps:$4 sm:$0xff]  }
 0x293   : > { %18888 = vmatpush1.bf16.msra.mxu1 %v25739_v36  ;;  %v25835_v36 = vld [vmem:[%s33193_s0 + $0x8] ss:$272 sps:$4 sm:$0xff]  }
 0x294   : > { %20809 = vmatpush1.bf16.msra.mxu0 %v25742_v37  ;;  %18889 = vmatprep.subr.bf16.mxu1 %v25752_v38  ;;  %v25838_v37 = vld [vmem:[%s33193_s0 + $0x90] ss:$272 sps:$4 sm:$0xff]  }
 0x295   : > { %20810 = vmatprep.subr.bf16.mxu0 %v25756_v39  ;;  %v25841_v38 = vld [vmem:[%s30319_s7 + $0x200] ss:$8 sps:$4 sm:$0xff]  }
 0x296   : > { %18827 = vmatmul.mubr.bf16.gmra.mrb[12].mxu1 %v25749_v40  ;;  %v25844_v39 = vld [vmem:[%s30319_s7 + $0x1300] ss:$8 sps:$4 sm:$0xff]   ;;  %v25849_v40 = vld [vmem:[%s30319_s7 + $0x214] ss:$8 sps:$4 sm:$0xff]  }
 0x297   : > { %20748 = vmatmul.mubr.bf16.gmra.mrb[12].mxu0 %v25753_v42  ;;  %18890 = vmatpush1.bf16.msra.mxu1 %v25750_v41  ;;  %v25852_v41 = vld [vmem:[%s30319_s7 + $0x1314] ss:$8 sps:$4 sm:$0xff]  }
 0x298   : > { %20811 = vmatpush1.bf16.msra.mxu0 %v25754_v43  ;;  %18891 = vmatprep.subr.bf16.mxu1 %v25759_v44  ;;  %v25853_v42 = vld [vmem:[%s33193_s0 + $0x22c] ss:$272 sps:$4 sm:$0xff]   ;;  %v25855_v43 = vld [vmem:[%s33193_s0 + $0x2b4] ss:$272 sps:$4 sm:$0xff]   ;;  %v25847_v44 = vld [vmem:[%s30319_s7 + $0x210] ss:$8 sps:$4 sm:$0xff]  }
 0x299   : > { %20812 = vmatprep.subr.bf16.mxu0 %v25762_v45  ;;  %18836 = vmatprep.mubr.bf16.mxu1 %v25763_v46  ;;  %v25850_v45 = vld [vmem:[%s30319_s7 + $0x1310] ss:$8 sps:$4 sm:$0xff]   ;;  %v25860_v46 = vld [vmem:[%s30319_s7 + $0x224] ss:$8 sps:$4 sm:$0xff]  }
 0x29a   : > { %20757 = vmatprep.mubr.bf16.mxu0 %v25765_v47  ;;  %v25864_v47 = vld [vmem:[%s30319_s7 + $0x1324] ss:$8 sps:$4 sm:$0xff]  }
 0x29b   : > { %18892 = vmatpush1.bf16.msra.mxu1 %v25757_v48  ;;  %v25857_v48 = vld [vmem:[%s33193_s0 + $0x228] ss:$272 sps:$4 sm:$0xff]  }
 0x29c   : > { %20813 = vmatpush1.bf16.msra.mxu0 %v25760_v49  ;;  %18893 = vmatprep.subr.bf16.mxu1 %v25770_v50  ;;  %v25858_v49 = vld [vmem:[%s30319_s7 + $0x220] ss:$8 sps:$4 sm:$0xff]  }
 0x29d   : > { %20814 = vmatprep.subr.bf16.mxu0 %v25774_v51  ;;  %v25861_v50 = vld [vmem:[%s33193_s0 + $0x2b0] ss:$272 sps:$4 sm:$0xff]  }
 0x29e   : > { %18837 = vmatmul.mubr.bf16.gmra.mrb[16].mxu1 %v25767_v52  ;;  %v25862_v51 = vld [vmem:[%s30319_s7 + $0x1320] ss:$8 sps:$4 sm:$0xff]   ;;  %v25867_v52 = vld [vmem:[%s30319_s7 + $0x234] ss:$8 sps:$4 sm:$0xff]  }
 0x29f   : > { %20758 = vmatmul.mubr.bf16.gmra.mrb[16].mxu0 %v25771_v54  ;;  %18894 = vmatpush1.bf16.msra.mxu1 %v25768_v53  ;;  %v25870_v53 = vld [vmem:[%s30319_s7 + $0x1334] ss:$8 sps:$4 sm:$0xff]  }
 0x2a0   : > { %20815 = vmatpush1.bf16.msra.mxu0 %v25772_v55  ;;  %18895 = vmatprep.subr.bf16.mxu1 %v25777_v56  ;;  %v25871_v54 = vld [vmem:[%s33193_s0 + $0x44c] ss:$272 sps:$4 sm:$0xff]   ;;  %v25873_v55 = vld [vmem:[%s33193_s0 + $0x4d4] ss:$272 sps:$4 sm:$0xff]   ;;  %v25865_v56 = vld [vmem:[%s30319_s7 + $0x230] ss:$8 sps:$4 sm:$0xff]  }
 0x2a1   : > { %20816 = vmatprep.subr.bf16.mxu0 %v25780_v57  ;;  %18846 = vmatprep.mubr.bf16.mxu1 %v25781_v58  ;;  %v25868_v57 = vld [vmem:[%s30319_s7 + $0x1330] ss:$8 sps:$4 sm:$0xff]   ;;  %v25878_v58 = vld [vmem:[%s30319_s7 + $0x244] ss:$8 sps:$4 sm:$0xff]  }
 0x2a2   : > { %20767 = vmatprep.mubr.bf16.mxu0 %v25783_v59  ;;  %v25882_v59 = vld [vmem:[%s30319_s7 + $0x1344] ss:$8 sps:$4 sm:$0xff]  }
 0x2a3   : > { %18896 = vmatpush1.bf16.msra.mxu1 %v25775_v60  ;;  %v25875_v60 = vld [vmem:[%s33193_s0 + $0x448] ss:$272 sps:$4 sm:$0xff]  }
 0x2a4   : > { %20817 = vmatpush1.bf16.msra.mxu0 %v25778_v61  ;;  %18897 = vmatprep.subr.bf16.mxu1 %v25788_v62  ;;  %v25876_v61 = vld [vmem:[%s30319_s7 + $0x240] ss:$8 sps:$4 sm:$0xff]  }
 0x2a5   : > { %20818 = vmatprep.subr.bf16.mxu0 %v25792_v63  ;;  %v25879_v62 = vld [vmem:[%s33193_s0 + $0x4d0] ss:$272 sps:$4 sm:$0xff]  }
 0x2a6   : > { %18847 = vmatmul.mubr.bf16.gmra.mrb[20].mxu1 %v25785_v0  ;;  %v25880_v63 = vld [vmem:[%s30319_s7 + $0x1340] ss:$8 sps:$4 sm:$0xff]   ;;  %v25885_v0 = vld [vmem:[%s30319_s7 + $0x254] ss:$8 sps:$4 sm:$0xff]  }
 0x2a7   : > { %20768 = vmatmul.mubr.bf16.gmra.mrb[20].mxu0 %v25789_v2  ;;  %18898 = vmatpush1.bf16.msra.mxu1 %v25786_v1  ;;  %v25888_v1 = vld [vmem:[%s30319_s7 + $0x1354] ss:$8 sps:$4 sm:$0xff]  }
 0x2a8   : > { %20819 = vmatpush1.bf16.msra.mxu0 %v25790_v3  ;;  %18899 = vmatprep.subr.bf16.mxu1 %v25795_v4  ;;  %v25889_v2 = vld [vmem:[%s33193_s0 + $0x66c] ss:$272 sps:$4 sm:$0xff]   ;;  %v25891_v3 = vld [vmem:[%s33193_s0 + $0x6f4] ss:$272 sps:$4 sm:$0xff]   ;;  %v25883_v4 = vld [vmem:[%s30319_s7 + $0x250] ss:$8 sps:$4 sm:$0xff]  }
 0x2a9   : > { %20820 = vmatprep.subr.bf16.mxu0 %v25798_v5  ;;  %18856 = vmatprep.mubr.bf16.mxu1 %v25799_v6  ;;  %v25886_v5 = vld [vmem:[%s30319_s7 + $0x1350] ss:$8 sps:$4 sm:$0xff]   ;;  %v25896_v6 = vld [vmem:[%s30319_s7 + $0x264] ss:$8 sps:$4 sm:$0xff]  }
 0x2aa   : > { %20777 = vmatprep.mubr.bf16.mxu0 %v25801_v7  ;;  %v25900_v7 = vld [vmem:[%s30319_s7 + $0x1364] ss:$8 sps:$4 sm:$0xff]  }
 0x2ab   : > { %18900 = vmatpush1.bf16.msra.mxu1 %v25793_v8  ;;  %v25893_v8 = vld [vmem:[%s33193_s0 + $0x668] ss:$272 sps:$4 sm:$0xff]  }
 0x2ac   : > { %20821 = vmatpush1.bf16.msra.mxu0 %v25796_v9  ;;  %18901 = vmatprep.subr.bf16.mxu1 %v25806_v10  ;;  %v25894_v9 = vld [vmem:[%s30319_s7 + $0x260] ss:$8 sps:$4 sm:$0xff]  }
 0x2ad   : > { %20822 = vmatprep.subr.bf16.mxu0 %v25810_v11  ;;  %v25897_v10 = vld [vmem:[%s33193_s0 + $0x6f0] ss:$272 sps:$4 sm:$0xff]  }
 0x2ae   : > { %18857 = vmatmul.mubr.bf16.gmra.mrb[24].mxu1 %v25803_v12  ;;  %v25898_v11 = vld [vmem:[%s30319_s7 + $0x1360] ss:$8 sps:$4 sm:$0xff]   ;;  %v25903_v12 = vld [vmem:[%s30319_s7 + $0x274] ss:$8 sps:$4 sm:$0xff]  }
 0x2af   : > { %20778 = vmatmul.mubr.bf16.gmra.mrb[24].mxu0 %v25807_v14  ;;  %18902 = vmatpush1.bf16.msra.mxu1 %v25804_v13  ;;  %v25906_v13 = vld [vmem:[%s30319_s7 + $0x1374] ss:$8 sps:$4 sm:$0xff]  }
 0x2b0   : > { %20823 = vmatpush1.bf16.msra.mxu0 %v25808_v15  ;;  %18903 = vmatprep.subr.bf16.mxu1 %v25813_v16  ;;  %v25907_v14 = vld [vmem:[%s33193_s0 + $0x88c] ss:$272 sps:$4 sm:$0xff]   ;;  %v25909_v15 = vld [vmem:[%s33193_s0 + $0x914] ss:$272 sps:$4 sm:$0xff]   ;;  %v25901_v16 = vld [vmem:[%s30319_s7 + $0x270] ss:$8 sps:$4 sm:$0xff]  }
 0x2b1   : > { %20824 = vmatprep.subr.bf16.mxu0 %v25816_v17  ;;  %18866 = vmatprep.mubr.bf16.mxu1 %v25817_v18  ;;  %v25904_v17 = vld [vmem:[%s30319_s7 + $0x1370] ss:$8 sps:$4 sm:$0xff]   ;;  %v25914_v18 = vld [vmem:[%s30319_s7 + $0x284] ss:$8 sps:$4 sm:$0xff]  }
 0x2b2   : > { %20787 = vmatprep.mubr.bf16.mxu0 %v25819_v19  ;;  %v25918_v19 = vld [vmem:[%s30319_s7 + $0x1384] ss:$8 sps:$4 sm:$0xff]  }
 0x2b3   : > { %18904 = vmatpush1.bf16.msra.mxu1 %v25811_v20  ;;  %v25911_v20 = vld [vmem:[%s33193_s0 + $0x888] ss:$272 sps:$4 sm:$0xff]  }
 0x2b4   : > { %20825 = vmatpush1.bf16.msra.mxu0 %v25814_v21  ;;  %18905 = vmatprep.subr.bf16.mxu1 %v25824_v22  ;;  %v25912_v21 = vld [vmem:[%s30319_s7 + $0x280] ss:$8 sps:$4 sm:$0xff]  }
 0x2b5   : > { %20826 = vmatprep.subr.bf16.mxu0 %v25828_v23  ;;  %v25915_v22 = vld [vmem:[%s33193_s0 + $0x910] ss:$272 sps:$4 sm:$0xff]  }
 0x2b6   : > { %18867 = vmatmul.mubr.bf16.gmra.mrb[28].mxu1 %v25821_v24  ;;  %v25916_v23 = vld [vmem:[%s30319_s7 + $0x1380] ss:$8 sps:$4 sm:$0xff]   ;;  %v25921_v24 = vld [vmem:[%s30319_s7 + $0x294] ss:$8 sps:$4 sm:$0xff]  }
 0x2b7   : > { %20788 = vmatmul.mubr.bf16.gmra.mrb[28].mxu0 %v25825_v26  ;;  %18906 = vmatpush1.bf16.msra.mxu1 %v25822_v25  ;;  %v25924_v25 = vld [vmem:[%s30319_s7 + $0x1394] ss:$8 sps:$4 sm:$0xff]  }
 0x2b8   : > { %20827 = vmatpush1.bf16.msra.mxu0 %v25826_v27  ;;  %18907 = vmatprep.subr.bf16.mxu1 %v25831_v28  ;;  %v25925_v26 = vld [vmem:[%s33193_s0 + $0xaac] ss:$272 sps:$4 sm:$0xff]   ;;  %v25927_v27 = vld [vmem:[%s33193_s0 + $0xb34] ss:$272 sps:$4 sm:$0xff]   ;;  %v25919_v28 = vld [vmem:[%s30319_s7 + $0x290] ss:$8 sps:$4 sm:$0xff]  }
 0x2b9   : > { %20828 = vmatprep.subr.bf16.mxu0 %v25834_v29  ;;  %18909 = vmatprep.mubr.bf16.mxu1 %v25837_v30  ;;  %v25922_v29 = vld [vmem:[%s30319_s7 + $0x1390] ss:$8 sps:$4 sm:$0xff]   ;;  %v25932_v30 = vld [vmem:[%s30319_s7 + $0x2a4] ss:$8 sps:$4 sm:$0xff]  }
 0x2ba   : > { %20830 = vmatprep.mubr.bf16.mxu0 %v25840_v31  ;;  %v25936_v31 = vld [vmem:[%s30319_s7 + $0x13a4] ss:$8 sps:$4 sm:$0xff]  }
 0x2bb   : > { %18908 = vmatpush1.bf16.msra.mxu1 %v25829_v32  ;;  %v25929_v32 = vld [vmem:[%s33193_s0 + $0xaa8] ss:$272 sps:$4 sm:$0xff]  }
 0x2bc   : > { %20829 = vmatpush1.bf16.msra.mxu0 %v25832_v33  ;;  %18990 = vmatprep.subr.bf16.mxu1 %v25843_v34  ;;  %v25930_v33 = vld [vmem:[%s30319_s7 + $0x2a0] ss:$8 sps:$4 sm:$0xff]  }
 0x2bd   : > { %20911 = vmatprep.subr.bf16.mxu0 %v25846_v35  ;;  %v25933_v34 = vld [vmem:[%s33193_s0 + $0xb30] ss:$272 sps:$4 sm:$0xff]  }
 0x2be   : > { %18910 = vmatmul.mubr.bf16.vlgmr.msra.gmra.mrb[0].mxu1 %v25835_v36  ;;  %v25934_v35 = vld [vmem:[%s30319_s7 + $0x13a0] ss:$8 sps:$4 sm:$0xff]   ;;  %v25939_v36 = vld [vmem:[%s30319_s7 + $0x2b4] ss:$8 sps:$4 sm:$0xff]  }
 0x2bf   : > { %20831 = vmatmul.mubr.bf16.vlgmr.msra.gmra.mrb[0].mxu0 %v25838_v37  ;;  %18991 = vmatpush1.bf16.msra.mxu1 %v25841_v38  ;;  %v25942_v37 = vld [vmem:[%s30319_s7 + $0x13b4] ss:$8 sps:$4 sm:$0xff]  }
 0x2c0   : > { %20912 = vmatpush1.bf16.msra.mxu0 %v25844_v39  ;;  %18992 = vmatprep.subr.bf16.mxu1 %v25849_v40  ;;  %v25943_v38 = vld [vmem:[%s33193_s0 + $0xccc] ss:$272 sps:$4 sm:$0xff]   ;;  %v25945_v39 = vld [vmem:[%s33193_s0 + $0xd54] ss:$272 sps:$4 sm:$0xff]   ;;  %v25937_v40 = vld [vmem:[%s30319_s7 + $0x2b0] ss:$8 sps:$4 sm:$0xff]  }
 0x2c1   : > { %20913 = vmatprep.subr.bf16.mxu0 %v25852_v41  ;;  %18919 = vmatprep.mubr.bf16.mxu1 %v25853_v42  ;;  %v25940_v41 = vld [vmem:[%s30319_s7 + $0x13b0] ss:$8 sps:$4 sm:$0xff]   ;;  %v25950_v42 = vld [vmem:[%s30319_s7 + $0x2c4] ss:$8 sps:$4 sm:$0xff]  }
 0x2c2   : > { %20840 = vmatprep.mubr.bf16.mxu0 %v25855_v43  ;;  %v25954_v43 = vld [vmem:[%s30319_s7 + $0x13c4] ss:$8 sps:$4 sm:$0xff]  }
 0x2c3   : > { %18993 = vmatpush1.bf16.msra.mxu1 %v25847_v44  ;;  %v25947_v44 = vld [vmem:[%s33193_s0 + $0xcc8] ss:$272 sps:$4 sm:$0xff]  }
 0x2c4   : > { %20914 = vmatpush1.bf16.msra.mxu0 %v25850_v45  ;;  %18994 = vmatprep.subr.bf16.mxu1 %v25860_v46  ;;  %v25948_v45 = vld [vmem:[%s30319_s7 + $0x2c0] ss:$8 sps:$4 sm:$0xff]  }
 0x2c5   : > { %20915 = vmatprep.subr.bf16.mxu0 %v25864_v47  ;;  %v25951_v46 = vld [vmem:[%s33193_s0 + $0xd50] ss:$272 sps:$4 sm:$0xff]  }
 0x2c6   : > { %18920 = vmatmul.mubr.bf16.gmra.mrb[4].mxu1 %v25857_v48  ;;  %v25952_v47 = vld [vmem:[%s30319_s7 + $0x13c0] ss:$8 sps:$4 sm:$0xff]   ;;  %v25957_v48 = vld [vmem:[%s30319_s7 + $0x2d4] ss:$8 sps:$4 sm:$0xff]  }
 0x2c7   : > { %20841 = vmatmul.mubr.bf16.gmra.mrb[4].mxu0 %v25861_v50  ;;  %18995 = vmatpush1.bf16.msra.mxu1 %v25858_v49  ;;  %v25960_v49 = vld [vmem:[%s30319_s7 + $0x13d4] ss:$8 sps:$4 sm:$0xff]  }
 0x2c8   : > { %20916 = vmatpush1.bf16.msra.mxu0 %v25862_v51  ;;  %18996 = vmatprep.subr.bf16.mxu1 %v25867_v52  ;;  %v25961_v50 = vld [vmem:[%s33193_s0 + $0xeec] ss:$272 sps:$4 sm:$0xff]   ;;  %v25963_v51 = vld [vmem:[%s33193_s0 + $0xf74] ss:$272 sps:$4 sm:$0xff]   ;;  %v25955_v52 = vld [vmem:[%s30319_s7 + $0x2d0] ss:$8 sps:$4 sm:$0xff]  }
 0x2c9   : > { %20917 = vmatprep.subr.bf16.mxu0 %v25870_v53  ;;  %18929 = vmatprep.mubr.bf16.mxu1 %v25871_v54  ;;  %v25958_v53 = vld [vmem:[%s30319_s7 + $0x13d0] ss:$8 sps:$4 sm:$0xff]   ;;  %v25968_v54 = vld [vmem:[%s30319_s7 + $0x2e4] ss:$8 sps:$4 sm:$0xff]  }
 0x2ca   : > { %20850 = vmatprep.mubr.bf16.mxu0 %v25873_v55  ;;  %v25972_v55 = vld [vmem:[%s30319_s7 + $0x13e4] ss:$8 sps:$4 sm:$0xff]  }
 0x2cb   : > { %18997 = vmatpush1.bf16.msra.mxu1 %v25865_v56  ;;  %v25965_v56 = vld [vmem:[%s33193_s0 + $0xee8] ss:$272 sps:$4 sm:$0xff]  }
 0x2cc   : > { %20918 = vmatpush1.bf16.msra.mxu0 %v25868_v57  ;;  %18998 = vmatprep.subr.bf16.mxu1 %v25878_v58  ;;  %v25966_v57 = vld [vmem:[%s30319_s7 + $0x2e0] ss:$8 sps:$4 sm:$0xff]  }
 0x2cd   : > { %20919 = vmatprep.subr.bf16.mxu0 %v25882_v59  ;;  %v25969_v58 = vld [vmem:[%s33193_s0 + $0xf70] ss:$272 sps:$4 sm:$0xff]  }
 0x2ce   : > { %18930 = vmatmul.mubr.bf16.gmra.mrb[8].mxu1 %v25875_v60  ;;  %v25970_v59 = vld [vmem:[%s30319_s7 + $0x13e0] ss:$8 sps:$4 sm:$0xff]   ;;  %v25975_v60 = vld [vmem:[%s30319_s7 + $0x2f4] ss:$8 sps:$4 sm:$0xff]  }
 0x2cf   : > { %20851 = vmatmul.mubr.bf16.gmra.mrb[8].mxu0 %v25879_v62  ;;  %18999 = vmatpush1.bf16.msra.mxu1 %v25876_v61  ;;  %v25978_v61 = vld [vmem:[%s30319_s7 + $0x13f4] ss:$8 sps:$4 sm:$0xff]  }
 0x2d0   : > { %20920 = vmatpush1.bf16.msra.mxu0 %v25880_v63  ;;  %19000 = vmatprep.subr.bf16.mxu1 %v25885_v0  ;;  %v25981_v62 = vld [vmem:[%s33193_s0 + $0x14] ss:$272 sps:$4 sm:$0xff]   ;;  %v25984_v63 = vld [vmem:[%s33193_s0 + $0x9c] ss:$272 sps:$4 sm:$0xff]   ;;  %v25973_v0 = vld [vmem:[%s30319_s7 + $0x2f0] ss:$8 sps:$4 sm:$0xff]  }
 0x2d1   : > { %20921 = vmatprep.subr.bf16.mxu0 %v25888_v1  ;;  %18939 = vmatprep.mubr.bf16.mxu1 %v25889_v2  ;;  %v25976_v1 = vld [vmem:[%s30319_s7 + $0x13f0] ss:$8 sps:$4 sm:$0xff]   ;;  %v25987_v2 = vld [vmem:[%s30319_s7 + $0x304] ss:$8 sps:$4 sm:$0xff]  }
 0x2d2   : > { %20860 = vmatprep.mubr.bf16.mxu0 %v25891_v3  ;;  %v25990_v3 = vld [vmem:[%s30319_s7 + $0x1404] ss:$8 sps:$4 sm:$0xff]  }
 0x2d3   : > { %19001 = vmatpush1.bf16.msra.mxu1 %v25883_v4  ;;  %v25979_v4 = vld [vmem:[%s33193_s0 + $0x10] ss:$272 sps:$4 sm:$0xff]  }
 0x2d4   : > { %20922 = vmatpush1.bf16.msra.mxu0 %v25886_v5  ;;  %19002 = vmatprep.subr.bf16.mxu1 %v25896_v6  ;;  %v25982_v5 = vld [vmem:[%s33193_s0 + $0x98] ss:$272 sps:$4 sm:$0xff]  }
 0x2d5   : > { %20923 = vmatprep.subr.bf16.mxu0 %v25900_v7  ;;  %v25985_v6 = vld [vmem:[%s30319_s7 + $0x300] ss:$8 sps:$4 sm:$0xff]  }
 0x2d6   : > { %18940 = vmatmul.mubr.bf16.gmra.mrb[12].mxu1 %v25893_v8  ;;  %v25988_v7 = vld [vmem:[%s30319_s7 + $0x1400] ss:$8 sps:$4 sm:$0xff]   ;;  %v25993_v8 = vld [vmem:[%s30319_s7 + $0x314] ss:$8 sps:$4 sm:$0xff]  }
 0x2d7   : > { %20861 = vmatmul.mubr.bf16.gmra.mrb[12].mxu0 %v25897_v10  ;;  %19003 = vmatpush1.bf16.msra.mxu1 %v25894_v9  ;;  %v25996_v9 = vld [vmem:[%s30319_s7 + $0x1414] ss:$8 sps:$4 sm:$0xff]  }
 0x2d8   : > { %20924 = vmatpush1.bf16.msra.mxu0 %v25898_v11  ;;  %19004 = vmatprep.subr.bf16.mxu1 %v25903_v12  ;;  %v25997_v10 = vld [vmem:[%s33193_s0 + $0x234] ss:$272 sps:$4 sm:$0xff]   ;;  %v25999_v11 = vld [vmem:[%s33193_s0 + $0x2bc] ss:$272 sps:$4 sm:$0xff]   ;;  %v25991_v12 = vld [vmem:[%s30319_s7 + $0x310] ss:$8 sps:$4 sm:$0xff]  }
 0x2d9   : > { %20925 = vmatprep.subr.bf16.mxu0 %v25906_v13  ;;  %18949 = vmatprep.mubr.bf16.mxu1 %v25907_v14  ;;  %v25994_v13 = vld [vmem:[%s30319_s7 + $0x1410] ss:$8 sps:$4 sm:$0xff]   ;;  %v26004_v14 = vld [vmem:[%s30319_s7 + $0x324] ss:$8 sps:$4 sm:$0xff]  }
 0x2da   : > { %20870 = vmatprep.mubr.bf16.mxu0 %v25909_v15  ;;  %v26008_v15 = vld [vmem:[%s30319_s7 + $0x1424] ss:$8 sps:$4 sm:$0xff]  }
 0x2db   : > { %19005 = vmatpush1.bf16.msra.mxu1 %v25901_v16  ;;  %v26001_v16 = vld [vmem:[%s33193_s0 + $0x230] ss:$272 sps:$4 sm:$0xff]  }
 0x2dc   : > { %20926 = vmatpush1.bf16.msra.mxu0 %v25904_v17  ;;  %19006 = vmatprep.subr.bf16.mxu1 %v25914_v18  ;;  %v26002_v17 = vld [vmem:[%s30319_s7 + $0x320] ss:$8 sps:$4 sm:$0xff]  }
 0x2dd   : > { %20927 = vmatprep.subr.bf16.mxu0 %v25918_v19  ;;  %v26005_v18 = vld [vmem:[%s33193_s0 + $0x2b8] ss:$272 sps:$4 sm:$0xff]  }
 0x2de   : > { %18950 = vmatmul.mubr.bf16.gmra.mrb[16].mxu1 %v25911_v20  ;;  %v26006_v19 = vld [vmem:[%s30319_s7 + $0x1420] ss:$8 sps:$4 sm:$0xff]   ;;  %v26011_v20 = vld [vmem:[%s30319_s7 + $0x334] ss:$8 sps:$4 sm:$0xff]  }
 0x2df   : > { %20871 = vmatmul.mubr.bf16.gmra.mrb[16].mxu0 %v25915_v22  ;;  %19007 = vmatpush1.bf16.msra.mxu1 %v25912_v21  ;;  %v26014_v21 = vld [vmem:[%s30319_s7 + $0x1434] ss:$8 sps:$4 sm:$0xff]  }
 0x2e0   : > { %20928 = vmatpush1.bf16.msra.mxu0 %v25916_v23  ;;  %19008 = vmatprep.subr.bf16.mxu1 %v25921_v24  ;;  %v26015_v22 = vld [vmem:[%s33193_s0 + $0x454] ss:$272 sps:$4 sm:$0xff]   ;;  %v26017_v23 = vld [vmem:[%s33193_s0 + $0x4dc] ss:$272 sps:$4 sm:$0xff]   ;;  %v26009_v24 = vld [vmem:[%s30319_s7 + $0x330] ss:$8 sps:$4 sm:$0xff]  }
 0x2e1   : > { %20929 = vmatprep.subr.bf16.mxu0 %v25924_v25  ;;  %18959 = vmatprep.mubr.bf16.mxu1 %v25925_v26  ;;  %v26012_v25 = vld [vmem:[%s30319_s7 + $0x1430] ss:$8 sps:$4 sm:$0xff]   ;;  %v26022_v26 = vld [vmem:[%s30319_s7 + $0x344] ss:$8 sps:$4 sm:$0xff]  }
 0x2e2   : > { %20880 = vmatprep.mubr.bf16.mxu0 %v25927_v27  ;;  %v26026_v27 = vld [vmem:[%s30319_s7 + $0x1444] ss:$8 sps:$4 sm:$0xff]  }
 0x2e3   : > { %19009 = vmatpush1.bf16.msra.mxu1 %v25919_v28  ;;  %v26019_v28 = vld [vmem:[%s33193_s0 + $0x450] ss:$272 sps:$4 sm:$0xff]  }
 0x2e4   : > { %20930 = vmatpush1.bf16.msra.mxu0 %v25922_v29  ;;  %19010 = vmatprep.subr.bf16.mxu1 %v25932_v30  ;;  %v26020_v29 = vld [vmem:[%s30319_s7 + $0x340] ss:$8 sps:$4 sm:$0xff]  }
 0x2e5   : > { %20931 = vmatprep.subr.bf16.mxu0 %v25936_v31  ;;  %v26023_v30 = vld [vmem:[%s33193_s0 + $0x4d8] ss:$272 sps:$4 sm:$0xff]  }
 0x2e6   : > { %18960 = vmatmul.mubr.bf16.gmra.mrb[20].mxu1 %v25929_v32  ;;  %v26024_v31 = vld [vmem:[%s30319_s7 + $0x1440] ss:$8 sps:$4 sm:$0xff]   ;;  %v26029_v32 = vld [vmem:[%s30319_s7 + $0x354] ss:$8 sps:$4 sm:$0xff]  }
 0x2e7   : > { %20881 = vmatmul.mubr.bf16.gmra.mrb[20].mxu0 %v25933_v34  ;;  %19011 = vmatpush1.bf16.msra.mxu1 %v25930_v33  ;;  %v26032_v33 = vld [vmem:[%s30319_s7 + $0x1454] ss:$8 sps:$4 sm:$0xff]  }
 0x2e8   : > { %20932 = vmatpush1.bf16.msra.mxu0 %v25934_v35  ;;  %19012 = vmatprep.subr.bf16.mxu1 %v25939_v36  ;;  %v26033_v34 = vld [vmem:[%s33193_s0 + $0x674] ss:$272 sps:$4 sm:$0xff]   ;;  %v26035_v35 = vld [vmem:[%s33193_s0 + $0x6fc] ss:$272 sps:$4 sm:$0xff]   ;;  %v26027_v36 = vld [vmem:[%s30319_s7 + $0x350] ss:$8 sps:$4 sm:$0xff]  }
 0x2e9   : > { %20933 = vmatprep.subr.bf16.mxu0 %v25942_v37  ;;  %18969 = vmatprep.mubr.bf16.mxu1 %v25943_v38  ;;  %v26030_v37 = vld [vmem:[%s30319_s7 + $0x1450] ss:$8 sps:$4 sm:$0xff]   ;;  %v26040_v38 = vld [vmem:[%s30319_s7 + $0x364] ss:$8 sps:$4 sm:$0xff]  }
 0x2ea   : > { %20890 = vmatprep.mubr.bf16.mxu0 %v25945_v39  ;;  %v26044_v39 = vld [vmem:[%s30319_s7 + $0x1464] ss:$8 sps:$4 sm:$0xff]  }
 0x2eb   : > { %19013 = vmatpush1.bf16.msra.mxu1 %v25937_v40  ;;  %v26037_v40 = vld [vmem:[%s33193_s0 + $0x670] ss:$272 sps:$4 sm:$0xff]  }
 0x2ec   : > { %20934 = vmatpush1.bf16.msra.mxu0 %v25940_v41  ;;  %19014 = vmatprep.subr.bf16.mxu1 %v25950_v42  ;;  %v26038_v41 = vld [vmem:[%s30319_s7 + $0x360] ss:$8 sps:$4 sm:$0xff]  }
 0x2ed   : > { %20935 = vmatprep.subr.bf16.mxu0 %v25954_v43  ;;  %v26041_v42 = vld [vmem:[%s33193_s0 + $0x6f8] ss:$272 sps:$4 sm:$0xff]  }
 0x2ee   : > { %18970 = vmatmul.mubr.bf16.gmra.mrb[24].mxu1 %v25947_v44  ;;  %v26042_v43 = vld [vmem:[%s30319_s7 + $0x1460] ss:$8 sps:$4 sm:$0xff]   ;;  %v26047_v44 = vld [vmem:[%s30319_s7 + $0x374] ss:$8 sps:$4 sm:$0xff]  }
 0x2ef   : > { %20891 = vmatmul.mubr.bf16.gmra.mrb[24].mxu0 %v25951_v46  ;;  %19015 = vmatpush1.bf16.msra.mxu1 %v25948_v45  ;;  %v26050_v45 = vld [vmem:[%s30319_s7 + $0x1474] ss:$8 sps:$4 sm:$0xff]  }
 0x2f0   : > { %20936 = vmatpush1.bf16.msra.mxu0 %v25952_v47  ;;  %19016 = vmatprep.subr.bf16.mxu1 %v25957_v48  ;;  %v26051_v46 = vld [vmem:[%s33193_s0 + $0x894] ss:$272 sps:$4 sm:$0xff]   ;;  %v26053_v47 = vld [vmem:[%s33193_s0 + $0x91c] ss:$272 sps:$4 sm:$0xff]   ;;  %v26045_v48 = vld [vmem:[%s30319_s7 + $0x370] ss:$8 sps:$4 sm:$0xff]  }
 0x2f1   : > { %20937 = vmatprep.subr.bf16.mxu0 %v25960_v49  ;;  %18979 = vmatprep.mubr.bf16.mxu1 %v25961_v50  ;;  %v26048_v49 = vld [vmem:[%s30319_s7 + $0x1470] ss:$8 sps:$4 sm:$0xff]   ;;  %v26058_v50 = vld [vmem:[%s30319_s7 + $0x384] ss:$8 sps:$4 sm:$0xff]  }
 0x2f2   : > { %20900 = vmatprep.mubr.bf16.mxu0 %v25963_v51  ;;  %v26062_v51 = vld [vmem:[%s30319_s7 + $0x1484] ss:$8 sps:$4 sm:$0xff]  }
 0x2f3   : > { %19017 = vmatpush1.bf16.msra.mxu1 %v25955_v52  ;;  %v26055_v52 = vld [vmem:[%s33193_s0 + $0x890] ss:$272 sps:$4 sm:$0xff]  }
 0x2f4   : > { %20938 = vmatpush1.bf16.msra.mxu0 %v25958_v53  ;;  %19018 = vmatprep.subr.bf16.mxu1 %v25968_v54  ;;  %v26056_v53 = vld [vmem:[%s30319_s7 + $0x380] ss:$8 sps:$4 sm:$0xff]  }
 0x2f5   : > { %20939 = vmatprep.subr.bf16.mxu0 %v25972_v55  ;;  %v26059_v54 = vld [vmem:[%s33193_s0 + $0x918] ss:$272 sps:$4 sm:$0xff]  }
 0x2f6   : > { %18980 = vmatmul.mubr.bf16.gmra.mrb[28].mxu1 %v25965_v56  ;;  %v26060_v55 = vld [vmem:[%s30319_s7 + $0x1480] ss:$8 sps:$4 sm:$0xff]   ;;  %v26065_v56 = vld [vmem:[%s30319_s7 + $0x394] ss:$8 sps:$4 sm:$0xff]  }
 0x2f7   : > { %20901 = vmatmul.mubr.bf16.gmra.mrb[28].mxu0 %v25969_v58  ;;  %19019 = vmatpush1.bf16.msra.mxu1 %v25966_v57  ;;  %v26068_v57 = vld [vmem:[%s30319_s7 + $0x1494] ss:$8 sps:$4 sm:$0xff]  }
 0x2f8   : > { %20940 = vmatpush1.bf16.msra.mxu0 %v25970_v59  ;;  %19020 = vmatprep.subr.bf16.mxu1 %v25975_v60  ;;  %v26069_v58 = vld [vmem:[%s33193_s0 + $0xab4] ss:$272 sps:$4 sm:$0xff]   ;;  %v26071_v59 = vld [vmem:[%s33193_s0 + $0xb3c] ss:$272 sps:$4 sm:$0xff]   ;;  %v26063_v60 = vld [vmem:[%s30319_s7 + $0x390] ss:$8 sps:$4 sm:$0xff]  }
 0x2f9   : > { %20941 = vmatprep.subr.bf16.mxu0 %v25978_v61  ;;  %19022 = vmatprep.mubr.bf16.mxu1 %v25981_v62  ;;  %v26066_v61 = vld [vmem:[%s30319_s7 + $0x1490] ss:$8 sps:$4 sm:$0xff]   ;;  %v26076_v62 = vld [vmem:[%s30319_s7 + $0x3a4] ss:$8 sps:$4 sm:$0xff]  }
 0x2fa   : > { %20943 = vmatprep.mubr.bf16.mxu0 %v25984_v63  ;;  %v26080_v63 = vld [vmem:[%s30319_s7 + $0x14a4] ss:$8 sps:$4 sm:$0xff]  }
 0x2fb   : > { %19021 = vmatpush1.bf16.msra.mxu1 %v25973_v0  ;;  %v26073_v0 = vld [vmem:[%s33193_s0 + $0xab0] ss:$272 sps:$4 sm:$0xff]  }
 0x2fc   : > { %20942 = vmatpush1.bf16.msra.mxu0 %v25976_v1  ;;  %19103 = vmatprep.subr.bf16.mxu1 %v25987_v2  ;;  %v26074_v1 = vld [vmem:[%s30319_s7 + $0x3a0] ss:$8 sps:$4 sm:$0xff]  }
 0x2fd   : > { %21024 = vmatprep.subr.bf16.mxu0 %v25990_v3  ;;  %v26077_v2 = vld [vmem:[%s33193_s0 + $0xb38] ss:$272 sps:$4 sm:$0xff]  }
 0x2fe   : > { %19023 = vmatmul.mubr.bf16.vlgmr.msra.gmra.mrb[0].mxu1 %v25979_v4  ;;  %v26078_v3 = vld [vmem:[%s30319_s7 + $0x14a0] ss:$8 sps:$4 sm:$0xff]   ;;  %v26083_v4 = vld [vmem:[%s30319_s7 + $0x3b4] ss:$8 sps:$4 sm:$0xff]  }
 0x2ff   : > { %20944 = vmatmul.mubr.bf16.vlgmr.msra.gmra.mrb[0].mxu0 %v25982_v5  ;;  %19104 = vmatpush1.bf16.msra.mxu1 %v25985_v6  ;;  %v26086_v5 = vld [vmem:[%s30319_s7 + $0x14b4] ss:$8 sps:$4 sm:$0xff]  }
 0x300   : > { %21025 = vmatpush1.bf16.msra.mxu0 %v25988_v7  ;;  %19105 = vmatprep.subr.bf16.mxu1 %v25993_v8  ;;  %v26087_v6 = vld [vmem:[%s33193_s0 + $0xcd4] ss:$272 sps:$4 sm:$0xff]   ;;  %v26089_v7 = vld [vmem:[%s33193_s0 + $0xd5c] ss:$272 sps:$4 sm:$0xff]   ;;  %v26081_v8 = vld [vmem:[%s30319_s7 + $0x3b0] ss:$8 sps:$4 sm:$0xff]  }
 0x301   : > { %21026 = vmatprep.subr.bf16.mxu0 %v25996_v9  ;;  %19032 = vmatprep.mubr.bf16.mxu1 %v25997_v10  ;;  %v26084_v9 = vld [vmem:[%s30319_s7 + $0x14b0] ss:$8 sps:$4 sm:$0xff]   ;;  %v26094_v10 = vld [vmem:[%s30319_s7 + $0x3c4] ss:$8 sps:$4 sm:$0xff]  }
 0x302   : > { %20953 = vmatprep.mubr.bf16.mxu0 %v25999_v11  ;;  %v26098_v11 = vld [vmem:[%s30319_s7 + $0x14c4] ss:$8 sps:$4 sm:$0xff]  }
 0x303   : > { %19106 = vmatpush1.bf16.msra.mxu1 %v25991_v12  ;;  %v26091_v12 = vld [vmem:[%s33193_s0 + $0xcd0] ss:$272 sps:$4 sm:$0xff]  }
 0x304   : > { %21027 = vmatpush1.bf16.msra.mxu0 %v25994_v13  ;;  %19107 = vmatprep.subr.bf16.mxu1 %v26004_v14  ;;  %v26092_v13 = vld [vmem:[%s30319_s7 + $0x3c0] ss:$8 sps:$4 sm:$0xff]  }
 0x305   : > { %21028 = vmatprep.subr.bf16.mxu0 %v26008_v15  ;;  %v26095_v14 = vld [vmem:[%s33193_s0 + $0xd58] ss:$272 sps:$4 sm:$0xff]  }
 0x306   : > { %19033 = vmatmul.mubr.bf16.gmra.mrb[4].mxu1 %v26001_v16  ;;  %v26096_v15 = vld [vmem:[%s30319_s7 + $0x14c0] ss:$8 sps:$4 sm:$0xff]   ;;  %v26101_v16 = vld [vmem:[%s30319_s7 + $0x3d4] ss:$8 sps:$4 sm:$0xff]  }
 0x307   : > { %20954 = vmatmul.mubr.bf16.gmra.mrb[4].mxu0 %v26005_v18  ;;  %19108 = vmatpush1.bf16.msra.mxu1 %v26002_v17  ;;  %v26104_v17 = vld [vmem:[%s30319_s7 + $0x14d4] ss:$8 sps:$4 sm:$0xff]  }
 0x308   : > { %21029 = vmatpush1.bf16.msra.mxu0 %v26006_v19  ;;  %19109 = vmatprep.subr.bf16.mxu1 %v26011_v20  ;;  %v26105_v18 = vld [vmem:[%s33193_s0 + $0xef4] ss:$272 sps:$4 sm:$0xff]   ;;  %v26107_v19 = vld [vmem:[%s33193_s0 + $0xf7c] ss:$272 sps:$4 sm:$0xff]   ;;  %v26099_v20 = vld [vmem:[%s30319_s7 + $0x3d0] ss:$8 sps:$4 sm:$0xff]  }
 0x309   : > { %21030 = vmatprep.subr.bf16.mxu0 %v26014_v21  ;;  %19042 = vmatprep.mubr.bf16.mxu1 %v26015_v22  ;;  %v26102_v21 = vld [vmem:[%s30319_s7 + $0x14d0] ss:$8 sps:$4 sm:$0xff]   ;;  %v26112_v22 = vld [vmem:[%s30319_s7 + $0x3e4] ss:$8 sps:$4 sm:$0xff]  }
 0x30a   : > { %20963 = vmatprep.mubr.bf16.mxu0 %v26017_v23  ;;  %v26116_v23 = vld [vmem:[%s30319_s7 + $0x14e4] ss:$8 sps:$4 sm:$0xff]  }
 0x30b   : > { %19110 = vmatpush1.bf16.msra.mxu1 %v26009_v24  ;;  %v26109_v24 = vld [vmem:[%s33193_s0 + $0xef0] ss:$272 sps:$4 sm:$0xff]  }
 0x30c   : > { %21031 = vmatpush1.bf16.msra.mxu0 %v26012_v25  ;;  %19111 = vmatprep.subr.bf16.mxu1 %v26022_v26  ;;  %v26110_v25 = vld [vmem:[%s30319_s7 + $0x3e0] ss:$8 sps:$4 sm:$0xff]  }
 0x30d   : > { %21032 = vmatprep.subr.bf16.mxu0 %v26026_v27  ;;  %v26113_v26 = vld [vmem:[%s33193_s0 + $0xf78] ss:$272 sps:$4 sm:$0xff]  }
 0x30e   : > { %19043 = vmatmul.mubr.bf16.gmra.mrb[8].mxu1 %v26019_v28  ;;  %v26114_v27 = vld [vmem:[%s30319_s7 + $0x14e0] ss:$8 sps:$4 sm:$0xff]   ;;  %v26119_v28 = vld [vmem:[%s30319_s7 + $0x3f4] ss:$8 sps:$4 sm:$0xff]  }
 0x30f   : > { %20964 = vmatmul.mubr.bf16.gmra.mrb[8].mxu0 %v26023_v30  ;;  %19112 = vmatpush1.bf16.msra.mxu1 %v26020_v29  ;;  %v26122_v29 = vld [vmem:[%s30319_s7 + $0x14f4] ss:$8 sps:$4 sm:$0xff]  }
 0x310   : > { %21033 = vmatpush1.bf16.msra.mxu0 %v26024_v31  ;;  %19113 = vmatprep.subr.bf16.mxu1 %v26029_v32  ;;  %v26125_v30 = vld [vmem:[%s33193_s0 + $0x1c] ss:$272 sps:$4 sm:$0xff]   ;;  %v26128_v31 = vld [vmem:[%s33193_s0 + $0xa4] ss:$272 sps:$4 sm:$0xff]   ;;  %v26117_v32 = vld [vmem:[%s30319_s7 + $0x3f0] ss:$8 sps:$4 sm:$0xff]  }
 0x311   : > { %21034 = vmatprep.subr.bf16.mxu0 %v26032_v33  ;;  %19052 = vmatprep.mubr.bf16.mxu1 %v26033_v34  ;;  %v26120_v33 = vld [vmem:[%s30319_s7 + $0x14f0] ss:$8 sps:$4 sm:$0xff]   ;;  %v26131_v34 = vld [vmem:[%s30319_s7 + $0x404] ss:$8 sps:$4 sm:$0xff]  }
 0x312   : > { %20973 = vmatprep.mubr.bf16.mxu0 %v26035_v35  ;;  %v26134_v35 = vld [vmem:[%s30319_s7 + $0x1504] ss:$8 sps:$4 sm:$0xff]  }
 0x313   : > { %19114 = vmatpush1.bf16.msra.mxu1 %v26027_v36  ;;  %v26123_v36 = vld [vmem:[%s33193_s0 + $0x18] ss:$272 sps:$4 sm:$0xff]  }
 0x314   : > { %21035 = vmatpush1.bf16.msra.mxu0 %v26030_v37  ;;  %19115 = vmatprep.subr.bf16.mxu1 %v26040_v38  ;;  %v26126_v37 = vld [vmem:[%s33193_s0 + $0xa0] ss:$272 sps:$4 sm:$0xff]  }
 0x315   : > { %21036 = vmatprep.subr.bf16.mxu0 %v26044_v39  ;;  %v26129_v38 = vld [vmem:[%s30319_s7 + $0x400] ss:$8 sps:$4 sm:$0xff]  }
 0x316   : > { %19053 = vmatmul.mubr.bf16.gmra.mrb[12].mxu1 %v26037_v40  ;;  %v26132_v39 = vld [vmem:[%s30319_s7 + $0x1500] ss:$8 sps:$4 sm:$0xff]   ;;  %v26137_v40 = vld [vmem:[%s30319_s7 + $0x414] ss:$8 sps:$4 sm:$0xff]  }
 0x317   : > { %20974 = vmatmul.mubr.bf16.gmra.mrb[12].mxu0 %v26041_v42  ;;  %19116 = vmatpush1.bf16.msra.mxu1 %v26038_v41  ;;  %v26140_v41 = vld [vmem:[%s30319_s7 + $0x1514] ss:$8 sps:$4 sm:$0xff]  }
 0x318   : > { %21037 = vmatpush1.bf16.msra.mxu0 %v26042_v43  ;;  %19117 = vmatprep.subr.bf16.mxu1 %v26047_v44  ;;  %v26141_v42 = vld [vmem:[%s33193_s0 + $0x23c] ss:$272 sps:$4 sm:$0xff]   ;;  %v26143_v43 = vld [vmem:[%s33193_s0 + $0x2c4] ss:$272 sps:$4 sm:$0xff]   ;;  %v26135_v44 = vld [vmem:[%s30319_s7 + $0x410] ss:$8 sps:$4 sm:$0xff]  }
 0x319   : > { %21038 = vmatprep.subr.bf16.mxu0 %v26050_v45  ;;  %19062 = vmatprep.mubr.bf16.mxu1 %v26051_v46  ;;  %v26138_v45 = vld [vmem:[%s30319_s7 + $0x1510] ss:$8 sps:$4 sm:$0xff]   ;;  %v26148_v46 = vld [vmem:[%s30319_s7 + $0x424] ss:$8 sps:$4 sm:$0xff]  }
 0x31a   : > { %20983 = vmatprep.mubr.bf16.mxu0 %v26053_v47  ;;  %v26152_v47 = vld [vmem:[%s30319_s7 + $0x1524] ss:$8 sps:$4 sm:$0xff]  }
 0x31b   : > { %19118 = vmatpush1.bf16.msra.mxu1 %v26045_v48  ;;  %v26145_v48 = vld [vmem:[%s33193_s0 + $0x238] ss:$272 sps:$4 sm:$0xff]  }
 0x31c   : > { %21039 = vmatpush1.bf16.msra.mxu0 %v26048_v49  ;;  %19119 = vmatprep.subr.bf16.mxu1 %v26058_v50  ;;  %v26146_v49 = vld [vmem:[%s30319_s7 + $0x420] ss:$8 sps:$4 sm:$0xff]  }
 0x31d   : > { %21040 = vmatprep.subr.bf16.mxu0 %v26062_v51  ;;  %v26149_v50 = vld [vmem:[%s33193_s0 + $0x2c0] ss:$272 sps:$4 sm:$0xff]  }
 0x31e   : > { %19063 = vmatmul.mubr.bf16.gmra.mrb[16].mxu1 %v26055_v52  ;;  %v26150_v51 = vld [vmem:[%s30319_s7 + $0x1520] ss:$8 sps:$4 sm:$0xff]   ;;  %v26155_v52 = vld [vmem:[%s30319_s7 + $0x434] ss:$8 sps:$4 sm:$0xff]  }
 0x31f   : > { %20984 = vmatmul.mubr.bf16.gmra.mrb[16].mxu0 %v26059_v54  ;;  %19120 = vmatpush1.bf16.msra.mxu1 %v26056_v53  ;;  %v26158_v53 = vld [vmem:[%s30319_s7 + $0x1534] ss:$8 sps:$4 sm:$0xff]  }
 0x320   : > { %21041 = vmatpush1.bf16.msra.mxu0 %v26060_v55  ;;  %19121 = vmatprep.subr.bf16.mxu1 %v26065_v56  ;;  %v26159_v54 = vld [vmem:[%s33193_s0 + $0x45c] ss:$272 sps:$4 sm:$0xff]   ;;  %v26161_v55 = vld [vmem:[%s33193_s0 + $0x4e4] ss:$272 sps:$4 sm:$0xff]   ;;  %v26153_v56 = vld [vmem:[%s30319_s7 + $0x430] ss:$8 sps:$4 sm:$0xff]  }
 0x321   : > { %21042 = vmatprep.subr.bf16.mxu0 %v26068_v57  ;;  %19072 = vmatprep.mubr.bf16.mxu1 %v26069_v58  ;;  %v26156_v57 = vld [vmem:[%s30319_s7 + $0x1530] ss:$8 sps:$4 sm:$0xff]   ;;  %v26166_v58 = vld [vmem:[%s30319_s7 + $0x444] ss:$8 sps:$4 sm:$0xff]  }
 0x322   : > { %20993 = vmatprep.mubr.bf16.mxu0 %v26071_v59  ;;  %v26170_v59 = vld [vmem:[%s30319_s7 + $0x1544] ss:$8 sps:$4 sm:$0xff]  }
 0x323   : > { %19122 = vmatpush1.bf16.msra.mxu1 %v26063_v60  ;;  %v26163_v60 = vld [vmem:[%s33193_s0 + $0x458] ss:$272 sps:$4 sm:$0xff]  }
 0x324   : > { %21043 = vmatpush1.bf16.msra.mxu0 %v26066_v61  ;;  %19123 = vmatprep.subr.bf16.mxu1 %v26076_v62  ;;  %v26164_v61 = vld [vmem:[%s30319_s7 + $0x440] ss:$8 sps:$4 sm:$0xff]  }
 0x325   : > { %21044 = vmatprep.subr.bf16.mxu0 %v26080_v63  ;;  %v26167_v62 = vld [vmem:[%s33193_s0 + $0x4e0] ss:$272 sps:$4 sm:$0xff]  }
 0x326   : > { %19073 = vmatmul.mubr.bf16.gmra.mrb[20].mxu1 %v26073_v0  ;;  %v26168_v63 = vld [vmem:[%s30319_s7 + $0x1540] ss:$8 sps:$4 sm:$0xff]   ;;  %v26173_v0 = vld [vmem:[%s30319_s7 + $0x454] ss:$8 sps:$4 sm:$0xff]  }
 0x327   : > { %20994 = vmatmul.mubr.bf16.gmra.mrb[20].mxu0 %v26077_v2  ;;  %19124 = vmatpush1.bf16.msra.mxu1 %v26074_v1  ;;  %v26176_v1 = vld [vmem:[%s30319_s7 + $0x1554] ss:$8 sps:$4 sm:$0xff]  }
 0x328   : > { %21045 = vmatpush1.bf16.msra.mxu0 %v26078_v3  ;;  %19125 = vmatprep.subr.bf16.mxu1 %v26083_v4  ;;  %v26177_v2 = vld [vmem:[%s33193_s0 + $0x67c] ss:$272 sps:$4 sm:$0xff]   ;;  %v26179_v3 = vld [vmem:[%s33193_s0 + $0x704] ss:$272 sps:$4 sm:$0xff]   ;;  %v26171_v4 = vld [vmem:[%s30319_s7 + $0x450] ss:$8 sps:$4 sm:$0xff]  }
 0x329   : > { %21046 = vmatprep.subr.bf16.mxu0 %v26086_v5  ;;  %19082 = vmatprep.mubr.bf16.mxu1 %v26087_v6  ;;  %v26174_v5 = vld [vmem:[%s30319_s7 + $0x1550] ss:$8 sps:$4 sm:$0xff]   ;;  %v26184_v6 = vld [vmem:[%s30319_s7 + $0x464] ss:$8 sps:$4 sm:$0xff]  }
 0x32a   : > { %21003 = vmatprep.mubr.bf16.mxu0 %v26089_v7  ;;  %v26188_v7 = vld [vmem:[%s30319_s7 + $0x1564] ss:$8 sps:$4 sm:$0xff]  }
 0x32b   : > { %19126 = vmatpush1.bf16.msra.mxu1 %v26081_v8  ;;  %v26181_v8 = vld [vmem:[%s33193_s0 + $0x678] ss:$272 sps:$4 sm:$0xff]  }
 0x32c   : > { %21047 = vmatpush1.bf16.msra.mxu0 %v26084_v9  ;;  %19127 = vmatprep.subr.bf16.mxu1 %v26094_v10  ;;  %v26182_v9 = vld [vmem:[%s30319_s7 + $0x460] ss:$8 sps:$4 sm:$0xff]  }
 0x32d   : > { %21048 = vmatprep.subr.bf16.mxu0 %v26098_v11  ;;  %v26185_v10 = vld [vmem:[%s33193_s0 + $0x700] ss:$272 sps:$4 sm:$0xff]  }
 0x32e   : > { %19083 = vmatmul.mubr.bf16.gmra.mrb[24].mxu1 %v26091_v12  ;;  %v26186_v11 = vld [vmem:[%s30319_s7 + $0x1560] ss:$8 sps:$4 sm:$0xff]   ;;  %v26191_v12 = vld [vmem:[%s30319_s7 + $0x474] ss:$8 sps:$4 sm:$0xff]  }
 0x32f   : > { %21004 = vmatmul.mubr.bf16.gmra.mrb[24].mxu0 %v26095_v14  ;;  %19128 = vmatpush1.bf16.msra.mxu1 %v26092_v13  ;;  %v26194_v13 = vld [vmem:[%s30319_s7 + $0x1574] ss:$8 sps:$4 sm:$0xff]  }
 0x330   : > { %21049 = vmatpush1.bf16.msra.mxu0 %v26096_v15  ;;  %19129 = vmatprep.subr.bf16.mxu1 %v26101_v16  ;;  %v26195_v14 = vld [vmem:[%s33193_s0 + $0x89c] ss:$272 sps:$4 sm:$0xff]   ;;  %v26197_v15 = vld [vmem:[%s33193_s0 + $0x924] ss:$272 sps:$4 sm:$0xff]   ;;  %v26189_v16 = vld [vmem:[%s30319_s7 + $0x470] ss:$8 sps:$4 sm:$0xff]  }
 0x331   : > { %21050 = vmatprep.subr.bf16.mxu0 %v26104_v17  ;;  %19092 = vmatprep.mubr.bf16.mxu1 %v26105_v18  ;;  %v26192_v17 = vld [vmem:[%s30319_s7 + $0x1570] ss:$8 sps:$4 sm:$0xff]   ;;  %v26202_v18 = vld [vmem:[%s30319_s7 + $0x484] ss:$8 sps:$4 sm:$0xff]  }
 0x332   : > { %21013 = vmatprep.mubr.bf16.mxu0 %v26107_v19  ;;  %v26206_v19 = vld [vmem:[%s30319_s7 + $0x1584] ss:$8 sps:$4 sm:$0xff]  }
 0x333   : > { %19130 = vmatpush1.bf16.msra.mxu1 %v26099_v20  ;;  %v26199_v20 = vld [vmem:[%s33193_s0 + $0x898] ss:$272 sps:$4 sm:$0xff]  }
 0x334   : > { %21051 = vmatpush1.bf16.msra.mxu0 %v26102_v21  ;;  %19131 = vmatprep.subr.bf16.mxu1 %v26112_v22  ;;  %v26200_v21 = vld [vmem:[%s30319_s7 + $0x480] ss:$8 sps:$4 sm:$0xff]  }
 0x335   : > { %21052 = vmatprep.subr.bf16.mxu0 %v26116_v23  ;;  %v26203_v22 = vld [vmem:[%s33193_s0 + $0x920] ss:$272 sps:$4 sm:$0xff]  }
 0x336   : > { %19093 = vmatmul.mubr.bf16.gmra.mrb[28].mxu1 %v26109_v24  ;;  %v26204_v23 = vld [vmem:[%s30319_s7 + $0x1580] ss:$8 sps:$4 sm:$0xff]   ;;  %v26209_v24 = vld [vmem:[%s30319_s7 + $0x494] ss:$8 sps:$4 sm:$0xff]  }
 0x337   : > { %21014 = vmatmul.mubr.bf16.gmra.mrb[28].mxu0 %v26113_v26  ;;  %19132 = vmatpush1.bf16.msra.mxu1 %v26110_v25  ;;  %v26212_v25 = vld [vmem:[%s30319_s7 + $0x1594] ss:$8 sps:$4 sm:$0xff]  }
 0x338   : > { %21053 = vmatpush1.bf16.msra.mxu0 %v26114_v27  ;;  %19133 = vmatprep.subr.bf16.mxu1 %v26119_v28  ;;  %v26213_v26 = vld [vmem:[%s33193_s0 + $0xabc] ss:$272 sps:$4 sm:$0xff]   ;;  %v26215_v27 = vld [vmem:[%s33193_s0 + $0xb44] ss:$272 sps:$4 sm:$0xff]   ;;  %v26207_v28 = vld [vmem:[%s30319_s7 + $0x490] ss:$8 sps:$4 sm:$0xff]  }
 0x339   : > { %21054 = vmatprep.subr.bf16.mxu0 %v26122_v29  ;;  %19135 = vmatprep.mubr.bf16.mxu1 %v26125_v30  ;;  %v26210_v29 = vld [vmem:[%s30319_s7 + $0x1590] ss:$8 sps:$4 sm:$0xff]   ;;  %v26220_v30 = vld [vmem:[%s30319_s7 + $0x4a4] ss:$8 sps:$4 sm:$0xff]  }
 0x33a   : > { %21056 = vmatprep.mubr.bf16.mxu0 %v26128_v31  ;;  %v26224_v31 = vld [vmem:[%s30319_s7 + $0x15a4] ss:$8 sps:$4 sm:$0xff]  }
 0x33b   : > { %19134 = vmatpush1.bf16.msra.mxu1 %v26117_v32  ;;  %v26217_v32 = vld [vmem:[%s33193_s0 + $0xab8] ss:$272 sps:$4 sm:$0xff]  }
 0x33c   : > { %21055 = vmatpush1.bf16.msra.mxu0 %v26120_v33  ;;  %19216 = vmatprep.subr.bf16.mxu1 %v26131_v34  ;;  %v26218_v33 = vld [vmem:[%s30319_s7 + $0x4a0] ss:$8 sps:$4 sm:$0xff]  }
 0x33d   : > { %21137 = vmatprep.subr.bf16.mxu0 %v26134_v35  ;;  %v26221_v34 = vld [vmem:[%s33193_s0 + $0xb40] ss:$272 sps:$4 sm:$0xff]  }
 0x33e   : > { %19136 = vmatmul.mubr.bf16.vlgmr.msra.gmra.mrb[0].mxu1 %v26123_v36  ;;  %v26222_v35 = vld [vmem:[%s30319_s7 + $0x15a0] ss:$8 sps:$4 sm:$0xff]   ;;  %v26227_v36 = vld [vmem:[%s30319_s7 + $0x4b4] ss:$8 sps:$4 sm:$0xff]  }
 0x33f   : > { %21057 = vmatmul.mubr.bf16.vlgmr.msra.gmra.mrb[0].mxu0 %v26126_v37  ;;  %19217 = vmatpush1.bf16.msra.mxu1 %v26129_v38  ;;  %v26230_v37 = vld [vmem:[%s30319_s7 + $0x15b4] ss:$8 sps:$4 sm:$0xff]  }
 0x340   : > { %21138 = vmatpush1.bf16.msra.mxu0 %v26132_v39  ;;  %19218 = vmatprep.subr.bf16.mxu1 %v26137_v40  ;;  %v26231_v38 = vld [vmem:[%s33193_s0 + $0xcdc] ss:$272 sps:$4 sm:$0xff]   ;;  %v26233_v39 = vld [vmem:[%s33193_s0 + $0xd64] ss:$272 sps:$4 sm:$0xff]   ;;  %v26225_v40 = vld [vmem:[%s30319_s7 + $0x4b0] ss:$8 sps:$4 sm:$0xff]  }
 0x341   : > { %21139 = vmatprep.subr.bf16.mxu0 %v26140_v41  ;;  %19145 = vmatprep.mubr.bf16.mxu1 %v26141_v42  ;;  %v26228_v41 = vld [vmem:[%s30319_s7 + $0x15b0] ss:$8 sps:$4 sm:$0xff]   ;;  %v26238_v42 = vld [vmem:[%s30319_s7 + $0x4c4] ss:$8 sps:$4 sm:$0xff]  }
 0x342   : > { %21066 = vmatprep.mubr.bf16.mxu0 %v26143_v43  ;;  %v26242_v43 = vld [vmem:[%s30319_s7 + $0x15c4] ss:$8 sps:$4 sm:$0xff]  }
 0x343   : > { %19219 = vmatpush1.bf16.msra.mxu1 %v26135_v44  ;;  %v26235_v44 = vld [vmem:[%s33193_s0 + $0xcd8] ss:$272 sps:$4 sm:$0xff]  }
 0x344   : > { %21140 = vmatpush1.bf16.msra.mxu0 %v26138_v45  ;;  %19220 = vmatprep.subr.bf16.mxu1 %v26148_v46  ;;  %v26236_v45 = vld [vmem:[%s30319_s7 + $0x4c0] ss:$8 sps:$4 sm:$0xff]  }
 0x345   : > { %21141 = vmatprep.subr.bf16.mxu0 %v26152_v47  ;;  %v26239_v46 = vld [vmem:[%s33193_s0 + $0xd60] ss:$272 sps:$4 sm:$0xff]  }
 0x346   : > { %19146 = vmatmul.mubr.bf16.gmra.mrb[4].mxu1 %v26145_v48  ;;  %v26240_v47 = vld [vmem:[%s30319_s7 + $0x15c0] ss:$8 sps:$4 sm:$0xff]   ;;  %v26245_v48 = vld [vmem:[%s30319_s7 + $0x4d4] ss:$8 sps:$4 sm:$0xff]  }
 0x347   : > { %21067 = vmatmul.mubr.bf16.gmra.mrb[4].mxu0 %v26149_v50  ;;  %19221 = vmatpush1.bf16.msra.mxu1 %v26146_v49  ;;  %v26248_v49 = vld [vmem:[%s30319_s7 + $0x15d4] ss:$8 sps:$4 sm:$0xff]  }
 0x348   : > { %21142 = vmatpush1.bf16.msra.mxu0 %v26150_v51  ;;  %19222 = vmatprep.subr.bf16.mxu1 %v26155_v52  ;;  %v26249_v50 = vld [vmem:[%s33193_s0 + $0xefc] ss:$272 sps:$4 sm:$0xff]   ;;  %v26251_v51 = vld [vmem:[%s33193_s0 + $0xf84] ss:$272 sps:$4 sm:$0xff]   ;;  %v26243_v52 = vld [vmem:[%s30319_s7 + $0x4d0] ss:$8 sps:$4 sm:$0xff]  }
 0x349   : > { %21143 = vmatprep.subr.bf16.mxu0 %v26158_v53  ;;  %19155 = vmatprep.mubr.bf16.mxu1 %v26159_v54  ;;  %v26246_v53 = vld [vmem:[%s30319_s7 + $0x15d0] ss:$8 sps:$4 sm:$0xff]   ;;  %v26256_v54 = vld [vmem:[%s30319_s7 + $0x4e4] ss:$8 sps:$4 sm:$0xff]  }
 0x34a   : > { %21076 = vmatprep.mubr.bf16.mxu0 %v26161_v55  ;;  %v26260_v55 = vld [vmem:[%s30319_s7 + $0x15e4] ss:$8 sps:$4 sm:$0xff]  }
 0x34b   : > { %19223 = vmatpush1.bf16.msra.mxu1 %v26153_v56  ;;  %v26253_v56 = vld [vmem:[%s33193_s0 + $0xef8] ss:$272 sps:$4 sm:$0xff]  }
 0x34c   : > { %21144 = vmatpush1.bf16.msra.mxu0 %v26156_v57  ;;  %19224 = vmatprep.subr.bf16.mxu1 %v26166_v58  ;;  %v26254_v57 = vld [vmem:[%s30319_s7 + $0x4e0] ss:$8 sps:$4 sm:$0xff]  }
 0x34d   : > { %21145 = vmatprep.subr.bf16.mxu0 %v26170_v59  ;;  %v26257_v58 = vld [vmem:[%s33193_s0 + $0xf80] ss:$272 sps:$4 sm:$0xff]  }
 0x34e   : > { %19156 = vmatmul.mubr.bf16.gmra.mrb[8].mxu1 %v26163_v60  ;;  %v26258_v59 = vld [vmem:[%s30319_s7 + $0x15e0] ss:$8 sps:$4 sm:$0xff]   ;;  %v26263_v60 = vld [vmem:[%s30319_s7 + $0x4f4] ss:$8 sps:$4 sm:$0xff]  }
 0x34f   : > { %21077 = vmatmul.mubr.bf16.gmra.mrb[8].mxu0 %v26167_v62  ;;  %19225 = vmatpush1.bf16.msra.mxu1 %v26164_v61  ;;  %v26266_v61 = vld [vmem:[%s30319_s7 + $0x15f4] ss:$8 sps:$4 sm:$0xff]  }
 0x350   : > { %21146 = vmatpush1.bf16.msra.mxu0 %v26168_v63  ;;  %19226 = vmatprep.subr.bf16.mxu1 %v26173_v0  ;;  %v26269_v62 = vld [vmem:[%s33193_s0 + $0x24] ss:$272 sps:$4 sm:$0xff]   ;;  %v26272_v63 = vld [vmem:[%s33193_s0 + $0xac] ss:$272 sps:$4 sm:$0xff]   ;;  %v26261_v0 = vld [vmem:[%s30319_s7 + $0x4f0] ss:$8 sps:$4 sm:$0xff]  }
 0x351   : > { %21147 = vmatprep.subr.bf16.mxu0 %v26176_v1  ;;  %19165 = vmatprep.mubr.bf16.mxu1 %v26177_v2  ;;  %v26264_v1 = vld [vmem:[%s30319_s7 + $0x15f0] ss:$8 sps:$4 sm:$0xff]   ;;  %v26275_v2 = vld [vmem:[%s30319_s7 + $0x504] ss:$8 sps:$4 sm:$0xff]  }
 0x352   : > { %21086 = vmatprep.mubr.bf16.mxu0 %v26179_v3  ;;  %v26278_v3 = vld [vmem:[%s30319_s7 + $0x1604] ss:$8 sps:$4 sm:$0xff]  }
 0x353   : > { %19227 = vmatpush1.bf16.msra.mxu1 %v26171_v4  ;;  %v26267_v4 = vld [vmem:[%s33193_s0 + $0x20] ss:$272 sps:$4 sm:$0xff]  }
 0x354   : > { %21148 = vmatpush1.bf16.msra.mxu0 %v26174_v5  ;;  %19228 = vmatprep.subr.bf16.mxu1 %v26184_v6  ;;  %v26270_v5 = vld [vmem:[%s33193_s0 + $0xa8] ss:$272 sps:$4 sm:$0xff]  }
 0x355   : > { %21149 = vmatprep.subr.bf16.mxu0 %v26188_v7  ;;  %v26273_v6 = vld [vmem:[%s30319_s7 + $0x500] ss:$8 sps:$4 sm:$0xff]  }
 0x356   : > { %19166 = vmatmul.mubr.bf16.gmra.mrb[12].mxu1 %v26181_v8  ;;  %v26276_v7 = vld [vmem:[%s30319_s7 + $0x1600] ss:$8 sps:$4 sm:$0xff]   ;;  %v26281_v8 = vld [vmem:[%s30319_s7 + $0x514] ss:$8 sps:$4 sm:$0xff]  }
 0x357   : > { %21087 = vmatmul.mubr.bf16.gmra.mrb[12].mxu0 %v26185_v10  ;;  %19229 = vmatpush1.bf16.msra.mxu1 %v26182_v9  ;;  %v26284_v9 = vld [vmem:[%s30319_s7 + $0x1614] ss:$8 sps:$4 sm:$0xff]  }
 0x358   : > { %21150 = vmatpush1.bf16.msra.mxu0 %v26186_v11  ;;  %19230 = vmatprep.subr.bf16.mxu1 %v26191_v12  ;;  %v26285_v10 = vld [vmem:[%s33193_s0 + $0x244] ss:$272 sps:$4 sm:$0xff]   ;;  %v26287_v11 = vld [vmem:[%s33193_s0 + $0x2cc] ss:$272 sps:$4 sm:$0xff]   ;;  %v26279_v12 = vld [vmem:[%s30319_s7 + $0x510] ss:$8 sps:$4 sm:$0xff]  }
 0x359   : > { %21151 = vmatprep.subr.bf16.mxu0 %v26194_v13  ;;  %19175 = vmatprep.mubr.bf16.mxu1 %v26195_v14  ;;  %v26282_v13 = vld [vmem:[%s30319_s7 + $0x1610] ss:$8 sps:$4 sm:$0xff]   ;;  %v26292_v14 = vld [vmem:[%s30319_s7 + $0x524] ss:$8 sps:$4 sm:$0xff]  }
 0x35a   : > { %21096 = vmatprep.mubr.bf16.mxu0 %v26197_v15  ;;  %v26296_v15 = vld [vmem:[%s30319_s7 + $0x1624] ss:$8 sps:$4 sm:$0xff]  }
 0x35b   : > { %19231 = vmatpush1.bf16.msra.mxu1 %v26189_v16  ;;  %v26289_v16 = vld [vmem:[%s33193_s0 + $0x240] ss:$272 sps:$4 sm:$0xff]  }
 0x35c   : > { %21152 = vmatpush1.bf16.msra.mxu0 %v26192_v17  ;;  %19232 = vmatprep.subr.bf16.mxu1 %v26202_v18  ;;  %v26290_v17 = vld [vmem:[%s30319_s7 + $0x520] ss:$8 sps:$4 sm:$0xff]  }
 0x35d   : > { %21153 = vmatprep.subr.bf16.mxu0 %v26206_v19  ;;  %v26293_v18 = vld [vmem:[%s33193_s0 + $0x2c8] ss:$272 sps:$4 sm:$0xff]  }
 0x35e   : > { %19176 = vmatmul.mubr.bf16.gmra.mrb[16].mxu1 %v26199_v20  ;;  %v26294_v19 = vld [vmem:[%s30319_s7 + $0x1620] ss:$8 sps:$4 sm:$0xff]   ;;  %v26299_v20 = vld [vmem:[%s30319_s7 + $0x534] ss:$8 sps:$4 sm:$0xff]  }
 0x35f   : > { %21097 = vmatmul.mubr.bf16.gmra.mrb[16].mxu0 %v26203_v22  ;;  %19233 = vmatpush1.bf16.msra.mxu1 %v26200_v21  ;;  %v26302_v21 = vld [vmem:[%s30319_s7 + $0x1634] ss:$8 sps:$4 sm:$0xff]  }
 0x360   : > { %21154 = vmatpush1.bf16.msra.mxu0 %v26204_v23  ;;  %19234 = vmatprep.subr.bf16.mxu1 %v26209_v24  ;;  %v26303_v22 = vld [vmem:[%s33193_s0 + $0x464] ss:$272 sps:$4 sm:$0xff]   ;;  %v26305_v23 = vld [vmem:[%s33193_s0 + $0x4ec] ss:$272 sps:$4 sm:$0xff]   ;;  %v26297_v24 = vld [vmem:[%s30319_s7 + $0x530] ss:$8 sps:$4 sm:$0xff]  }
 0x361   : > { %21155 = vmatprep.subr.bf16.mxu0 %v26212_v25  ;;  %19185 = vmatprep.mubr.bf16.mxu1 %v26213_v26  ;;  %v26300_v25 = vld [vmem:[%s30319_s7 + $0x1630] ss:$8 sps:$4 sm:$0xff]   ;;  %v26310_v26 = vld [vmem:[%s30319_s7 + $0x544] ss:$8 sps:$4 sm:$0xff]  }
 0x362   : > { %21106 = vmatprep.mubr.bf16.mxu0 %v26215_v27  ;;  %v26314_v27 = vld [vmem:[%s30319_s7 + $0x1644] ss:$8 sps:$4 sm:$0xff]  }
 0x363   : > { %19235 = vmatpush1.bf16.msra.mxu1 %v26207_v28  ;;  %v26307_v28 = vld [vmem:[%s33193_s0 + $0x460] ss:$272 sps:$4 sm:$0xff]  }
 0x364   : > { %21156 = vmatpush1.bf16.msra.mxu0 %v26210_v29  ;;  %19236 = vmatprep.subr.bf16.mxu1 %v26220_v30  ;;  %v26308_v29 = vld [vmem:[%s30319_s7 + $0x540] ss:$8 sps:$4 sm:$0xff]  }
 0x365   : > { %21157 = vmatprep.subr.bf16.mxu0 %v26224_v31  ;;  %v26311_v30 = vld [vmem:[%s33193_s0 + $0x4e8] ss:$272 sps:$4 sm:$0xff]  }
 0x366   : > { %19186 = vmatmul.mubr.bf16.gmra.mrb[20].mxu1 %v26217_v32  ;;  %v26312_v31 = vld [vmem:[%s30319_s7 + $0x1640] ss:$8 sps:$4 sm:$0xff]   ;;  %v26317_v32 = vld [vmem:[%s30319_s7 + $0x554] ss:$8 sps:$4 sm:$0xff]  }
 0x367   : > { %21107 = vmatmul.mubr.bf16.gmra.mrb[20].mxu0 %v26221_v34  ;;  %19237 = vmatpush1.bf16.msra.mxu1 %v26218_v33  ;;  %v26320_v33 = vld [vmem:[%s30319_s7 + $0x1654] ss:$8 sps:$4 sm:$0xff]  }
 0x368   : > { %21158 = vmatpush1.bf16.msra.mxu0 %v26222_v35  ;;  %19238 = vmatprep.subr.bf16.mxu1 %v26227_v36  ;;  %v26321_v34 = vld [vmem:[%s33193_s0 + $0x684] ss:$272 sps:$4 sm:$0xff]   ;;  %v26323_v35 = vld [vmem:[%s33193_s0 + $0x70c] ss:$272 sps:$4 sm:$0xff]   ;;  %v26315_v36 = vld [vmem:[%s30319_s7 + $0x550] ss:$8 sps:$4 sm:$0xff]  }
 0x369   : > { %21159 = vmatprep.subr.bf16.mxu0 %v26230_v37  ;;  %19195 = vmatprep.mubr.bf16.mxu1 %v26231_v38  ;;  %v26318_v37 = vld [vmem:[%s30319_s7 + $0x1650] ss:$8 sps:$4 sm:$0xff]   ;;  %v26328_v38 = vld [vmem:[%s30319_s7 + $0x564] ss:$8 sps:$4 sm:$0xff]  }
 0x36a   : > { %21116 = vmatprep.mubr.bf16.mxu0 %v26233_v39  ;;  %v26332_v39 = vld [vmem:[%s30319_s7 + $0x1664] ss:$8 sps:$4 sm:$0xff]  }
 0x36b   : > { %19239 = vmatpush1.bf16.msra.mxu1 %v26225_v40  ;;  %v26325_v40 = vld [vmem:[%s33193_s0 + $0x680] ss:$272 sps:$4 sm:$0xff]  }
 0x36c   : > { %21160 = vmatpush1.bf16.msra.mxu0 %v26228_v41  ;;  %19240 = vmatprep.subr.bf16.mxu1 %v26238_v42  ;;  %v26326_v41 = vld [vmem:[%s30319_s7 + $0x560] ss:$8 sps:$4 sm:$0xff]  }
 0x36d   : > { %21161 = vmatprep.subr.bf16.mxu0 %v26242_v43  ;;  %v26329_v42 = vld [vmem:[%s33193_s0 + $0x708] ss:$272 sps:$4 sm:$0xff]  }
 0x36e   : > { %19196 = vmatmul.mubr.bf16.gmra.mrb[24].mxu1 %v26235_v44  ;;  %v26330_v43 = vld [vmem:[%s30319_s7 + $0x1660] ss:$8 sps:$4 sm:$0xff]   ;;  %v26335_v44 = vld [vmem:[%s30319_s7 + $0x574] ss:$8 sps:$4 sm:$0xff]  }
 0x36f   : > { %21117 = vmatmul.mubr.bf16.gmra.mrb[24].mxu0 %v26239_v46  ;;  %19241 = vmatpush1.bf16.msra.mxu1 %v26236_v45  ;;  %v26338_v45 = vld [vmem:[%s30319_s7 + $0x1674] ss:$8 sps:$4 sm:$0xff]  }
 0x370   : > { %21162 = vmatpush1.bf16.msra.mxu0 %v26240_v47  ;;  %19242 = vmatprep.subr.bf16.mxu1 %v26245_v48  ;;  %v26339_v46 = vld [vmem:[%s33193_s0 + $0x8a4] ss:$272 sps:$4 sm:$0xff]   ;;  %v26341_v47 = vld [vmem:[%s33193_s0 + $0x92c] ss:$272 sps:$4 sm:$0xff]   ;;  %v26333_v48 = vld [vmem:[%s30319_s7 + $0x570] ss:$8 sps:$4 sm:$0xff]  }
 0x371   : > { %21163 = vmatprep.subr.bf16.mxu0 %v26248_v49  ;;  %19205 = vmatprep.mubr.bf16.mxu1 %v26249_v50  ;;  %v26336_v49 = vld [vmem:[%s30319_s7 + $0x1670] ss:$8 sps:$4 sm:$0xff]   ;;  %v26346_v50 = vld [vmem:[%s30319_s7 + $0x584] ss:$8 sps:$4 sm:$0xff]  }
 0x372   : > { %21126 = vmatprep.mubr.bf16.mxu0 %v26251_v51  ;;  %v26350_v51 = vld [vmem:[%s30319_s7 + $0x1684] ss:$8 sps:$4 sm:$0xff]  }
 0x373   : > { %19243 = vmatpush1.bf16.msra.mxu1 %v26243_v52  ;;  %v26343_v52 = vld [vmem:[%s33193_s0 + $0x8a0] ss:$272 sps:$4 sm:$0xff]  }
 0x374   : > { %21164 = vmatpush1.bf16.msra.mxu0 %v26246_v53  ;;  %19244 = vmatprep.subr.bf16.mxu1 %v26256_v54  ;;  %v26344_v53 = vld [vmem:[%s30319_s7 + $0x580] ss:$8 sps:$4 sm:$0xff]  }
 0x375   : > { %21165 = vmatprep.subr.bf16.mxu0 %v26260_v55  ;;  %v26347_v54 = vld [vmem:[%s33193_s0 + $0x928] ss:$272 sps:$4 sm:$0xff]  }
 0x376   : > { %19206 = vmatmul.mubr.bf16.gmra.mrb[28].mxu1 %v26253_v56  ;;  %v26348_v55 = vld [vmem:[%s30319_s7 + $0x1680] ss:$8 sps:$4 sm:$0xff]   ;;  %v26353_v56 = vld [vmem:[%s30319_s7 + $0x594] ss:$8 sps:$4 sm:$0xff]  }
 0x377   : > { %21127 = vmatmul.mubr.bf16.gmra.mrb[28].mxu0 %v26257_v58  ;;  %19245 = vmatpush1.bf16.msra.mxu1 %v26254_v57  ;;  %v26356_v57 = vld [vmem:[%s30319_s7 + $0x1694] ss:$8 sps:$4 sm:$0xff]  }
 0x378   : > { %21166 = vmatpush1.bf16.msra.mxu0 %v26258_v59  ;;  %19246 = vmatprep.subr.bf16.mxu1 %v26263_v60  ;;  %v26357_v58 = vld [vmem:[%s33193_s0 + $0xac4] ss:$272 sps:$4 sm:$0xff]   ;;  %v26359_v59 = vld [vmem:[%s33193_s0 + $0xb4c] ss:$272 sps:$4 sm:$0xff]   ;;  %v26351_v60 = vld [vmem:[%s30319_s7 + $0x590] ss:$8 sps:$4 sm:$0xff]  }
 0x379   : > { %21167 = vmatprep.subr.bf16.mxu0 %v26266_v61  ;;  %19248 = vmatprep.mubr.bf16.mxu1 %v26269_v62  ;;  %v26354_v61 = vld [vmem:[%s30319_s7 + $0x1690] ss:$8 sps:$4 sm:$0xff]   ;;  %v26364_v62 = vld [vmem:[%s30319_s7 + $0x5a4] ss:$8 sps:$4 sm:$0xff]  }
 0x37a   : > { %21169 = vmatprep.mubr.bf16.mxu0 %v26272_v63  ;;  %v26368_v63 = vld [vmem:[%s30319_s7 + $0x16a4] ss:$8 sps:$4 sm:$0xff]  }
 0x37b   : > { %19247 = vmatpush1.bf16.msra.mxu1 %v26261_v0  ;;  %v26361_v0 = vld [vmem:[%s33193_s0 + $0xac0] ss:$272 sps:$4 sm:$0xff]  }
 0x37c   : > { %21168 = vmatpush1.bf16.msra.mxu0 %v26264_v1  ;;  %19329 = vmatprep.subr.bf16.mxu1 %v26275_v2  ;;  %v26362_v1 = vld [vmem:[%s30319_s7 + $0x5a0] ss:$8 sps:$4 sm:$0xff]  }
 0x37d   : > { %21250 = vmatprep.subr.bf16.mxu0 %v26278_v3  ;;  %v26365_v2 = vld [vmem:[%s33193_s0 + $0xb48] ss:$272 sps:$4 sm:$0xff]  }
 0x37e   : > { %19249 = vmatmul.mubr.bf16.vlgmr.msra.gmra.mrb[0].mxu1 %v26267_v4  ;;  %v26366_v3 = vld [vmem:[%s30319_s7 + $0x16a0] ss:$8 sps:$4 sm:$0xff]   ;;  %v26371_v4 = vld [vmem:[%s30319_s7 + $0x5b4] ss:$8 sps:$4 sm:$0xff]  }
 0x37f   : > { %21170 = vmatmul.mubr.bf16.vlgmr.msra.gmra.mrb[0].mxu0 %v26270_v5  ;;  %19330 = vmatpush1.bf16.msra.mxu1 %v26273_v6  ;;  %v26374_v5 = vld [vmem:[%s30319_s7 + $0x16b4] ss:$8 sps:$4 sm:$0xff]  }
 0x380   : > { %21251 = vmatpush1.bf16.msra.mxu0 %v26276_v7  ;;  %19331 = vmatprep.subr.bf16.mxu1 %v26281_v8  ;;  %v26375_v6 = vld [vmem:[%s33193_s0 + $0xce4] ss:$272 sps:$4 sm:$0xff]   ;;  %v26377_v7 = vld [vmem:[%s33193_s0 + $0xd6c] ss:$272 sps:$4 sm:$0xff]   ;;  %v26369_v8 = vld [vmem:[%s30319_s7 + $0x5b0] ss:$8 sps:$4 sm:$0xff]  }
 0x381   : > { %21252 = vmatprep.subr.bf16.mxu0 %v26284_v9  ;;  %19258 = vmatprep.mubr.bf16.mxu1 %v26285_v10  ;;  %v26372_v9 = vld [vmem:[%s30319_s7 + $0x16b0] ss:$8 sps:$4 sm:$0xff]   ;;  %v26382_v10 = vld [vmem:[%s30319_s7 + $0x5c4] ss:$8 sps:$4 sm:$0xff]  }
 0x382   : > { %21179 = vmatprep.mubr.bf16.mxu0 %v26287_v11  ;;  %v26386_v11 = vld [vmem:[%s30319_s7 + $0x16c4] ss:$8 sps:$4 sm:$0xff]  }
 0x383   : > { %19332 = vmatpush1.bf16.msra.mxu1 %v26279_v12  ;;  %v26379_v12 = vld [vmem:[%s33193_s0 + $0xce0] ss:$272 sps:$4 sm:$0xff]  }
 0x384   : > { %21253 = vmatpush1.bf16.msra.mxu0 %v26282_v13  ;;  %19333 = vmatprep.subr.bf16.mxu1 %v26292_v14  ;;  %v26380_v13 = vld [vmem:[%s30319_s7 + $0x5c0] ss:$8 sps:$4 sm:$0xff]  }
 0x385   : > { %21254 = vmatprep.subr.bf16.mxu0 %v26296_v15  ;;  %v26383_v14 = vld [vmem:[%s33193_s0 + $0xd68] ss:$272 sps:$4 sm:$0xff]  }
 0x386   : > { %19259 = vmatmul.mubr.bf16.gmra.mrb[4].mxu1 %v26289_v16  ;;  %v26384_v15 = vld [vmem:[%s30319_s7 + $0x16c0] ss:$8 sps:$4 sm:$0xff]   ;;  %v26389_v16 = vld [vmem:[%s30319_s7 + $0x5d4] ss:$8 sps:$4 sm:$0xff]  }
 0x387   : > { %21180 = vmatmul.mubr.bf16.gmra.mrb[4].mxu0 %v26293_v18  ;;  %19334 = vmatpush1.bf16.msra.mxu1 %v26290_v17  ;;  %v26392_v17 = vld [vmem:[%s30319_s7 + $0x16d4] ss:$8 sps:$4 sm:$0xff]  }
 0x388   : > { %21255 = vmatpush1.bf16.msra.mxu0 %v26294_v19  ;;  %19335 = vmatprep.subr.bf16.mxu1 %v26299_v20  ;;  %v26393_v18 = vld [vmem:[%s33193_s0 + $0xf04] ss:$272 sps:$4 sm:$0xff]   ;;  %v26395_v19 = vld [vmem:[%s33193_s0 + $0xf8c] ss:$272 sps:$4 sm:$0xff]   ;;  %v26387_v20 = vld [vmem:[%s30319_s7 + $0x5d0] ss:$8 sps:$4 sm:$0xff]  }
 0x389   : > { %21256 = vmatprep.subr.bf16.mxu0 %v26302_v21  ;;  %19268 = vmatprep.mubr.bf16.mxu1 %v26303_v22  ;;  %v26390_v21 = vld [vmem:[%s30319_s7 + $0x16d0] ss:$8 sps:$4 sm:$0xff]   ;;  %v26400_v22 = vld [vmem:[%s30319_s7 + $0x5e4] ss:$8 sps:$4 sm:$0xff]  }
 0x38a   : > { %21189 = vmatprep.mubr.bf16.mxu0 %v26305_v23  ;;  %v26404_v23 = vld [vmem:[%s30319_s7 + $0x16e4] ss:$8 sps:$4 sm:$0xff]  }
 0x38b   : > { %19336 = vmatpush1.bf16.msra.mxu1 %v26297_v24  ;;  %v26397_v24 = vld [vmem:[%s33193_s0 + $0xf00] ss:$272 sps:$4 sm:$0xff]  }
 0x38c   : > { %21257 = vmatpush1.bf16.msra.mxu0 %v26300_v25  ;;  %19337 = vmatprep.subr.bf16.mxu1 %v26310_v26  ;;  %v26398_v25 = vld [vmem:[%s30319_s7 + $0x5e0] ss:$8 sps:$4 sm:$0xff]  }
 0x38d   : > { %21258 = vmatprep.subr.bf16.mxu0 %v26314_v27  ;;  %v26401_v26 = vld [vmem:[%s33193_s0 + $0xf88] ss:$272 sps:$4 sm:$0xff]  }
 0x38e   : > { %19269 = vmatmul.mubr.bf16.gmra.mrb[8].mxu1 %v26307_v28  ;;  %v26402_v27 = vld [vmem:[%s30319_s7 + $0x16e0] ss:$8 sps:$4 sm:$0xff]   ;;  %v26407_v28 = vld [vmem:[%s30319_s7 + $0x5f4] ss:$8 sps:$4 sm:$0xff]  }
 0x38f   : > { %21190 = vmatmul.mubr.bf16.gmra.mrb[8].mxu0 %v26311_v30  ;;  %19338 = vmatpush1.bf16.msra.mxu1 %v26308_v29  ;;  %v26410_v29 = vld [vmem:[%s30319_s7 + $0x16f4] ss:$8 sps:$4 sm:$0xff]  }
 0x390   : > { %21259 = vmatpush1.bf16.msra.mxu0 %v26312_v31  ;;  %19339 = vmatprep.subr.bf16.mxu1 %v26317_v32  ;;  %v26413_v30 = vld [vmem:[%s33193_s0 + $0x2c] ss:$272 sps:$4 sm:$0xff]   ;;  %v26416_v31 = vld [vmem:[%s33193_s0 + $0xb4] ss:$272 sps:$4 sm:$0xff]   ;;  %v26405_v32 = vld [vmem:[%s30319_s7 + $0x5f0] ss:$8 sps:$4 sm:$0xff]  }
 0x391   : > { %21260 = vmatprep.subr.bf16.mxu0 %v26320_v33  ;;  %19278 = vmatprep.mubr.bf16.mxu1 %v26321_v34  ;;  %v26408_v33 = vld [vmem:[%s30319_s7 + $0x16f0] ss:$8 sps:$4 sm:$0xff]   ;;  %v26419_v34 = vld [vmem:[%s30319_s7 + $0x604] ss:$8 sps:$4 sm:$0xff]  }
 0x392   : > { %21199 = vmatprep.mubr.bf16.mxu0 %v26323_v35  ;;  %v26422_v35 = vld [vmem:[%s30319_s7 + $0x1704] ss:$8 sps:$4 sm:$0xff]  }
 0x393   : > { %19340 = vmatpush1.bf16.msra.mxu1 %v26315_v36  ;;  %v26411_v36 = vld [vmem:[%s33193_s0 + $0x28] ss:$272 sps:$4 sm:$0xff]  }
 0x394   : > { %21261 = vmatpush1.bf16.msra.mxu0 %v26318_v37  ;;  %19341 = vmatprep.subr.bf16.mxu1 %v26328_v38  ;;  %v26414_v37 = vld [vmem:[%s33193_s0 + $0xb0] ss:$272 sps:$4 sm:$0xff]  }
 0x395   : > { %21262 = vmatprep.subr.bf16.mxu0 %v26332_v39  ;;  %v26417_v38 = vld [vmem:[%s30319_s7 + $0x600] ss:$8 sps:$4 sm:$0xff]  }
 0x396   : > { %19279 = vmatmul.mubr.bf16.gmra.mrb[12].mxu1 %v26325_v40  ;;  %v26420_v39 = vld [vmem:[%s30319_s7 + $0x1700] ss:$8 sps:$4 sm:$0xff]   ;;  %v26425_v40 = vld [vmem:[%s30319_s7 + $0x614] ss:$8 sps:$4 sm:$0xff]  }
 0x397   : > { %21200 = vmatmul.mubr.bf16.gmra.mrb[12].mxu0 %v26329_v42  ;;  %19342 = vmatpush1.bf16.msra.mxu1 %v26326_v41  ;;  %v26428_v41 = vld [vmem:[%s30319_s7 + $0x1714] ss:$8 sps:$4 sm:$0xff]  }
 0x398   : > { %21263 = vmatpush1.bf16.msra.mxu0 %v26330_v43  ;;  %19343 = vmatprep.subr.bf16.mxu1 %v26335_v44  ;;  %v26429_v42 = vld [vmem:[%s33193_s0 + $0x24c] ss:$272 sps:$4 sm:$0xff]   ;;  %v26431_v43 = vld [vmem:[%s33193_s0 + $0x2d4] ss:$272 sps:$4 sm:$0xff]   ;;  %v26423_v44 = vld [vmem:[%s30319_s7 + $0x610] ss:$8 sps:$4 sm:$0xff]  }
 0x399   : > { %21264 = vmatprep.subr.bf16.mxu0 %v26338_v45  ;;  %19288 = vmatprep.mubr.bf16.mxu1 %v26339_v46  ;;  %v26426_v45 = vld [vmem:[%s30319_s7 + $0x1710] ss:$8 sps:$4 sm:$0xff]   ;;  %v26436_v46 = vld [vmem:[%s30319_s7 + $0x624] ss:$8 sps:$4 sm:$0xff]  }
 0x39a   : > { %21209 = vmatprep.mubr.bf16.mxu0 %v26341_v47  ;;  %v26440_v47 = vld [vmem:[%s30319_s7 + $0x1724] ss:$8 sps:$4 sm:$0xff]  }
 0x39b   : > { %19344 = vmatpush1.bf16.msra.mxu1 %v26333_v48  ;;  %v26433_v48 = vld [vmem:[%s33193_s0 + $0x248] ss:$272 sps:$4 sm:$0xff]  }
 0x39c   : > { %21265 = vmatpush1.bf16.msra.mxu0 %v26336_v49  ;;  %19345 = vmatprep.subr.bf16.mxu1 %v26346_v50  ;;  %v26434_v49 = vld [vmem:[%s30319_s7 + $0x620] ss:$8 sps:$4 sm:$0xff]  }
 0x39d   : > { %21266 = vmatprep.subr.bf16.mxu0 %v26350_v51  ;;  %v26437_v50 = vld [vmem:[%s33193_s0 + $0x2d0] ss:$272 sps:$4 sm:$0xff]  }
 0x39e   : > { %19289 = vmatmul.mubr.bf16.gmra.mrb[16].mxu1 %v26343_v52  ;;  %v26438_v51 = vld [vmem:[%s30319_s7 + $0x1720] ss:$8 sps:$4 sm:$0xff]   ;;  %v26443_v52 = vld [vmem:[%s30319_s7 + $0x634] ss:$8 sps:$4 sm:$0xff]  }
 0x39f   : > { %21210 = vmatmul.mubr.bf16.gmra.mrb[16].mxu0 %v26347_v54  ;;  %19346 = vmatpush1.bf16.msra.mxu1 %v26344_v53  ;;  %v26446_v53 = vld [vmem:[%s30319_s7 + $0x1734] ss:$8 sps:$4 sm:$0xff]  }
 0x3a0   : > { %21267 = vmatpush1.bf16.msra.mxu0 %v26348_v55  ;;  %19347 = vmatprep.subr.bf16.mxu1 %v26353_v56  ;;  %v26447_v54 = vld [vmem:[%s33193_s0 + $0x46c] ss:$272 sps:$4 sm:$0xff]   ;;  %v26449_v55 = vld [vmem:[%s33193_s0 + $0x4f4] ss:$272 sps:$4 sm:$0xff]   ;;  %v26441_v56 = vld [vmem:[%s30319_s7 + $0x630] ss:$8 sps:$4 sm:$0xff]  }
 0x3a1   : > { %21268 = vmatprep.subr.bf16.mxu0 %v26356_v57  ;;  %19298 = vmatprep.mubr.bf16.mxu1 %v26357_v58  ;;  %v26444_v57 = vld [vmem:[%s30319_s7 + $0x1730] ss:$8 sps:$4 sm:$0xff]   ;;  %v26454_v58 = vld [vmem:[%s30319_s7 + $0x644] ss:$8 sps:$4 sm:$0xff]  }
 0x3a2   : > { %21219 = vmatprep.mubr.bf16.mxu0 %v26359_v59  ;;  %v26458_v59 = vld [vmem:[%s30319_s7 + $0x1744] ss:$8 sps:$4 sm:$0xff]  }
 0x3a3   : > { %19348 = vmatpush1.bf16.msra.mxu1 %v26351_v60  ;;  %v26451_v60 = vld [vmem:[%s33193_s0 + $0x468] ss:$272 sps:$4 sm:$0xff]  }
 0x3a4   : > { %21269 = vmatpush1.bf16.msra.mxu0 %v26354_v61  ;;  %19349 = vmatprep.subr.bf16.mxu1 %v26364_v62  ;;  %v26452_v61 = vld [vmem:[%s30319_s7 + $0x640] ss:$8 sps:$4 sm:$0xff]  }
 0x3a5   : > { %21270 = vmatprep.subr.bf16.mxu0 %v26368_v63  ;;  %v26455_v62 = vld [vmem:[%s33193_s0 + $0x4f0] ss:$272 sps:$4 sm:$0xff]  }
 0x3a6   : > { %19299 = vmatmul.mubr.bf16.gmra.mrb[20].mxu1 %v26361_v0  ;;  %v26456_v63 = vld [vmem:[%s30319_s7 + $0x1740] ss:$8 sps:$4 sm:$0xff]   ;;  %v26461_v0 = vld [vmem:[%s30319_s7 + $0x654] ss:$8 sps:$4 sm:$0xff]  }
 0x3a7   : > { %21220 = vmatmul.mubr.bf16.gmra.mrb[20].mxu0 %v26365_v2  ;;  %19350 = vmatpush1.bf16.msra.mxu1 %v26362_v1  ;;  %v26464_v1 = vld [vmem:[%s30319_s7 + $0x1754] ss:$8 sps:$4 sm:$0xff]  }
 0x3a8   : > { %21271 = vmatpush1.bf16.msra.mxu0 %v26366_v3  ;;  %19351 = vmatprep.subr.bf16.mxu1 %v26371_v4  ;;  %v26465_v2 = vld [vmem:[%s33193_s0 + $0x68c] ss:$272 sps:$4 sm:$0xff]   ;;  %v26467_v3 = vld [vmem:[%s33193_s0 + $0x714] ss:$272 sps:$4 sm:$0xff]   ;;  %v26459_v4 = vld [vmem:[%s30319_s7 + $0x650] ss:$8 sps:$4 sm:$0xff]  }
 0x3a9   : > { %21272 = vmatprep.subr.bf16.mxu0 %v26374_v5  ;;  %19308 = vmatprep.mubr.bf16.mxu1 %v26375_v6  ;;  %v26462_v5 = vld [vmem:[%s30319_s7 + $0x1750] ss:$8 sps:$4 sm:$0xff]   ;;  %v26472_v6 = vld [vmem:[%s30319_s7 + $0x664] ss:$8 sps:$4 sm:$0xff]  }
 0x3aa   : > { %21229 = vmatprep.mubr.bf16.mxu0 %v26377_v7  ;;  %v26476_v7 = vld [vmem:[%s30319_s7 + $0x1764] ss:$8 sps:$4 sm:$0xff]  }
 0x3ab   : > { %19352 = vmatpush1.bf16.msra.mxu1 %v26369_v8  ;;  %v26469_v8 = vld [vmem:[%s33193_s0 + $0x688] ss:$272 sps:$4 sm:$0xff]  }
 0x3ac   : > { %21273 = vmatpush1.bf16.msra.mxu0 %v26372_v9  ;;  %19353 = vmatprep.subr.bf16.mxu1 %v26382_v10  ;;  %v26470_v9 = vld [vmem:[%s30319_s7 + $0x660] ss:$8 sps:$4 sm:$0xff]  }
 0x3ad   : > { %21274 = vmatprep.subr.bf16.mxu0 %v26386_v11  ;;  %v26473_v10 = vld [vmem:[%s33193_s0 + $0x710] ss:$272 sps:$4 sm:$0xff]  }
 0x3ae   : > { %19309 = vmatmul.mubr.bf16.gmra.mrb[24].mxu1 %v26379_v12  ;;  %v26474_v11 = vld [vmem:[%s30319_s7 + $0x1760] ss:$8 sps:$4 sm:$0xff]   ;;  %v26479_v12 = vld [vmem:[%s30319_s7 + $0x674] ss:$8 sps:$4 sm:$0xff]  }
 0x3af   : > { %21230 = vmatmul.mubr.bf16.gmra.mrb[24].mxu0 %v26383_v14  ;;  %19354 = vmatpush1.bf16.msra.mxu1 %v26380_v13  ;;  %v26482_v13 = vld [vmem:[%s30319_s7 + $0x1774] ss:$8 sps:$4 sm:$0xff]  }
 0x3b0   : > { %21275 = vmatpush1.bf16.msra.mxu0 %v26384_v15  ;;  %19355 = vmatprep.subr.bf16.mxu1 %v26389_v16  ;;  %v26483_v14 = vld [vmem:[%s33193_s0 + $0x8ac] ss:$272 sps:$4 sm:$0xff]   ;;  %v26485_v15 = vld [vmem:[%s33193_s0 + $0x934] ss:$272 sps:$4 sm:$0xff]   ;;  %v26477_v16 = vld [vmem:[%s30319_s7 + $0x670] ss:$8 sps:$4 sm:$0xff]  }
 0x3b1   : > { %21276 = vmatprep.subr.bf16.mxu0 %v26392_v17  ;;  %19318 = vmatprep.mubr.bf16.mxu1 %v26393_v18  ;;  %v26480_v17 = vld [vmem:[%s30319_s7 + $0x1770] ss:$8 sps:$4 sm:$0xff]   ;;  %v26490_v18 = vld [vmem:[%s30319_s7 + $0x684] ss:$8 sps:$4 sm:$0xff]  }
 0x3b2   : > { %21239 = vmatprep.mubr.bf16.mxu0 %v26395_v19  ;;  %v26494_v19 = vld [vmem:[%s30319_s7 + $0x1784] ss:$8 sps:$4 sm:$0xff]  }
 0x3b3   : > { %19356 = vmatpush1.bf16.msra.mxu1 %v26387_v20  ;;  %v26487_v20 = vld [vmem:[%s33193_s0 + $0x8a8] ss:$272 sps:$4 sm:$0xff]  }
 0x3b4   : > { %21277 = vmatpush1.bf16.msra.mxu0 %v26390_v21  ;;  %19357 = vmatprep.subr.bf16.mxu1 %v26400_v22  ;;  %v26488_v21 = vld [vmem:[%s30319_s7 + $0x680] ss:$8 sps:$4 sm:$0xff]  }
 0x3b5   : > { %21278 = vmatprep.subr.bf16.mxu0 %v26404_v23  ;;  %v26491_v22 = vld [vmem:[%s33193_s0 + $0x930] ss:$272 sps:$4 sm:$0xff]  }
 0x3b6   : > { %19319 = vmatmul.mubr.bf16.gmra.mrb[28].mxu1 %v26397_v24  ;;  %v26492_v23 = vld [vmem:[%s30319_s7 + $0x1780] ss:$8 sps:$4 sm:$0xff]   ;;  %v26497_v24 = vld [vmem:[%s30319_s7 + $0x694] ss:$8 sps:$4 sm:$0xff]  }
 0x3b7   : > { %21240 = vmatmul.mubr.bf16.gmra.mrb[28].mxu0 %v26401_v26  ;;  %19358 = vmatpush1.bf16.msra.mxu1 %v26398_v25  ;;  %v26500_v25 = vld [vmem:[%s30319_s7 + $0x1794] ss:$8 sps:$4 sm:$0xff]  }
 0x3b8   : > { %21279 = vmatpush1.bf16.msra.mxu0 %v26402_v27  ;;  %19359 = vmatprep.subr.bf16.mxu1 %v26407_v28  ;;  %v26501_v26 = vld [vmem:[%s33193_s0 + $0xacc] ss:$272 sps:$4 sm:$0xff]   ;;  %v26503_v27 = vld [vmem:[%s33193_s0 + $0xb54] ss:$272 sps:$4 sm:$0xff]   ;;  %v26495_v28 = vld [vmem:[%s30319_s7 + $0x690] ss:$8 sps:$4 sm:$0xff]  }
 0x3b9   : > { %21280 = vmatprep.subr.bf16.mxu0 %v26410_v29  ;;  %19361 = vmatprep.mubr.bf16.mxu1 %v26413_v30  ;;  %v26498_v29 = vld [vmem:[%s30319_s7 + $0x1790] ss:$8 sps:$4 sm:$0xff]   ;;  %v26508_v30 = vld [vmem:[%s30319_s7 + $0x6a4] ss:$8 sps:$4 sm:$0xff]  }
 0x3ba   : > { %21282 = vmatprep.mubr.bf16.mxu0 %v26416_v31  ;;  %v26512_v31 = vld [vmem:[%s30319_s7 + $0x17a4] ss:$8 sps:$4 sm:$0xff]  }
 0x3bb   : > { %19360 = vmatpush1.bf16.msra.mxu1 %v26405_v32  ;;  %v26505_v32 = vld [vmem:[%s33193_s0 + $0xac8] ss:$272 sps:$4 sm:$0xff]  }
 0x3bc   : > { %21281 = vmatpush1.bf16.msra.mxu0 %v26408_v33  ;;  %19442 = vmatprep.subr.bf16.mxu1 %v26419_v34  ;;  %v26506_v33 = vld [vmem:[%s30319_s7 + $0x6a0] ss:$8 sps:$4 sm:$0xff]  }
 0x3bd   : > { %21363 = vmatprep.subr.bf16.mxu0 %v26422_v35  ;;  %v26509_v34 = vld [vmem:[%s33193_s0 + $0xb50] ss:$272 sps:$4 sm:$0xff]  }
 0x3be   : > { %19362 = vmatmul.mubr.bf16.vlgmr.msra.gmra.mrb[0].mxu1 %v26411_v36  ;;  %v26510_v35 = vld [vmem:[%s30319_s7 + $0x17a0] ss:$8 sps:$4 sm:$0xff]   ;;  %v26515_v36 = vld [vmem:[%s30319_s7 + $0x6b4] ss:$8 sps:$4 sm:$0xff]  }
 0x3bf   : > { %21283 = vmatmul.mubr.bf16.vlgmr.msra.gmra.mrb[0].mxu0 %v26414_v37  ;;  %19443 = vmatpush1.bf16.msra.mxu1 %v26417_v38  ;;  %v26518_v37 = vld [vmem:[%s30319_s7 + $0x17b4] ss:$8 sps:$4 sm:$0xff]  }
 0x3c0   : > { %21364 = vmatpush1.bf16.msra.mxu0 %v26420_v39  ;;  %19444 = vmatprep.subr.bf16.mxu1 %v26425_v40  ;;  %v26519_v38 = vld [vmem:[%s33193_s0 + $0xcec] ss:$272 sps:$4 sm:$0xff]   ;;  %v26521_v39 = vld [vmem:[%s33193_s0 + $0xd74] ss:$272 sps:$4 sm:$0xff]   ;;  %v26513_v40 = vld [vmem:[%s30319_s7 + $0x6b0] ss:$8 sps:$4 sm:$0xff]  }
 0x3c1   : > { %21365 = vmatprep.subr.bf16.mxu0 %v26428_v41  ;;  %19371 = vmatprep.mubr.bf16.mxu1 %v26429_v42  ;;  %v26516_v41 = vld [vmem:[%s30319_s7 + $0x17b0] ss:$8 sps:$4 sm:$0xff]   ;;  %v26526_v42 = vld [vmem:[%s30319_s7 + $0x6c4] ss:$8 sps:$4 sm:$0xff]  }
 0x3c2   : > { %21292 = vmatprep.mubr.bf16.mxu0 %v26431_v43  ;;  %v26530_v43 = vld [vmem:[%s30319_s7 + $0x17c4] ss:$8 sps:$4 sm:$0xff]  }
 0x3c3   : > { %19445 = vmatpush1.bf16.msra.mxu1 %v26423_v44  ;;  %v26523_v44 = vld [vmem:[%s33193_s0 + $0xce8] ss:$272 sps:$4 sm:$0xff]  }
 0x3c4   : > { %21366 = vmatpush1.bf16.msra.mxu0 %v26426_v45  ;;  %19446 = vmatprep.subr.bf16.mxu1 %v26436_v46  ;;  %v26524_v45 = vld [vmem:[%s30319_s7 + $0x6c0] ss:$8 sps:$4 sm:$0xff]  }
 0x3c5   : > { %21367 = vmatprep.subr.bf16.mxu0 %v26440_v47  ;;  %v26527_v46 = vld [vmem:[%s33193_s0 + $0xd70] ss:$272 sps:$4 sm:$0xff]  }
 0x3c6   : > { %19372 = vmatmul.mubr.bf16.gmra.mrb[4].mxu1 %v26433_v48  ;;  %v26528_v47 = vld [vmem:[%s30319_s7 + $0x17c0] ss:$8 sps:$4 sm:$0xff]   ;;  %v26533_v48 = vld [vmem:[%s30319_s7 + $0x6d4] ss:$8 sps:$4 sm:$0xff]  }
 0x3c7   : > { %21293 = vmatmul.mubr.bf16.gmra.mrb[4].mxu0 %v26437_v50  ;;  %19447 = vmatpush1.bf16.msra.mxu1 %v26434_v49  ;;  %v26536_v49 = vld [vmem:[%s30319_s7 + $0x17d4] ss:$8 sps:$4 sm:$0xff]  }
 0x3c8   : > { %21368 = vmatpush1.bf16.msra.mxu0 %v26438_v51  ;;  %19448 = vmatprep.subr.bf16.mxu1 %v26443_v52  ;;  %v26537_v50 = vld [vmem:[%s33193_s0 + $0xf0c] ss:$272 sps:$4 sm:$0xff]   ;;  %v26539_v51 = vld [vmem:[%s33193_s0 + $0xf94] ss:$272 sps:$4 sm:$0xff]   ;;  %v26531_v52 = vld [vmem:[%s30319_s7 + $0x6d0] ss:$8 sps:$4 sm:$0xff]  }
 0x3c9   : > { %21369 = vmatprep.subr.bf16.mxu0 %v26446_v53  ;;  %19381 = vmatprep.mubr.bf16.mxu1 %v26447_v54  ;;  %v26534_v53 = vld [vmem:[%s30319_s7 + $0x17d0] ss:$8 sps:$4 sm:$0xff]   ;;  %v26544_v54 = vld [vmem:[%s30319_s7 + $0x6e4] ss:$8 sps:$4 sm:$0xff]  }
 0x3ca   : > { %21302 = vmatprep.mubr.bf16.mxu0 %v26449_v55  ;;  %v26548_v55 = vld [vmem:[%s30319_s7 + $0x17e4] ss:$8 sps:$4 sm:$0xff]  }
 0x3cb   : > { %19449 = vmatpush1.bf16.msra.mxu1 %v26441_v56  ;;  %v26541_v56 = vld [vmem:[%s33193_s0 + $0xf08] ss:$272 sps:$4 sm:$0xff]  }
 0x3cc   : > { %21370 = vmatpush1.bf16.msra.mxu0 %v26444_v57  ;;  %19450 = vmatprep.subr.bf16.mxu1 %v26454_v58  ;;  %v26542_v57 = vld [vmem:[%s30319_s7 + $0x6e0] ss:$8 sps:$4 sm:$0xff]  }
 0x3cd   : > { %21371 = vmatprep.subr.bf16.mxu0 %v26458_v59  ;;  %v26545_v58 = vld [vmem:[%s33193_s0 + $0xf90] ss:$272 sps:$4 sm:$0xff]  }
 0x3ce   : > { %19382 = vmatmul.mubr.bf16.gmra.mrb[8].mxu1 %v26451_v60  ;;  %v26546_v59 = vld [vmem:[%s30319_s7 + $0x17e0] ss:$8 sps:$4 sm:$0xff]   ;;  %v26551_v60 = vld [vmem:[%s30319_s7 + $0x6f4] ss:$8 sps:$4 sm:$0xff]  }
 0x3cf   : > { %21303 = vmatmul.mubr.bf16.gmra.mrb[8].mxu0 %v26455_v62  ;;  %19451 = vmatpush1.bf16.msra.mxu1 %v26452_v61  ;;  %v26554_v61 = vld [vmem:[%s30319_s7 + $0x17f4] ss:$8 sps:$4 sm:$0xff]  }
 0x3d0   : > { %21372 = vmatpush1.bf16.msra.mxu0 %v26456_v63  ;;  %19452 = vmatprep.subr.bf16.mxu1 %v26461_v0  ;;  %v26557_v62 = vld [vmem:[%s33193_s0 + $0x34] ss:$272 sps:$4 sm:$0xff]   ;;  %v26560_v63 = vld [vmem:[%s33193_s0 + $0xbc] ss:$272 sps:$4 sm:$0xff]   ;;  %v26549_v0 = vld [vmem:[%s30319_s7 + $0x6f0] ss:$8 sps:$4 sm:$0xff]  }
 0x3d1   : > { %21373 = vmatprep.subr.bf16.mxu0 %v26464_v1  ;;  %19391 = vmatprep.mubr.bf16.mxu1 %v26465_v2  ;;  %v26552_v1 = vld [vmem:[%s30319_s7 + $0x17f0] ss:$8 sps:$4 sm:$0xff]   ;;  %v26563_v2 = vld [vmem:[%s30319_s7 + $0x704] ss:$8 sps:$4 sm:$0xff]  }
 0x3d2   : > { %21312 = vmatprep.mubr.bf16.mxu0 %v26467_v3  ;;  %v26566_v3 = vld [vmem:[%s30319_s7 + $0x1804] ss:$8 sps:$4 sm:$0xff]  }
 0x3d3   : > { %19453 = vmatpush1.bf16.msra.mxu1 %v26459_v4  ;;  %v26555_v4 = vld [vmem:[%s33193_s0 + $0x30] ss:$272 sps:$4 sm:$0xff]  }
 0x3d4   : > { %21374 = vmatpush1.bf16.msra.mxu0 %v26462_v5  ;;  %19454 = vmatprep.subr.bf16.mxu1 %v26472_v6  ;;  %v26558_v5 = vld [vmem:[%s33193_s0 + $0xb8] ss:$272 sps:$4 sm:$0xff]  }
 0x3d5   : > { %21375 = vmatprep.subr.bf16.mxu0 %v26476_v7  ;;  %v26561_v6 = vld [vmem:[%s30319_s7 + $0x700] ss:$8 sps:$4 sm:$0xff]  }
 0x3d6   : > { %19392 = vmatmul.mubr.bf16.gmra.mrb[12].mxu1 %v26469_v8  ;;  %v26564_v7 = vld [vmem:[%s30319_s7 + $0x1800] ss:$8 sps:$4 sm:$0xff]   ;;  %v26569_v8 = vld [vmem:[%s30319_s7 + $0x714] ss:$8 sps:$4 sm:$0xff]  }
 0x3d7   : > { %21313 = vmatmul.mubr.bf16.gmra.mrb[12].mxu0 %v26473_v10  ;;  %19455 = vmatpush1.bf16.msra.mxu1 %v26470_v9  ;;  %v26572_v9 = vld [vmem:[%s30319_s7 + $0x1814] ss:$8 sps:$4 sm:$0xff]  }
 0x3d8   : > { %21376 = vmatpush1.bf16.msra.mxu0 %v26474_v11  ;;  %19456 = vmatprep.subr.bf16.mxu1 %v26479_v12  ;;  %v26573_v10 = vld [vmem:[%s33193_s0 + $0x254] ss:$272 sps:$4 sm:$0xff]   ;;  %v26575_v11 = vld [vmem:[%s33193_s0 + $0x2dc] ss:$272 sps:$4 sm:$0xff]   ;;  %v26567_v12 = vld [vmem:[%s30319_s7 + $0x710] ss:$8 sps:$4 sm:$0xff]  }
 0x3d9   : > { %21377 = vmatprep.subr.bf16.mxu0 %v26482_v13  ;;  %19401 = vmatprep.mubr.bf16.mxu1 %v26483_v14  ;;  %v26570_v13 = vld [vmem:[%s30319_s7 + $0x1810] ss:$8 sps:$4 sm:$0xff]   ;;  %v26580_v14 = vld [vmem:[%s30319_s7 + $0x724] ss:$8 sps:$4 sm:$0xff]  }
 0x3da   : > { %21322 = vmatprep.mubr.bf16.mxu0 %v26485_v15  ;;  %v26584_v15 = vld [vmem:[%s30319_s7 + $0x1824] ss:$8 sps:$4 sm:$0xff]  }
 0x3db   : > { %19457 = vmatpush1.bf16.msra.mxu1 %v26477_v16  ;;  %v26577_v16 = vld [vmem:[%s33193_s0 + $0x250] ss:$272 sps:$4 sm:$0xff]  }
 0x3dc   : > { %21378 = vmatpush1.bf16.msra.mxu0 %v26480_v17  ;;  %19458 = vmatprep.subr.bf16.mxu1 %v26490_v18  ;;  %v26578_v17 = vld [vmem:[%s30319_s7 + $0x720] ss:$8 sps:$4 sm:$0xff]  }
 0x3dd   : > { %21379 = vmatprep.subr.bf16.mxu0 %v26494_v19  ;;  %v26581_v18 = vld [vmem:[%s33193_s0 + $0x2d8] ss:$272 sps:$4 sm:$0xff]  }
 0x3de   : > { %19402 = vmatmul.mubr.bf16.gmra.mrb[16].mxu1 %v26487_v20  ;;  %v26582_v19 = vld [vmem:[%s30319_s7 + $0x1820] ss:$8 sps:$4 sm:$0xff]   ;;  %v26587_v20 = vld [vmem:[%s30319_s7 + $0x734] ss:$8 sps:$4 sm:$0xff]  }
 0x3df   : > { %21323 = vmatmul.mubr.bf16.gmra.mrb[16].mxu0 %v26491_v22  ;;  %19459 = vmatpush1.bf16.msra.mxu1 %v26488_v21  ;;  %v26590_v21 = vld [vmem:[%s30319_s7 + $0x1834] ss:$8 sps:$4 sm:$0xff]  }
 0x3e0   : > { %21380 = vmatpush1.bf16.msra.mxu0 %v26492_v23  ;;  %19460 = vmatprep.subr.bf16.mxu1 %v26497_v24  ;;  %v26591_v22 = vld [vmem:[%s33193_s0 + $0x474] ss:$272 sps:$4 sm:$0xff]   ;;  %v26593_v23 = vld [vmem:[%s33193_s0 + $0x4fc] ss:$272 sps:$4 sm:$0xff]   ;;  %v26585_v24 = vld [vmem:[%s30319_s7 + $0x730] ss:$8 sps:$4 sm:$0xff]  }
 0x3e1   : > { %21381 = vmatprep.subr.bf16.mxu0 %v26500_v25  ;;  %19411 = vmatprep.mubr.bf16.mxu1 %v26501_v26  ;;  %v26588_v25 = vld [vmem:[%s30319_s7 + $0x1830] ss:$8 sps:$4 sm:$0xff]   ;;  %v26598_v26 = vld [vmem:[%s30319_s7 + $0x744] ss:$8 sps:$4 sm:$0xff]  }
 0x3e2   : > { %21332 = vmatprep.mubr.bf16.mxu0 %v26503_v27  ;;  %v26602_v27 = vld [vmem:[%s30319_s7 + $0x1844] ss:$8 sps:$4 sm:$0xff]  }
 0x3e3   : > { %19461 = vmatpush1.bf16.msra.mxu1 %v26495_v28  ;;  %v26595_v28 = vld [vmem:[%s33193_s0 + $0x470] ss:$272 sps:$4 sm:$0xff]  }
 0x3e4   : > { %21382 = vmatpush1.bf16.msra.mxu0 %v26498_v29  ;;  %19462 = vmatprep.subr.bf16.mxu1 %v26508_v30  ;;  %v26596_v29 = vld [vmem:[%s30319_s7 + $0x740] ss:$8 sps:$4 sm:$0xff]  }
 0x3e5   : > { %21383 = vmatprep.subr.bf16.mxu0 %v26512_v31  ;;  %v26599_v30 = vld [vmem:[%s33193_s0 + $0x4f8] ss:$272 sps:$4 sm:$0xff]  }
 0x3e6   : > { %19412 = vmatmul.mubr.bf16.gmra.mrb[20].mxu1 %v26505_v32  ;;  %v26600_v31 = vld [vmem:[%s30319_s7 + $0x1840] ss:$8 sps:$4 sm:$0xff]   ;;  %v26605_v32 = vld [vmem:[%s30319_s7 + $0x754] ss:$8 sps:$4 sm:$0xff]  }
 0x3e7   : > { %21333 = vmatmul.mubr.bf16.gmra.mrb[20].mxu0 %v26509_v34  ;;  %19463 = vmatpush1.bf16.msra.mxu1 %v26506_v33  ;;  %v26608_v33 = vld [vmem:[%s30319_s7 + $0x1854] ss:$8 sps:$4 sm:$0xff]  }
 0x3e8   : > { %21384 = vmatpush1.bf16.msra.mxu0 %v26510_v35  ;;  %19464 = vmatprep.subr.bf16.mxu1 %v26515_v36  ;;  %v26609_v34 = vld [vmem:[%s33193_s0 + $0x694] ss:$272 sps:$4 sm:$0xff]   ;;  %v26611_v35 = vld [vmem:[%s33193_s0 + $0x71c] ss:$272 sps:$4 sm:$0xff]   ;;  %v26603_v36 = vld [vmem:[%s30319_s7 + $0x750] ss:$8 sps:$4 sm:$0xff]  }
 0x3e9   : > { %21385 = vmatprep.subr.bf16.mxu0 %v26518_v37  ;;  %19421 = vmatprep.mubr.bf16.mxu1 %v26519_v38  ;;  %v26606_v37 = vld [vmem:[%s30319_s7 + $0x1850] ss:$8 sps:$4 sm:$0xff]   ;;  %v26616_v38 = vld [vmem:[%s30319_s7 + $0x764] ss:$8 sps:$4 sm:$0xff]  }
 0x3ea   : > { %21342 = vmatprep.mubr.bf16.mxu0 %v26521_v39  ;;  %v26620_v39 = vld [vmem:[%s30319_s7 + $0x1864] ss:$8 sps:$4 sm:$0xff]  }
 0x3eb   : > { %19465 = vmatpush1.bf16.msra.mxu1 %v26513_v40  ;;  %v26613_v40 = vld [vmem:[%s33193_s0 + $0x690] ss:$272 sps:$4 sm:$0xff]  }
 0x3ec   : > { %21386 = vmatpush1.bf16.msra.mxu0 %v26516_v41  ;;  %19466 = vmatprep.subr.bf16.mxu1 %v26526_v42  ;;  %v26614_v41 = vld [vmem:[%s30319_s7 + $0x760] ss:$8 sps:$4 sm:$0xff]  }
 0x3ed   : > { %21387 = vmatprep.subr.bf16.mxu0 %v26530_v43  ;;  %v26617_v42 = vld [vmem:[%s33193_s0 + $0x718] ss:$272 sps:$4 sm:$0xff]  }
 0x3ee   : > { %19422 = vmatmul.mubr.bf16.gmra.mrb[24].mxu1 %v26523_v44  ;;  %v26618_v43 = vld [vmem:[%s30319_s7 + $0x1860] ss:$8 sps:$4 sm:$0xff]   ;;  %v26623_v44 = vld [vmem:[%s30319_s7 + $0x774] ss:$8 sps:$4 sm:$0xff]  }
 0x3ef   : > { %21343 = vmatmul.mubr.bf16.gmra.mrb[24].mxu0 %v26527_v46  ;;  %19467 = vmatpush1.bf16.msra.mxu1 %v26524_v45  ;;  %v26626_v45 = vld [vmem:[%s30319_s7 + $0x1874] ss:$8 sps:$4 sm:$0xff]  }
 0x3f0   : > { %21388 = vmatpush1.bf16.msra.mxu0 %v26528_v47  ;;  %19468 = vmatprep.subr.bf16.mxu1 %v26533_v48  ;;  %v26627_v46 = vld [vmem:[%s33193_s0 + $0x8b4] ss:$272 sps:$4 sm:$0xff]   ;;  %v26629_v47 = vld [vmem:[%s33193_s0 + $0x93c] ss:$272 sps:$4 sm:$0xff]   ;;  %v26621_v48 = vld [vmem:[%s30319_s7 + $0x770] ss:$8 sps:$4 sm:$0xff]  }
 0x3f1   : > { %21389 = vmatprep.subr.bf16.mxu0 %v26536_v49  ;;  %19431 = vmatprep.mubr.bf16.mxu1 %v26537_v50  ;;  %v26624_v49 = vld [vmem:[%s30319_s7 + $0x1870] ss:$8 sps:$4 sm:$0xff]   ;;  %v26634_v50 = vld [vmem:[%s30319_s7 + $0x784] ss:$8 sps:$4 sm:$0xff]  }
 0x3f2   : > { %21352 = vmatprep.mubr.bf16.mxu0 %v26539_v51  ;;  %v26638_v51 = vld [vmem:[%s30319_s7 + $0x1884] ss:$8 sps:$4 sm:$0xff]  }
 0x3f3   : > { %19469 = vmatpush1.bf16.msra.mxu1 %v26531_v52  ;;  %v26631_v52 = vld [vmem:[%s33193_s0 + $0x8b0] ss:$272 sps:$4 sm:$0xff]  }
 0x3f4   : > { %21390 = vmatpush1.bf16.msra.mxu0 %v26534_v53  ;;  %19470 = vmatprep.subr.bf16.mxu1 %v26544_v54  ;;  %v26632_v53 = vld [vmem:[%s30319_s7 + $0x780] ss:$8 sps:$4 sm:$0xff]  }
 0x3f5   : > { %21391 = vmatprep.subr.bf16.mxu0 %v26548_v55  ;;  %v26635_v54 = vld [vmem:[%s33193_s0 + $0x938] ss:$272 sps:$4 sm:$0xff]  }
 0x3f6   : > { %19432 = vmatmul.mubr.bf16.gmra.mrb[28].mxu1 %v26541_v56  ;;  %v26636_v55 = vld [vmem:[%s30319_s7 + $0x1880] ss:$8 sps:$4 sm:$0xff]   ;;  %v26641_v56 = vld [vmem:[%s30319_s7 + $0x794] ss:$8 sps:$4 sm:$0xff]  }
 0x3f7   : > { %21353 = vmatmul.mubr.bf16.gmra.mrb[28].mxu0 %v26545_v58  ;;  %19471 = vmatpush1.bf16.msra.mxu1 %v26542_v57  ;;  %v26644_v57 = vld [vmem:[%s30319_s7 + $0x1894] ss:$8 sps:$4 sm:$0xff]  }
 0x3f8   : > { %21392 = vmatpush1.bf16.msra.mxu0 %v26546_v59  ;;  %19472 = vmatprep.subr.bf16.mxu1 %v26551_v60  ;;  %v26645_v58 = vld [vmem:[%s33193_s0 + $0xad4] ss:$272 sps:$4 sm:$0xff]   ;;  %v26647_v59 = vld [vmem:[%s33193_s0 + $0xb5c] ss:$272 sps:$4 sm:$0xff]   ;;  %v26639_v60 = vld [vmem:[%s30319_s7 + $0x790] ss:$8 sps:$4 sm:$0xff]  }
 0x3f9   : > { %21393 = vmatprep.subr.bf16.mxu0 %v26554_v61  ;;  %19474 = vmatprep.mubr.bf16.mxu1 %v26557_v62  ;;  %v26642_v61 = vld [vmem:[%s30319_s7 + $0x1890] ss:$8 sps:$4 sm:$0xff]   ;;  %v26652_v62 = vld [vmem:[%s30319_s7 + $0x7a4] ss:$8 sps:$4 sm:$0xff]  }
 0x3fa   : > { %21395 = vmatprep.mubr.bf16.mxu0 %v26560_v63  ;;  %v26656_v63 = vld [vmem:[%s30319_s7 + $0x18a4] ss:$8 sps:$4 sm:$0xff]  }
 0x3fb   : > { %19473 = vmatpush1.bf16.msra.mxu1 %v26549_v0  ;;  %v26649_v0 = vld [vmem:[%s33193_s0 + $0xad0] ss:$272 sps:$4 sm:$0xff]  }
 0x3fc   : > { %21394 = vmatpush1.bf16.msra.mxu0 %v26552_v1  ;;  %19555 = vmatprep.subr.bf16.mxu1 %v26563_v2  ;;  %v26650_v1 = vld [vmem:[%s30319_s7 + $0x7a0] ss:$8 sps:$4 sm:$0xff]  }
 0x3fd   : > { %21476 = vmatprep.subr.bf16.mxu0 %v26566_v3  ;;  %v26653_v2 = vld [vmem:[%s33193_s0 + $0xb58] ss:$272 sps:$4 sm:$0xff]  }
 0x3fe   : > { %19475 = vmatmul.mubr.bf16.vlgmr.msra.gmra.mrb[0].mxu1 %v26555_v4  ;;  %v26654_v3 = vld [vmem:[%s30319_s7 + $0x18a0] ss:$8 sps:$4 sm:$0xff]   ;;  %v26659_v4 = vld [vmem:[%s30319_s7 + $0x7b4] ss:$8 sps:$4 sm:$0xff]  }
 0x3ff   : > { %21396 = vmatmul.mubr.bf16.vlgmr.msra.gmra.mrb[0].mxu0 %v26558_v5  ;;  %19556 = vmatpush1.bf16.msra.mxu1 %v26561_v6  ;;  %v26662_v5 = vld [vmem:[%s30319_s7 + $0x18b4] ss:$8 sps:$4 sm:$0xff]  }
 0x400   : > { %21477 = vmatpush1.bf16.msra.mxu0 %v26564_v7  ;;  %19557 = vmatprep.subr.bf16.mxu1 %v26569_v8  ;;  %v26663_v6 = vld [vmem:[%s33193_s0 + $0xcf4] ss:$272 sps:$4 sm:$0xff]   ;;  %v26665_v7 = vld [vmem:[%s33193_s0 + $0xd7c] ss:$272 sps:$4 sm:$0xff]   ;;  %v26657_v8 = vld [vmem:[%s30319_s7 + $0x7b0] ss:$8 sps:$4 sm:$0xff]  }
 0x401   : > { %21478 = vmatprep.subr.bf16.mxu0 %v26572_v9  ;;  %19484 = vmatprep.mubr.bf16.mxu1 %v26573_v10  ;;  %v26660_v9 = vld [vmem:[%s30319_s7 + $0x18b0] ss:$8 sps:$4 sm:$0xff]   ;;  %v26670_v10 = vld [vmem:[%s30319_s7 + $0x7c4] ss:$8 sps:$4 sm:$0xff]  }
 0x402   : > { %21405 = vmatprep.mubr.bf16.mxu0 %v26575_v11  ;;  %v26674_v11 = vld [vmem:[%s30319_s7 + $0x18c4] ss:$8 sps:$4 sm:$0xff]  }
 0x403   : > { %19558 = vmatpush1.bf16.msra.mxu1 %v26567_v12  ;;  %v26667_v12 = vld [vmem:[%s33193_s0 + $0xcf0] ss:$272 sps:$4 sm:$0xff]  }
 0x404   : > { %21479 = vmatpush1.bf16.msra.mxu0 %v26570_v13  ;;  %19559 = vmatprep.subr.bf16.mxu1 %v26580_v14  ;;  %v26668_v13 = vld [vmem:[%s30319_s7 + $0x7c0] ss:$8 sps:$4 sm:$0xff]  }
 0x405   : > { %21480 = vmatprep.subr.bf16.mxu0 %v26584_v15  ;;  %v26671_v14 = vld [vmem:[%s33193_s0 + $0xd78] ss:$272 sps:$4 sm:$0xff]  }
 0x406   : > { %19485 = vmatmul.mubr.bf16.gmra.mrb[4].mxu1 %v26577_v16  ;;  %v26672_v15 = vld [vmem:[%s30319_s7 + $0x18c0] ss:$8 sps:$4 sm:$0xff]   ;;  %v26677_v16 = vld [vmem:[%s30319_s7 + $0x7d4] ss:$8 sps:$4 sm:$0xff]  }
 0x407   : > { %21406 = vmatmul.mubr.bf16.gmra.mrb[4].mxu0 %v26581_v18  ;;  %19560 = vmatpush1.bf16.msra.mxu1 %v26578_v17  ;;  %v26680_v17 = vld [vmem:[%s30319_s7 + $0x18d4] ss:$8 sps:$4 sm:$0xff]  }
 0x408   : > { %21481 = vmatpush1.bf16.msra.mxu0 %v26582_v19  ;;  %19561 = vmatprep.subr.bf16.mxu1 %v26587_v20  ;;  %v26681_v18 = vld [vmem:[%s33193_s0 + $0xf14] ss:$272 sps:$4 sm:$0xff]   ;;  %v26683_v19 = vld [vmem:[%s33193_s0 + $0xf9c] ss:$272 sps:$4 sm:$0xff]   ;;  %v26675_v20 = vld [vmem:[%s30319_s7 + $0x7d0] ss:$8 sps:$4 sm:$0xff]  }
 0x409   : > { %21482 = vmatprep.subr.bf16.mxu0 %v26590_v21  ;;  %19494 = vmatprep.mubr.bf16.mxu1 %v26591_v22  ;;  %v26678_v21 = vld [vmem:[%s30319_s7 + $0x18d0] ss:$8 sps:$4 sm:$0xff]   ;;  %v26688_v22 = vld [vmem:[%s30319_s7 + $0x7e4] ss:$8 sps:$4 sm:$0xff]  }
 0x40a   : > { %21415 = vmatprep.mubr.bf16.mxu0 %v26593_v23  ;;  %v26692_v23 = vld [vmem:[%s30319_s7 + $0x18e4] ss:$8 sps:$4 sm:$0xff]  }
 0x40b   : > { %19562 = vmatpush1.bf16.msra.mxu1 %v26585_v24  ;;  %v26685_v24 = vld [vmem:[%s33193_s0 + $0xf10] ss:$272 sps:$4 sm:$0xff]  }
 0x40c   : > { %21483 = vmatpush1.bf16.msra.mxu0 %v26588_v25  ;;  %19563 = vmatprep.subr.bf16.mxu1 %v26598_v26  ;;  %v26686_v25 = vld [vmem:[%s30319_s7 + $0x7e0] ss:$8 sps:$4 sm:$0xff]  }
 0x40d   : > { %21484 = vmatprep.subr.bf16.mxu0 %v26602_v27  ;;  %v26689_v26 = vld [vmem:[%s33193_s0 + $0xf98] ss:$272 sps:$4 sm:$0xff]  }
 0x40e   : > { %19495 = vmatmul.mubr.bf16.gmra.mrb[8].mxu1 %v26595_v28  ;;  %v26690_v27 = vld [vmem:[%s30319_s7 + $0x18e0] ss:$8 sps:$4 sm:$0xff]   ;;  %v26695_v28 = vld [vmem:[%s30319_s7 + $0x7f4] ss:$8 sps:$4 sm:$0xff]  }
 0x40f   : > { %21416 = vmatmul.mubr.bf16.gmra.mrb[8].mxu0 %v26599_v30  ;;  %19564 = vmatpush1.bf16.msra.mxu1 %v26596_v29  ;;  %v26698_v29 = vld [vmem:[%s30319_s7 + $0x18f4] ss:$8 sps:$4 sm:$0xff]  }
 0x410   : > { %21485 = vmatpush1.bf16.msra.mxu0 %v26600_v31  ;;  %19565 = vmatprep.subr.bf16.mxu1 %v26605_v32  ;;  %v26701_v30 = vld [vmem:[%s33193_s0 + $0x3c] ss:$272 sps:$4 sm:$0xff]   ;;  %v26704_v31 = vld [vmem:[%s33193_s0 + $0xc4] ss:$272 sps:$4 sm:$0xff]   ;;  %v26693_v32 = vld [vmem:[%s30319_s7 + $0x7f0] ss:$8 sps:$4 sm:$0xff]  }
 0x411   : > { %21486 = vmatprep.subr.bf16.mxu0 %v26608_v33  ;;  %19504 = vmatprep.mubr.bf16.mxu1 %v26609_v34  ;;  %v26696_v33 = vld [vmem:[%s30319_s7 + $0x18f0] ss:$8 sps:$4 sm:$0xff]   ;;  %v26707_v34 = vld [vmem:[%s30319_s7 + $0x804] ss:$8 sps:$4 sm:$0xff]  }
 0x412   : > { %21425 = vmatprep.mubr.bf16.mxu0 %v26611_v35  ;;  %v26710_v35 = vld [vmem:[%s30319_s7 + $0x1904] ss:$8 sps:$4 sm:$0xff]  }
 0x413   : > { %19566 = vmatpush1.bf16.msra.mxu1 %v26603_v36  ;;  %v26699_v36 = vld [vmem:[%s33193_s0 + $0x38] ss:$272 sps:$4 sm:$0xff]  }
 0x414   : > { %21487 = vmatpush1.bf16.msra.mxu0 %v26606_v37  ;;  %19567 = vmatprep.subr.bf16.mxu1 %v26616_v38  ;;  %v26702_v37 = vld [vmem:[%s33193_s0 + $0xc0] ss:$272 sps:$4 sm:$0xff]  }
 0x415   : > { %21488 = vmatprep.subr.bf16.mxu0 %v26620_v39  ;;  %v26705_v38 = vld [vmem:[%s30319_s7 + $0x800] ss:$8 sps:$4 sm:$0xff]  }
 0x416   : > { %19505 = vmatmul.mubr.bf16.gmra.mrb[12].mxu1 %v26613_v40  ;;  %v26708_v39 = vld [vmem:[%s30319_s7 + $0x1900] ss:$8 sps:$4 sm:$0xff]   ;;  %v26713_v40 = vld [vmem:[%s30319_s7 + $0x814] ss:$8 sps:$4 sm:$0xff]  }
 0x417   : > { %21426 = vmatmul.mubr.bf16.gmra.mrb[12].mxu0 %v26617_v42  ;;  %19568 = vmatpush1.bf16.msra.mxu1 %v26614_v41  ;;  %v26716_v41 = vld [vmem:[%s30319_s7 + $0x1914] ss:$8 sps:$4 sm:$0xff]  }
 0x418   : > { %21489 = vmatpush1.bf16.msra.mxu0 %v26618_v43  ;;  %19569 = vmatprep.subr.bf16.mxu1 %v26623_v44  ;;  %v26717_v42 = vld [vmem:[%s33193_s0 + $0x25c] ss:$272 sps:$4 sm:$0xff]   ;;  %v26719_v43 = vld [vmem:[%s33193_s0 + $0x2e4] ss:$272 sps:$4 sm:$0xff]   ;;  %v26711_v44 = vld [vmem:[%s30319_s7 + $0x810] ss:$8 sps:$4 sm:$0xff]  }
 0x419   : > { %21490 = vmatprep.subr.bf16.mxu0 %v26626_v45  ;;  %19514 = vmatprep.mubr.bf16.mxu1 %v26627_v46  ;;  %v26714_v45 = vld [vmem:[%s30319_s7 + $0x1910] ss:$8 sps:$4 sm:$0xff]   ;;  %v26724_v46 = vld [vmem:[%s30319_s7 + $0x824] ss:$8 sps:$4 sm:$0xff]  }
 0x41a   : > { %21435 = vmatprep.mubr.bf16.mxu0 %v26629_v47  ;;  %v26728_v47 = vld [vmem:[%s30319_s7 + $0x1924] ss:$8 sps:$4 sm:$0xff]  }
 0x41b   : > { %19570 = vmatpush1.bf16.msra.mxu1 %v26621_v48  ;;  %v26721_v48 = vld [vmem:[%s33193_s0 + $0x258] ss:$272 sps:$4 sm:$0xff]  }
 0x41c   : > { %21491 = vmatpush1.bf16.msra.mxu0 %v26624_v49  ;;  %19571 = vmatprep.subr.bf16.mxu1 %v26634_v50  ;;  %v26722_v49 = vld [vmem:[%s30319_s7 + $0x820] ss:$8 sps:$4 sm:$0xff]  }
 0x41d   : > { %21492 = vmatprep.subr.bf16.mxu0 %v26638_v51  ;;  %v26725_v50 = vld [vmem:[%s33193_s0 + $0x2e0] ss:$272 sps:$4 sm:$0xff]  }
 0x41e   : > { %19515 = vmatmul.mubr.bf16.gmra.mrb[16].mxu1 %v26631_v52  ;;  %v26726_v51 = vld [vmem:[%s30319_s7 + $0x1920] ss:$8 sps:$4 sm:$0xff]   ;;  %v26731_v52 = vld [vmem:[%s30319_s7 + $0x834] ss:$8 sps:$4 sm:$0xff]  }
 0x41f   : > { %21436 = vmatmul.mubr.bf16.gmra.mrb[16].mxu0 %v26635_v54  ;;  %19572 = vmatpush1.bf16.msra.mxu1 %v26632_v53  ;;  %v26734_v53 = vld [vmem:[%s30319_s7 + $0x1934] ss:$8 sps:$4 sm:$0xff]  }
 0x420   : > { %21493 = vmatpush1.bf16.msra.mxu0 %v26636_v55  ;;  %19573 = vmatprep.subr.bf16.mxu1 %v26641_v56  ;;  %v26735_v54 = vld [vmem:[%s33193_s0 + $0x47c] ss:$272 sps:$4 sm:$0xff]   ;;  %v26737_v55 = vld [vmem:[%s33193_s0 + $0x504] ss:$272 sps:$4 sm:$0xff]   ;;  %v26729_v56 = vld [vmem:[%s30319_s7 + $0x830] ss:$8 sps:$4 sm:$0xff]  }
 0x421   : > { %21494 = vmatprep.subr.bf16.mxu0 %v26644_v57  ;;  %19524 = vmatprep.mubr.bf16.mxu1 %v26645_v58  ;;  %v26732_v57 = vld [vmem:[%s30319_s7 + $0x1930] ss:$8 sps:$4 sm:$0xff]   ;;  %v26742_v58 = vld [vmem:[%s30319_s7 + $0x844] ss:$8 sps:$4 sm:$0xff]  }
 0x422   : > { %21445 = vmatprep.mubr.bf16.mxu0 %v26647_v59  ;;  %v26746_v59 = vld [vmem:[%s30319_s7 + $0x1944] ss:$8 sps:$4 sm:$0xff]  }
 0x423   : > { %19574 = vmatpush1.bf16.msra.mxu1 %v26639_v60  ;;  %v26739_v60 = vld [vmem:[%s33193_s0 + $0x478] ss:$272 sps:$4 sm:$0xff]  }
 0x424   : > { %21495 = vmatpush1.bf16.msra.mxu0 %v26642_v61  ;;  %19575 = vmatprep.subr.bf16.mxu1 %v26652_v62  ;;  %v26740_v61 = vld [vmem:[%s30319_s7 + $0x840] ss:$8 sps:$4 sm:$0xff]  }
 0x425   : > { %21496 = vmatprep.subr.bf16.mxu0 %v26656_v63  ;;  %v26743_v62 = vld [vmem:[%s33193_s0 + $0x500] ss:$272 sps:$4 sm:$0xff]  }
 0x426   : > { %19525 = vmatmul.mubr.bf16.gmra.mrb[20].mxu1 %v26649_v0  ;;  %v26744_v63 = vld [vmem:[%s30319_s7 + $0x1940] ss:$8 sps:$4 sm:$0xff]   ;;  %v26749_v0 = vld [vmem:[%s30319_s7 + $0x854] ss:$8 sps:$4 sm:$0xff]  }
 0x427   : > { %21446 = vmatmul.mubr.bf16.gmra.mrb[20].mxu0 %v26653_v2  ;;  %19576 = vmatpush1.bf16.msra.mxu1 %v26650_v1  ;;  %v26752_v1 = vld [vmem:[%s30319_s7 + $0x1954] ss:$8 sps:$4 sm:$0xff]  }
 0x428   : > { %21497 = vmatpush1.bf16.msra.mxu0 %v26654_v3  ;;  %19577 = vmatprep.subr.bf16.mxu1 %v26659_v4  ;;  %v26753_v2 = vld [vmem:[%s33193_s0 + $0x69c] ss:$272 sps:$4 sm:$0xff]   ;;  %v26755_v3 = vld [vmem:[%s33193_s0 + $0x724] ss:$272 sps:$4 sm:$0xff]   ;;  %v26747_v4 = vld [vmem:[%s30319_s7 + $0x850] ss:$8 sps:$4 sm:$0xff]  }
 0x429   : > { %21498 = vmatprep.subr.bf16.mxu0 %v26662_v5  ;;  %19534 = vmatprep.mubr.bf16.mxu1 %v26663_v6  ;;  %v26750_v5 = vld [vmem:[%s30319_s7 + $0x1950] ss:$8 sps:$4 sm:$0xff]   ;;  %v26760_v6 = vld [vmem:[%s30319_s7 + $0x864] ss:$8 sps:$4 sm:$0xff]  }
 0x42a   : > { %21455 = vmatprep.mubr.bf16.mxu0 %v26665_v7  ;;  %v26764_v7 = vld [vmem:[%s30319_s7 + $0x1964] ss:$8 sps:$4 sm:$0xff]  }
 0x42b   : > { %19578 = vmatpush1.bf16.msra.mxu1 %v26657_v8  ;;  %v26757_v8 = vld [vmem:[%s33193_s0 + $0x698] ss:$272 sps:$4 sm:$0xff]  }
 0x42c   : > { %21499 = vmatpush1.bf16.msra.mxu0 %v26660_v9  ;;  %19579 = vmatprep.subr.bf16.mxu1 %v26670_v10  ;;  %v26758_v9 = vld [vmem:[%s30319_s7 + $0x860] ss:$8 sps:$4 sm:$0xff]  }
 0x42d   : > { %21500 = vmatprep.subr.bf16.mxu0 %v26674_v11  ;;  %v26761_v10 = vld [vmem:[%s33193_s0 + $0x720] ss:$272 sps:$4 sm:$0xff]  }
 0x42e   : > { %19535 = vmatmul.mubr.bf16.gmra.mrb[24].mxu1 %v26667_v12  ;;  %v26762_v11 = vld [vmem:[%s30319_s7 + $0x1960] ss:$8 sps:$4 sm:$0xff]   ;;  %v26767_v12 = vld [vmem:[%s30319_s7 + $0x874] ss:$8 sps:$4 sm:$0xff]  }
 0x42f   : > { %21456 = vmatmul.mubr.bf16.gmra.mrb[24].mxu0 %v26671_v14  ;;  %19580 = vmatpush1.bf16.msra.mxu1 %v26668_v13  ;;  %v26770_v13 = vld [vmem:[%s30319_s7 + $0x1974] ss:$8 sps:$4 sm:$0xff]  }
 0x430   : > { %21501 = vmatpush1.bf16.msra.mxu0 %v26672_v15  ;;  %19581 = vmatprep.subr.bf16.mxu1 %v26677_v16  ;;  %v26771_v14 = vld [vmem:[%s33193_s0 + $0x8bc] ss:$272 sps:$4 sm:$0xff]   ;;  %v26773_v15 = vld [vmem:[%s33193_s0 + $0x944] ss:$272 sps:$4 sm:$0xff]   ;;  %v26765_v16 = vld [vmem:[%s30319_s7 + $0x870] ss:$8 sps:$4 sm:$0xff]  }
 0x431   : > { %21502 = vmatprep.subr.bf16.mxu0 %v26680_v17  ;;  %19544 = vmatprep.mubr.bf16.mxu1 %v26681_v18  ;;  %v26768_v17 = vld [vmem:[%s30319_s7 + $0x1970] ss:$8 sps:$4 sm:$0xff]   ;;  %v26778_v18 = vld [vmem:[%s30319_s7 + $0x884] ss:$8 sps:$4 sm:$0xff]  }
 0x432   : > { %21465 = vmatprep.mubr.bf16.mxu0 %v26683_v19  ;;  %v26782_v19 = vld [vmem:[%s30319_s7 + $0x1984] ss:$8 sps:$4 sm:$0xff]  }
 0x433   : > { %19582 = vmatpush1.bf16.msra.mxu1 %v26675_v20  ;;  %v26775_v20 = vld [vmem:[%s33193_s0 + $0x8b8] ss:$272 sps:$4 sm:$0xff]  }
 0x434   : > { %21503 = vmatpush1.bf16.msra.mxu0 %v26678_v21  ;;  %19583 = vmatprep.subr.bf16.mxu1 %v26688_v22  ;;  %v26776_v21 = vld [vmem:[%s30319_s7 + $0x880] ss:$8 sps:$4 sm:$0xff]  }
 0x435   : > { %21504 = vmatprep.subr.bf16.mxu0 %v26692_v23  ;;  %v26779_v22 = vld [vmem:[%s33193_s0 + $0x940] ss:$272 sps:$4 sm:$0xff]  }
 0x436   : > { %19545 = vmatmul.mubr.bf16.gmra.mrb[28].mxu1 %v26685_v24  ;;  %v26780_v23 = vld [vmem:[%s30319_s7 + $0x1980] ss:$8 sps:$4 sm:$0xff]   ;;  %v26785_v24 = vld [vmem:[%s30319_s7 + $0x894] ss:$8 sps:$4 sm:$0xff]  }
 0x437   : > { %21466 = vmatmul.mubr.bf16.gmra.mrb[28].mxu0 %v26689_v26  ;;  %19584 = vmatpush1.bf16.msra.mxu1 %v26686_v25  ;;  %v26788_v25 = vld [vmem:[%s30319_s7 + $0x1994] ss:$8 sps:$4 sm:$0xff]  }
 0x438   : > { %21505 = vmatpush1.bf16.msra.mxu0 %v26690_v27  ;;  %19585 = vmatprep.subr.bf16.mxu1 %v26695_v28  ;;  %v26789_v26 = vld [vmem:[%s33193_s0 + $0xadc] ss:$272 sps:$4 sm:$0xff]   ;;  %v26791_v27 = vld [vmem:[%s33193_s0 + $0xb64] ss:$272 sps:$4 sm:$0xff]   ;;  %v26783_v28 = vld [vmem:[%s30319_s7 + $0x890] ss:$8 sps:$4 sm:$0xff]  }
 0x439   : > { %21506 = vmatprep.subr.bf16.mxu0 %v26698_v29  ;;  %19587 = vmatprep.mubr.bf16.mxu1 %v26701_v30  ;;  %v26786_v29 = vld [vmem:[%s30319_s7 + $0x1990] ss:$8 sps:$4 sm:$0xff]   ;;  %v26796_v30 = vld [vmem:[%s30319_s7 + $0x8a4] ss:$8 sps:$4 sm:$0xff]  }
 0x43a   : > { %21508 = vmatprep.mubr.bf16.mxu0 %v26704_v31  ;;  %v26800_v31 = vld [vmem:[%s30319_s7 + $0x19a4] ss:$8 sps:$4 sm:$0xff]  }
 0x43b   : > { %19586 = vmatpush1.bf16.msra.mxu1 %v26693_v32  ;;  %v26793_v32 = vld [vmem:[%s33193_s0 + $0xad8] ss:$272 sps:$4 sm:$0xff]  }
 0x43c   : > { %21507 = vmatpush1.bf16.msra.mxu0 %v26696_v33  ;;  %19668 = vmatprep.subr.bf16.mxu1 %v26707_v34  ;;  %v26794_v33 = vld [vmem:[%s30319_s7 + $0x8a0] ss:$8 sps:$4 sm:$0xff]  }
 0x43d   : > { %21589 = vmatprep.subr.bf16.mxu0 %v26710_v35  ;;  %v26797_v34 = vld [vmem:[%s33193_s0 + $0xb60] ss:$272 sps:$4 sm:$0xff]  }
 0x43e   : > { %19588 = vmatmul.mubr.bf16.vlgmr.msra.gmra.mrb[0].mxu1 %v26699_v36  ;;  %v26798_v35 = vld [vmem:[%s30319_s7 + $0x19a0] ss:$8 sps:$4 sm:$0xff]   ;;  %v26803_v36 = vld [vmem:[%s30319_s7 + $0x8b4] ss:$8 sps:$4 sm:$0xff]  }
 0x43f   : > { %21509 = vmatmul.mubr.bf16.vlgmr.msra.gmra.mrb[0].mxu0 %v26702_v37  ;;  %19669 = vmatpush1.bf16.msra.mxu1 %v26705_v38  ;;  %v26806_v37 = vld [vmem:[%s30319_s7 + $0x19b4] ss:$8 sps:$4 sm:$0xff]  }
 0x440   : > { %21590 = vmatpush1.bf16.msra.mxu0 %v26708_v39  ;;  %19670 = vmatprep.subr.bf16.mxu1 %v26713_v40  ;;  %v26807_v38 = vld [vmem:[%s33193_s0 + $0xcfc] ss:$272 sps:$4 sm:$0xff]   ;;  %v26809_v39 = vld [vmem:[%s33193_s0 + $0xd84] ss:$272 sps:$4 sm:$0xff]   ;;  %v26801_v40 = vld [vmem:[%s30319_s7 + $0x8b0] ss:$8 sps:$4 sm:$0xff]  }
 0x441   : > { %21591 = vmatprep.subr.bf16.mxu0 %v26716_v41  ;;  %19597 = vmatprep.mubr.bf16.mxu1 %v26717_v42  ;;  %v26804_v41 = vld [vmem:[%s30319_s7 + $0x19b0] ss:$8 sps:$4 sm:$0xff]   ;;  %v26814_v42 = vld [vmem:[%s30319_s7 + $0x8c4] ss:$8 sps:$4 sm:$0xff]  }
 0x442   : > { %21518 = vmatprep.mubr.bf16.mxu0 %v26719_v43  ;;  %v26818_v43 = vld [vmem:[%s30319_s7 + $0x19c4] ss:$8 sps:$4 sm:$0xff]  }
 0x443   : > { %19671 = vmatpush1.bf16.msra.mxu1 %v26711_v44  ;;  %v26811_v44 = vld [vmem:[%s33193_s0 + $0xcf8] ss:$272 sps:$4 sm:$0xff]  }
 0x444   : > { %21592 = vmatpush1.bf16.msra.mxu0 %v26714_v45  ;;  %19672 = vmatprep.subr.bf16.mxu1 %v26724_v46  ;;  %v26812_v45 = vld [vmem:[%s30319_s7 + $0x8c0] ss:$8 sps:$4 sm:$0xff]  }
 0x445   : > { %21593 = vmatprep.subr.bf16.mxu0 %v26728_v47  ;;  %v26815_v46 = vld [vmem:[%s33193_s0 + $0xd80] ss:$272 sps:$4 sm:$0xff]  }
 0x446   : > { %19598 = vmatmul.mubr.bf16.gmra.mrb[4].mxu1 %v26721_v48  ;;  %v26816_v47 = vld [vmem:[%s30319_s7 + $0x19c0] ss:$8 sps:$4 sm:$0xff]   ;;  %v26821_v48 = vld [vmem:[%s30319_s7 + $0x8d4] ss:$8 sps:$4 sm:$0xff]  }
 0x447   : > { %21519 = vmatmul.mubr.bf16.gmra.mrb[4].mxu0 %v26725_v50  ;;  %19673 = vmatpush1.bf16.msra.mxu1 %v26722_v49  ;;  %v26824_v49 = vld [vmem:[%s30319_s7 + $0x19d4] ss:$8 sps:$4 sm:$0xff]  }
 0x448   : > { %21594 = vmatpush1.bf16.msra.mxu0 %v26726_v51  ;;  %19674 = vmatprep.subr.bf16.mxu1 %v26731_v52  ;;  %v26825_v50 = vld [vmem:[%s33193_s0 + $0xf1c] ss:$272 sps:$4 sm:$0xff]   ;;  %v26827_v51 = vld [vmem:[%s33193_s0 + $0xfa4] ss:$272 sps:$4 sm:$0xff]   ;;  %v26819_v52 = vld [vmem:[%s30319_s7 + $0x8d0] ss:$8 sps:$4 sm:$0xff]  }
 0x449   : > { %21595 = vmatprep.subr.bf16.mxu0 %v26734_v53  ;;  %19607 = vmatprep.mubr.bf16.mxu1 %v26735_v54  ;;  %v26822_v53 = vld [vmem:[%s30319_s7 + $0x19d0] ss:$8 sps:$4 sm:$0xff]   ;;  %v26832_v54 = vld [vmem:[%s30319_s7 + $0x8e4] ss:$8 sps:$4 sm:$0xff]  }
 0x44a   : > { %21528 = vmatprep.mubr.bf16.mxu0 %v26737_v55  ;;  %v26836_v55 = vld [vmem:[%s30319_s7 + $0x19e4] ss:$8 sps:$4 sm:$0xff]  }
 0x44b   : > { %19675 = vmatpush1.bf16.msra.mxu1 %v26729_v56  ;;  %v26829_v56 = vld [vmem:[%s33193_s0 + $0xf18] ss:$272 sps:$4 sm:$0xff]  }
 0x44c   : > { %21596 = vmatpush1.bf16.msra.mxu0 %v26732_v57  ;;  %19676 = vmatprep.subr.bf16.mxu1 %v26742_v58  ;;  %v26830_v57 = vld [vmem:[%s30319_s7 + $0x8e0] ss:$8 sps:$4 sm:$0xff]  }
 0x44d   : > { %21597 = vmatprep.subr.bf16.mxu0 %v26746_v59  ;;  %v26833_v58 = vld [vmem:[%s33193_s0 + $0xfa0] ss:$272 sps:$4 sm:$0xff]  }
 0x44e   : > { %19608 = vmatmul.mubr.bf16.gmra.mrb[8].mxu1 %v26739_v60  ;;  %v26834_v59 = vld [vmem:[%s30319_s7 + $0x19e0] ss:$8 sps:$4 sm:$0xff]   ;;  %v26839_v60 = vld [vmem:[%s30319_s7 + $0x8f4] ss:$8 sps:$4 sm:$0xff]  }
 0x44f   : > { %21529 = vmatmul.mubr.bf16.gmra.mrb[8].mxu0 %v26743_v62  ;;  %19677 = vmatpush1.bf16.msra.mxu1 %v26740_v61  ;;  %v26842_v61 = vld [vmem:[%s30319_s7 + $0x19f4] ss:$8 sps:$4 sm:$0xff]  }
 0x450   : > { %21598 = vmatpush1.bf16.msra.mxu0 %v26744_v63  ;;  %19678 = vmatprep.subr.bf16.mxu1 %v26749_v0  ;;  %v26845_v62 = vld [vmem:[%s33193_s0 + $0x44] ss:$272 sps:$4 sm:$0xff]   ;;  %v26848_v63 = vld [vmem:[%s33193_s0 + $0xcc] ss:$272 sps:$4 sm:$0xff]   ;;  %v26837_v0 = vld [vmem:[%s30319_s7 + $0x8f0] ss:$8 sps:$4 sm:$0xff]  }
 0x451   : > { %21599 = vmatprep.subr.bf16.mxu0 %v26752_v1  ;;  %19617 = vmatprep.mubr.bf16.mxu1 %v26753_v2  ;;  %v26840_v1 = vld [vmem:[%s30319_s7 + $0x19f0] ss:$8 sps:$4 sm:$0xff]   ;;  %v26851_v2 = vld [vmem:[%s30319_s7 + $0x904] ss:$8 sps:$4 sm:$0xff]  }
 0x452   : > { %21538 = vmatprep.mubr.bf16.mxu0 %v26755_v3  ;;  %v26854_v3 = vld [vmem:[%s30319_s7 + $0x1a04] ss:$8 sps:$4 sm:$0xff]  }
 0x453   : > { %19679 = vmatpush1.bf16.msra.mxu1 %v26747_v4  ;;  %v26843_v4 = vld [vmem:[%s33193_s0 + $0x40] ss:$272 sps:$4 sm:$0xff]  }
 0x454   : > { %21600 = vmatpush1.bf16.msra.mxu0 %v26750_v5  ;;  %19680 = vmatprep.subr.bf16.mxu1 %v26760_v6  ;;  %v26846_v5 = vld [vmem:[%s33193_s0 + $0xc8] ss:$272 sps:$4 sm:$0xff]  }
 0x455   : > { %21601 = vmatprep.subr.bf16.mxu0 %v26764_v7  ;;  %v26849_v6 = vld [vmem:[%s30319_s7 + $0x900] ss:$8 sps:$4 sm:$0xff]  }
 0x456   : > { %19618 = vmatmul.mubr.bf16.gmra.mrb[12].mxu1 %v26757_v8  ;;  %v26852_v7 = vld [vmem:[%s30319_s7 + $0x1a00] ss:$8 sps:$4 sm:$0xff]   ;;  %v26857_v8 = vld [vmem:[%s30319_s7 + $0x914] ss:$8 sps:$4 sm:$0xff]  }
 0x457   : > { %21539 = vmatmul.mubr.bf16.gmra.mrb[12].mxu0 %v26761_v10  ;;  %19681 = vmatpush1.bf16.msra.mxu1 %v26758_v9  ;;  %v26860_v9 = vld [vmem:[%s30319_s7 + $0x1a14] ss:$8 sps:$4 sm:$0xff]  }
 0x458   : > { %21602 = vmatpush1.bf16.msra.mxu0 %v26762_v11  ;;  %19682 = vmatprep.subr.bf16.mxu1 %v26767_v12  ;;  %v26861_v10 = vld [vmem:[%s33193_s0 + $0x264] ss:$272 sps:$4 sm:$0xff]   ;;  %v26863_v11 = vld [vmem:[%s33193_s0 + $0x2ec] ss:$272 sps:$4 sm:$0xff]   ;;  %v26855_v12 = vld [vmem:[%s30319_s7 + $0x910] ss:$8 sps:$4 sm:$0xff]  }
 0x459   : > { %21603 = vmatprep.subr.bf16.mxu0 %v26770_v13  ;;  %19627 = vmatprep.mubr.bf16.mxu1 %v26771_v14  ;;  %v26858_v13 = vld [vmem:[%s30319_s7 + $0x1a10] ss:$8 sps:$4 sm:$0xff]   ;;  %v26868_v14 = vld [vmem:[%s30319_s7 + $0x924] ss:$8 sps:$4 sm:$0xff]  }
 0x45a   : > { %21548 = vmatprep.mubr.bf16.mxu0 %v26773_v15  ;;  %v26872_v15 = vld [vmem:[%s30319_s7 + $0x1a24] ss:$8 sps:$4 sm:$0xff]  }
 0x45b   : > { %19683 = vmatpush1.bf16.msra.mxu1 %v26765_v16  ;;  %v26865_v16 = vld [vmem:[%s33193_s0 + $0x260] ss:$272 sps:$4 sm:$0xff]  }
 0x45c   : > { %21604 = vmatpush1.bf16.msra.mxu0 %v26768_v17  ;;  %19684 = vmatprep.subr.bf16.mxu1 %v26778_v18  ;;  %v26866_v17 = vld [vmem:[%s30319_s7 + $0x920] ss:$8 sps:$4 sm:$0xff]  }
 0x45d   : > { %21605 = vmatprep.subr.bf16.mxu0 %v26782_v19  ;;  %v26869_v18 = vld [vmem:[%s33193_s0 + $0x2e8] ss:$272 sps:$4 sm:$0xff]  }
 0x45e   : > { %19628 = vmatmul.mubr.bf16.gmra.mrb[16].mxu1 %v26775_v20  ;;  %v26870_v19 = vld [vmem:[%s30319_s7 + $0x1a20] ss:$8 sps:$4 sm:$0xff]   ;;  %v26875_v20 = vld [vmem:[%s30319_s7 + $0x934] ss:$8 sps:$4 sm:$0xff]  }
 0x45f   : > { %21549 = vmatmul.mubr.bf16.gmra.mrb[16].mxu0 %v26779_v22  ;;  %19685 = vmatpush1.bf16.msra.mxu1 %v26776_v21  ;;  %v26878_v21 = vld [vmem:[%s30319_s7 + $0x1a34] ss:$8 sps:$4 sm:$0xff]  }
 0x460   : > { %21606 = vmatpush1.bf16.msra.mxu0 %v26780_v23  ;;  %19686 = vmatprep.subr.bf16.mxu1 %v26785_v24  ;;  %v26879_v22 = vld [vmem:[%s33193_s0 + $0x484] ss:$272 sps:$4 sm:$0xff]   ;;  %v26881_v23 = vld [vmem:[%s33193_s0 + $0x50c] ss:$272 sps:$4 sm:$0xff]   ;;  %v26873_v24 = vld [vmem:[%s30319_s7 + $0x930] ss:$8 sps:$4 sm:$0xff]  }
 0x461   : > { %21607 = vmatprep.subr.bf16.mxu0 %v26788_v25  ;;  %19637 = vmatprep.mubr.bf16.mxu1 %v26789_v26  ;;  %v26876_v25 = vld [vmem:[%s30319_s7 + $0x1a30] ss:$8 sps:$4 sm:$0xff]   ;;  %v26886_v26 = vld [vmem:[%s30319_s7 + $0x944] ss:$8 sps:$4 sm:$0xff]  }
 0x462   : > { %21558 = vmatprep.mubr.bf16.mxu0 %v26791_v27  ;;  %v26890_v27 = vld [vmem:[%s30319_s7 + $0x1a44] ss:$8 sps:$4 sm:$0xff]  }
 0x463   : > { %19687 = vmatpush1.bf16.msra.mxu1 %v26783_v28  ;;  %v26883_v28 = vld [vmem:[%s33193_s0 + $0x480] ss:$272 sps:$4 sm:$0xff]  }
 0x464   : > { %21608 = vmatpush1.bf16.msra.mxu0 %v26786_v29  ;;  %19688 = vmatprep.subr.bf16.mxu1 %v26796_v30  ;;  %v26884_v29 = vld [vmem:[%s30319_s7 + $0x940] ss:$8 sps:$4 sm:$0xff]  }
 0x465   : > { %21609 = vmatprep.subr.bf16.mxu0 %v26800_v31  ;;  %v26887_v30 = vld [vmem:[%s33193_s0 + $0x508] ss:$272 sps:$4 sm:$0xff]  }
 0x466   : > { %19638 = vmatmul.mubr.bf16.gmra.mrb[20].mxu1 %v26793_v32  ;;  %v26888_v31 = vld [vmem:[%s30319_s7 + $0x1a40] ss:$8 sps:$4 sm:$0xff]   ;;  %v26893_v32 = vld [vmem:[%s30319_s7 + $0x954] ss:$8 sps:$4 sm:$0xff]  }
 0x467   : > { %21559 = vmatmul.mubr.bf16.gmra.mrb[20].mxu0 %v26797_v34  ;;  %19689 = vmatpush1.bf16.msra.mxu1 %v26794_v33  ;;  %v26896_v33 = vld [vmem:[%s30319_s7 + $0x1a54] ss:$8 sps:$4 sm:$0xff]  }
 0x468   : > { %21610 = vmatpush1.bf16.msra.mxu0 %v26798_v35  ;;  %19690 = vmatprep.subr.bf16.mxu1 %v26803_v36  ;;  %v26897_v34 = vld [vmem:[%s33193_s0 + $0x6a4] ss:$272 sps:$4 sm:$0xff]   ;;  %v26899_v35 = vld [vmem:[%s33193_s0 + $0x72c] ss:$272 sps:$4 sm:$0xff]   ;;  %v26891_v36 = vld [vmem:[%s30319_s7 + $0x950] ss:$8 sps:$4 sm:$0xff]  }
 0x469   : > { %21611 = vmatprep.subr.bf16.mxu0 %v26806_v37  ;;  %19647 = vmatprep.mubr.bf16.mxu1 %v26807_v38  ;;  %v26894_v37 = vld [vmem:[%s30319_s7 + $0x1a50] ss:$8 sps:$4 sm:$0xff]   ;;  %v26904_v38 = vld [vmem:[%s30319_s7 + $0x964] ss:$8 sps:$4 sm:$0xff]  }
 0x46a   : > { %21568 = vmatprep.mubr.bf16.mxu0 %v26809_v39  ;;  %v26908_v39 = vld [vmem:[%s30319_s7 + $0x1a64] ss:$8 sps:$4 sm:$0xff]  }
 0x46b   : > { %19691 = vmatpush1.bf16.msra.mxu1 %v26801_v40  ;;  %v26901_v40 = vld [vmem:[%s33193_s0 + $0x6a0] ss:$272 sps:$4 sm:$0xff]  }
 0x46c   : > { %21612 = vmatpush1.bf16.msra.mxu0 %v26804_v41  ;;  %19692 = vmatprep.subr.bf16.mxu1 %v26814_v42  ;;  %v26902_v41 = vld [vmem:[%s30319_s7 + $0x960] ss:$8 sps:$4 sm:$0xff]  }
 0x46d   : > { %21613 = vmatprep.subr.bf16.mxu0 %v26818_v43  ;;  %v26905_v42 = vld [vmem:[%s33193_s0 + $0x728] ss:$272 sps:$4 sm:$0xff]  }
 0x46e   : > { %19648 = vmatmul.mubr.bf16.gmra.mrb[24].mxu1 %v26811_v44  ;;  %v26906_v43 = vld [vmem:[%s30319_s7 + $0x1a60] ss:$8 sps:$4 sm:$0xff]   ;;  %v26911_v44 = vld [vmem:[%s30319_s7 + $0x974] ss:$8 sps:$4 sm:$0xff]  }
 0x46f   : > { %21569 = vmatmul.mubr.bf16.gmra.mrb[24].mxu0 %v26815_v46  ;;  %19693 = vmatpush1.bf16.msra.mxu1 %v26812_v45  ;;  %v26914_v45 = vld [vmem:[%s30319_s7 + $0x1a74] ss:$8 sps:$4 sm:$0xff]  }
 0x470   : > { %21614 = vmatpush1.bf16.msra.mxu0 %v26816_v47  ;;  %19694 = vmatprep.subr.bf16.mxu1 %v26821_v48  ;;  %v26915_v46 = vld [vmem:[%s33193_s0 + $0x8c4] ss:$272 sps:$4 sm:$0xff]   ;;  %v26917_v47 = vld [vmem:[%s33193_s0 + $0x94c] ss:$272 sps:$4 sm:$0xff]   ;;  %v26909_v48 = vld [vmem:[%s30319_s7 + $0x970] ss:$8 sps:$4 sm:$0xff]  }
 0x471   : > { %21615 = vmatprep.subr.bf16.mxu0 %v26824_v49  ;;  %19657 = vmatprep.mubr.bf16.mxu1 %v26825_v50  ;;  %v26912_v49 = vld [vmem:[%s30319_s7 + $0x1a70] ss:$8 sps:$4 sm:$0xff]   ;;  %v26922_v50 = vld [vmem:[%s30319_s7 + $0x984] ss:$8 sps:$4 sm:$0xff]  }
 0x472   : > { %21578 = vmatprep.mubr.bf16.mxu0 %v26827_v51  ;;  %v26926_v51 = vld [vmem:[%s30319_s7 + $0x1a84] ss:$8 sps:$4 sm:$0xff]  }
 0x473   : > { %19695 = vmatpush1.bf16.msra.mxu1 %v26819_v52  ;;  %v26919_v52 = vld [vmem:[%s33193_s0 + $0x8c0] ss:$272 sps:$4 sm:$0xff]  }
 0x474   : > { %21616 = vmatpush1.bf16.msra.mxu0 %v26822_v53  ;;  %19696 = vmatprep.subr.bf16.mxu1 %v26832_v54  ;;  %v26920_v53 = vld [vmem:[%s30319_s7 + $0x980] ss:$8 sps:$4 sm:$0xff]  }
 0x475   : > { %21617 = vmatprep.subr.bf16.mxu0 %v26836_v55  ;;  %v26923_v54 = vld [vmem:[%s33193_s0 + $0x948] ss:$272 sps:$4 sm:$0xff]  }
 0x476   : > { %19658 = vmatmul.mubr.bf16.gmra.mrb[28].mxu1 %v26829_v56  ;;  %v26924_v55 = vld [vmem:[%s30319_s7 + $0x1a80] ss:$8 sps:$4 sm:$0xff]   ;;  %v26929_v56 = vld [vmem:[%s30319_s7 + $0x994] ss:$8 sps:$4 sm:$0xff]  }
 0x477   : > { %21579 = vmatmul.mubr.bf16.gmra.mrb[28].mxu0 %v26833_v58  ;;  %19697 = vmatpush1.bf16.msra.mxu1 %v26830_v57  ;;  %v26932_v57 = vld [vmem:[%s30319_s7 + $0x1a94] ss:$8 sps:$4 sm:$0xff]  }
 0x478   : > { %21618 = vmatpush1.bf16.msra.mxu0 %v26834_v59  ;;  %19698 = vmatprep.subr.bf16.mxu1 %v26839_v60  ;;  %v26933_v58 = vld [vmem:[%s33193_s0 + $0xae4] ss:$272 sps:$4 sm:$0xff]   ;;  %v26935_v59 = vld [vmem:[%s33193_s0 + $0xb6c] ss:$272 sps:$4 sm:$0xff]   ;;  %v26927_v60 = vld [vmem:[%s30319_s7 + $0x990] ss:$8 sps:$4 sm:$0xff]  }
 0x479   : > { %21619 = vmatprep.subr.bf16.mxu0 %v26842_v61  ;;  %19700 = vmatprep.mubr.bf16.mxu1 %v26845_v62  ;;  %v26930_v61 = vld [vmem:[%s30319_s7 + $0x1a90] ss:$8 sps:$4 sm:$0xff]   ;;  %v26940_v62 = vld [vmem:[%s30319_s7 + $0x9a4] ss:$8 sps:$4 sm:$0xff]  }
 0x47a   : > { %21621 = vmatprep.mubr.bf16.mxu0 %v26848_v63  ;;  %v26944_v63 = vld [vmem:[%s30319_s7 + $0x1aa4] ss:$8 sps:$4 sm:$0xff]  }
 0x47b   : > { %19699 = vmatpush1.bf16.msra.mxu1 %v26837_v0  ;;  %v26937_v0 = vld [vmem:[%s33193_s0 + $0xae0] ss:$272 sps:$4 sm:$0xff]  }
 0x47c   : > { %21620 = vmatpush1.bf16.msra.mxu0 %v26840_v1  ;;  %19781 = vmatprep.subr.bf16.mxu1 %v26851_v2  ;;  %v26938_v1 = vld [vmem:[%s30319_s7 + $0x9a0] ss:$8 sps:$4 sm:$0xff]  }
 0x47d   : > { %21702 = vmatprep.subr.bf16.mxu0 %v26854_v3  ;;  %v26941_v2 = vld [vmem:[%s33193_s0 + $0xb68] ss:$272 sps:$4 sm:$0xff]  }
 0x47e   : > { %19701 = vmatmul.mubr.bf16.vlgmr.msra.gmra.mrb[0].mxu1 %v26843_v4  ;;  %v26942_v3 = vld [vmem:[%s30319_s7 + $0x1aa0] ss:$8 sps:$4 sm:$0xff]   ;;  %v26947_v4 = vld [vmem:[%s30319_s7 + $0x9b4] ss:$8 sps:$4 sm:$0xff]  }
 0x47f   : > { %21622 = vmatmul.mubr.bf16.vlgmr.msra.gmra.mrb[0].mxu0 %v26846_v5  ;;  %19782 = vmatpush1.bf16.msra.mxu1 %v26849_v6  ;;  %v26950_v5 = vld [vmem:[%s30319_s7 + $0x1ab4] ss:$8 sps:$4 sm:$0xff]  }
 0x480   : > { %21703 = vmatpush1.bf16.msra.mxu0 %v26852_v7  ;;  %19783 = vmatprep.subr.bf16.mxu1 %v26857_v8  ;;  %v26951_v6 = vld [vmem:[%s33193_s0 + $0xd04] ss:$272 sps:$4 sm:$0xff]   ;;  %v26953_v7 = vld [vmem:[%s33193_s0 + $0xd8c] ss:$272 sps:$4 sm:$0xff]   ;;  %v26945_v8 = vld [vmem:[%s30319_s7 + $0x9b0] ss:$8 sps:$4 sm:$0xff]  }
 0x481   : > { %21704 = vmatprep.subr.bf16.mxu0 %v26860_v9  ;;  %19710 = vmatprep.mubr.bf16.mxu1 %v26861_v10  ;;  %v26948_v9 = vld [vmem:[%s30319_s7 + $0x1ab0] ss:$8 sps:$4 sm:$0xff]   ;;  %v26958_v10 = vld [vmem:[%s30319_s7 + $0x9c4] ss:$8 sps:$4 sm:$0xff]  }
 0x482   : > { %21631 = vmatprep.mubr.bf16.mxu0 %v26863_v11  ;;  %v26962_v11 = vld [vmem:[%s30319_s7 + $0x1ac4] ss:$8 sps:$4 sm:$0xff]  }
 0x483   : > { %19784 = vmatpush1.bf16.msra.mxu1 %v26855_v12  ;;  %v26955_v12 = vld [vmem:[%s33193_s0 + $0xd00] ss:$272 sps:$4 sm:$0xff]  }
 0x484   : > { %21705 = vmatpush1.bf16.msra.mxu0 %v26858_v13  ;;  %19785 = vmatprep.subr.bf16.mxu1 %v26868_v14  ;;  %v26956_v13 = vld [vmem:[%s30319_s7 + $0x9c0] ss:$8 sps:$4 sm:$0xff]  }
 0x485   : > { %21706 = vmatprep.subr.bf16.mxu0 %v26872_v15  ;;  %v26959_v14 = vld [vmem:[%s33193_s0 + $0xd88] ss:$272 sps:$4 sm:$0xff]  }
 0x486   : > { %19711 = vmatmul.mubr.bf16.gmra.mrb[4].mxu1 %v26865_v16  ;;  %v26960_v15 = vld [vmem:[%s30319_s7 + $0x1ac0] ss:$8 sps:$4 sm:$0xff]   ;;  %v26965_v16 = vld [vmem:[%s30319_s7 + $0x9d4] ss:$8 sps:$4 sm:$0xff]  }
 0x487   : > { %21632 = vmatmul.mubr.bf16.gmra.mrb[4].mxu0 %v26869_v18  ;;  %19786 = vmatpush1.bf16.msra.mxu1 %v26866_v17  ;;  %v26968_v17 = vld [vmem:[%s30319_s7 + $0x1ad4] ss:$8 sps:$4 sm:$0xff]  }
 0x488   : > { %21707 = vmatpush1.bf16.msra.mxu0 %v26870_v19  ;;  %19787 = vmatprep.subr.bf16.mxu1 %v26875_v20  ;;  %v26969_v18 = vld [vmem:[%s33193_s0 + $0xf24] ss:$272 sps:$4 sm:$0xff]   ;;  %v26971_v19 = vld [vmem:[%s33193_s0 + $0xfac] ss:$272 sps:$4 sm:$0xff]   ;;  %v26963_v20 = vld [vmem:[%s30319_s7 + $0x9d0] ss:$8 sps:$4 sm:$0xff]  }
 0x489   : > { %21708 = vmatprep.subr.bf16.mxu0 %v26878_v21  ;;  %19720 = vmatprep.mubr.bf16.mxu1 %v26879_v22  ;;  %v26966_v21 = vld [vmem:[%s30319_s7 + $0x1ad0] ss:$8 sps:$4 sm:$0xff]   ;;  %v26976_v22 = vld [vmem:[%s30319_s7 + $0x9e4] ss:$8 sps:$4 sm:$0xff]  }
 0x48a   : > { %21641 = vmatprep.mubr.bf16.mxu0 %v26881_v23  ;;  %v26980_v23 = vld [vmem:[%s30319_s7 + $0x1ae4] ss:$8 sps:$4 sm:$0xff]  }
 0x48b   : > { %19788 = vmatpush1.bf16.msra.mxu1 %v26873_v24  ;;  %v26973_v24 = vld [vmem:[%s33193_s0 + $0xf20] ss:$272 sps:$4 sm:$0xff]  }
 0x48c   : > { %21709 = vmatpush1.bf16.msra.mxu0 %v26876_v25  ;;  %19789 = vmatprep.subr.bf16.mxu1 %v26886_v26  ;;  %v26974_v25 = vld [vmem:[%s30319_s7 + $0x9e0] ss:$8 sps:$4 sm:$0xff]  }
 0x48d   : > { %21710 = vmatprep.subr.bf16.mxu0 %v26890_v27  ;;  %v26977_v26 = vld [vmem:[%s33193_s0 + $0xfa8] ss:$272 sps:$4 sm:$0xff]  }
 0x48e   : > { %19721 = vmatmul.mubr.bf16.gmra.mrb[8].mxu1 %v26883_v28  ;;  %v26978_v27 = vld [vmem:[%s30319_s7 + $0x1ae0] ss:$8 sps:$4 sm:$0xff]   ;;  %v26983_v28 = vld [vmem:[%s30319_s7 + $0x9f4] ss:$8 sps:$4 sm:$0xff]  }
 0x48f   : > { %21642 = vmatmul.mubr.bf16.gmra.mrb[8].mxu0 %v26887_v30  ;;  %19790 = vmatpush1.bf16.msra.mxu1 %v26884_v29  ;;  %v26986_v29 = vld [vmem:[%s30319_s7 + $0x1af4] ss:$8 sps:$4 sm:$0xff]  }
 0x490   : > { %21711 = vmatpush1.bf16.msra.mxu0 %v26888_v31  ;;  %19791 = vmatprep.subr.bf16.mxu1 %v26893_v32  ;;  %v26989_v30 = vld [vmem:[%s33193_s0 + $0x4c] ss:$272 sps:$4 sm:$0xff]   ;;  %v26992_v31 = vld [vmem:[%s33193_s0 + $0xd4] ss:$272 sps:$4 sm:$0xff]   ;;  %v26981_v32 = vld [vmem:[%s30319_s7 + $0x9f0] ss:$8 sps:$4 sm:$0xff]  }
 0x491   : > { %21712 = vmatprep.subr.bf16.mxu0 %v26896_v33  ;;  %19730 = vmatprep.mubr.bf16.mxu1 %v26897_v34  ;;  %v26984_v33 = vld [vmem:[%s30319_s7 + $0x1af0] ss:$8 sps:$4 sm:$0xff]   ;;  %v26995_v34 = vld [vmem:[%s30319_s7 + $0xa04] ss:$8 sps:$4 sm:$0xff]  }
 0x492   : > { %21651 = vmatprep.mubr.bf16.mxu0 %v26899_v35  ;;  %v26998_v35 = vld [vmem:[%s30319_s7 + $0x1b04] ss:$8 sps:$4 sm:$0xff]  }
 0x493   : > { %19792 = vmatpush1.bf16.msra.mxu1 %v26891_v36  ;;  %v26987_v36 = vld [vmem:[%s33193_s0 + $0x48] ss:$272 sps:$4 sm:$0xff]  }
 0x494   : > { %21713 = vmatpush1.bf16.msra.mxu0 %v26894_v37  ;;  %19793 = vmatprep.subr.bf16.mxu1 %v26904_v38  ;;  %v26990_v37 = vld [vmem:[%s33193_s0 + $0xd0] ss:$272 sps:$4 sm:$0xff]  }
 0x495   : > { %21714 = vmatprep.subr.bf16.mxu0 %v26908_v39  ;;  %v26993_v38 = vld [vmem:[%s30319_s7 + $0xa00] ss:$8 sps:$4 sm:$0xff]  }
 0x496   : > { %19731 = vmatmul.mubr.bf16.gmra.mrb[12].mxu1 %v26901_v40  ;;  %v26996_v39 = vld [vmem:[%s30319_s7 + $0x1b00] ss:$8 sps:$4 sm:$0xff]   ;;  %v27001_v40 = vld [vmem:[%s30319_s7 + $0xa14] ss:$8 sps:$4 sm:$0xff]  }
 0x497   : > { %21652 = vmatmul.mubr.bf16.gmra.mrb[12].mxu0 %v26905_v42  ;;  %19794 = vmatpush1.bf16.msra.mxu1 %v26902_v41  ;;  %v27004_v41 = vld [vmem:[%s30319_s7 + $0x1b14] ss:$8 sps:$4 sm:$0xff]  }
 0x498   : > { %21715 = vmatpush1.bf16.msra.mxu0 %v26906_v43  ;;  %19795 = vmatprep.subr.bf16.mxu1 %v26911_v44  ;;  %v27005_v42 = vld [vmem:[%s33193_s0 + $0x26c] ss:$272 sps:$4 sm:$0xff]   ;;  %v27007_v43 = vld [vmem:[%s33193_s0 + $0x2f4] ss:$272 sps:$4 sm:$0xff]   ;;  %v26999_v44 = vld [vmem:[%s30319_s7 + $0xa10] ss:$8 sps:$4 sm:$0xff]  }
 0x499   : > { %21716 = vmatprep.subr.bf16.mxu0 %v26914_v45  ;;  %19740 = vmatprep.mubr.bf16.mxu1 %v26915_v46  ;;  %v27002_v45 = vld [vmem:[%s30319_s7 + $0x1b10] ss:$8 sps:$4 sm:$0xff]   ;;  %v27012_v46 = vld [vmem:[%s30319_s7 + $0xa24] ss:$8 sps:$4 sm:$0xff]  }
 0x49a   : > { %21661 = vmatprep.mubr.bf16.mxu0 %v26917_v47  ;;  %v27016_v47 = vld [vmem:[%s30319_s7 + $0x1b24] ss:$8 sps:$4 sm:$0xff]  }
 0x49b   : > { %19796 = vmatpush1.bf16.msra.mxu1 %v26909_v48  ;;  %v27009_v48 = vld [vmem:[%s33193_s0 + $0x268] ss:$272 sps:$4 sm:$0xff]  }
 0x49c   : > { %21717 = vmatpush1.bf16.msra.mxu0 %v26912_v49  ;;  %19797 = vmatprep.subr.bf16.mxu1 %v26922_v50  ;;  %v27010_v49 = vld [vmem:[%s30319_s7 + $0xa20] ss:$8 sps:$4 sm:$0xff]  }
 0x49d   : > { %21718 = vmatprep.subr.bf16.mxu0 %v26926_v51  ;;  %v27013_v50 = vld [vmem:[%s33193_s0 + $0x2f0] ss:$272 sps:$4 sm:$0xff]  }
 0x49e   : > { %19741 = vmatmul.mubr.bf16.gmra.mrb[16].mxu1 %v26919_v52  ;;  %v27014_v51 = vld [vmem:[%s30319_s7 + $0x1b20] ss:$8 sps:$4 sm:$0xff]   ;;  %v27019_v52 = vld [vmem:[%s30319_s7 + $0xa34] ss:$8 sps:$4 sm:$0xff]  }
 0x49f   : > { %21662 = vmatmul.mubr.bf16.gmra.mrb[16].mxu0 %v26923_v54  ;;  %19798 = vmatpush1.bf16.msra.mxu1 %v26920_v53  ;;  %v27022_v53 = vld [vmem:[%s30319_s7 + $0x1b34] ss:$8 sps:$4 sm:$0xff]  }
 0x4a0   : > { %21719 = vmatpush1.bf16.msra.mxu0 %v26924_v55  ;;  %19799 = vmatprep.subr.bf16.mxu1 %v26929_v56  ;;  %v27023_v54 = vld [vmem:[%s33193_s0 + $0x48c] ss:$272 sps:$4 sm:$0xff]   ;;  %v27025_v55 = vld [vmem:[%s33193_s0 + $0x514] ss:$272 sps:$4 sm:$0xff]   ;;  %v27017_v56 = vld [vmem:[%s30319_s7 + $0xa30] ss:$8 sps:$4 sm:$0xff]  }
 0x4a1   : > { %21720 = vmatprep.subr.bf16.mxu0 %v26932_v57  ;;  %19750 = vmatprep.mubr.bf16.mxu1 %v26933_v58  ;;  %v27020_v57 = vld [vmem:[%s30319_s7 + $0x1b30] ss:$8 sps:$4 sm:$0xff]   ;;  %v27030_v58 = vld [vmem:[%s30319_s7 + $0xa44] ss:$8 sps:$4 sm:$0xff]  }
 0x4a2   : > { %21671 = vmatprep.mubr.bf16.mxu0 %v26935_v59  ;;  %v27034_v59 = vld [vmem:[%s30319_s7 + $0x1b44] ss:$8 sps:$4 sm:$0xff]  }
 0x4a3   : > { %19800 = vmatpush1.bf16.msra.mxu1 %v26927_v60  ;;  %v27027_v60 = vld [vmem:[%s33193_s0 + $0x488] ss:$272 sps:$4 sm:$0xff]  }
 0x4a4   : > { %21721 = vmatpush1.bf16.msra.mxu0 %v26930_v61  ;;  %19801 = vmatprep.subr.bf16.mxu1 %v26940_v62  ;;  %v27028_v61 = vld [vmem:[%s30319_s7 + $0xa40] ss:$8 sps:$4 sm:$0xff]  }
 0x4a5   : > { %21722 = vmatprep.subr.bf16.mxu0 %v26944_v63  ;;  %v27031_v62 = vld [vmem:[%s33193_s0 + $0x510] ss:$272 sps:$4 sm:$0xff]  }
 0x4a6   : > { %19751 = vmatmul.mubr.bf16.gmra.mrb[20].mxu1 %v26937_v0  ;;  %v27032_v63 = vld [vmem:[%s30319_s7 + $0x1b40] ss:$8 sps:$4 sm:$0xff]   ;;  %v27037_v0 = vld [vmem:[%s30319_s7 + $0xa54] ss:$8 sps:$4 sm:$0xff]  }
 0x4a7   : > { %21672 = vmatmul.mubr.bf16.gmra.mrb[20].mxu0 %v26941_v2  ;;  %19802 = vmatpush1.bf16.msra.mxu1 %v26938_v1  ;;  %v27040_v1 = vld [vmem:[%s30319_s7 + $0x1b54] ss:$8 sps:$4 sm:$0xff]  }
 0x4a8   : > { %21723 = vmatpush1.bf16.msra.mxu0 %v26942_v3  ;;  %19803 = vmatprep.subr.bf16.mxu1 %v26947_v4  ;;  %v27041_v2 = vld [vmem:[%s33193_s0 + $0x6ac] ss:$272 sps:$4 sm:$0xff]   ;;  %v27043_v3 = vld [vmem:[%s33193_s0 + $0x734] ss:$272 sps:$4 sm:$0xff]   ;;  %v27035_v4 = vld [vmem:[%s30319_s7 + $0xa50] ss:$8 sps:$4 sm:$0xff]  }
 0x4a9   : > { %21724 = vmatprep.subr.bf16.mxu0 %v26950_v5  ;;  %19760 = vmatprep.mubr.bf16.mxu1 %v26951_v6  ;;  %v27038_v5 = vld [vmem:[%s30319_s7 + $0x1b50] ss:$8 sps:$4 sm:$0xff]   ;;  %v27048_v6 = vld [vmem:[%s30319_s7 + $0xa64] ss:$8 sps:$4 sm:$0xff]  }
 0x4aa   : > { %21681 = vmatprep.mubr.bf16.mxu0 %v26953_v7  ;;  %v27052_v7 = vld [vmem:[%s30319_s7 + $0x1b64] ss:$8 sps:$4 sm:$0xff]  }
 0x4ab   : > { %19804 = vmatpush1.bf16.msra.mxu1 %v26945_v8  ;;  %v27045_v8 = vld [vmem:[%s33193_s0 + $0x6a8] ss:$272 sps:$4 sm:$0xff]  }
 0x4ac   : > { %21725 = vmatpush1.bf16.msra.mxu0 %v26948_v9  ;;  %19805 = vmatprep.subr.bf16.mxu1 %v26958_v10  ;;  %v27046_v9 = vld [vmem:[%s30319_s7 + $0xa60] ss:$8 sps:$4 sm:$0xff]  }
 0x4ad   : > { %21726 = vmatprep.subr.bf16.mxu0 %v26962_v11  ;;  %v27049_v10 = vld [vmem:[%s33193_s0 + $0x730] ss:$272 sps:$4 sm:$0xff]  }
 0x4ae   : > { %19761 = vmatmul.mubr.bf16.gmra.mrb[24].mxu1 %v26955_v12  ;;  %v27050_v11 = vld [vmem:[%s30319_s7 + $0x1b60] ss:$8 sps:$4 sm:$0xff]   ;;  %v27055_v12 = vld [vmem:[%s30319_s7 + $0xa74] ss:$8 sps:$4 sm:$0xff]  }
 0x4af   : > { %21682 = vmatmul.mubr.bf16.gmra.mrb[24].mxu0 %v26959_v14  ;;  %19806 = vmatpush1.bf16.msra.mxu1 %v26956_v13  ;;  %v27058_v13 = vld [vmem:[%s30319_s7 + $0x1b74] ss:$8 sps:$4 sm:$0xff]  }
 0x4b0   : > { %21727 = vmatpush1.bf16.msra.mxu0 %v26960_v15  ;;  %19807 = vmatprep.subr.bf16.mxu1 %v26965_v16  ;;  %v27059_v14 = vld [vmem:[%s33193_s0 + $0x8cc] ss:$272 sps:$4 sm:$0xff]   ;;  %v27061_v15 = vld [vmem:[%s33193_s0 + $0x954] ss:$272 sps:$4 sm:$0xff]   ;;  %v27053_v16 = vld [vmem:[%s30319_s7 + $0xa70] ss:$8 sps:$4 sm:$0xff]  }
 0x4b1   : > { %21728 = vmatprep.subr.bf16.mxu0 %v26968_v17  ;;  %19770 = vmatprep.mubr.bf16.mxu1 %v26969_v18  ;;  %v27056_v17 = vld [vmem:[%s30319_s7 + $0x1b70] ss:$8 sps:$4 sm:$0xff]   ;;  %v27066_v18 = vld [vmem:[%s30319_s7 + $0xa84] ss:$8 sps:$4 sm:$0xff]  }
 0x4b2   : > { %21691 = vmatprep.mubr.bf16.mxu0 %v26971_v19  ;;  %v27070_v19 = vld [vmem:[%s30319_s7 + $0x1b84] ss:$8 sps:$4 sm:$0xff]  }
 0x4b3   : > { %19808 = vmatpush1.bf16.msra.mxu1 %v26963_v20  ;;  %v27063_v20 = vld [vmem:[%s33193_s0 + $0x8c8] ss:$272 sps:$4 sm:$0xff]  }
 0x4b4   : > { %21729 = vmatpush1.bf16.msra.mxu0 %v26966_v21  ;;  %19809 = vmatprep.subr.bf16.mxu1 %v26976_v22  ;;  %v27064_v21 = vld [vmem:[%s30319_s7 + $0xa80] ss:$8 sps:$4 sm:$0xff]  }
 0x4b5   : > { %21730 = vmatprep.subr.bf16.mxu0 %v26980_v23  ;;  %v27067_v22 = vld [vmem:[%s33193_s0 + $0x950] ss:$272 sps:$4 sm:$0xff]  }
 0x4b6   : > { %19771 = vmatmul.mubr.bf16.gmra.mrb[28].mxu1 %v26973_v24  ;;  %v27068_v23 = vld [vmem:[%s30319_s7 + $0x1b80] ss:$8 sps:$4 sm:$0xff]   ;;  %v27073_v24 = vld [vmem:[%s30319_s7 + $0xa94] ss:$8 sps:$4 sm:$0xff]  }
 0x4b7   : > { %21692 = vmatmul.mubr.bf16.gmra.mrb[28].mxu0 %v26977_v26  ;;  %19810 = vmatpush1.bf16.msra.mxu1 %v26974_v25  ;;  %v27076_v25 = vld [vmem:[%s30319_s7 + $0x1b94] ss:$8 sps:$4 sm:$0xff]  }
 0x4b8   : > { %21731 = vmatpush1.bf16.msra.mxu0 %v26978_v27  ;;  %19811 = vmatprep.subr.bf16.mxu1 %v26983_v28  ;;  %v27077_v26 = vld [vmem:[%s33193_s0 + $0xaec] ss:$272 sps:$4 sm:$0xff]   ;;  %v27079_v27 = vld [vmem:[%s33193_s0 + $0xb74] ss:$272 sps:$4 sm:$0xff]   ;;  %v27071_v28 = vld [vmem:[%s30319_s7 + $0xa90] ss:$8 sps:$4 sm:$0xff]  }
 0x4b9   : > { %21732 = vmatprep.subr.bf16.mxu0 %v26986_v29  ;;  %19813 = vmatprep.mubr.bf16.mxu1 %v26989_v30  ;;  %v27074_v29 = vld [vmem:[%s30319_s7 + $0x1b90] ss:$8 sps:$4 sm:$0xff]   ;;  %v27084_v30 = vld [vmem:[%s30319_s7 + $0xaa4] ss:$8 sps:$4 sm:$0xff]  }
 0x4ba   : > { %21734 = vmatprep.mubr.bf16.mxu0 %v26992_v31  ;;  %v27088_v31 = vld [vmem:[%s30319_s7 + $0x1ba4] ss:$8 sps:$4 sm:$0xff]  }
 0x4bb   : > { %19812 = vmatpush1.bf16.msra.mxu1 %v26981_v32  ;;  %v27081_v32 = vld [vmem:[%s33193_s0 + $0xae8] ss:$272 sps:$4 sm:$0xff]  }
 0x4bc   : > { %21733 = vmatpush1.bf16.msra.mxu0 %v26984_v33  ;;  %19894 = vmatprep.subr.bf16.mxu1 %v26995_v34  ;;  %v27082_v33 = vld [vmem:[%s30319_s7 + $0xaa0] ss:$8 sps:$4 sm:$0xff]  }
 0x4bd   : > { %21815 = vmatprep.subr.bf16.mxu0 %v26998_v35  ;;  %v27085_v34 = vld [vmem:[%s33193_s0 + $0xb70] ss:$272 sps:$4 sm:$0xff]  }
 0x4be   : > { %19814 = vmatmul.mubr.bf16.vlgmr.msra.gmra.mrb[0].mxu1 %v26987_v36  ;;  %v27086_v35 = vld [vmem:[%s30319_s7 + $0x1ba0] ss:$8 sps:$4 sm:$0xff]   ;;  %v27091_v36 = vld [vmem:[%s30319_s7 + $0xab4] ss:$8 sps:$4 sm:$0xff]  }
 0x4bf   : > { %21735 = vmatmul.mubr.bf16.vlgmr.msra.gmra.mrb[0].mxu0 %v26990_v37  ;;  %19895 = vmatpush1.bf16.msra.mxu1 %v26993_v38  ;;  %v27094_v37 = vld [vmem:[%s30319_s7 + $0x1bb4] ss:$8 sps:$4 sm:$0xff]  }
 0x4c0   : > { %21816 = vmatpush1.bf16.msra.mxu0 %v26996_v39  ;;  %19896 = vmatprep.subr.bf16.mxu1 %v27001_v40  ;;  %v27095_v38 = vld [vmem:[%s33193_s0 + $0xd0c] ss:$272 sps:$4 sm:$0xff]   ;;  %v27097_v39 = vld [vmem:[%s33193_s0 + $0xd94] ss:$272 sps:$4 sm:$0xff]   ;;  %v27089_v40 = vld [vmem:[%s30319_s7 + $0xab0] ss:$8 sps:$4 sm:$0xff]  }
 0x4c1   : > { %21817 = vmatprep.subr.bf16.mxu0 %v27004_v41  ;;  %19823 = vmatprep.mubr.bf16.mxu1 %v27005_v42  ;;  %v27092_v41 = vld [vmem:[%s30319_s7 + $0x1bb0] ss:$8 sps:$4 sm:$0xff]   ;;  %v27102_v42 = vld [vmem:[%s30319_s7 + $0xac4] ss:$8 sps:$4 sm:$0xff]  }
 0x4c2   : > { %21744 = vmatprep.mubr.bf16.mxu0 %v27007_v43  ;;  %v27106_v43 = vld [vmem:[%s30319_s7 + $0x1bc4] ss:$8 sps:$4 sm:$0xff]  }
 0x4c3   : > { %19897 = vmatpush1.bf16.msra.mxu1 %v26999_v44  ;;  %v27099_v44 = vld [vmem:[%s33193_s0 + $0xd08] ss:$272 sps:$4 sm:$0xff]  }
 0x4c4   : > { %21818 = vmatpush1.bf16.msra.mxu0 %v27002_v45  ;;  %19898 = vmatprep.subr.bf16.mxu1 %v27012_v46  ;;  %v27100_v45 = vld [vmem:[%s30319_s7 + $0xac0] ss:$8 sps:$4 sm:$0xff]  }
 0x4c5   : > { %21819 = vmatprep.subr.bf16.mxu0 %v27016_v47  ;;  %v27103_v46 = vld [vmem:[%s33193_s0 + $0xd90] ss:$272 sps:$4 sm:$0xff]  }
 0x4c6   : > { %19824 = vmatmul.mubr.bf16.gmra.mrb[4].mxu1 %v27009_v48  ;;  %v27104_v47 = vld [vmem:[%s30319_s7 + $0x1bc0] ss:$8 sps:$4 sm:$0xff]   ;;  %v27109_v48 = vld [vmem:[%s30319_s7 + $0xad4] ss:$8 sps:$4 sm:$0xff]  }
 0x4c7   : > { %21745 = vmatmul.mubr.bf16.gmra.mrb[4].mxu0 %v27013_v50  ;;  %19899 = vmatpush1.bf16.msra.mxu1 %v27010_v49  ;;  %v27112_v49 = vld [vmem:[%s30319_s7 + $0x1bd4] ss:$8 sps:$4 sm:$0xff]  }
 0x4c8   : > { %21820 = vmatpush1.bf16.msra.mxu0 %v27014_v51  ;;  %19900 = vmatprep.subr.bf16.mxu1 %v27019_v52  ;;  %v27113_v50 = vld [vmem:[%s33193_s0 + $0xf2c] ss:$272 sps:$4 sm:$0xff]   ;;  %v27115_v51 = vld [vmem:[%s33193_s0 + $0xfb4] ss:$272 sps:$4 sm:$0xff]   ;;  %v27107_v52 = vld [vmem:[%s30319_s7 + $0xad0] ss:$8 sps:$4 sm:$0xff]  }
 0x4c9   : > { %21821 = vmatprep.subr.bf16.mxu0 %v27022_v53  ;;  %19833 = vmatprep.mubr.bf16.mxu1 %v27023_v54  ;;  %v27110_v53 = vld [vmem:[%s30319_s7 + $0x1bd0] ss:$8 sps:$4 sm:$0xff]   ;;  %v27120_v54 = vld [vmem:[%s30319_s7 + $0xae4] ss:$8 sps:$4 sm:$0xff]  }
 0x4ca   : > { %21754 = vmatprep.mubr.bf16.mxu0 %v27025_v55  ;;  %v27124_v55 = vld [vmem:[%s30319_s7 + $0x1be4] ss:$8 sps:$4 sm:$0xff]  }
 0x4cb   : > { %19901 = vmatpush1.bf16.msra.mxu1 %v27017_v56  ;;  %v27117_v56 = vld [vmem:[%s33193_s0 + $0xf28] ss:$272 sps:$4 sm:$0xff]  }
 0x4cc   : > { %21822 = vmatpush1.bf16.msra.mxu0 %v27020_v57  ;;  %19902 = vmatprep.subr.bf16.mxu1 %v27030_v58  ;;  %v27118_v57 = vld [vmem:[%s30319_s7 + $0xae0] ss:$8 sps:$4 sm:$0xff]  }
 0x4cd   : > { %21823 = vmatprep.subr.bf16.mxu0 %v27034_v59  ;;  %v27121_v58 = vld [vmem:[%s33193_s0 + $0xfb0] ss:$272 sps:$4 sm:$0xff]  }
 0x4ce   : > { %19834 = vmatmul.mubr.bf16.gmra.mrb[8].mxu1 %v27027_v60  ;;  %v27122_v59 = vld [vmem:[%s30319_s7 + $0x1be0] ss:$8 sps:$4 sm:$0xff]   ;;  %v27127_v60 = vld [vmem:[%s30319_s7 + $0xaf4] ss:$8 sps:$4 sm:$0xff]  }
 0x4cf   : > { %21755 = vmatmul.mubr.bf16.gmra.mrb[8].mxu0 %v27031_v62  ;;  %19903 = vmatpush1.bf16.msra.mxu1 %v27028_v61  ;;  %v27130_v61 = vld [vmem:[%s30319_s7 + $0x1bf4] ss:$8 sps:$4 sm:$0xff]  }
 0x4d0   : > { %21824 = vmatpush1.bf16.msra.mxu0 %v27032_v63  ;;  %19904 = vmatprep.subr.bf16.mxu1 %v27037_v0  ;;  %v27133_v62 = vld [vmem:[%s33193_s0 + $0x54] ss:$272 sps:$4 sm:$0xff]   ;;  %v27136_v63 = vld [vmem:[%s33193_s0 + $0xdc] ss:$272 sps:$4 sm:$0xff]   ;;  %v27125_v0 = vld [vmem:[%s30319_s7 + $0xaf0] ss:$8 sps:$4 sm:$0xff]  }
 0x4d1   : > { %21825 = vmatprep.subr.bf16.mxu0 %v27040_v1  ;;  %19843 = vmatprep.mubr.bf16.mxu1 %v27041_v2  ;;  %v27128_v1 = vld [vmem:[%s30319_s7 + $0x1bf0] ss:$8 sps:$4 sm:$0xff]   ;;  %v27139_v2 = vld [vmem:[%s30319_s7 + $0xb04] ss:$8 sps:$4 sm:$0xff]  }
 0x4d2   : > { %21764 = vmatprep.mubr.bf16.mxu0 %v27043_v3  ;;  %v27142_v3 = vld [vmem:[%s30319_s7 + $0x1c04] ss:$8 sps:$4 sm:$0xff]  }
 0x4d3   : > { %19905 = vmatpush1.bf16.msra.mxu1 %v27035_v4  ;;  %v27131_v4 = vld [vmem:[%s33193_s0 + $0x50] ss:$272 sps:$4 sm:$0xff]  }
 0x4d4   : > { %21826 = vmatpush1.bf16.msra.mxu0 %v27038_v5  ;;  %19906 = vmatprep.subr.bf16.mxu1 %v27048_v6  ;;  %v27134_v5 = vld [vmem:[%s33193_s0 + $0xd8] ss:$272 sps:$4 sm:$0xff]  }
 0x4d5   : > { %21827 = vmatprep.subr.bf16.mxu0 %v27052_v7  ;;  %v27137_v6 = vld [vmem:[%s30319_s7 + $0xb00] ss:$8 sps:$4 sm:$0xff]  }
 0x4d6   : > { %19844 = vmatmul.mubr.bf16.gmra.mrb[12].mxu1 %v27045_v8  ;;  %v27140_v7 = vld [vmem:[%s30319_s7 + $0x1c00] ss:$8 sps:$4 sm:$0xff]   ;;  %v27145_v8 = vld [vmem:[%s30319_s7 + $0xb14] ss:$8 sps:$4 sm:$0xff]  }
 0x4d7   : > { %21765 = vmatmul.mubr.bf16.gmra.mrb[12].mxu0 %v27049_v10  ;;  %19907 = vmatpush1.bf16.msra.mxu1 %v27046_v9  ;;  %v27148_v9 = vld [vmem:[%s30319_s7 + $0x1c14] ss:$8 sps:$4 sm:$0xff]  }
 0x4d8   : > { %21828 = vmatpush1.bf16.msra.mxu0 %v27050_v11  ;;  %19908 = vmatprep.subr.bf16.mxu1 %v27055_v12  ;;  %v27149_v10 = vld [vmem:[%s33193_s0 + $0x274] ss:$272 sps:$4 sm:$0xff]   ;;  %v27151_v11 = vld [vmem:[%s33193_s0 + $0x2fc] ss:$272 sps:$4 sm:$0xff]   ;;  %v27143_v12 = vld [vmem:[%s30319_s7 + $0xb10] ss:$8 sps:$4 sm:$0xff]  }
 0x4d9   : > { %21829 = vmatprep.subr.bf16.mxu0 %v27058_v13  ;;  %19853 = vmatprep.mubr.bf16.mxu1 %v27059_v14  ;;  %v27146_v13 = vld [vmem:[%s30319_s7 + $0x1c10] ss:$8 sps:$4 sm:$0xff]   ;;  %v27156_v14 = vld [vmem:[%s30319_s7 + $0xb24] ss:$8 sps:$4 sm:$0xff]  }
 0x4da   : > { %21774 = vmatprep.mubr.bf16.mxu0 %v27061_v15  ;;  %v27160_v15 = vld [vmem:[%s30319_s7 + $0x1c24] ss:$8 sps:$4 sm:$0xff]  }
 0x4db   : > { %19909 = vmatpush1.bf16.msra.mxu1 %v27053_v16  ;;  %v27153_v16 = vld [vmem:[%s33193_s0 + $0x270] ss:$272 sps:$4 sm:$0xff]  }
 0x4dc   : > { %21830 = vmatpush1.bf16.msra.mxu0 %v27056_v17  ;;  %19910 = vmatprep.subr.bf16.mxu1 %v27066_v18  ;;  %v27154_v17 = vld [vmem:[%s30319_s7 + $0xb20] ss:$8 sps:$4 sm:$0xff]  }
 0x4dd   : > { %21831 = vmatprep.subr.bf16.mxu0 %v27070_v19  ;;  %v27157_v18 = vld [vmem:[%s33193_s0 + $0x2f8] ss:$272 sps:$4 sm:$0xff]  }
 0x4de   : > { %19854 = vmatmul.mubr.bf16.gmra.mrb[16].mxu1 %v27063_v20  ;;  %v27158_v19 = vld [vmem:[%s30319_s7 + $0x1c20] ss:$8 sps:$4 sm:$0xff]   ;;  %v27163_v20 = vld [vmem:[%s30319_s7 + $0xb34] ss:$8 sps:$4 sm:$0xff]  }
 0x4df   : > { %21775 = vmatmul.mubr.bf16.gmra.mrb[16].mxu0 %v27067_v22  ;;  %19911 = vmatpush1.bf16.msra.mxu1 %v27064_v21  ;;  %v27166_v21 = vld [vmem:[%s30319_s7 + $0x1c34] ss:$8 sps:$4 sm:$0xff]  }
 0x4e0   : > { %21832 = vmatpush1.bf16.msra.mxu0 %v27068_v23  ;;  %19912 = vmatprep.subr.bf16.mxu1 %v27073_v24  ;;  %v27167_v22 = vld [vmem:[%s33193_s0 + $0x494] ss:$272 sps:$4 sm:$0xff]   ;;  %v27169_v23 = vld [vmem:[%s33193_s0 + $0x51c] ss:$272 sps:$4 sm:$0xff]   ;;  %v27161_v24 = vld [vmem:[%s30319_s7 + $0xb30] ss:$8 sps:$4 sm:$0xff]  }
 0x4e1   : > { %21833 = vmatprep.subr.bf16.mxu0 %v27076_v25  ;;  %19863 = vmatprep.mubr.bf16.mxu1 %v27077_v26  ;;  %v27164_v25 = vld [vmem:[%s30319_s7 + $0x1c30] ss:$8 sps:$4 sm:$0xff]   ;;  %v27174_v26 = vld [vmem:[%s30319_s7 + $0xb44] ss:$8 sps:$4 sm:$0xff]  }
 0x4e2   : > { %21784 = vmatprep.mubr.bf16.mxu0 %v27079_v27  ;;  %v27178_v27 = vld [vmem:[%s30319_s7 + $0x1c44] ss:$8 sps:$4 sm:$0xff]  }
 0x4e3   : > { %19913 = vmatpush1.bf16.msra.mxu1 %v27071_v28  ;;  %v27171_v28 = vld [vmem:[%s33193_s0 + $0x490] ss:$272 sps:$4 sm:$0xff]  }
 0x4e4   : > { %21834 = vmatpush1.bf16.msra.mxu0 %v27074_v29  ;;  %19914 = vmatprep.subr.bf16.mxu1 %v27084_v30  ;;  %v27172_v29 = vld [vmem:[%s30319_s7 + $0xb40] ss:$8 sps:$4 sm:$0xff]  }
 0x4e5   : > { %21835 = vmatprep.subr.bf16.mxu0 %v27088_v31  ;;  %v27175_v30 = vld [vmem:[%s33193_s0 + $0x518] ss:$272 sps:$4 sm:$0xff]  }
 0x4e6   : > { %19864 = vmatmul.mubr.bf16.gmra.mrb[20].mxu1 %v27081_v32  ;;  %v27176_v31 = vld [vmem:[%s30319_s7 + $0x1c40] ss:$8 sps:$4 sm:$0xff]   ;;  %v27181_v32 = vld [vmem:[%s30319_s7 + $0xb54] ss:$8 sps:$4 sm:$0xff]  }
 0x4e7   : > { %21785 = vmatmul.mubr.bf16.gmra.mrb[20].mxu0 %v27085_v34  ;;  %19915 = vmatpush1.bf16.msra.mxu1 %v27082_v33  ;;  %v27184_v33 = vld [vmem:[%s30319_s7 + $0x1c54] ss:$8 sps:$4 sm:$0xff]  }
 0x4e8   : > { %21836 = vmatpush1.bf16.msra.mxu0 %v27086_v35  ;;  %19916 = vmatprep.subr.bf16.mxu1 %v27091_v36  ;;  %v27185_v34 = vld [vmem:[%s33193_s0 + $0x6b4] ss:$272 sps:$4 sm:$0xff]   ;;  %v27187_v35 = vld [vmem:[%s33193_s0 + $0x73c] ss:$272 sps:$4 sm:$0xff]   ;;  %v27179_v36 = vld [vmem:[%s30319_s7 + $0xb50] ss:$8 sps:$4 sm:$0xff]  }
 0x4e9   : > { %21837 = vmatprep.subr.bf16.mxu0 %v27094_v37  ;;  %19873 = vmatprep.mubr.bf16.mxu1 %v27095_v38  ;;  %v27182_v37 = vld [vmem:[%s30319_s7 + $0x1c50] ss:$8 sps:$4 sm:$0xff]   ;;  %v27192_v38 = vld [vmem:[%s30319_s7 + $0xb64] ss:$8 sps:$4 sm:$0xff]  }
 0x4ea   : > { %21794 = vmatprep.mubr.bf16.mxu0 %v27097_v39  ;;  %v27196_v39 = vld [vmem:[%s30319_s7 + $0x1c64] ss:$8 sps:$4 sm:$0xff]  }
 0x4eb   : > { %19917 = vmatpush1.bf16.msra.mxu1 %v27089_v40  ;;  %v27189_v40 = vld [vmem:[%s33193_s0 + $0x6b0] ss:$272 sps:$4 sm:$0xff]  }
 0x4ec   : > { %21838 = vmatpush1.bf16.msra.mxu0 %v27092_v41  ;;  %19918 = vmatprep.subr.bf16.mxu1 %v27102_v42  ;;  %v27190_v41 = vld [vmem:[%s30319_s7 + $0xb60] ss:$8 sps:$4 sm:$0xff]  }
 0x4ed   : > { %21839 = vmatprep.subr.bf16.mxu0 %v27106_v43  ;;  %v27193_v42 = vld [vmem:[%s33193_s0 + $0x738] ss:$272 sps:$4 sm:$0xff]  }
 0x4ee   : > { %19874 = vmatmul.mubr.bf16.gmra.mrb[24].mxu1 %v27099_v44  ;;  %v27194_v43 = vld [vmem:[%s30319_s7 + $0x1c60] ss:$8 sps:$4 sm:$0xff]   ;;  %v27199_v44 = vld [vmem:[%s30319_s7 + $0xb74] ss:$8 sps:$4 sm:$0xff]  }
 0x4ef   : > { %21795 = vmatmul.mubr.bf16.gmra.mrb[24].mxu0 %v27103_v46  ;;  %19919 = vmatpush1.bf16.msra.mxu1 %v27100_v45  ;;  %v27202_v45 = vld [vmem:[%s30319_s7 + $0x1c74] ss:$8 sps:$4 sm:$0xff]  }
 0x4f0   : > { %21840 = vmatpush1.bf16.msra.mxu0 %v27104_v47  ;;  %19920 = vmatprep.subr.bf16.mxu1 %v27109_v48  ;;  %v27203_v46 = vld [vmem:[%s33193_s0 + $0x8d4] ss:$272 sps:$4 sm:$0xff]   ;;  %v27205_v47 = vld [vmem:[%s33193_s0 + $0x95c] ss:$272 sps:$4 sm:$0xff]   ;;  %v27197_v48 = vld [vmem:[%s30319_s7 + $0xb70] ss:$8 sps:$4 sm:$0xff]  }
 0x4f1   : > { %21841 = vmatprep.subr.bf16.mxu0 %v27112_v49  ;;  %19883 = vmatprep.mubr.bf16.mxu1 %v27113_v50  ;;  %v27200_v49 = vld [vmem:[%s30319_s7 + $0x1c70] ss:$8 sps:$4 sm:$0xff]   ;;  %v27210_v50 = vld [vmem:[%s30319_s7 + $0xb84] ss:$8 sps:$4 sm:$0xff]  }
 0x4f2   : > { %21804 = vmatprep.mubr.bf16.mxu0 %v27115_v51  ;;  %v27214_v51 = vld [vmem:[%s30319_s7 + $0x1c84] ss:$8 sps:$4 sm:$0xff]  }
 0x4f3   : > { %19921 = vmatpush1.bf16.msra.mxu1 %v27107_v52  ;;  %v27207_v52 = vld [vmem:[%s33193_s0 + $0x8d0] ss:$272 sps:$4 sm:$0xff]  }
 0x4f4   : > { %21842 = vmatpush1.bf16.msra.mxu0 %v27110_v53  ;;  %19922 = vmatprep.subr.bf16.mxu1 %v27120_v54  ;;  %v27208_v53 = vld [vmem:[%s30319_s7 + $0xb80] ss:$8 sps:$4 sm:$0xff]  }
 0x4f5   : > { %21843 = vmatprep.subr.bf16.mxu0 %v27124_v55  ;;  %v27211_v54 = vld [vmem:[%s33193_s0 + $0x958] ss:$272 sps:$4 sm:$0xff]  }
 0x4f6   : > { %19884 = vmatmul.mubr.bf16.gmra.mrb[28].mxu1 %v27117_v56  ;;  %v27212_v55 = vld [vmem:[%s30319_s7 + $0x1c80] ss:$8 sps:$4 sm:$0xff]   ;;  %v27217_v56 = vld [vmem:[%s30319_s7 + $0xb94] ss:$8 sps:$4 sm:$0xff]  }
 0x4f7   : > { %21805 = vmatmul.mubr.bf16.gmra.mrb[28].mxu0 %v27121_v58  ;;  %19923 = vmatpush1.bf16.msra.mxu1 %v27118_v57  ;;  %v27220_v57 = vld [vmem:[%s30319_s7 + $0x1c94] ss:$8 sps:$4 sm:$0xff]  }
 0x4f8   : > { %21844 = vmatpush1.bf16.msra.mxu0 %v27122_v59  ;;  %19924 = vmatprep.subr.bf16.mxu1 %v27127_v60  ;;  %v27221_v58 = vld [vmem:[%s33193_s0 + $0xaf4] ss:$272 sps:$4 sm:$0xff]   ;;  %v27223_v59 = vld [vmem:[%s33193_s0 + $0xb7c] ss:$272 sps:$4 sm:$0xff]   ;;  %v27215_v60 = vld [vmem:[%s30319_s7 + $0xb90] ss:$8 sps:$4 sm:$0xff]  }
 0x4f9   : > { %21845 = vmatprep.subr.bf16.mxu0 %v27130_v61  ;;  %19926 = vmatprep.mubr.bf16.mxu1 %v27133_v62  ;;  %v27218_v61 = vld [vmem:[%s30319_s7 + $0x1c90] ss:$8 sps:$4 sm:$0xff]   ;;  %v27228_v62 = vld [vmem:[%s30319_s7 + $0xba4] ss:$8 sps:$4 sm:$0xff]  }
 0x4fa   : > { %21847 = vmatprep.mubr.bf16.mxu0 %v27136_v63  ;;  %v27232_v63 = vld [vmem:[%s30319_s7 + $0x1ca4] ss:$8 sps:$4 sm:$0xff]  }
 0x4fb   : > { %19925 = vmatpush1.bf16.msra.mxu1 %v27125_v0  ;;  %v27225_v0 = vld [vmem:[%s33193_s0 + $0xaf0] ss:$272 sps:$4 sm:$0xff]  }
 0x4fc   : > { %21846 = vmatpush1.bf16.msra.mxu0 %v27128_v1  ;;  %20007 = vmatprep.subr.bf16.mxu1 %v27139_v2  ;;  %v27226_v1 = vld [vmem:[%s30319_s7 + $0xba0] ss:$8 sps:$4 sm:$0xff]  }
 0x4fd   : > { %21928 = vmatprep.subr.bf16.mxu0 %v27142_v3  ;;  %v27229_v2 = vld [vmem:[%s33193_s0 + $0xb78] ss:$272 sps:$4 sm:$0xff]  }
 0x4fe   : > { %19927 = vmatmul.mubr.bf16.vlgmr.msra.gmra.mrb[0].mxu1 %v27131_v4  ;;  %v27230_v3 = vld [vmem:[%s30319_s7 + $0x1ca0] ss:$8 sps:$4 sm:$0xff]   ;;  %v27235_v4 = vld [vmem:[%s30319_s7 + $0xbb4] ss:$8 sps:$4 sm:$0xff]  }
 0x4ff   : > { %21848 = vmatmul.mubr.bf16.vlgmr.msra.gmra.mrb[0].mxu0 %v27134_v5  ;;  %20008 = vmatpush1.bf16.msra.mxu1 %v27137_v6  ;;  %v27238_v5 = vld [vmem:[%s30319_s7 + $0x1cb4] ss:$8 sps:$4 sm:$0xff]  }
 0x500   : > { %21929 = vmatpush1.bf16.msra.mxu0 %v27140_v7  ;;  %20009 = vmatprep.subr.bf16.mxu1 %v27145_v8  ;;  %v27239_v6 = vld [vmem:[%s33193_s0 + $0xd14] ss:$272 sps:$4 sm:$0xff]   ;;  %v27241_v7 = vld [vmem:[%s33193_s0 + $0xd9c] ss:$272 sps:$4 sm:$0xff]   ;;  %v27233_v8 = vld [vmem:[%s30319_s7 + $0xbb0] ss:$8 sps:$4 sm:$0xff]  }
 0x501   : > { %21930 = vmatprep.subr.bf16.mxu0 %v27148_v9  ;;  %19936 = vmatprep.mubr.bf16.mxu1 %v27149_v10  ;;  %v27236_v9 = vld [vmem:[%s30319_s7 + $0x1cb0] ss:$8 sps:$4 sm:$0xff]   ;;  %v27246_v10 = vld [vmem:[%s30319_s7 + $0xbc4] ss:$8 sps:$4 sm:$0xff]  }
 0x502   : > { %21857 = vmatprep.mubr.bf16.mxu0 %v27151_v11  ;;  %v27250_v11 = vld [vmem:[%s30319_s7 + $0x1cc4] ss:$8 sps:$4 sm:$0xff]  }
 0x503   : > { %20010 = vmatpush1.bf16.msra.mxu1 %v27143_v12  ;;  %v27243_v12 = vld [vmem:[%s33193_s0 + $0xd10] ss:$272 sps:$4 sm:$0xff]  }
 0x504   : > { %21931 = vmatpush1.bf16.msra.mxu0 %v27146_v13  ;;  %20011 = vmatprep.subr.bf16.mxu1 %v27156_v14  ;;  %v27244_v13 = vld [vmem:[%s30319_s7 + $0xbc0] ss:$8 sps:$4 sm:$0xff]  }
 0x505   : > { %21932 = vmatprep.subr.bf16.mxu0 %v27160_v15  ;;  %v27247_v14 = vld [vmem:[%s33193_s0 + $0xd98] ss:$272 sps:$4 sm:$0xff]  }
 0x506   : > { %19937 = vmatmul.mubr.bf16.gmra.mrb[4].mxu1 %v27153_v16  ;;  %v27248_v15 = vld [vmem:[%s30319_s7 + $0x1cc0] ss:$8 sps:$4 sm:$0xff]   ;;  %v27253_v16 = vld [vmem:[%s30319_s7 + $0xbd4] ss:$8 sps:$4 sm:$0xff]  }
 0x507   : > { %21858 = vmatmul.mubr.bf16.gmra.mrb[4].mxu0 %v27157_v18  ;;  %20012 = vmatpush1.bf16.msra.mxu1 %v27154_v17  ;;  %v27256_v17 = vld [vmem:[%s30319_s7 + $0x1cd4] ss:$8 sps:$4 sm:$0xff]  }
 0x508   : > { %21933 = vmatpush1.bf16.msra.mxu0 %v27158_v19  ;;  %20013 = vmatprep.subr.bf16.mxu1 %v27163_v20  ;;  %v27257_v18 = vld [vmem:[%s33193_s0 + $0xf34] ss:$272 sps:$4 sm:$0xff]   ;;  %v27259_v19 = vld [vmem:[%s33193_s0 + $0xfbc] ss:$272 sps:$4 sm:$0xff]   ;;  %v27251_v20 = vld [vmem:[%s30319_s7 + $0xbd0] ss:$8 sps:$4 sm:$0xff]  }
 0x509   : > { %21934 = vmatprep.subr.bf16.mxu0 %v27166_v21  ;;  %19946 = vmatprep.mubr.bf16.mxu1 %v27167_v22  ;;  %v27254_v21 = vld [vmem:[%s30319_s7 + $0x1cd0] ss:$8 sps:$4 sm:$0xff]   ;;  %v27264_v22 = vld [vmem:[%s30319_s7 + $0xbe4] ss:$8 sps:$4 sm:$0xff]  }
 0x50a   : > { %21867 = vmatprep.mubr.bf16.mxu0 %v27169_v23  ;;  %v27268_v23 = vld [vmem:[%s30319_s7 + $0x1ce4] ss:$8 sps:$4 sm:$0xff]  }
 0x50b   : > { %20014 = vmatpush1.bf16.msra.mxu1 %v27161_v24  ;;  %v27261_v24 = vld [vmem:[%s33193_s0 + $0xf30] ss:$272 sps:$4 sm:$0xff]  }
 0x50c   : > { %21935 = vmatpush1.bf16.msra.mxu0 %v27164_v25  ;;  %20015 = vmatprep.subr.bf16.mxu1 %v27174_v26  ;;  %v27262_v25 = vld [vmem:[%s30319_s7 + $0xbe0] ss:$8 sps:$4 sm:$0xff]  }
 0x50d   : > { %21936 = vmatprep.subr.bf16.mxu0 %v27178_v27  ;;  %v27265_v26 = vld [vmem:[%s33193_s0 + $0xfb8] ss:$272 sps:$4 sm:$0xff]  }
 0x50e   : > { %19947 = vmatmul.mubr.bf16.gmra.mrb[8].mxu1 %v27171_v28  ;;  %v27266_v27 = vld [vmem:[%s30319_s7 + $0x1ce0] ss:$8 sps:$4 sm:$0xff]   ;;  %v27271_v28 = vld [vmem:[%s30319_s7 + $0xbf4] ss:$8 sps:$4 sm:$0xff]  }
 0x50f   : > { %21868 = vmatmul.mubr.bf16.gmra.mrb[8].mxu0 %v27175_v30  ;;  %20016 = vmatpush1.bf16.msra.mxu1 %v27172_v29  ;;  %v27274_v29 = vld [vmem:[%s30319_s7 + $0x1cf4] ss:$8 sps:$4 sm:$0xff]  }
 0x510   : > { %21937 = vmatpush1.bf16.msra.mxu0 %v27176_v31  ;;  %20017 = vmatprep.subr.bf16.mxu1 %v27181_v32  ;;  %v27277_v30 = vld [vmem:[%s33193_s0 + $0x5c] ss:$272 sps:$4 sm:$0xff]   ;;  %v27280_v31 = vld [vmem:[%s33193_s0 + $0xe4] ss:$272 sps:$4 sm:$0xff]   ;;  %v27269_v32 = vld [vmem:[%s30319_s7 + $0xbf0] ss:$8 sps:$4 sm:$0xff]  }
 0x511   : > { %21938 = vmatprep.subr.bf16.mxu0 %v27184_v33  ;;  %19956 = vmatprep.mubr.bf16.mxu1 %v27185_v34  ;;  %v27272_v33 = vld [vmem:[%s30319_s7 + $0x1cf0] ss:$8 sps:$4 sm:$0xff]   ;;  %v27283_v34 = vld [vmem:[%s30319_s7 + $0xc04] ss:$8 sps:$4 sm:$0xff]  }
 0x512   : > { %21877 = vmatprep.mubr.bf16.mxu0 %v27187_v35  ;;  %v27286_v35 = vld [vmem:[%s30319_s7 + $0x1d04] ss:$8 sps:$4 sm:$0xff]  }
 0x513   : > { %20018 = vmatpush1.bf16.msra.mxu1 %v27179_v36  ;;  %v27275_v36 = vld [vmem:[%s33193_s0 + $0x58] ss:$272 sps:$4 sm:$0xff]  }
 0x514   : > { %21939 = vmatpush1.bf16.msra.mxu0 %v27182_v37  ;;  %20019 = vmatprep.subr.bf16.mxu1 %v27192_v38  ;;  %v27278_v37 = vld [vmem:[%s33193_s0 + $0xe0] ss:$272 sps:$4 sm:$0xff]  }
 0x515   : > { %21940 = vmatprep.subr.bf16.mxu0 %v27196_v39  ;;  %v27281_v38 = vld [vmem:[%s30319_s7 + $0xc00] ss:$8 sps:$4 sm:$0xff]  }
 0x516   : > { %19957 = vmatmul.mubr.bf16.gmra.mrb[12].mxu1 %v27189_v40  ;;  %v27284_v39 = vld [vmem:[%s30319_s7 + $0x1d00] ss:$8 sps:$4 sm:$0xff]   ;;  %v27289_v40 = vld [vmem:[%s30319_s7 + $0xc14] ss:$8 sps:$4 sm:$0xff]  }
 0x517   : > { %21878 = vmatmul.mubr.bf16.gmra.mrb[12].mxu0 %v27193_v42  ;;  %20020 = vmatpush1.bf16.msra.mxu1 %v27190_v41  ;;  %v27292_v41 = vld [vmem:[%s30319_s7 + $0x1d14] ss:$8 sps:$4 sm:$0xff]  }
 0x518   : > { %21941 = vmatpush1.bf16.msra.mxu0 %v27194_v43  ;;  %20021 = vmatprep.subr.bf16.mxu1 %v27199_v44  ;;  %v27293_v42 = vld [vmem:[%s33193_s0 + $0x27c] ss:$272 sps:$4 sm:$0xff]   ;;  %v27295_v43 = vld [vmem:[%s33193_s0 + $0x304] ss:$272 sps:$4 sm:$0xff]   ;;  %v27287_v44 = vld [vmem:[%s30319_s7 + $0xc10] ss:$8 sps:$4 sm:$0xff]  }
 0x519   : > { %21942 = vmatprep.subr.bf16.mxu0 %v27202_v45  ;;  %19966 = vmatprep.mubr.bf16.mxu1 %v27203_v46  ;;  %v27290_v45 = vld [vmem:[%s30319_s7 + $0x1d10] ss:$8 sps:$4 sm:$0xff]   ;;  %v27300_v46 = vld [vmem:[%s30319_s7 + $0xc24] ss:$8 sps:$4 sm:$0xff]  }
 0x51a   : > { %21887 = vmatprep.mubr.bf16.mxu0 %v27205_v47  ;;  %v27304_v47 = vld [vmem:[%s30319_s7 + $0x1d24] ss:$8 sps:$4 sm:$0xff]  }
 0x51b   : > { %20022 = vmatpush1.bf16.msra.mxu1 %v27197_v48  ;;  %v27297_v48 = vld [vmem:[%s33193_s0 + $0x278] ss:$272 sps:$4 sm:$0xff]  }
 0x51c   : > { %21943 = vmatpush1.bf16.msra.mxu0 %v27200_v49  ;;  %20023 = vmatprep.subr.bf16.mxu1 %v27210_v50  ;;  %v27298_v49 = vld [vmem:[%s30319_s7 + $0xc20] ss:$8 sps:$4 sm:$0xff]  }
 0x51d   : > { %21944 = vmatprep.subr.bf16.mxu0 %v27214_v51  ;;  %v27301_v50 = vld [vmem:[%s33193_s0 + $0x300] ss:$272 sps:$4 sm:$0xff]  }
 0x51e   : > { %19967 = vmatmul.mubr.bf16.gmra.mrb[16].mxu1 %v27207_v52  ;;  %v27302_v51 = vld [vmem:[%s30319_s7 + $0x1d20] ss:$8 sps:$4 sm:$0xff]   ;;  %v27307_v52 = vld [vmem:[%s30319_s7 + $0xc34] ss:$8 sps:$4 sm:$0xff]  }
 0x51f   : > { %21888 = vmatmul.mubr.bf16.gmra.mrb[16].mxu0 %v27211_v54  ;;  %20024 = vmatpush1.bf16.msra.mxu1 %v27208_v53  ;;  %v27310_v53 = vld [vmem:[%s30319_s7 + $0x1d34] ss:$8 sps:$4 sm:$0xff]  }
 0x520   : > { %21945 = vmatpush1.bf16.msra.mxu0 %v27212_v55  ;;  %20025 = vmatprep.subr.bf16.mxu1 %v27217_v56  ;;  %v27311_v54 = vld [vmem:[%s33193_s0 + $0x49c] ss:$272 sps:$4 sm:$0xff]   ;;  %v27313_v55 = vld [vmem:[%s33193_s0 + $0x524] ss:$272 sps:$4 sm:$0xff]   ;;  %v27305_v56 = vld [vmem:[%s30319_s7 + $0xc30] ss:$8 sps:$4 sm:$0xff]  }
 0x521   : > { %21946 = vmatprep.subr.bf16.mxu0 %v27220_v57  ;;  %19976 = vmatprep.mubr.bf16.mxu1 %v27221_v58  ;;  %v27308_v57 = vld [vmem:[%s30319_s7 + $0x1d30] ss:$8 sps:$4 sm:$0xff]   ;;  %v27318_v58 = vld [vmem:[%s30319_s7 + $0xc44] ss:$8 sps:$4 sm:$0xff]  }
 0x522   : > { %21897 = vmatprep.mubr.bf16.mxu0 %v27223_v59  ;;  %v27322_v59 = vld [vmem:[%s30319_s7 + $0x1d44] ss:$8 sps:$4 sm:$0xff]  }
 0x523   : > { %20026 = vmatpush1.bf16.msra.mxu1 %v27215_v60  ;;  %v27315_v60 = vld [vmem:[%s33193_s0 + $0x498] ss:$272 sps:$4 sm:$0xff]  }
 0x524   : > { %21947 = vmatpush1.bf16.msra.mxu0 %v27218_v61  ;;  %20027 = vmatprep.subr.bf16.mxu1 %v27228_v62  ;;  %v27316_v61 = vld [vmem:[%s30319_s7 + $0xc40] ss:$8 sps:$4 sm:$0xff]  }
 0x525   : > { %21948 = vmatprep.subr.bf16.mxu0 %v27232_v63  ;;  %v27319_v62 = vld [vmem:[%s33193_s0 + $0x520] ss:$272 sps:$4 sm:$0xff]  }
 0x526   : > { %19977 = vmatmul.mubr.bf16.gmra.mrb[20].mxu1 %v27225_v0  ;;  %v27320_v63 = vld [vmem:[%s30319_s7 + $0x1d40] ss:$8 sps:$4 sm:$0xff]   ;;  %v27325_v0 = vld [vmem:[%s30319_s7 + $0xc54] ss:$8 sps:$4 sm:$0xff]  }
 0x527   : > { %21898 = vmatmul.mubr.bf16.gmra.mrb[20].mxu0 %v27229_v2  ;;  %20028 = vmatpush1.bf16.msra.mxu1 %v27226_v1  ;;  %v27328_v1 = vld [vmem:[%s30319_s7 + $0x1d54] ss:$8 sps:$4 sm:$0xff]  }
 0x528   : > { %21949 = vmatpush1.bf16.msra.mxu0 %v27230_v3  ;;  %20029 = vmatprep.subr.bf16.mxu1 %v27235_v4  ;;  %v27329_v2 = vld [vmem:[%s33193_s0 + $0x6bc] ss:$272 sps:$4 sm:$0xff]   ;;  %v27331_v3 = vld [vmem:[%s33193_s0 + $0x744] ss:$272 sps:$4 sm:$0xff]   ;;  %v27323_v4 = vld [vmem:[%s30319_s7 + $0xc50] ss:$8 sps:$4 sm:$0xff]  }
 0x529   : > { %21950 = vmatprep.subr.bf16.mxu0 %v27238_v5  ;;  %19986 = vmatprep.mubr.bf16.mxu1 %v27239_v6  ;;  %v27326_v5 = vld [vmem:[%s30319_s7 + $0x1d50] ss:$8 sps:$4 sm:$0xff]   ;;  %v27336_v6 = vld [vmem:[%s30319_s7 + $0xc64] ss:$8 sps:$4 sm:$0xff]  }
 0x52a   : > { %21907 = vmatprep.mubr.bf16.mxu0 %v27241_v7  ;;  %v27340_v7 = vld [vmem:[%s30319_s7 + $0x1d64] ss:$8 sps:$4 sm:$0xff]  }
 0x52b   : > { %20030 = vmatpush1.bf16.msra.mxu1 %v27233_v8  ;;  %v27333_v8 = vld [vmem:[%s33193_s0 + $0x6b8] ss:$272 sps:$4 sm:$0xff]  }
 0x52c   : > { %21951 = vmatpush1.bf16.msra.mxu0 %v27236_v9  ;;  %20031 = vmatprep.subr.bf16.mxu1 %v27246_v10  ;;  %v27334_v9 = vld [vmem:[%s30319_s7 + $0xc60] ss:$8 sps:$4 sm:$0xff]  }
 0x52d   : > { %21952 = vmatprep.subr.bf16.mxu0 %v27250_v11  ;;  %v27337_v10 = vld [vmem:[%s33193_s0 + $0x740] ss:$272 sps:$4 sm:$0xff]  }
 0x52e   : > { %19987 = vmatmul.mubr.bf16.gmra.mrb[24].mxu1 %v27243_v12  ;;  %v27338_v11 = vld [vmem:[%s30319_s7 + $0x1d60] ss:$8 sps:$4 sm:$0xff]   ;;  %v27343_v12 = vld [vmem:[%s30319_s7 + $0xc74] ss:$8 sps:$4 sm:$0xff]  }
 0x52f   : > { %21908 = vmatmul.mubr.bf16.gmra.mrb[24].mxu0 %v27247_v14  ;;  %20032 = vmatpush1.bf16.msra.mxu1 %v27244_v13  ;;  %v27346_v13 = vld [vmem:[%s30319_s7 + $0x1d74] ss:$8 sps:$4 sm:$0xff]  }
 0x530   : > { %21953 = vmatpush1.bf16.msra.mxu0 %v27248_v15  ;;  %20033 = vmatprep.subr.bf16.mxu1 %v27253_v16  ;;  %v27347_v14 = vld [vmem:[%s33193_s0 + $0x8dc] ss:$272 sps:$4 sm:$0xff]   ;;  %v27349_v15 = vld [vmem:[%s33193_s0 + $0x964] ss:$272 sps:$4 sm:$0xff]   ;;  %v27341_v16 = vld [vmem:[%s30319_s7 + $0xc70] ss:$8 sps:$4 sm:$0xff]  }
 0x531   : > { %21954 = vmatprep.subr.bf16.mxu0 %v27256_v17  ;;  %19996 = vmatprep.mubr.bf16.mxu1 %v27257_v18  ;;  %v27344_v17 = vld [vmem:[%s30319_s7 + $0x1d70] ss:$8 sps:$4 sm:$0xff]   ;;  %v27354_v18 = vld [vmem:[%s30319_s7 + $0xc84] ss:$8 sps:$4 sm:$0xff]  }
 0x532   : > { %21917 = vmatprep.mubr.bf16.mxu0 %v27259_v19  ;;  %v27358_v19 = vld [vmem:[%s30319_s7 + $0x1d84] ss:$8 sps:$4 sm:$0xff]  }
 0x533   : > { %20034 = vmatpush1.bf16.msra.mxu1 %v27251_v20  ;;  %v27351_v20 = vld [vmem:[%s33193_s0 + $0x8d8] ss:$272 sps:$4 sm:$0xff]  }
 0x534   : > { %21955 = vmatpush1.bf16.msra.mxu0 %v27254_v21  ;;  %20035 = vmatprep.subr.bf16.mxu1 %v27264_v22  ;;  %v27352_v21 = vld [vmem:[%s30319_s7 + $0xc80] ss:$8 sps:$4 sm:$0xff]  }
 0x535   : > { %21956 = vmatprep.subr.bf16.mxu0 %v27268_v23  ;;  %v27355_v22 = vld [vmem:[%s33193_s0 + $0x960] ss:$272 sps:$4 sm:$0xff]  }
 0x536   : > { %19997 = vmatmul.mubr.bf16.gmra.mrb[28].mxu1 %v27261_v24  ;;  %v27356_v23 = vld [vmem:[%s30319_s7 + $0x1d80] ss:$8 sps:$4 sm:$0xff]   ;;  %v27361_v24 = vld [vmem:[%s30319_s7 + $0xc94] ss:$8 sps:$4 sm:$0xff]  }
 0x537   : > { %21918 = vmatmul.mubr.bf16.gmra.mrb[28].mxu0 %v27265_v26  ;;  %20036 = vmatpush1.bf16.msra.mxu1 %v27262_v25  ;;  %v27364_v25 = vld [vmem:[%s30319_s7 + $0x1d94] ss:$8 sps:$4 sm:$0xff]  }
 0x538   : > { %21957 = vmatpush1.bf16.msra.mxu0 %v27266_v27  ;;  %20037 = vmatprep.subr.bf16.mxu1 %v27271_v28  ;;  %v27365_v26 = vld [vmem:[%s33193_s0 + $0xafc] ss:$272 sps:$4 sm:$0xff]   ;;  %v27367_v27 = vld [vmem:[%s33193_s0 + $0xb84] ss:$272 sps:$4 sm:$0xff]   ;;  %v27359_v28 = vld [vmem:[%s30319_s7 + $0xc90] ss:$8 sps:$4 sm:$0xff]  }
 0x539   : > { %21958 = vmatprep.subr.bf16.mxu0 %v27274_v29  ;;  %20039 = vmatprep.mubr.bf16.mxu1 %v27277_v30  ;;  %v27362_v29 = vld [vmem:[%s30319_s7 + $0x1d90] ss:$8 sps:$4 sm:$0xff]   ;;  %v27372_v30 = vld [vmem:[%s30319_s7 + $0xca4] ss:$8 sps:$4 sm:$0xff]  }
 0x53a   : > { %21960 = vmatprep.mubr.bf16.mxu0 %v27280_v31  ;;  %v27376_v31 = vld [vmem:[%s30319_s7 + $0x1da4] ss:$8 sps:$4 sm:$0xff]  }
 0x53b   : > { %20038 = vmatpush1.bf16.msra.mxu1 %v27269_v32  ;;  %v27369_v32 = vld [vmem:[%s33193_s0 + $0xaf8] ss:$272 sps:$4 sm:$0xff]  }
 0x53c   : > { %21959 = vmatpush1.bf16.msra.mxu0 %v27272_v33  ;;  %20120 = vmatprep.subr.bf16.mxu1 %v27283_v34  ;;  %v27370_v33 = vld [vmem:[%s30319_s7 + $0xca0] ss:$8 sps:$4 sm:$0xff]  }
 0x53d   : > { %22041 = vmatprep.subr.bf16.mxu0 %v27286_v35  ;;  %v27373_v34 = vld [vmem:[%s33193_s0 + $0xb80] ss:$272 sps:$4 sm:$0xff]  }
 0x53e   : > { %20040 = vmatmul.mubr.bf16.vlgmr.msra.gmra.mrb[0].mxu1 %v27275_v36  ;;  %v27374_v35 = vld [vmem:[%s30319_s7 + $0x1da0] ss:$8 sps:$4 sm:$0xff]   ;;  %v27379_v36 = vld [vmem:[%s30319_s7 + $0xcb4] ss:$8 sps:$4 sm:$0xff]  }
 0x53f   : > { %21961 = vmatmul.mubr.bf16.vlgmr.msra.gmra.mrb[0].mxu0 %v27278_v37  ;;  %20121 = vmatpush1.bf16.msra.mxu1 %v27281_v38  ;;  %v27382_v37 = vld [vmem:[%s30319_s7 + $0x1db4] ss:$8 sps:$4 sm:$0xff]  }
 0x540   : > { %22042 = vmatpush1.bf16.msra.mxu0 %v27284_v39  ;;  %20122 = vmatprep.subr.bf16.mxu1 %v27289_v40  ;;  %v27383_v38 = vld [vmem:[%s33193_s0 + $0xd1c] ss:$272 sps:$4 sm:$0xff]   ;;  %v27385_v39 = vld [vmem:[%s33193_s0 + $0xda4] ss:$272 sps:$4 sm:$0xff]   ;;  %v27377_v40 = vld [vmem:[%s30319_s7 + $0xcb0] ss:$8 sps:$4 sm:$0xff]  }
 0x541   : > { %22043 = vmatprep.subr.bf16.mxu0 %v27292_v41  ;;  %20049 = vmatprep.mubr.bf16.mxu1 %v27293_v42  ;;  %v27380_v41 = vld [vmem:[%s30319_s7 + $0x1db0] ss:$8 sps:$4 sm:$0xff]   ;;  %v27390_v42 = vld [vmem:[%s30319_s7 + $0xcc4] ss:$8 sps:$4 sm:$0xff]  }
 0x542   : > { %21970 = vmatprep.mubr.bf16.mxu0 %v27295_v43  ;;  %v27394_v43 = vld [vmem:[%s30319_s7 + $0x1dc4] ss:$8 sps:$4 sm:$0xff]  }
 0x543   : > { %20123 = vmatpush1.bf16.msra.mxu1 %v27287_v44  ;;  %v27387_v44 = vld [vmem:[%s33193_s0 + $0xd18] ss:$272 sps:$4 sm:$0xff]  }
 0x544   : > { %22044 = vmatpush1.bf16.msra.mxu0 %v27290_v45  ;;  %20124 = vmatprep.subr.bf16.mxu1 %v27300_v46  ;;  %v27388_v45 = vld [vmem:[%s30319_s7 + $0xcc0] ss:$8 sps:$4 sm:$0xff]  }
 0x545   : > { %22045 = vmatprep.subr.bf16.mxu0 %v27304_v47  ;;  %v27391_v46 = vld [vmem:[%s33193_s0 + $0xda0] ss:$272 sps:$4 sm:$0xff]  }
 0x546   : > { %20050 = vmatmul.mubr.bf16.gmra.mrb[4].mxu1 %v27297_v48  ;;  %v27392_v47 = vld [vmem:[%s30319_s7 + $0x1dc0] ss:$8 sps:$4 sm:$0xff]   ;;  %v27397_v48 = vld [vmem:[%s30319_s7 + $0xcd4] ss:$8 sps:$4 sm:$0xff]  }
 0x547   : > { %21971 = vmatmul.mubr.bf16.gmra.mrb[4].mxu0 %v27301_v50  ;;  %20125 = vmatpush1.bf16.msra.mxu1 %v27298_v49  ;;  %v27400_v49 = vld [vmem:[%s30319_s7 + $0x1dd4] ss:$8 sps:$4 sm:$0xff]  }
 0x548   : > { %22046 = vmatpush1.bf16.msra.mxu0 %v27302_v51  ;;  %20126 = vmatprep.subr.bf16.mxu1 %v27307_v52  ;;  %v27401_v50 = vld [vmem:[%s33193_s0 + $0xf3c] ss:$272 sps:$4 sm:$0xff]   ;;  %v27403_v51 = vld [vmem:[%s33193_s0 + $0xfc4] ss:$272 sps:$4 sm:$0xff]   ;;  %v27395_v52 = vld [vmem:[%s30319_s7 + $0xcd0] ss:$8 sps:$4 sm:$0xff]  }
 0x549   : > { %22047 = vmatprep.subr.bf16.mxu0 %v27310_v53  ;;  %20059 = vmatprep.mubr.bf16.mxu1 %v27311_v54  ;;  %v27398_v53 = vld [vmem:[%s30319_s7 + $0x1dd0] ss:$8 sps:$4 sm:$0xff]   ;;  %v27408_v54 = vld [vmem:[%s30319_s7 + $0xce4] ss:$8 sps:$4 sm:$0xff]  }
 0x54a   : > { %21980 = vmatprep.mubr.bf16.mxu0 %v27313_v55  ;;  %v27412_v55 = vld [vmem:[%s30319_s7 + $0x1de4] ss:$8 sps:$4 sm:$0xff]  }
 0x54b   : > { %20127 = vmatpush1.bf16.msra.mxu1 %v27305_v56  ;;  %v27405_v56 = vld [vmem:[%s33193_s0 + $0xf38] ss:$272 sps:$4 sm:$0xff]  }
 0x54c   : > { %22048 = vmatpush1.bf16.msra.mxu0 %v27308_v57  ;;  %20128 = vmatprep.subr.bf16.mxu1 %v27318_v58  ;;  %v27406_v57 = vld [vmem:[%s30319_s7 + $0xce0] ss:$8 sps:$4 sm:$0xff]  }
 0x54d   : > { %22049 = vmatprep.subr.bf16.mxu0 %v27322_v59  ;;  %v27409_v58 = vld [vmem:[%s33193_s0 + $0xfc0] ss:$272 sps:$4 sm:$0xff]  }
 0x54e   : > { %20060 = vmatmul.mubr.bf16.gmra.mrb[8].mxu1 %v27315_v60  ;;  %v27410_v59 = vld [vmem:[%s30319_s7 + $0x1de0] ss:$8 sps:$4 sm:$0xff]   ;;  %v27415_v60 = vld [vmem:[%s30319_s7 + $0xcf4] ss:$8 sps:$4 sm:$0xff]  }
 0x54f   : > { %21981 = vmatmul.mubr.bf16.gmra.mrb[8].mxu0 %v27319_v62  ;;  %20129 = vmatpush1.bf16.msra.mxu1 %v27316_v61  ;;  %v27418_v61 = vld [vmem:[%s30319_s7 + $0x1df4] ss:$8 sps:$4 sm:$0xff]  }
 0x550   : > { %22050 = vmatpush1.bf16.msra.mxu0 %v27320_v63  ;;  %20130 = vmatprep.subr.bf16.mxu1 %v27325_v0  ;;  %v27421_v62 = vld [vmem:[%s33193_s0 + $0x64] ss:$272 sps:$4 sm:$0xff]   ;;  %v27424_v63 = vld [vmem:[%s33193_s0 + $0xec] ss:$272 sps:$4 sm:$0xff]   ;;  %v27413_v0 = vld [vmem:[%s30319_s7 + $0xcf0] ss:$8 sps:$4 sm:$0xff]  }
 0x551   : > { %22051 = vmatprep.subr.bf16.mxu0 %v27328_v1  ;;  %20069 = vmatprep.mubr.bf16.mxu1 %v27329_v2  ;;  %v27416_v1 = vld [vmem:[%s30319_s7 + $0x1df0] ss:$8 sps:$4 sm:$0xff]   ;;  %v27427_v2 = vld [vmem:[%s30319_s7 + $0xd04] ss:$8 sps:$4 sm:$0xff]  }
 0x552   : > { %21990 = vmatprep.mubr.bf16.mxu0 %v27331_v3  ;;  %v27430_v3 = vld [vmem:[%s30319_s7 + $0x1e04] ss:$8 sps:$4 sm:$0xff]  }
 0x553   : > { %20131 = vmatpush1.bf16.msra.mxu1 %v27323_v4  ;;  %v27419_v4 = vld [vmem:[%s33193_s0 + $0x60] ss:$272 sps:$4 sm:$0xff]  }
 0x554   : > { %22052 = vmatpush1.bf16.msra.mxu0 %v27326_v5  ;;  %20132 = vmatprep.subr.bf16.mxu1 %v27336_v6  ;;  %v27422_v5 = vld [vmem:[%s33193_s0 + $0xe8] ss:$272 sps:$4 sm:$0xff]  }
 0x555   : > { %22053 = vmatprep.subr.bf16.mxu0 %v27340_v7  ;;  %v27425_v6 = vld [vmem:[%s30319_s7 + $0xd00] ss:$8 sps:$4 sm:$0xff]  }
 0x556   : > { %20070 = vmatmul.mubr.bf16.gmra.mrb[12].mxu1 %v27333_v8  ;;  %v27428_v7 = vld [vmem:[%s30319_s7 + $0x1e00] ss:$8 sps:$4 sm:$0xff]   ;;  %v27433_v8 = vld [vmem:[%s30319_s7 + $0xd14] ss:$8 sps:$4 sm:$0xff]  }
 0x557   : > { %21991 = vmatmul.mubr.bf16.gmra.mrb[12].mxu0 %v27337_v10  ;;  %20133 = vmatpush1.bf16.msra.mxu1 %v27334_v9  ;;  %v27436_v9 = vld [vmem:[%s30319_s7 + $0x1e14] ss:$8 sps:$4 sm:$0xff]  }
 0x558   : > { %22054 = vmatpush1.bf16.msra.mxu0 %v27338_v11  ;;  %20134 = vmatprep.subr.bf16.mxu1 %v27343_v12  ;;  %v27437_v10 = vld [vmem:[%s33193_s0 + $0x284] ss:$272 sps:$4 sm:$0xff]   ;;  %v27439_v11 = vld [vmem:[%s33193_s0 + $0x30c] ss:$272 sps:$4 sm:$0xff]   ;;  %v27431_v12 = vld [vmem:[%s30319_s7 + $0xd10] ss:$8 sps:$4 sm:$0xff]  }
 0x559   : > { %22055 = vmatprep.subr.bf16.mxu0 %v27346_v13  ;;  %20079 = vmatprep.mubr.bf16.mxu1 %v27347_v14  ;;  %v27434_v13 = vld [vmem:[%s30319_s7 + $0x1e10] ss:$8 sps:$4 sm:$0xff]   ;;  %v27444_v14 = vld [vmem:[%s30319_s7 + $0xd24] ss:$8 sps:$4 sm:$0xff]  }
 0x55a   : > { %22000 = vmatprep.mubr.bf16.mxu0 %v27349_v15  ;;  %v27448_v15 = vld [vmem:[%s30319_s7 + $0x1e24] ss:$8 sps:$4 sm:$0xff]  }
 0x55b   : > { %20135 = vmatpush1.bf16.msra.mxu1 %v27341_v16  ;;  %v27441_v16 = vld [vmem:[%s33193_s0 + $0x280] ss:$272 sps:$4 sm:$0xff]  }
 0x55c   : > { %22056 = vmatpush1.bf16.msra.mxu0 %v27344_v17  ;;  %20136 = vmatprep.subr.bf16.mxu1 %v27354_v18  ;;  %v27442_v17 = vld [vmem:[%s30319_s7 + $0xd20] ss:$8 sps:$4 sm:$0xff]  }
 0x55d   : > { %22057 = vmatprep.subr.bf16.mxu0 %v27358_v19  ;;  %v27445_v18 = vld [vmem:[%s33193_s0 + $0x308] ss:$272 sps:$4 sm:$0xff]  }
 0x55e   : > { %20080 = vmatmul.mubr.bf16.gmra.mrb[16].mxu1 %v27351_v20  ;;  %v27446_v19 = vld [vmem:[%s30319_s7 + $0x1e20] ss:$8 sps:$4 sm:$0xff]   ;;  %v27451_v20 = vld [vmem:[%s30319_s7 + $0xd34] ss:$8 sps:$4 sm:$0xff]  }
 0x55f   : > { %22001 = vmatmul.mubr.bf16.gmra.mrb[16].mxu0 %v27355_v22  ;;  %20137 = vmatpush1.bf16.msra.mxu1 %v27352_v21  ;;  %v27454_v21 = vld [vmem:[%s30319_s7 + $0x1e34] ss:$8 sps:$4 sm:$0xff]  }
 0x560   : > { %22058 = vmatpush1.bf16.msra.mxu0 %v27356_v23  ;;  %20138 = vmatprep.subr.bf16.mxu1 %v27361_v24  ;;  %v27455_v22 = vld [vmem:[%s33193_s0 + $0x4a4] ss:$272 sps:$4 sm:$0xff]   ;;  %v27457_v23 = vld [vmem:[%s33193_s0 + $0x52c] ss:$272 sps:$4 sm:$0xff]   ;;  %v27449_v24 = vld [vmem:[%s30319_s7 + $0xd30] ss:$8 sps:$4 sm:$0xff]  }
 0x561   : > { %22059 = vmatprep.subr.bf16.mxu0 %v27364_v25  ;;  %20089 = vmatprep.mubr.bf16.mxu1 %v27365_v26  ;;  %v27452_v25 = vld [vmem:[%s30319_s7 + $0x1e30] ss:$8 sps:$4 sm:$0xff]   ;;  %v27462_v26 = vld [vmem:[%s30319_s7 + $0xd44] ss:$8 sps:$4 sm:$0xff]  }
 0x562   : > { %22010 = vmatprep.mubr.bf16.mxu0 %v27367_v27  ;;  %v27466_v27 = vld [vmem:[%s30319_s7 + $0x1e44] ss:$8 sps:$4 sm:$0xff]  }
 0x563   : > { %20139 = vmatpush1.bf16.msra.mxu1 %v27359_v28  ;;  %v27459_v28 = vld [vmem:[%s33193_s0 + $0x4a0] ss:$272 sps:$4 sm:$0xff]  }
 0x564   : > { %22060 = vmatpush1.bf16.msra.mxu0 %v27362_v29  ;;  %20140 = vmatprep.subr.bf16.mxu1 %v27372_v30  ;;  %v27460_v29 = vld [vmem:[%s30319_s7 + $0xd40] ss:$8 sps:$4 sm:$0xff]  }
 0x565   : > { %22061 = vmatprep.subr.bf16.mxu0 %v27376_v31  ;;  %v27463_v30 = vld [vmem:[%s33193_s0 + $0x528] ss:$272 sps:$4 sm:$0xff]  }
 0x566   : > { %20090 = vmatmul.mubr.bf16.gmra.mrb[20].mxu1 %v27369_v32  ;;  %v27464_v31 = vld [vmem:[%s30319_s7 + $0x1e40] ss:$8 sps:$4 sm:$0xff]   ;;  %v27469_v32 = vld [vmem:[%s30319_s7 + $0xd54] ss:$8 sps:$4 sm:$0xff]  }
 0x567   : > { %22011 = vmatmul.mubr.bf16.gmra.mrb[20].mxu0 %v27373_v34  ;;  %20141 = vmatpush1.bf16.msra.mxu1 %v27370_v33  ;;  %v27472_v33 = vld [vmem:[%s30319_s7 + $0x1e54] ss:$8 sps:$4 sm:$0xff]  }
 0x568   : > { %22062 = vmatpush1.bf16.msra.mxu0 %v27374_v35  ;;  %20142 = vmatprep.subr.bf16.mxu1 %v27379_v36  ;;  %v27473_v34 = vld [vmem:[%s33193_s0 + $0x6c4] ss:$272 sps:$4 sm:$0xff]   ;;  %v27475_v35 = vld [vmem:[%s33193_s0 + $0x74c] ss:$272 sps:$4 sm:$0xff]   ;;  %v27467_v36 = vld [vmem:[%s30319_s7 + $0xd50] ss:$8 sps:$4 sm:$0xff]  }
 0x569   : > { %22063 = vmatprep.subr.bf16.mxu0 %v27382_v37  ;;  %20099 = vmatprep.mubr.bf16.mxu1 %v27383_v38  ;;  %v27470_v37 = vld [vmem:[%s30319_s7 + $0x1e50] ss:$8 sps:$4 sm:$0xff]   ;;  %v27480_v38 = vld [vmem:[%s30319_s7 + $0xd64] ss:$8 sps:$4 sm:$0xff]  }
 0x56a   : > { %22020 = vmatprep.mubr.bf16.mxu0 %v27385_v39  ;;  %v27484_v39 = vld [vmem:[%s30319_s7 + $0x1e64] ss:$8 sps:$4 sm:$0xff]  }
 0x56b   : > { %20143 = vmatpush1.bf16.msra.mxu1 %v27377_v40  ;;  %v27477_v40 = vld [vmem:[%s33193_s0 + $0x6c0] ss:$272 sps:$4 sm:$0xff]  }
 0x56c   : > { %22064 = vmatpush1.bf16.msra.mxu0 %v27380_v41  ;;  %20144 = vmatprep.subr.bf16.mxu1 %v27390_v42  ;;  %v27478_v41 = vld [vmem:[%s30319_s7 + $0xd60] ss:$8 sps:$4 sm:$0xff]  }
 0x56d   : > { %22065 = vmatprep.subr.bf16.mxu0 %v27394_v43  ;;  %v27481_v42 = vld [vmem:[%s33193_s0 + $0x748] ss:$272 sps:$4 sm:$0xff]  }
 0x56e   : > { %20100 = vmatmul.mubr.bf16.gmra.mrb[24].mxu1 %v27387_v44  ;;  %v27482_v43 = vld [vmem:[%s30319_s7 + $0x1e60] ss:$8 sps:$4 sm:$0xff]   ;;  %v27487_v44 = vld [vmem:[%s30319_s7 + $0xd74] ss:$8 sps:$4 sm:$0xff]  }
 0x56f   : > { %22021 = vmatmul.mubr.bf16.gmra.mrb[24].mxu0 %v27391_v46  ;;  %20145 = vmatpush1.bf16.msra.mxu1 %v27388_v45  ;;  %v27490_v45 = vld [vmem:[%s30319_s7 + $0x1e74] ss:$8 sps:$4 sm:$0xff]  }
 0x570   : > { %22066 = vmatpush1.bf16.msra.mxu0 %v27392_v47  ;;  %20146 = vmatprep.subr.bf16.mxu1 %v27397_v48  ;;  %v27491_v46 = vld [vmem:[%s33193_s0 + $0x8e4] ss:$272 sps:$4 sm:$0xff]   ;;  %v27493_v47 = vld [vmem:[%s33193_s0 + $0x96c] ss:$272 sps:$4 sm:$0xff]   ;;  %v27485_v48 = vld [vmem:[%s30319_s7 + $0xd70] ss:$8 sps:$4 sm:$0xff]  }
 0x571   : > { %22067 = vmatprep.subr.bf16.mxu0 %v27400_v49  ;;  %20109 = vmatprep.mubr.bf16.mxu1 %v27401_v50  ;;  %v27488_v49 = vld [vmem:[%s30319_s7 + $0x1e70] ss:$8 sps:$4 sm:$0xff]   ;;  %v27498_v50 = vld [vmem:[%s30319_s7 + $0xd84] ss:$8 sps:$4 sm:$0xff]  }
 0x572   : > { %22030 = vmatprep.mubr.bf16.mxu0 %v27403_v51  ;;  %v27502_v51 = vld [vmem:[%s30319_s7 + $0x1e84] ss:$8 sps:$4 sm:$0xff]  }
 0x573   : > { %20147 = vmatpush1.bf16.msra.mxu1 %v27395_v52  ;;  %v27495_v52 = vld [vmem:[%s33193_s0 + $0x8e0] ss:$272 sps:$4 sm:$0xff]  }
 0x574   : > { %22068 = vmatpush1.bf16.msra.mxu0 %v27398_v53  ;;  %20148 = vmatprep.subr.bf16.mxu1 %v27408_v54  ;;  %v27496_v53 = vld [vmem:[%s30319_s7 + $0xd80] ss:$8 sps:$4 sm:$0xff]  }
 0x575   : > { %22069 = vmatprep.subr.bf16.mxu0 %v27412_v55  ;;  %v27499_v54 = vld [vmem:[%s33193_s0 + $0x968] ss:$272 sps:$4 sm:$0xff]  }
 0x576   : > { %20110 = vmatmul.mubr.bf16.gmra.mrb[28].mxu1 %v27405_v56  ;;  %v27500_v55 = vld [vmem:[%s30319_s7 + $0x1e80] ss:$8 sps:$4 sm:$0xff]   ;;  %v27505_v56 = vld [vmem:[%s30319_s7 + $0xd94] ss:$8 sps:$4 sm:$0xff]  }
 0x577   : > { %22031 = vmatmul.mubr.bf16.gmra.mrb[28].mxu0 %v27409_v58  ;;  %20149 = vmatpush1.bf16.msra.mxu1 %v27406_v57  ;;  %v27508_v57 = vld [vmem:[%s30319_s7 + $0x1e94] ss:$8 sps:$4 sm:$0xff]  }
 0x578   : > { %22070 = vmatpush1.bf16.msra.mxu0 %v27410_v59  ;;  %20150 = vmatprep.subr.bf16.mxu1 %v27415_v60  ;;  %v27509_v58 = vld [vmem:[%s33193_s0 + $0xb04] ss:$272 sps:$4 sm:$0xff]   ;;  %v27511_v59 = vld [vmem:[%s33193_s0 + $0xb8c] ss:$272 sps:$4 sm:$0xff]   ;;  %v27503_v60 = vld [vmem:[%s30319_s7 + $0xd90] ss:$8 sps:$4 sm:$0xff]  }
 0x579   : > { %22071 = vmatprep.subr.bf16.mxu0 %v27418_v61  ;;  %20152 = vmatprep.mubr.bf16.mxu1 %v27421_v62  ;;  %v27506_v61 = vld [vmem:[%s30319_s7 + $0x1e90] ss:$8 sps:$4 sm:$0xff]   ;;  %v27516_v62 = vld [vmem:[%s30319_s7 + $0xda4] ss:$8 sps:$4 sm:$0xff]  }
 0x57a   : > { %22073 = vmatprep.mubr.bf16.mxu0 %v27424_v63  ;;  %v27520_v63 = vld [vmem:[%s30319_s7 + $0x1ea4] ss:$8 sps:$4 sm:$0xff]  }
 0x57b   : > { %20151 = vmatpush1.bf16.msra.mxu1 %v27413_v0  ;;  %v27513_v0 = vld [vmem:[%s33193_s0 + $0xb00] ss:$272 sps:$4 sm:$0xff]  }
 0x57c   : > { %22072 = vmatpush1.bf16.msra.mxu0 %v27416_v1  ;;  %20233 = vmatprep.subr.bf16.mxu1 %v27427_v2  ;;  %v27514_v1 = vld [vmem:[%s30319_s7 + $0xda0] ss:$8 sps:$4 sm:$0xff]  }
 0x57d   : > { %22154 = vmatprep.subr.bf16.mxu0 %v27430_v3  ;;  %v27517_v2 = vld [vmem:[%s33193_s0 + $0xb88] ss:$272 sps:$4 sm:$0xff]  }
 0x57e   : > { %20153 = vmatmul.mubr.bf16.vlgmr.msra.gmra.mrb[0].mxu1 %v27419_v4  ;;  %v27518_v3 = vld [vmem:[%s30319_s7 + $0x1ea0] ss:$8 sps:$4 sm:$0xff]   ;;  %v27523_v4 = vld [vmem:[%s30319_s7 + $0xdb4] ss:$8 sps:$4 sm:$0xff]  }
 0x57f   : > { %22074 = vmatmul.mubr.bf16.vlgmr.msra.gmra.mrb[0].mxu0 %v27422_v5  ;;  %20234 = vmatpush1.bf16.msra.mxu1 %v27425_v6  ;;  %v27526_v5 = vld [vmem:[%s30319_s7 + $0x1eb4] ss:$8 sps:$4 sm:$0xff]  }
 0x580   : > { %22155 = vmatpush1.bf16.msra.mxu0 %v27428_v7  ;;  %20235 = vmatprep.subr.bf16.mxu1 %v27433_v8  ;;  %v27527_v6 = vld [vmem:[%s33193_s0 + $0xd24] ss:$272 sps:$4 sm:$0xff]   ;;  %v27529_v7 = vld [vmem:[%s33193_s0 + $0xdac] ss:$272 sps:$4 sm:$0xff]   ;;  %v27521_v8 = vld [vmem:[%s30319_s7 + $0xdb0] ss:$8 sps:$4 sm:$0xff]  }
 0x581   : > { %22156 = vmatprep.subr.bf16.mxu0 %v27436_v9  ;;  %20162 = vmatprep.mubr.bf16.mxu1 %v27437_v10  ;;  %v27524_v9 = vld [vmem:[%s30319_s7 + $0x1eb0] ss:$8 sps:$4 sm:$0xff]   ;;  %v27534_v10 = vld [vmem:[%s30319_s7 + $0xdc4] ss:$8 sps:$4 sm:$0xff]  }
 0x582   : > { %22083 = vmatprep.mubr.bf16.mxu0 %v27439_v11  ;;  %v27538_v11 = vld [vmem:[%s30319_s7 + $0x1ec4] ss:$8 sps:$4 sm:$0xff]  }
 0x583   : > { %20236 = vmatpush1.bf16.msra.mxu1 %v27431_v12  ;;  %v27531_v12 = vld [vmem:[%s33193_s0 + $0xd20] ss:$272 sps:$4 sm:$0xff]  }
 0x584   : > { %22157 = vmatpush1.bf16.msra.mxu0 %v27434_v13  ;;  %20237 = vmatprep.subr.bf16.mxu1 %v27444_v14  ;;  %v27532_v13 = vld [vmem:[%s30319_s7 + $0xdc0] ss:$8 sps:$4 sm:$0xff]  }
 0x585   : > { %22158 = vmatprep.subr.bf16.mxu0 %v27448_v15  ;;  %v27535_v14 = vld [vmem:[%s33193_s0 + $0xda8] ss:$272 sps:$4 sm:$0xff]  }
 0x586   : > { %20163 = vmatmul.mubr.bf16.gmra.mrb[4].mxu1 %v27441_v16  ;;  %v27536_v15 = vld [vmem:[%s30319_s7 + $0x1ec0] ss:$8 sps:$4 sm:$0xff]   ;;  %v27541_v16 = vld [vmem:[%s30319_s7 + $0xdd4] ss:$8 sps:$4 sm:$0xff]  }
 0x587   : > { %22084 = vmatmul.mubr.bf16.gmra.mrb[4].mxu0 %v27445_v18  ;;  %20238 = vmatpush1.bf16.msra.mxu1 %v27442_v17  ;;  %v27544_v17 = vld [vmem:[%s30319_s7 + $0x1ed4] ss:$8 sps:$4 sm:$0xff]  }
 0x588   : > { %22159 = vmatpush1.bf16.msra.mxu0 %v27446_v19  ;;  %20239 = vmatprep.subr.bf16.mxu1 %v27451_v20  ;;  %v27545_v18 = vld [vmem:[%s33193_s0 + $0xf44] ss:$272 sps:$4 sm:$0xff]   ;;  %v27547_v19 = vld [vmem:[%s33193_s0 + $0xfcc] ss:$272 sps:$4 sm:$0xff]   ;;  %v27539_v20 = vld [vmem:[%s30319_s7 + $0xdd0] ss:$8 sps:$4 sm:$0xff]  }
 0x589   : > { %22160 = vmatprep.subr.bf16.mxu0 %v27454_v21  ;;  %20172 = vmatprep.mubr.bf16.mxu1 %v27455_v22  ;;  %v27542_v21 = vld [vmem:[%s30319_s7 + $0x1ed0] ss:$8 sps:$4 sm:$0xff]   ;;  %v27552_v22 = vld [vmem:[%s30319_s7 + $0xde4] ss:$8 sps:$4 sm:$0xff]  }
 0x58a   : > { %22093 = vmatprep.mubr.bf16.mxu0 %v27457_v23  ;;  %v27556_v23 = vld [vmem:[%s30319_s7 + $0x1ee4] ss:$8 sps:$4 sm:$0xff]  }
 0x58b   : > { %20240 = vmatpush1.bf16.msra.mxu1 %v27449_v24  ;;  %v27549_v24 = vld [vmem:[%s33193_s0 + $0xf40] ss:$272 sps:$4 sm:$0xff]  }
 0x58c   : > { %22161 = vmatpush1.bf16.msra.mxu0 %v27452_v25  ;;  %20241 = vmatprep.subr.bf16.mxu1 %v27462_v26  ;;  %v27550_v25 = vld [vmem:[%s30319_s7 + $0xde0] ss:$8 sps:$4 sm:$0xff]  }
 0x58d   : > { %22162 = vmatprep.subr.bf16.mxu0 %v27466_v27  ;;  %v27553_v26 = vld [vmem:[%s33193_s0 + $0xfc8] ss:$272 sps:$4 sm:$0xff]  }
 0x58e   : > { %20173 = vmatmul.mubr.bf16.gmra.mrb[8].mxu1 %v27459_v28  ;;  %v27554_v27 = vld [vmem:[%s30319_s7 + $0x1ee0] ss:$8 sps:$4 sm:$0xff]   ;;  %v27559_v28 = vld [vmem:[%s30319_s7 + $0xdf4] ss:$8 sps:$4 sm:$0xff]  }
 0x58f   : > { %22094 = vmatmul.mubr.bf16.gmra.mrb[8].mxu0 %v27463_v30  ;;  %20242 = vmatpush1.bf16.msra.mxu1 %v27460_v29  ;;  %v27562_v29 = vld [vmem:[%s30319_s7 + $0x1ef4] ss:$8 sps:$4 sm:$0xff]  }
 0x590   : > { %22163 = vmatpush1.bf16.msra.mxu0 %v27464_v31  ;;  %20243 = vmatprep.subr.bf16.mxu1 %v27469_v32  ;;  %v27565_v30 = vld [vmem:[%s33193_s0 + $0x6c] ss:$272 sps:$4 sm:$0xff]   ;;  %v27568_v31 = vld [vmem:[%s33193_s0 + $0xf4] ss:$272 sps:$4 sm:$0xff]   ;;  %v27557_v32 = vld [vmem:[%s30319_s7 + $0xdf0] ss:$8 sps:$4 sm:$0xff]  }
 0x591   : > { %22164 = vmatprep.subr.bf16.mxu0 %v27472_v33  ;;  %20182 = vmatprep.mubr.bf16.mxu1 %v27473_v34  ;;  %v27560_v33 = vld [vmem:[%s30319_s7 + $0x1ef0] ss:$8 sps:$4 sm:$0xff]   ;;  %v27571_v34 = vld [vmem:[%s30319_s7 + $0xe04] ss:$8 sps:$4 sm:$0xff]  }
 0x592   : > { %22103 = vmatprep.mubr.bf16.mxu0 %v27475_v35  ;;  %v27574_v35 = vld [vmem:[%s30319_s7 + $0x1f04] ss:$8 sps:$4 sm:$0xff]  }
 0x593   : > { %20244 = vmatpush1.bf16.msra.mxu1 %v27467_v36  ;;  %v27563_v36 = vld [vmem:[%s33193_s0 + $0x68] ss:$272 sps:$4 sm:$0xff]  }
 0x594   : > { %22165 = vmatpush1.bf16.msra.mxu0 %v27470_v37  ;;  %20245 = vmatprep.subr.bf16.mxu1 %v27480_v38  ;;  %v27566_v37 = vld [vmem:[%s33193_s0 + $0xf0] ss:$272 sps:$4 sm:$0xff]  }
 0x595   : > { %22166 = vmatprep.subr.bf16.mxu0 %v27484_v39  ;;  %v27569_v38 = vld [vmem:[%s30319_s7 + $0xe00] ss:$8 sps:$4 sm:$0xff]  }
 0x596   : > { %20183 = vmatmul.mubr.bf16.gmra.mrb[12].mxu1 %v27477_v40  ;;  %v27572_v39 = vld [vmem:[%s30319_s7 + $0x1f00] ss:$8 sps:$4 sm:$0xff]   ;;  %v27577_v40 = vld [vmem:[%s30319_s7 + $0xe14] ss:$8 sps:$4 sm:$0xff]  }
 0x597   : > { %22104 = vmatmul.mubr.bf16.gmra.mrb[12].mxu0 %v27481_v42  ;;  %20246 = vmatpush1.bf16.msra.mxu1 %v27478_v41  ;;  %v27580_v41 = vld [vmem:[%s30319_s7 + $0x1f14] ss:$8 sps:$4 sm:$0xff]  }
 0x598   : > { %22167 = vmatpush1.bf16.msra.mxu0 %v27482_v43  ;;  %20247 = vmatprep.subr.bf16.mxu1 %v27487_v44  ;;  %v27581_v42 = vld [vmem:[%s33193_s0 + $0x28c] ss:$272 sps:$4 sm:$0xff]   ;;  %v27583_v43 = vld [vmem:[%s33193_s0 + $0x314] ss:$272 sps:$4 sm:$0xff]   ;;  %v27575_v44 = vld [vmem:[%s30319_s7 + $0xe10] ss:$8 sps:$4 sm:$0xff]  }
 0x599   : > { %22168 = vmatprep.subr.bf16.mxu0 %v27490_v45  ;;  %20192 = vmatprep.mubr.bf16.mxu1 %v27491_v46  ;;  %v27578_v45 = vld [vmem:[%s30319_s7 + $0x1f10] ss:$8 sps:$4 sm:$0xff]   ;;  %v27588_v46 = vld [vmem:[%s30319_s7 + $0xe24] ss:$8 sps:$4 sm:$0xff]  }
 0x59a   : > { %22113 = vmatprep.mubr.bf16.mxu0 %v27493_v47  ;;  %v27592_v47 = vld [vmem:[%s30319_s7 + $0x1f24] ss:$8 sps:$4 sm:$0xff]  }
 0x59b   : > { %20248 = vmatpush1.bf16.msra.mxu1 %v27485_v48  ;;  %v27585_v48 = vld [vmem:[%s33193_s0 + $0x288] ss:$272 sps:$4 sm:$0xff]  }
 0x59c   : > { %22169 = vmatpush1.bf16.msra.mxu0 %v27488_v49  ;;  %20249 = vmatprep.subr.bf16.mxu1 %v27498_v50  ;;  %v27586_v49 = vld [vmem:[%s30319_s7 + $0xe20] ss:$8 sps:$4 sm:$0xff]  }
 0x59d   : > { %22170 = vmatprep.subr.bf16.mxu0 %v27502_v51  ;;  %v27589_v50 = vld [vmem:[%s33193_s0 + $0x310] ss:$272 sps:$4 sm:$0xff]  }
 0x59e   : > { %20193 = vmatmul.mubr.bf16.gmra.mrb[16].mxu1 %v27495_v52  ;;  %v27590_v51 = vld [vmem:[%s30319_s7 + $0x1f20] ss:$8 sps:$4 sm:$0xff]   ;;  %v27595_v52 = vld [vmem:[%s30319_s7 + $0xe34] ss:$8 sps:$4 sm:$0xff]  }
 0x59f   : > { %22114 = vmatmul.mubr.bf16.gmra.mrb[16].mxu0 %v27499_v54  ;;  %20250 = vmatpush1.bf16.msra.mxu1 %v27496_v53  ;;  %v27598_v53 = vld [vmem:[%s30319_s7 + $0x1f34] ss:$8 sps:$4 sm:$0xff]  }
 0x5a0   : > { %22171 = vmatpush1.bf16.msra.mxu0 %v27500_v55  ;;  %20251 = vmatprep.subr.bf16.mxu1 %v27505_v56  ;;  %v27599_v54 = vld [vmem:[%s33193_s0 + $0x4ac] ss:$272 sps:$4 sm:$0xff]   ;;  %v27601_v55 = vld [vmem:[%s33193_s0 + $0x534] ss:$272 sps:$4 sm:$0xff]   ;;  %v27593_v56 = vld [vmem:[%s30319_s7 + $0xe30] ss:$8 sps:$4 sm:$0xff]  }
 0x5a1   : > { %22172 = vmatprep.subr.bf16.mxu0 %v27508_v57  ;;  %20202 = vmatprep.mubr.bf16.mxu1 %v27509_v58  ;;  %v27596_v57 = vld [vmem:[%s30319_s7 + $0x1f30] ss:$8 sps:$4 sm:$0xff]   ;;  %v27606_v58 = vld [vmem:[%s30319_s7 + $0xe44] ss:$8 sps:$4 sm:$0xff]  }
 0x5a2   : > { %22123 = vmatprep.mubr.bf16.mxu0 %v27511_v59  ;;  %v27610_v59 = vld [vmem:[%s30319_s7 + $0x1f44] ss:$8 sps:$4 sm:$0xff]  }
 0x5a3   : > { %20252 = vmatpush1.bf16.msra.mxu1 %v27503_v60  ;;  %v27603_v60 = vld [vmem:[%s33193_s0 + $0x4a8] ss:$272 sps:$4 sm:$0xff]  }
 0x5a4   : > { %22173 = vmatpush1.bf16.msra.mxu0 %v27506_v61  ;;  %20253 = vmatprep.subr.bf16.mxu1 %v27516_v62  ;;  %v27604_v61 = vld [vmem:[%s30319_s7 + $0xe40] ss:$8 sps:$4 sm:$0xff]  }
 0x5a5   : > { %22174 = vmatprep.subr.bf16.mxu0 %v27520_v63  ;;  %v27607_v62 = vld [vmem:[%s33193_s0 + $0x530] ss:$272 sps:$4 sm:$0xff]  }
 0x5a6   : > { %20203 = vmatmul.mubr.bf16.gmra.mrb[20].mxu1 %v27513_v0  ;;  %v27608_v63 = vld [vmem:[%s30319_s7 + $0x1f40] ss:$8 sps:$4 sm:$0xff]   ;;  %v27613_v0 = vld [vmem:[%s30319_s7 + $0xe54] ss:$8 sps:$4 sm:$0xff]  }
 0x5a7   : > { %22124 = vmatmul.mubr.bf16.gmra.mrb[20].mxu0 %v27517_v2  ;;  %20254 = vmatpush1.bf16.msra.mxu1 %v27514_v1  ;;  %v27616_v1 = vld [vmem:[%s30319_s7 + $0x1f54] ss:$8 sps:$4 sm:$0xff]  }
 0x5a8   : > { %22175 = vmatpush1.bf16.msra.mxu0 %v27518_v3  ;;  %20255 = vmatprep.subr.bf16.mxu1 %v27523_v4  ;;  %v27617_v2 = vld [vmem:[%s33193_s0 + $0x6cc] ss:$272 sps:$4 sm:$0xff]   ;;  %v27619_v3 = vld [vmem:[%s33193_s0 + $0x754] ss:$272 sps:$4 sm:$0xff]   ;;  %v27611_v4 = vld [vmem:[%s30319_s7 + $0xe50] ss:$8 sps:$4 sm:$0xff]  }
 0x5a9   : > { %22176 = vmatprep.subr.bf16.mxu0 %v27526_v5  ;;  %20212 = vmatprep.mubr.bf16.mxu1 %v27527_v6  ;;  %v27614_v5 = vld [vmem:[%s30319_s7 + $0x1f50] ss:$8 sps:$4 sm:$0xff]   ;;  %v27624_v6 = vld [vmem:[%s30319_s7 + $0xe64] ss:$8 sps:$4 sm:$0xff]  }
 0x5aa   : > { %22133 = vmatprep.mubr.bf16.mxu0 %v27529_v7  ;;  %v27628_v7 = vld [vmem:[%s30319_s7 + $0x1f64] ss:$8 sps:$4 sm:$0xff]  }
 0x5ab   : > { %20256 = vmatpush1.bf16.msra.mxu1 %v27521_v8  ;;  %v27621_v8 = vld [vmem:[%s33193_s0 + $0x6c8] ss:$272 sps:$4 sm:$0xff]  }
 0x5ac   : > { %22177 = vmatpush1.bf16.msra.mxu0 %v27524_v9  ;;  %20257 = vmatprep.subr.bf16.mxu1 %v27534_v10  ;;  %v27622_v9 = vld [vmem:[%s30319_s7 + $0xe60] ss:$8 sps:$4 sm:$0xff]  }
 0x5ad   : > { %22178 = vmatprep.subr.bf16.mxu0 %v27538_v11  ;;  %v27625_v10 = vld [vmem:[%s33193_s0 + $0x750] ss:$272 sps:$4 sm:$0xff]  }
 0x5ae   : > { %20213 = vmatmul.mubr.bf16.gmra.mrb[24].mxu1 %v27531_v12  ;;  %v27626_v11 = vld [vmem:[%s30319_s7 + $0x1f60] ss:$8 sps:$4 sm:$0xff]   ;;  %v27631_v12 = vld [vmem:[%s30319_s7 + $0xe74] ss:$8 sps:$4 sm:$0xff]  }
 0x5af   : > { %22134 = vmatmul.mubr.bf16.gmra.mrb[24].mxu0 %v27535_v14  ;;  %20258 = vmatpush1.bf16.msra.mxu1 %v27532_v13  ;;  %v27634_v13 = vld [vmem:[%s30319_s7 + $0x1f74] ss:$8 sps:$4 sm:$0xff]  }
 0x5b0   : > { %22179 = vmatpush1.bf16.msra.mxu0 %v27536_v15  ;;  %20259 = vmatprep.subr.bf16.mxu1 %v27541_v16  ;;  %v27635_v14 = vld [vmem:[%s33193_s0 + $0x8ec] ss:$272 sps:$4 sm:$0xff]   ;;  %v27637_v15 = vld [vmem:[%s33193_s0 + $0x974] ss:$272 sps:$4 sm:$0xff]   ;;  %v27629_v16 = vld [vmem:[%s30319_s7 + $0xe70] ss:$8 sps:$4 sm:$0xff]  }
 0x5b1   : > { %22180 = vmatprep.subr.bf16.mxu0 %v27544_v17  ;;  %20222 = vmatprep.mubr.bf16.mxu1 %v27545_v18  ;;  %v27632_v17 = vld [vmem:[%s30319_s7 + $0x1f70] ss:$8 sps:$4 sm:$0xff]   ;;  %v27642_v18 = vld [vmem:[%s30319_s7 + $0xe84] ss:$8 sps:$4 sm:$0xff]  }
 0x5b2   : > { %22143 = vmatprep.mubr.bf16.mxu0 %v27547_v19  ;;  %v27646_v19 = vld [vmem:[%s30319_s7 + $0x1f84] ss:$8 sps:$4 sm:$0xff]  }
 0x5b3   : > { %20260 = vmatpush1.bf16.msra.mxu1 %v27539_v20  ;;  %v27639_v20 = vld [vmem:[%s33193_s0 + $0x8e8] ss:$272 sps:$4 sm:$0xff]  }
 0x5b4   : > { %22181 = vmatpush1.bf16.msra.mxu0 %v27542_v21  ;;  %20261 = vmatprep.subr.bf16.mxu1 %v27552_v22  ;;  %v27640_v21 = vld [vmem:[%s30319_s7 + $0xe80] ss:$8 sps:$4 sm:$0xff]  }
 0x5b5   : > { %22182 = vmatprep.subr.bf16.mxu0 %v27556_v23  ;;  %v27643_v22 = vld [vmem:[%s33193_s0 + $0x970] ss:$272 sps:$4 sm:$0xff]  }
 0x5b6   : > { %20223 = vmatmul.mubr.bf16.gmra.mrb[28].mxu1 %v27549_v24  ;;  %v27644_v23 = vld [vmem:[%s30319_s7 + $0x1f80] ss:$8 sps:$4 sm:$0xff]   ;;  %v27649_v24 = vld [vmem:[%s30319_s7 + $0xe94] ss:$8 sps:$4 sm:$0xff]  }
 0x5b7   : > { %22144 = vmatmul.mubr.bf16.gmra.mrb[28].mxu0 %v27553_v26  ;;  %20262 = vmatpush1.bf16.msra.mxu1 %v27550_v25  ;;  %v27652_v25 = vld [vmem:[%s30319_s7 + $0x1f94] ss:$8 sps:$4 sm:$0xff]  }
 0x5b8   : > { %22183 = vmatpush1.bf16.msra.mxu0 %v27554_v27  ;;  %20263 = vmatprep.subr.bf16.mxu1 %v27559_v28  ;;  %v27653_v26 = vld [vmem:[%s33193_s0 + $0xb0c] ss:$272 sps:$4 sm:$0xff]   ;;  %v27655_v27 = vld [vmem:[%s33193_s0 + $0xb94] ss:$272 sps:$4 sm:$0xff]   ;;  %v27647_v28 = vld [vmem:[%s30319_s7 + $0xe90] ss:$8 sps:$4 sm:$0xff]  }
 0x5b9   : > { %22184 = vmatprep.subr.bf16.mxu0 %v27562_v29  ;;  %20265 = vmatprep.mubr.bf16.mxu1 %v27565_v30  ;;  %v27650_v29 = vld [vmem:[%s30319_s7 + $0x1f90] ss:$8 sps:$4 sm:$0xff]   ;;  %v27660_v30 = vld [vmem:[%s30319_s7 + $0xea4] ss:$8 sps:$4 sm:$0xff]  }
 0x5ba   : > { %22186 = vmatprep.mubr.bf16.mxu0 %v27568_v31  ;;  %v27664_v31 = vld [vmem:[%s30319_s7 + $0x1fa4] ss:$8 sps:$4 sm:$0xff]  }
 0x5bb   : > { %20264 = vmatpush1.bf16.msra.mxu1 %v27557_v32  ;;  %v27657_v32 = vld [vmem:[%s33193_s0 + $0xb08] ss:$272 sps:$4 sm:$0xff]  }
 0x5bc   : > { %22185 = vmatpush1.bf16.msra.mxu0 %v27560_v33  ;;  %20346 = vmatprep.subr.bf16.mxu1 %v27571_v34  ;;  %v27658_v33 = vld [vmem:[%s30319_s7 + $0xea0] ss:$8 sps:$4 sm:$0xff]  }
 0x5bd   : > { %22267 = vmatprep.subr.bf16.mxu0 %v27574_v35  ;;  %v27661_v34 = vld [vmem:[%s33193_s0 + $0xb90] ss:$272 sps:$4 sm:$0xff]  }
 0x5be   : > { %20266 = vmatmul.mubr.bf16.vlgmr.msra.gmra.mrb[0].mxu1 %v27563_v36  ;;  %v27662_v35 = vld [vmem:[%s30319_s7 + $0x1fa0] ss:$8 sps:$4 sm:$0xff]   ;;  %v27667_v36 = vld [vmem:[%s30319_s7 + $0xeb4] ss:$8 sps:$4 sm:$0xff]  }
 0x5bf   : > { %22187 = vmatmul.mubr.bf16.vlgmr.msra.gmra.mrb[0].mxu0 %v27566_v37  ;;  %20347 = vmatpush1.bf16.msra.mxu1 %v27569_v38  ;;  %v27670_v37 = vld [vmem:[%s30319_s7 + $0x1fb4] ss:$8 sps:$4 sm:$0xff]  }
 0x5c0   : > { %22268 = vmatpush1.bf16.msra.mxu0 %v27572_v39  ;;  %20348 = vmatprep.subr.bf16.mxu1 %v27577_v40  ;;  %v27671_v38 = vld [vmem:[%s33193_s0 + $0xd2c] ss:$272 sps:$4 sm:$0xff]   ;;  %v27673_v39 = vld [vmem:[%s33193_s0 + $0xdb4] ss:$272 sps:$4 sm:$0xff]   ;;  %v27665_v40 = vld [vmem:[%s30319_s7 + $0xeb0] ss:$8 sps:$4 sm:$0xff]  }
 0x5c1   : > { %22269 = vmatprep.subr.bf16.mxu0 %v27580_v41  ;;  %20275 = vmatprep.mubr.bf16.mxu1 %v27581_v42  ;;  %v27668_v41 = vld [vmem:[%s30319_s7 + $0x1fb0] ss:$8 sps:$4 sm:$0xff]   ;;  %v27678_v42 = vld [vmem:[%s30319_s7 + $0xec4] ss:$8 sps:$4 sm:$0xff]  }
 0x5c2   : > { %22196 = vmatprep.mubr.bf16.mxu0 %v27583_v43  ;;  %v27682_v43 = vld [vmem:[%s30319_s7 + $0x1fc4] ss:$8 sps:$4 sm:$0xff]  }
 0x5c3   : > { %20349 = vmatpush1.bf16.msra.mxu1 %v27575_v44  ;;  %v27675_v44 = vld [vmem:[%s33193_s0 + $0xd28] ss:$272 sps:$4 sm:$0xff]  }
 0x5c4   : > { %22270 = vmatpush1.bf16.msra.mxu0 %v27578_v45  ;;  %20350 = vmatprep.subr.bf16.mxu1 %v27588_v46  ;;  %v27676_v45 = vld [vmem:[%s30319_s7 + $0xec0] ss:$8 sps:$4 sm:$0xff]  }
 0x5c5   : > { %22271 = vmatprep.subr.bf16.mxu0 %v27592_v47  ;;  %v27679_v46 = vld [vmem:[%s33193_s0 + $0xdb0] ss:$272 sps:$4 sm:$0xff]  }
 0x5c6   : > { %20276 = vmatmul.mubr.bf16.gmra.mrb[4].mxu1 %v27585_v48  ;;  %v27680_v47 = vld [vmem:[%s30319_s7 + $0x1fc0] ss:$8 sps:$4 sm:$0xff]   ;;  %v27685_v48 = vld [vmem:[%s30319_s7 + $0xed4] ss:$8 sps:$4 sm:$0xff]  }
 0x5c7   : > { %22197 = vmatmul.mubr.bf16.gmra.mrb[4].mxu0 %v27589_v50  ;;  %20351 = vmatpush1.bf16.msra.mxu1 %v27586_v49  ;;  %v27688_v49 = vld [vmem:[%s30319_s7 + $0x1fd4] ss:$8 sps:$4 sm:$0xff]  }
 0x5c8   : > { %22272 = vmatpush1.bf16.msra.mxu0 %v27590_v51  ;;  %20352 = vmatprep.subr.bf16.mxu1 %v27595_v52  ;;  %v27689_v50 = vld [vmem:[%s33193_s0 + $0xf4c] ss:$272 sps:$4 sm:$0xff]   ;;  %v27691_v51 = vld [vmem:[%s33193_s0 + $0xfd4] ss:$272 sps:$4 sm:$0xff]   ;;  %v27683_v52 = vld [vmem:[%s30319_s7 + $0xed0] ss:$8 sps:$4 sm:$0xff]  }
 0x5c9   : > { %22273 = vmatprep.subr.bf16.mxu0 %v27598_v53  ;;  %20285 = vmatprep.mubr.bf16.mxu1 %v27599_v54  ;;  %v27686_v53 = vld [vmem:[%s30319_s7 + $0x1fd0] ss:$8 sps:$4 sm:$0xff]   ;;  %v27696_v54 = vld [vmem:[%s30319_s7 + $0xee4] ss:$8 sps:$4 sm:$0xff]  }
 0x5ca   : > { %22206 = vmatprep.mubr.bf16.mxu0 %v27601_v55  ;;  %v27700_v55 = vld [vmem:[%s30319_s7 + $0x1fe4] ss:$8 sps:$4 sm:$0xff]  }
 0x5cb   : > { %20353 = vmatpush1.bf16.msra.mxu1 %v27593_v56  ;;  %v27693_v56 = vld [vmem:[%s33193_s0 + $0xf48] ss:$272 sps:$4 sm:$0xff]  }
 0x5cc   : > { %22274 = vmatpush1.bf16.msra.mxu0 %v27596_v57  ;;  %20354 = vmatprep.subr.bf16.mxu1 %v27606_v58  ;;  %v27694_v57 = vld [vmem:[%s30319_s7 + $0xee0] ss:$8 sps:$4 sm:$0xff]  }
 0x5cd   : > { %22275 = vmatprep.subr.bf16.mxu0 %v27610_v59  ;;  %v27697_v58 = vld [vmem:[%s33193_s0 + $0xfd0] ss:$272 sps:$4 sm:$0xff]  }
 0x5ce   : > { %20286 = vmatmul.mubr.bf16.gmra.mrb[8].mxu1 %v27603_v60  ;;  %v27698_v59 = vld [vmem:[%s30319_s7 + $0x1fe0] ss:$8 sps:$4 sm:$0xff]   ;;  %v27703_v60 = vld [vmem:[%s30319_s7 + $0xef4] ss:$8 sps:$4 sm:$0xff]  }
 0x5cf   : > { %22207 = vmatmul.mubr.bf16.gmra.mrb[8].mxu0 %v27607_v62  ;;  %20355 = vmatpush1.bf16.msra.mxu1 %v27604_v61  ;;  %v27706_v61 = vld [vmem:[%s30319_s7 + $0x1ff4] ss:$8 sps:$4 sm:$0xff]  }
 0x5d0   : > { %22276 = vmatpush1.bf16.msra.mxu0 %v27608_v63  ;;  %20356 = vmatprep.subr.bf16.mxu1 %v27613_v0  ;;  %v27709_v62 = vld [vmem:[%s33193_s0 + $0x74] ss:$272 sps:$4 sm:$0xff]   ;;  %v27712_v63 = vld [vmem:[%s33193_s0 + $0xfc] ss:$272 sps:$4 sm:$0xff]   ;;  %v27701_v0 = vld [vmem:[%s30319_s7 + $0xef0] ss:$8 sps:$4 sm:$0xff]  }
 0x5d1   : > { %22277 = vmatprep.subr.bf16.mxu0 %v27616_v1  ;;  %20295 = vmatprep.mubr.bf16.mxu1 %v27617_v2  ;;  %v27704_v1 = vld [vmem:[%s30319_s7 + $0x1ff0] ss:$8 sps:$4 sm:$0xff]   ;;  %v27715_v2 = vld [vmem:[%s30319_s7 + $0xf04] ss:$8 sps:$4 sm:$0xff]  }
 0x5d2   : > { %22216 = vmatprep.mubr.bf16.mxu0 %v27619_v3  ;;  %v27718_v3 = vld [vmem:[%s30319_s7 + $0x2004] ss:$8 sps:$4 sm:$0xff]  }
 0x5d3   : > { %20357 = vmatpush1.bf16.msra.mxu1 %v27611_v4  ;;  %v27707_v4 = vld [vmem:[%s33193_s0 + $0x70] ss:$272 sps:$4 sm:$0xff]  }
 0x5d4   : > { %22278 = vmatpush1.bf16.msra.mxu0 %v27614_v5  ;;  %20358 = vmatprep.subr.bf16.mxu1 %v27624_v6  ;;  %v27710_v5 = vld [vmem:[%s33193_s0 + $0xf8] ss:$272 sps:$4 sm:$0xff]  }
 0x5d5   : > { %22279 = vmatprep.subr.bf16.mxu0 %v27628_v7  ;;  %v27713_v6 = vld [vmem:[%s30319_s7 + $0xf00] ss:$8 sps:$4 sm:$0xff]  }
 0x5d6   : > { %20296 = vmatmul.mubr.bf16.gmra.mrb[12].mxu1 %v27621_v8  ;;  %v27716_v7 = vld [vmem:[%s30319_s7 + $0x2000] ss:$8 sps:$4 sm:$0xff]   ;;  %v27721_v8 = vld [vmem:[%s30319_s7 + $0xf14] ss:$8 sps:$4 sm:$0xff]  }
 0x5d7   : > { %22217 = vmatmul.mubr.bf16.gmra.mrb[12].mxu0 %v27625_v10  ;;  %20359 = vmatpush1.bf16.msra.mxu1 %v27622_v9  ;;  %v27724_v9 = vld [vmem:[%s30319_s7 + $0x2014] ss:$8 sps:$4 sm:$0xff]  }
 0x5d8   : > { %22280 = vmatpush1.bf16.msra.mxu0 %v27626_v11  ;;  %20360 = vmatprep.subr.bf16.mxu1 %v27631_v12  ;;  %v27725_v10 = vld [vmem:[%s33193_s0 + $0x294] ss:$272 sps:$4 sm:$0xff]   ;;  %v27727_v11 = vld [vmem:[%s33193_s0 + $0x31c] ss:$272 sps:$4 sm:$0xff]   ;;  %v27719_v12 = vld [vmem:[%s30319_s7 + $0xf10] ss:$8 sps:$4 sm:$0xff]  }
 0x5d9   : > { %22281 = vmatprep.subr.bf16.mxu0 %v27634_v13  ;;  %20305 = vmatprep.mubr.bf16.mxu1 %v27635_v14  ;;  %v27722_v13 = vld [vmem:[%s30319_s7 + $0x2010] ss:$8 sps:$4 sm:$0xff]   ;;  %v27732_v14 = vld [vmem:[%s30319_s7 + $0xf24] ss:$8 sps:$4 sm:$0xff]  }
 0x5da   : > { %22226 = vmatprep.mubr.bf16.mxu0 %v27637_v15  ;;  %v27736_v15 = vld [vmem:[%s30319_s7 + $0x2024] ss:$8 sps:$4 sm:$0xff]  }
 0x5db   : > { %20361 = vmatpush1.bf16.msra.mxu1 %v27629_v16  ;;  %v27729_v16 = vld [vmem:[%s33193_s0 + $0x290] ss:$272 sps:$4 sm:$0xff]  }
 0x5dc   : > { %22282 = vmatpush1.bf16.msra.mxu0 %v27632_v17  ;;  %20362 = vmatprep.subr.bf16.mxu1 %v27642_v18  ;;  %v27730_v17 = vld [vmem:[%s30319_s7 + $0xf20] ss:$8 sps:$4 sm:$0xff]  }
 0x5dd   : > { %22283 = vmatprep.subr.bf16.mxu0 %v27646_v19  ;;  %v27733_v18 = vld [vmem:[%s33193_s0 + $0x318] ss:$272 sps:$4 sm:$0xff]  }
 0x5de   : > { %20306 = vmatmul.mubr.bf16.gmra.mrb[16].mxu1 %v27639_v20  ;;  %v27734_v19 = vld [vmem:[%s30319_s7 + $0x2020] ss:$8 sps:$4 sm:$0xff]   ;;  %v27739_v20 = vld [vmem:[%s30319_s7 + $0xf34] ss:$8 sps:$4 sm:$0xff]  }
 0x5df   : > { %22227 = vmatmul.mubr.bf16.gmra.mrb[16].mxu0 %v27643_v22  ;;  %20363 = vmatpush1.bf16.msra.mxu1 %v27640_v21  ;;  %v27742_v21 = vld [vmem:[%s30319_s7 + $0x2034] ss:$8 sps:$4 sm:$0xff]  }
 0x5e0   : > { %22284 = vmatpush1.bf16.msra.mxu0 %v27644_v23  ;;  %20364 = vmatprep.subr.bf16.mxu1 %v27649_v24  ;;  %v27743_v22 = vld [vmem:[%s33193_s0 + $0x4b4] ss:$272 sps:$4 sm:$0xff]   ;;  %v27745_v23 = vld [vmem:[%s33193_s0 + $0x53c] ss:$272 sps:$4 sm:$0xff]   ;;  %v27737_v24 = vld [vmem:[%s30319_s7 + $0xf30] ss:$8 sps:$4 sm:$0xff]  }
 0x5e1   : > { %22285 = vmatprep.subr.bf16.mxu0 %v27652_v25  ;;  %20315 = vmatprep.mubr.bf16.mxu1 %v27653_v26  ;;  %v27740_v25 = vld [vmem:[%s30319_s7 + $0x2030] ss:$8 sps:$4 sm:$0xff]   ;;  %v27750_v26 = vld [vmem:[%s30319_s7 + $0xf44] ss:$8 sps:$4 sm:$0xff]  }
 0x5e2   : > { %22236 = vmatprep.mubr.bf16.mxu0 %v27655_v27  ;;  %v27754_v27 = vld [vmem:[%s30319_s7 + $0x2044] ss:$8 sps:$4 sm:$0xff]  }
 0x5e3   : > { %20365 = vmatpush1.bf16.msra.mxu1 %v27647_v28  ;;  %v27747_v28 = vld [vmem:[%s33193_s0 + $0x4b0] ss:$272 sps:$4 sm:$0xff]  }
 0x5e4   : > { %22286 = vmatpush1.bf16.msra.mxu0 %v27650_v29  ;;  %20366 = vmatprep.subr.bf16.mxu1 %v27660_v30  ;;  %v27748_v29 = vld [vmem:[%s30319_s7 + $0xf40] ss:$8 sps:$4 sm:$0xff]  }
 0x5e5   : > { %22287 = vmatprep.subr.bf16.mxu0 %v27664_v31  ;;  %v27751_v30 = vld [vmem:[%s33193_s0 + $0x538] ss:$272 sps:$4 sm:$0xff]  }
 0x5e6   : > { %20316 = vmatmul.mubr.bf16.gmra.mrb[20].mxu1 %v27657_v32  ;;  %v27752_v31 = vld [vmem:[%s30319_s7 + $0x2040] ss:$8 sps:$4 sm:$0xff]   ;;  %v27757_v32 = vld [vmem:[%s30319_s7 + $0xf54] ss:$8 sps:$4 sm:$0xff]  }
 0x5e7   : > { %22237 = vmatmul.mubr.bf16.gmra.mrb[20].mxu0 %v27661_v34  ;;  %20367 = vmatpush1.bf16.msra.mxu1 %v27658_v33  ;;  %v27760_v33 = vld [vmem:[%s30319_s7 + $0x2054] ss:$8 sps:$4 sm:$0xff]  }
 0x5e8   : > { %22288 = vmatpush1.bf16.msra.mxu0 %v27662_v35  ;;  %20368 = vmatprep.subr.bf16.mxu1 %v27667_v36  ;;  %v27761_v34 = vld [vmem:[%s33193_s0 + $0x6d4] ss:$272 sps:$4 sm:$0xff]   ;;  %v27763_v35 = vld [vmem:[%s33193_s0 + $0x75c] ss:$272 sps:$4 sm:$0xff]   ;;  %v27755_v36 = vld [vmem:[%s30319_s7 + $0xf50] ss:$8 sps:$4 sm:$0xff]  }
 0x5e9   : > { %22289 = vmatprep.subr.bf16.mxu0 %v27670_v37  ;;  %20325 = vmatprep.mubr.bf16.mxu1 %v27671_v38  ;;  %v27758_v37 = vld [vmem:[%s30319_s7 + $0x2050] ss:$8 sps:$4 sm:$0xff]   ;;  %v27768_v38 = vld [vmem:[%s30319_s7 + $0xf64] ss:$8 sps:$4 sm:$0xff]  }
 0x5ea   : > { %22246 = vmatprep.mubr.bf16.mxu0 %v27673_v39  ;;  %v27772_v39 = vld [vmem:[%s30319_s7 + $0x2064] ss:$8 sps:$4 sm:$0xff]  }
 0x5eb   : > { %20369 = vmatpush1.bf16.msra.mxu1 %v27665_v40  ;;  %v27765_v40 = vld [vmem:[%s33193_s0 + $0x6d0] ss:$272 sps:$4 sm:$0xff]  }
 0x5ec   : > { %22290 = vmatpush1.bf16.msra.mxu0 %v27668_v41  ;;  %20370 = vmatprep.subr.bf16.mxu1 %v27678_v42  ;;  %v27766_v41 = vld [vmem:[%s30319_s7 + $0xf60] ss:$8 sps:$4 sm:$0xff]  }
 0x5ed   : > { %22291 = vmatprep.subr.bf16.mxu0 %v27682_v43  ;;  %v27769_v42 = vld [vmem:[%s33193_s0 + $0x758] ss:$272 sps:$4 sm:$0xff]  }
 0x5ee   : > { %20326 = vmatmul.mubr.bf16.gmra.mrb[24].mxu1 %v27675_v44  ;;  %v27770_v43 = vld [vmem:[%s30319_s7 + $0x2060] ss:$8 sps:$4 sm:$0xff]   ;;  %v27775_v44 = vld [vmem:[%s30319_s7 + $0xf74] ss:$8 sps:$4 sm:$0xff]  }
 0x5ef   : > { %22247 = vmatmul.mubr.bf16.gmra.mrb[24].mxu0 %v27679_v46  ;;  %20371 = vmatpush1.bf16.msra.mxu1 %v27676_v45  ;;  %v27778_v45 = vld [vmem:[%s30319_s7 + $0x2074] ss:$8 sps:$4 sm:$0xff]  }
 0x5f0   : > { %22292 = vmatpush1.bf16.msra.mxu0 %v27680_v47  ;;  %20372 = vmatprep.subr.bf16.mxu1 %v27685_v48  ;;  %v27779_v46 = vld [vmem:[%s33193_s0 + $0x8f4] ss:$272 sps:$4 sm:$0xff]   ;;  %v27781_v47 = vld [vmem:[%s33193_s0 + $0x97c] ss:$272 sps:$4 sm:$0xff]   ;;  %v27773_v48 = vld [vmem:[%s30319_s7 + $0xf70] ss:$8 sps:$4 sm:$0xff]  }
 0x5f1   : > { %22293 = vmatprep.subr.bf16.mxu0 %v27688_v49  ;;  %20335 = vmatprep.mubr.bf16.mxu1 %v27689_v50  ;;  %v27776_v49 = vld [vmem:[%s30319_s7 + $0x2070] ss:$8 sps:$4 sm:$0xff]   ;;  %v27786_v50 = vld [vmem:[%s30319_s7 + $0xf84] ss:$8 sps:$4 sm:$0xff]  }
 0x5f2   : > { %22256 = vmatprep.mubr.bf16.mxu0 %v27691_v51  ;;  %v27790_v51 = vld [vmem:[%s30319_s7 + $0x2084] ss:$8 sps:$4 sm:$0xff]  }
 0x5f3   : > { %20373 = vmatpush1.bf16.msra.mxu1 %v27683_v52  ;;  %v27783_v52 = vld [vmem:[%s33193_s0 + $0x8f0] ss:$272 sps:$4 sm:$0xff]  }
 0x5f4   : > { %22294 = vmatpush1.bf16.msra.mxu0 %v27686_v53  ;;  %20374 = vmatprep.subr.bf16.mxu1 %v27696_v54  ;;  %v27784_v53 = vld [vmem:[%s30319_s7 + $0xf80] ss:$8 sps:$4 sm:$0xff]  }
 0x5f5   : > { %22295 = vmatprep.subr.bf16.mxu0 %v27700_v55  ;;  %v27787_v54 = vld [vmem:[%s33193_s0 + $0x978] ss:$272 sps:$4 sm:$0xff]  }
 0x5f6   : > { %20336 = vmatmul.mubr.bf16.gmra.mrb[28].mxu1 %v27693_v56  ;;  %v27788_v55 = vld [vmem:[%s30319_s7 + $0x2080] ss:$8 sps:$4 sm:$0xff]   ;;  %v27793_v56 = vld [vmem:[%s30319_s7 + $0xf94] ss:$8 sps:$4 sm:$0xff]  }
 0x5f7   : > { %22257 = vmatmul.mubr.bf16.gmra.mrb[28].mxu0 %v27697_v58  ;;  %20375 = vmatpush1.bf16.msra.mxu1 %v27694_v57  ;;  %v27796_v57 = vld [vmem:[%s30319_s7 + $0x2094] ss:$8 sps:$4 sm:$0xff]  }
 0x5f8   : > { %22296 = vmatpush1.bf16.msra.mxu0 %v27698_v59  ;;  %20376 = vmatprep.subr.bf16.mxu1 %v27703_v60  ;;  %v27797_v58 = vld [vmem:[%s33193_s0 + $0xb14] ss:$272 sps:$4 sm:$0xff]   ;;  %v27799_v59 = vld [vmem:[%s33193_s0 + $0xb9c] ss:$272 sps:$4 sm:$0xff]   ;;  %v27791_v60 = vld [vmem:[%s30319_s7 + $0xf90] ss:$8 sps:$4 sm:$0xff]  }
 0x5f9   : > { %22297 = vmatprep.subr.bf16.mxu0 %v27706_v61  ;;  %20378 = vmatprep.mubr.bf16.mxu1 %v27709_v62  ;;  %v27794_v61 = vld [vmem:[%s30319_s7 + $0x2090] ss:$8 sps:$4 sm:$0xff]   ;;  %v27804_v62 = vld [vmem:[%s30319_s7 + $0xfa4] ss:$8 sps:$4 sm:$0xff]  }
 0x5fa   : > { %22299 = vmatprep.mubr.bf16.mxu0 %v27712_v63  ;;  %v27808_v63 = vld [vmem:[%s30319_s7 + $0x20a4] ss:$8 sps:$4 sm:$0xff]  }
 0x5fb   : > { %20377 = vmatpush1.bf16.msra.mxu1 %v27701_v0  ;;  %v27801_v0 = vld [vmem:[%s33193_s0 + $0xb10] ss:$272 sps:$4 sm:$0xff]  }
 0x5fc   : > { %22298 = vmatpush1.bf16.msra.mxu0 %v27704_v1  ;;  %20459 = vmatprep.subr.bf16.mxu1 %v27715_v2  ;;  %v27802_v1 = vld [vmem:[%s30319_s7 + $0xfa0] ss:$8 sps:$4 sm:$0xff]  }
 0x5fd   : > { %22380 = vmatprep.subr.bf16.mxu0 %v27718_v3  ;;  %v27805_v2 = vld [vmem:[%s33193_s0 + $0xb98] ss:$272 sps:$4 sm:$0xff]  }
 0x5fe   : > { %20379 = vmatmul.mubr.bf16.vlgmr.msra.gmra.mrb[0].mxu1 %v27707_v4  ;;  %v27806_v3 = vld [vmem:[%s30319_s7 + $0x20a0] ss:$8 sps:$4 sm:$0xff]   ;;  %v27811_v4 = vld [vmem:[%s30319_s7 + $0xfb4] ss:$8 sps:$4 sm:$0xff]  }
 0x5ff   : > { %22300 = vmatmul.mubr.bf16.vlgmr.msra.gmra.mrb[0].mxu0 %v27710_v5  ;;  %20460 = vmatpush1.bf16.msra.mxu1 %v27713_v6  ;;  %v27814_v5 = vld [vmem:[%s30319_s7 + $0x20b4] ss:$8 sps:$4 sm:$0xff]  }
 0x600   : > { %22381 = vmatpush1.bf16.msra.mxu0 %v27716_v7  ;;  %20461 = vmatprep.subr.bf16.mxu1 %v27721_v8  ;;  %v27815_v6 = vld [vmem:[%s33193_s0 + $0xd34] ss:$272 sps:$4 sm:$0xff]   ;;  %v27817_v7 = vld [vmem:[%s33193_s0 + $0xdbc] ss:$272 sps:$4 sm:$0xff]   ;;  %v27809_v8 = vld [vmem:[%s30319_s7 + $0xfb0] ss:$8 sps:$4 sm:$0xff]  }
 0x601   : > { %22382 = vmatprep.subr.bf16.mxu0 %v27724_v9  ;;  %20388 = vmatprep.mubr.bf16.mxu1 %v27725_v10  ;;  %v27812_v9 = vld [vmem:[%s30319_s7 + $0x20b0] ss:$8 sps:$4 sm:$0xff]   ;;  %v27822_v10 = vld [vmem:[%s30319_s7 + $0xfc4] ss:$8 sps:$4 sm:$0xff]  }
 0x602   : > { %22309 = vmatprep.mubr.bf16.mxu0 %v27727_v11  ;;  %v27826_v11 = vld [vmem:[%s30319_s7 + $0x20c4] ss:$8 sps:$4 sm:$0xff]  }
 0x603   : > { %20462 = vmatpush1.bf16.msra.mxu1 %v27719_v12  ;;  %v27819_v12 = vld [vmem:[%s33193_s0 + $0xd30] ss:$272 sps:$4 sm:$0xff]  }
 0x604   : > { %22383 = vmatpush1.bf16.msra.mxu0 %v27722_v13  ;;  %20463 = vmatprep.subr.bf16.mxu1 %v27732_v14  ;;  %v27820_v13 = vld [vmem:[%s30319_s7 + $0xfc0] ss:$8 sps:$4 sm:$0xff]  }
 0x605   : > { %22384 = vmatprep.subr.bf16.mxu0 %v27736_v15  ;;  %v27823_v14 = vld [vmem:[%s33193_s0 + $0xdb8] ss:$272 sps:$4 sm:$0xff]  }
 0x606   : > { %20389 = vmatmul.mubr.bf16.gmra.mrb[4].mxu1 %v27729_v16  ;;  %v27824_v15 = vld [vmem:[%s30319_s7 + $0x20c0] ss:$8 sps:$4 sm:$0xff]   ;;  %v27829_v16 = vld [vmem:[%s30319_s7 + $0xfd4] ss:$8 sps:$4 sm:$0xff]  }
 0x607   : > { %22310 = vmatmul.mubr.bf16.gmra.mrb[4].mxu0 %v27733_v18  ;;  %20464 = vmatpush1.bf16.msra.mxu1 %v27730_v17  ;;  %v27832_v17 = vld [vmem:[%s30319_s7 + $0x20d4] ss:$8 sps:$4 sm:$0xff]  }
 0x608   : > { %22385 = vmatpush1.bf16.msra.mxu0 %v27734_v19  ;;  %20465 = vmatprep.subr.bf16.mxu1 %v27739_v20  ;;  %v27833_v18 = vld [vmem:[%s33193_s0 + $0xf54] ss:$272 sps:$4 sm:$0xff]   ;;  %v27835_v19 = vld [vmem:[%s33193_s0 + $0xfdc] ss:$272 sps:$4 sm:$0xff]   ;;  %v27827_v20 = vld [vmem:[%s30319_s7 + $0xfd0] ss:$8 sps:$4 sm:$0xff]  }
 0x609   : > { %22386 = vmatprep.subr.bf16.mxu0 %v27742_v21  ;;  %20398 = vmatprep.mubr.bf16.mxu1 %v27743_v22  ;;  %v27830_v21 = vld [vmem:[%s30319_s7 + $0x20d0] ss:$8 sps:$4 sm:$0xff]   ;;  %v27840_v22 = vld [vmem:[%s30319_s7 + $0xfe4] ss:$8 sps:$4 sm:$0xff]  }
 0x60a   : > { %22319 = vmatprep.mubr.bf16.mxu0 %v27745_v23  ;;  %v27844_v23 = vld [vmem:[%s30319_s7 + $0x20e4] ss:$8 sps:$4 sm:$0xff]  }
 0x60b   : > { %20466 = vmatpush1.bf16.msra.mxu1 %v27737_v24  ;;  %v27837_v24 = vld [vmem:[%s33193_s0 + $0xf50] ss:$272 sps:$4 sm:$0xff]  }
 0x60c   : > { %22387 = vmatpush1.bf16.msra.mxu0 %v27740_v25  ;;  %20467 = vmatprep.subr.bf16.mxu1 %v27750_v26  ;;  %v27838_v25 = vld [vmem:[%s30319_s7 + $0xfe0] ss:$8 sps:$4 sm:$0xff]  }
 0x60d   : > { %22388 = vmatprep.subr.bf16.mxu0 %v27754_v27  ;;  %v27841_v26 = vld [vmem:[%s33193_s0 + $0xfd8] ss:$272 sps:$4 sm:$0xff]  }
 0x60e   : > { %20399 = vmatmul.mubr.bf16.gmra.mrb[8].mxu1 %v27747_v28  ;;  %v27842_v27 = vld [vmem:[%s30319_s7 + $0x20e0] ss:$8 sps:$4 sm:$0xff]   ;;  %v27847_v28 = vld [vmem:[%s30319_s7 + $0xff4] ss:$8 sps:$4 sm:$0xff]  }
 0x60f   : > { %22320 = vmatmul.mubr.bf16.gmra.mrb[8].mxu0 %v27751_v30  ;;  %20468 = vmatpush1.bf16.msra.mxu1 %v27748_v29  ;;  %v27850_v29 = vld [vmem:[%s30319_s7 + $0x20f4] ss:$8 sps:$4 sm:$0xff]  }
 0x610   : > { %22389 = vmatpush1.bf16.msra.mxu0 %v27752_v31  ;;  %20469 = vmatprep.subr.bf16.mxu1 %v27757_v32  ;;  %v27853_v30 = vld [vmem:[%s33193_s0 + $0x7c] ss:$272 sps:$4 sm:$0xff]   ;;  %v27856_v31 = vld [vmem:[%s33193_s0 + $0x104] ss:$272 sps:$4 sm:$0xff]   ;;  %v27845_v32 = vld [vmem:[%s30319_s7 + $0xff0] ss:$8 sps:$4 sm:$0xff]  }
 0x611   : > { %22390 = vmatprep.subr.bf16.mxu0 %v27760_v33  ;;  %20408 = vmatprep.mubr.bf16.mxu1 %v27761_v34  ;;  %v27848_v33 = vld [vmem:[%s30319_s7 + $0x20f0] ss:$8 sps:$4 sm:$0xff]   ;;  %v27859_v34 = vld [vmem:[%s30319_s7 + $0x1004] ss:$8 sps:$4 sm:$0xff]  }
 0x612   : > { %22329 = vmatprep.mubr.bf16.mxu0 %v27763_v35  ;;  %v27862_v35 = vld [vmem:[%s30319_s7 + $0x2104] ss:$8 sps:$4 sm:$0xff]  }
 0x613   : > { %20470 = vmatpush1.bf16.msra.mxu1 %v27755_v36  ;;  %v27851_v36 = vld [vmem:[%s33193_s0 + $0x78] ss:$272 sps:$4 sm:$0xff]  }
 0x614   : > { %22391 = vmatpush1.bf16.msra.mxu0 %v27758_v37  ;;  %20471 = vmatprep.subr.bf16.mxu1 %v27768_v38  ;;  %v27854_v37 = vld [vmem:[%s33193_s0 + $0x100] ss:$272 sps:$4 sm:$0xff]  }
 0x615   : > { %22392 = vmatprep.subr.bf16.mxu0 %v27772_v39  ;;  %v27857_v38 = vld [vmem:[%s30319_s7 + $0x1000] ss:$8 sps:$4 sm:$0xff]  }
 0x616   : > { %20409 = vmatmul.mubr.bf16.gmra.mrb[12].mxu1 %v27765_v40  ;;  %v27860_v39 = vld [vmem:[%s30319_s7 + $0x2100] ss:$8 sps:$4 sm:$0xff]   ;;  %v27865_v40 = vld [vmem:[%s30319_s7 + $0x1014] ss:$8 sps:$4 sm:$0xff]  }
 0x617   : > { %22330 = vmatmul.mubr.bf16.gmra.mrb[12].mxu0 %v27769_v42  ;;  %20472 = vmatpush1.bf16.msra.mxu1 %v27766_v41  ;;  %v27868_v41 = vld [vmem:[%s30319_s7 + $0x2114] ss:$8 sps:$4 sm:$0xff]  }
 0x618   : > { %22393 = vmatpush1.bf16.msra.mxu0 %v27770_v43  ;;  %20473 = vmatprep.subr.bf16.mxu1 %v27775_v44  ;;  %v27869_v42 = vld [vmem:[%s33193_s0 + $0x29c] ss:$272 sps:$4 sm:$0xff]   ;;  %v27871_v43 = vld [vmem:[%s33193_s0 + $0x324] ss:$272 sps:$4 sm:$0xff]   ;;  %v27863_v44 = vld [vmem:[%s30319_s7 + $0x1010] ss:$8 sps:$4 sm:$0xff]  }
 0x619   : > { %22394 = vmatprep.subr.bf16.mxu0 %v27778_v45  ;;  %20418 = vmatprep.mubr.bf16.mxu1 %v27779_v46  ;;  %v27866_v45 = vld [vmem:[%s30319_s7 + $0x2110] ss:$8 sps:$4 sm:$0xff]   ;;  %v27876_v46 = vld [vmem:[%s30319_s7 + $0x1024] ss:$8 sps:$4 sm:$0xff]  }
 0x61a   : > { %22339 = vmatprep.mubr.bf16.mxu0 %v27781_v47  ;;  %v27880_v47 = vld [vmem:[%s30319_s7 + $0x2124] ss:$8 sps:$4 sm:$0xff]  }
 0x61b   : > { %20474 = vmatpush1.bf16.msra.mxu1 %v27773_v48  ;;  %v27873_v48 = vld [vmem:[%s33193_s0 + $0x298] ss:$272 sps:$4 sm:$0xff]  }
 0x61c   : > { %22395 = vmatpush1.bf16.msra.mxu0 %v27776_v49  ;;  %20475 = vmatprep.subr.bf16.mxu1 %v27786_v50  ;;  %v27874_v49 = vld [vmem:[%s30319_s7 + $0x1020] ss:$8 sps:$4 sm:$0xff]  }
 0x61d   : > { %22396 = vmatprep.subr.bf16.mxu0 %v27790_v51  ;;  %v27877_v50 = vld [vmem:[%s33193_s0 + $0x320] ss:$272 sps:$4 sm:$0xff]  }
 0x61e   : > { %20419 = vmatmul.mubr.bf16.gmra.mrb[16].mxu1 %v27783_v52  ;;  %v27878_v51 = vld [vmem:[%s30319_s7 + $0x2120] ss:$8 sps:$4 sm:$0xff]   ;;  %v27883_v52 = vld [vmem:[%s30319_s7 + $0x1034] ss:$8 sps:$4 sm:$0xff]  }
 0x61f   : > { %22340 = vmatmul.mubr.bf16.gmra.mrb[16].mxu0 %v27787_v54  ;;  %20476 = vmatpush1.bf16.msra.mxu1 %v27784_v53  ;;  %v27886_v53 = vld [vmem:[%s30319_s7 + $0x2134] ss:$8 sps:$4 sm:$0xff]  }
 0x620   : > { %22397 = vmatpush1.bf16.msra.mxu0 %v27788_v55  ;;  %20477 = vmatprep.subr.bf16.mxu1 %v27793_v56  ;;  %v27887_v54 = vld [vmem:[%s33193_s0 + $0x4bc] ss:$272 sps:$4 sm:$0xff]   ;;  %v27889_v55 = vld [vmem:[%s33193_s0 + $0x544] ss:$272 sps:$4 sm:$0xff]   ;;  %v27881_v56 = vld [vmem:[%s30319_s7 + $0x1030] ss:$8 sps:$4 sm:$0xff]  }
 0x621   : > { %22398 = vmatprep.subr.bf16.mxu0 %v27796_v57  ;;  %20428 = vmatprep.mubr.bf16.mxu1 %v27797_v58  ;;  %v27884_v57 = vld [vmem:[%s30319_s7 + $0x2130] ss:$8 sps:$4 sm:$0xff]   ;;  %v27894_v58 = vld [vmem:[%s30319_s7 + $0x1044] ss:$8 sps:$4 sm:$0xff]  }
 0x622   : > { %22349 = vmatprep.mubr.bf16.mxu0 %v27799_v59  ;;  %v27898_v59 = vld [vmem:[%s30319_s7 + $0x2144] ss:$8 sps:$4 sm:$0xff]  }
 0x623   : > { %20478 = vmatpush1.bf16.msra.mxu1 %v27791_v60  ;;  %v27891_v60 = vld [vmem:[%s33193_s0 + $0x4b8] ss:$272 sps:$4 sm:$0xff]  }
 0x624   : > { %22399 = vmatpush1.bf16.msra.mxu0 %v27794_v61  ;;  %20479 = vmatprep.subr.bf16.mxu1 %v27804_v62  ;;  %v27892_v61 = vld [vmem:[%s30319_s7 + $0x1040] ss:$8 sps:$4 sm:$0xff]  }
 0x625   : > { %22400 = vmatprep.subr.bf16.mxu0 %v27808_v63  ;;  %v27895_v62 = vld [vmem:[%s33193_s0 + $0x540] ss:$272 sps:$4 sm:$0xff]  }
 0x626   : > { %20429 = vmatmul.mubr.bf16.gmra.mrb[20].mxu1 %v27801_v0  ;;  %v27896_v63 = vld [vmem:[%s30319_s7 + $0x2140] ss:$8 sps:$4 sm:$0xff]   ;;  %v27901_v0 = vld [vmem:[%s30319_s7 + $0x1054] ss:$8 sps:$4 sm:$0xff]  }
 0x627   : > { %22350 = vmatmul.mubr.bf16.gmra.mrb[20].mxu0 %v27805_v2  ;;  %20480 = vmatpush1.bf16.msra.mxu1 %v27802_v1  ;;  %v27904_v1 = vld [vmem:[%s30319_s7 + $0x2154] ss:$8 sps:$4 sm:$0xff]  }
 0x628   : > { %22401 = vmatpush1.bf16.msra.mxu0 %v27806_v3  ;;  %20481 = vmatprep.subr.bf16.mxu1 %v27811_v4  ;;  %v27905_v2 = vld [vmem:[%s33193_s0 + $0x6dc] ss:$272 sps:$4 sm:$0xff]   ;;  %v27907_v3 = vld [vmem:[%s33193_s0 + $0x764] ss:$272 sps:$4 sm:$0xff]   ;;  %v27899_v4 = vld [vmem:[%s30319_s7 + $0x1050] ss:$8 sps:$4 sm:$0xff]  }
 0x629   : > { %22402 = vmatprep.subr.bf16.mxu0 %v27814_v5  ;;  %20438 = vmatprep.mubr.bf16.mxu1 %v27815_v6  ;;  %v27902_v5 = vld [vmem:[%s30319_s7 + $0x2150] ss:$8 sps:$4 sm:$0xff]   ;;  %v27912_v6 = vld [vmem:[%s30319_s7 + $0x1064] ss:$8 sps:$4 sm:$0xff]  }
 0x62a   : > { %22359 = vmatprep.mubr.bf16.mxu0 %v27817_v7  ;;  %v27916_v7 = vld [vmem:[%s30319_s7 + $0x2164] ss:$8 sps:$4 sm:$0xff]  }
 0x62b   : > { %20482 = vmatpush1.bf16.msra.mxu1 %v27809_v8  ;;  %v27909_v8 = vld [vmem:[%s33193_s0 + $0x6d8] ss:$272 sps:$4 sm:$0xff]  }
 0x62c   : > { %22403 = vmatpush1.bf16.msra.mxu0 %v27812_v9  ;;  %20483 = vmatprep.subr.bf16.mxu1 %v27822_v10  ;;  %v27910_v9 = vld [vmem:[%s30319_s7 + $0x1060] ss:$8 sps:$4 sm:$0xff]  }
 0x62d   : > { %22404 = vmatprep.subr.bf16.mxu0 %v27826_v11  ;;  %v27913_v10 = vld [vmem:[%s33193_s0 + $0x760] ss:$272 sps:$4 sm:$0xff]  }
 0x62e   : > { %20439 = vmatmul.mubr.bf16.gmra.mrb[24].mxu1 %v27819_v12  ;;  %v27914_v11 = vld [vmem:[%s30319_s7 + $0x2160] ss:$8 sps:$4 sm:$0xff]   ;;  %v27919_v12 = vld [vmem:[%s30319_s7 + $0x1074] ss:$8 sps:$4 sm:$0xff]  }
 0x62f   : > { %22360 = vmatmul.mubr.bf16.gmra.mrb[24].mxu0 %v27823_v14  ;;  %20484 = vmatpush1.bf16.msra.mxu1 %v27820_v13  ;;  %v27922_v13 = vld [vmem:[%s30319_s7 + $0x2174] ss:$8 sps:$4 sm:$0xff]  }
 0x630   : > { %22405 = vmatpush1.bf16.msra.mxu0 %v27824_v15  ;;  %20485 = vmatprep.subr.bf16.mxu1 %v27829_v16  ;;  %v27923_v14 = vld [vmem:[%s33193_s0 + $0x8fc] ss:$272 sps:$4 sm:$0xff]   ;;  %v27925_v15 = vld [vmem:[%s33193_s0 + $0x984] ss:$272 sps:$4 sm:$0xff]   ;;  %v27917_v16 = vld [vmem:[%s30319_s7 + $0x1070] ss:$8 sps:$4 sm:$0xff]  }
 0x631   : > { %22406 = vmatprep.subr.bf16.mxu0 %v27832_v17  ;;  %20448 = vmatprep.mubr.bf16.mxu1 %v27833_v18  ;;  %v27920_v17 = vld [vmem:[%s30319_s7 + $0x2170] ss:$8 sps:$4 sm:$0xff]   ;;  %v27930_v18 = vld [vmem:[%s30319_s7 + $0x1084] ss:$8 sps:$4 sm:$0xff]  }
 0x632   : > { %22369 = vmatprep.mubr.bf16.mxu0 %v27835_v19  ;;  %v27934_v19 = vld [vmem:[%s30319_s7 + $0x2184] ss:$8 sps:$4 sm:$0xff]  }
 0x633   : > { %20486 = vmatpush1.bf16.msra.mxu1 %v27827_v20  ;;  %v27927_v20 = vld [vmem:[%s33193_s0 + $0x8f8] ss:$272 sps:$4 sm:$0xff]  }
 0x634   : > { %22407 = vmatpush1.bf16.msra.mxu0 %v27830_v21  ;;  %20487 = vmatprep.subr.bf16.mxu1 %v27840_v22  ;;  %v27928_v21 = vld [vmem:[%s30319_s7 + $0x1080] ss:$8 sps:$4 sm:$0xff]  }
 0x635   : > { %22408 = vmatprep.subr.bf16.mxu0 %v27844_v23  ;;  %v27931_v22 = vld [vmem:[%s33193_s0 + $0x980] ss:$272 sps:$4 sm:$0xff]  }
 0x636   : > { %20449 = vmatmul.mubr.bf16.gmra.mrb[28].mxu1 %v27837_v24  ;;  %v27932_v23 = vld [vmem:[%s30319_s7 + $0x2180] ss:$8 sps:$4 sm:$0xff]   ;;  %v27937_v24 = vld [vmem:[%s30319_s7 + $0x1094] ss:$8 sps:$4 sm:$0xff]  }
 0x637   : > { %22370 = vmatmul.mubr.bf16.gmra.mrb[28].mxu0 %v27841_v26  ;;  %20488 = vmatpush1.bf16.msra.mxu1 %v27838_v25  ;;  %v27940_v25 = vld [vmem:[%s30319_s7 + $0x2194] ss:$8 sps:$4 sm:$0xff]  }
 0x638   : > { %22409 = vmatpush1.bf16.msra.mxu0 %v27842_v27  ;;  %20489 = vmatprep.subr.bf16.mxu1 %v27847_v28  ;;  %v27941_v26 = vld [vmem:[%s33193_s0 + $0xb1c] ss:$272 sps:$4 sm:$0xff]   ;;  %v27943_v27 = vld [vmem:[%s33193_s0 + $0xba4] ss:$272 sps:$4 sm:$0xff]   ;;  %v27935_v28 = vld [vmem:[%s30319_s7 + $0x1090] ss:$8 sps:$4 sm:$0xff]  }
 0x639   : > { %22410 = vmatprep.subr.bf16.mxu0 %v27850_v29  ;;  %20491 = vmatprep.mubr.bf16.mxu1 %v27853_v30  ;;  %v27938_v29 = vld [vmem:[%s30319_s7 + $0x2190] ss:$8 sps:$4 sm:$0xff]   ;;  %v27948_v30 = vld [vmem:[%s30319_s7 + $0x10a4] ss:$8 sps:$4 sm:$0xff]  }
 0x63a   : > { %22412 = vmatprep.mubr.bf16.mxu0 %v27856_v31  ;;  %v27945_v31 = vld [vmem:[%s33193_s0 + $0xb18] ss:$272 sps:$4 sm:$0xff]  }
 0x63b   : > { %20490 = vmatpush1.bf16.msra.mxu1 %v27845_v32  ;;  %v27952_v32 = vld [vmem:[%s30319_s7 + $0x21a4] ss:$8 sps:$4 sm:$0xff]  }
 0x63c   : > { %22411 = vmatpush1.bf16.msra.mxu0 %v27848_v33  ;;  %20572 = vmatprep.subr.bf16.mxu1 %v27859_v34  ;;  %v27946_v33 = vld [vmem:[%s30319_s7 + $0x10a0] ss:$8 sps:$4 sm:$0xff]  }
 0x63d   : > { %22493 = vmatprep.subr.bf16.mxu0 %v27862_v35  ;;  %v27949_v34 = vld [vmem:[%s33193_s0 + $0xba0] ss:$272 sps:$4 sm:$0xff]  }
 0x63e   : > { %20492 = vmatmul.mubr.bf16.vlgmr.msra.gmra.mrb[0].mxu1 %v27851_v36  ;;  %v27950_v35 = vld [vmem:[%s30319_s7 + $0x21a0] ss:$8 sps:$4 sm:$0xff]   ;;  %v27955_v36 = vld [vmem:[%s30319_s7 + $0x10b4] ss:$8 sps:$4 sm:$0xff]  }
 0x63f   : > { %22413 = vmatmul.mubr.bf16.vlgmr.msra.gmra.mrb[0].mxu0 %v27854_v37  ;;  %20573 = vmatpush1.bf16.msra.mxu1 %v27857_v38  ;;  %v27958_v37 = vld [vmem:[%s30319_s7 + $0x21b4] ss:$8 sps:$4 sm:$0xff]  }
 0x640   : > { %22494 = vmatpush1.bf16.msra.mxu0 %v27860_v39  ;;  %20574 = vmatprep.subr.bf16.mxu1 %v27865_v40  ;;  %v27959_v38 = vld [vmem:[%s33193_s0 + $0xd3c] ss:$272 sps:$4 sm:$0xff]   ;;  %v27961_v39 = vld [vmem:[%s33193_s0 + $0xdc4] ss:$272 sps:$4 sm:$0xff]   ;;  %v27953_v40 = vld [vmem:[%s30319_s7 + $0x10b0] ss:$8 sps:$4 sm:$0xff]  }
 0x641   : > { %22495 = vmatprep.subr.bf16.mxu0 %v27868_v41  ;;  %20501 = vmatprep.mubr.bf16.mxu1 %v27869_v42  ;;  %v27956_v41 = vld [vmem:[%s30319_s7 + $0x21b0] ss:$8 sps:$4 sm:$0xff]   ;;  %v27966_v42 = vld [vmem:[%s30319_s7 + $0x10c4] ss:$8 sps:$4 sm:$0xff]  }
 0x642   : > { %22422 = vmatprep.mubr.bf16.mxu0 %v27871_v43  ;;  %v27963_v43 = vld [vmem:[%s33193_s0 + $0xd38] ss:$272 sps:$4 sm:$0xff]  }
 0x643   : > { %20575 = vmatpush1.bf16.msra.mxu1 %v27863_v44  ;;  %v27970_v44 = vld [vmem:[%s30319_s7 + $0x21c4] ss:$8 sps:$4 sm:$0xff]  }
 0x644   : > { %22496 = vmatpush1.bf16.msra.mxu0 %v27866_v45  ;;  %20576 = vmatprep.subr.bf16.mxu1 %v27876_v46  ;;  %v27964_v45 = vld [vmem:[%s30319_s7 + $0x10c0] ss:$8 sps:$4 sm:$0xff]  }
 0x645   : > { %22497 = vmatprep.subr.bf16.mxu0 %v27880_v47  ;;  %v27967_v46 = vld [vmem:[%s33193_s0 + $0xdc0] ss:$272 sps:$4 sm:$0xff]  }
 0x646   : > { %20502 = vmatmul.mubr.bf16.gmra.mrb[4].mxu1 %v27873_v48  ;;  %v27968_v47 = vld [vmem:[%s30319_s7 + $0x21c0] ss:$8 sps:$4 sm:$0xff]   ;;  %v27973_v48 = vld [vmem:[%s30319_s7 + $0x10d4] ss:$8 sps:$4 sm:$0xff]  }
 0x647   : > { %22423 = vmatmul.mubr.bf16.gmra.mrb[4].mxu0 %v27877_v50  ;;  %20577 = vmatpush1.bf16.msra.mxu1 %v27874_v49  ;;  %v27976_v49 = vld [vmem:[%s30319_s7 + $0x21d4] ss:$8 sps:$4 sm:$0xff]  }
 0x648   : > { %22498 = vmatpush1.bf16.msra.mxu0 %v27878_v51  ;;  %20578 = vmatprep.subr.bf16.mxu1 %v27883_v52  ;;  %v27977_v50 = vld [vmem:[%s33193_s0 + $0xf5c] ss:$272 sps:$4 sm:$0xff]   ;;  %v27979_v51 = vld [vmem:[%s33193_s0 + $0xfe4] ss:$272 sps:$4 sm:$0xff]   ;;  %v27971_v52 = vld [vmem:[%s30319_s7 + $0x10d0] ss:$8 sps:$4 sm:$0xff]  }
 0x649   : > { %22499 = vmatprep.subr.bf16.mxu0 %v27886_v53  ;;  %20511 = vmatprep.mubr.bf16.mxu1 %v27887_v54  ;;  %v27974_v53 = vld [vmem:[%s30319_s7 + $0x21d0] ss:$8 sps:$4 sm:$0xff]   ;;  %v27984_v54 = vld [vmem:[%s30319_s7 + $0x10e4] ss:$8 sps:$4 sm:$0xff]  }
 0x64a   : > { %22432 = vmatprep.mubr.bf16.mxu0 %v27889_v55  ;;  %v27981_v55 = vld [vmem:[%s33193_s0 + $0xf58] ss:$272 sps:$4 sm:$0xff]  }
 0x64b   : > { %20579 = vmatpush1.bf16.msra.mxu1 %v27881_v56  ;;  %v27988_v56 = vld [vmem:[%s30319_s7 + $0x21e4] ss:$8 sps:$4 sm:$0xff]  }
 0x64c   : > { %22500 = vmatpush1.bf16.msra.mxu0 %v27884_v57  ;;  %20580 = vmatprep.subr.bf16.mxu1 %v27894_v58  ;;  %v27982_v57 = vld [vmem:[%s30319_s7 + $0x10e0] ss:$8 sps:$4 sm:$0xff]  }
 0x64d   : > { %22501 = vmatprep.subr.bf16.mxu0 %v27898_v59  ;;  %v27985_v58 = vld [vmem:[%s33193_s0 + $0xfe0] ss:$272 sps:$4 sm:$0xff]  }
 0x64e   : > { %20512 = vmatmul.mubr.bf16.gmra.mrb[8].mxu1 %v27891_v60  ;;  %v27986_v59 = vld [vmem:[%s30319_s7 + $0x21e0] ss:$8 sps:$4 sm:$0xff]   ;;  %v27991_v60 = vld [vmem:[%s30319_s7 + $0x10f4] ss:$8 sps:$4 sm:$0xff]  }
 0x64f   : > { %22433 = vmatmul.mubr.bf16.gmra.mrb[8].mxu0 %v27895_v62  ;;  %20581 = vmatpush1.bf16.msra.mxu1 %v27892_v61  ;;  %v27994_v61 = vld [vmem:[%s30319_s7 + $0x21f4] ss:$8 sps:$4 sm:$0xff]  }
 0x650   : > { %22502 = vmatpush1.bf16.msra.mxu0 %v27896_v63  ;;  %20582 = vmatprep.subr.bf16.mxu1 %v27901_v0  ;;  %v27997_v62 = vld [vmem:[%s33193_s0 + $0x84] ss:$272 sps:$4 sm:$0xff]   ;;  %v28000_v63 = vld [vmem:[%s33193_s0 + $0x10c] ss:$272 sps:$4 sm:$0xff]   ;;  %v27989_v0 = vld [vmem:[%s30319_s7 + $0x10f0] ss:$8 sps:$4 sm:$0xff]  }
 0x651   : > { %22503 = vmatprep.subr.bf16.mxu0 %v27904_v1  ;;  %20521 = vmatprep.mubr.bf16.mxu1 %v27905_v2  ;;  %v27992_v1 = vld [vmem:[%s30319_s7 + $0x21f0] ss:$8 sps:$4 sm:$0xff]   ;;  %s33120_s7 = scalar_lea.vmem (%p28118_p5), %s33196_s3, %s24480_s28 }
 0x652   : > { %22442 = vmatprep.mubr.bf16.mxu0 %v27907_v3  ;;  %v27995_v2 = vld [vmem:[%s33193_s0 + $0x80] ss:$272 sps:$4 sm:$0xff]   ;;  %v27998_v3 = vld [vmem:[%s33193_s0 + $0x108] ss:$272 sps:$4 sm:$0xff]  }
 0x653   : > { %20583 = vmatpush1.bf16.msra.mxu1 %v27899_v4  ;;  %v28001_v4 = vld [vmem:[%s33193_s0 + $0x2a4] ss:$272 sps:$4 sm:$0xff]  }
 0x654   : > { %22504 = vmatpush1.bf16.msra.mxu0 %v27902_v5  ;;  %20584 = vmatprep.subr.bf16.mxu1 %v27912_v6  ;;  %v28003_v5 = vld [vmem:[%s33193_s0 + $0x32c] ss:$272 sps:$4 sm:$0xff]   ;;  %v28005_v6 = vld [vmem:[%s33193_s0 + $0x2a0] ss:$272 sps:$4 sm:$0xff]  }
 0x655   : > { %22505 = vmatprep.subr.bf16.mxu0 %v27916_v7  ;;  %v28006_v7 = vld [vmem:[%s33193_s0 + $0x328] ss:$272 sps:$4 sm:$0xff]  }
 0x656   : > { %20522 = vmatmul.mubr.bf16.gmra.mrb[12].mxu1 %v27909_v8  ;;  %v28007_v8 = vld [vmem:[%s33193_s0 + $0x4c4] ss:$272 sps:$4 sm:$0xff]  }
 0x657   : > { %22443 = vmatmul.mubr.bf16.gmra.mrb[12].mxu0 %v27913_v10  ;;  %20585 = vmatpush1.bf16.msra.mxu1 %v27910_v9  ;;  %v28009_v9 = vld [vmem:[%s33193_s0 + $0x54c] ss:$272 sps:$4 sm:$0xff]   ;;  %v28011_v10 = vld [vmem:[%s33193_s0 + $0x4c0] ss:$272 sps:$4 sm:$0xff]  }
 0x658   : > { %22506 = vmatpush1.bf16.msra.mxu0 %v27914_v11  ;;  %20586 = vmatprep.subr.bf16.mxu1 %v27919_v12  ;;  %v28012_v11 = vld [vmem:[%s33193_s0 + $0x548] ss:$272 sps:$4 sm:$0xff]   ;;  %v28013_v12 = vld [vmem:[%s33193_s0 + $0x6e4] ss:$272 sps:$4 sm:$0xff]  }
 0x659   : > { %22507 = vmatprep.subr.bf16.mxu0 %v27922_v13  ;;  %20531 = vmatprep.mubr.bf16.mxu1 %v27923_v14  ;;  %v28015_v13 = vld [vmem:[%s33193_s0 + $0x76c] ss:$272 sps:$4 sm:$0xff]   ;;  %v28017_v14 = vld [vmem:[%s33193_s0 + $0x6e0] ss:$272 sps:$4 sm:$0xff]  }
 0x65a   : > { %22452 = vmatprep.mubr.bf16.mxu0 %v27925_v15  ;;  %v28018_v15 = vld [vmem:[%s33193_s0 + $0x768] ss:$272 sps:$4 sm:$0xff]  }
 0x65b   : > { %20587 = vmatpush1.bf16.msra.mxu1 %v27917_v16  ;;  %v28019_v16 = vld [vmem:[%s33193_s0 + $0x904] ss:$272 sps:$4 sm:$0xff]  }
 0x65c   : > { %22508 = vmatpush1.bf16.msra.mxu0 %v27920_v17  ;;  %20588 = vmatprep.subr.bf16.mxu1 %v27930_v18  ;;  %v28021_v17 = vld [vmem:[%s33193_s0 + $0x98c] ss:$272 sps:$4 sm:$0xff]   ;;  %v28023_v18 = vld [vmem:[%s33193_s0 + $0x900] ss:$272 sps:$4 sm:$0xff]  }
 0x65d   : > { %22509 = vmatprep.subr.bf16.mxu0 %v27934_v19  ;;  %v28024_v19 = vld [vmem:[%s33193_s0 + $0x988] ss:$272 sps:$4 sm:$0xff]  }
 0x65e   : > { %20532 = vmatmul.mubr.bf16.gmra.mrb[16].mxu1 %v27927_v20  ;;  %v28025_v20 = vld [vmem:[%s33193_s0 + $0xb24] ss:$272 sps:$4 sm:$0xff]  }
 0x65f   : > { %22453 = vmatmul.mubr.bf16.gmra.mrb[16].mxu0 %v27931_v22  ;;  %20589 = vmatpush1.bf16.msra.mxu1 %v27928_v21  ;;  %v28027_v21 = vld [vmem:[%s33193_s0 + $0xbac] ss:$272 sps:$4 sm:$0xff]   ;;  %v28029_v22 = vld [vmem:[%s33193_s0 + $0xb20] ss:$272 sps:$4 sm:$0xff]  }
 0x660   : > { %22510 = vmatpush1.bf16.msra.mxu0 %v27932_v23  ;;  %20590 = vmatprep.subr.bf16.mxu1 %v27937_v24  ;;  %v28030_v23 = vld [vmem:[%s33193_s0 + $0xba8] ss:$272 sps:$4 sm:$0xff]   ;;  %v28031_v24 = vld [vmem:[%s33193_s0 + $0xd44] ss:$272 sps:$4 sm:$0xff]  }
 0x661   : > { %22511 = vmatprep.subr.bf16.mxu0 %v27940_v25  ;;  %20541 = vmatprep.mubr.bf16.mxu1 %v27941_v26  ;;  %v28033_v25 = vld [vmem:[%s33193_s0 + $0xdcc] ss:$272 sps:$4 sm:$0xff]   ;;  %v28035_v26 = vld [vmem:[%s33193_s0 + $0xd40] ss:$272 sps:$4 sm:$0xff]  }
 0x662   : > { %22462 = vmatprep.mubr.bf16.mxu0 %v27943_v27  ;;  %v28036_v27 = vld [vmem:[%s33193_s0 + $0xdc8] ss:$272 sps:$4 sm:$0xff]  }
 0x663   : > { %20591 = vmatpush1.bf16.msra.mxu1 %v27935_v28  ;;  %v28037_v28 = vld [vmem:[%s33193_s0 + $0xf64] ss:$272 sps:$4 sm:$0xff]  }
 0x664   : > { %22512 = vmatpush1.bf16.msra.mxu0 %v27938_v29  ;;  %20592 = vmatprep.subr.bf16.mxu1 %v27948_v30  ;;  %v28039_v29 = vld [vmem:[%s33193_s0 + $0xfec] ss:$272 sps:$4 sm:$0xff]   ;;  %v28041_v30 = vld [vmem:[%s33193_s0 + $0xf60] ss:$272 sps:$4 sm:$0xff]  }
 0x665   : > { %22513 = vmatprep.subr.bf16.mxu0 %v27952_v32  ;;  %v10594_v32 = vlaneseq }
 0x666   : > { %20542 = vmatmul.mubr.bf16.gmra.mrb[20].mxu1 %v27945_v31  ;;  %v28042_v31 = vld [vmem:[%s33193_s0 + $0xfe8] ss:$272 sps:$4 sm:$0xff]  }
 0x667   : > { %22463 = vmatmul.mubr.bf16.gmra.mrb[20].mxu0 %v27949_v34  ;;  %20593 = vmatpush1.bf16.msra.mxu1 %v27946_v33  ;;  %v10595_v33 = vshrl.u32 %v10594_v32, 7 }
 0x668   : > { %22514 = vmatpush1.bf16.msra.mxu0 %v27950_v35  ;;  %20594 = vmatprep.subr.bf16.mxu1 %v27955_v36  ;;  %v10592_v35 = vld [vmem:[%s8957_s9] sm:$0x3] }
 0x669   : > { %22515 = vmatprep.subr.bf16.mxu0 %v27958_v37  ;;  %20551 = vmatprep.mubr.bf16.mxu1 %v27959_v38  ;;  %v10596_v34 = vsub.s32 0, %v10595_v33  ;;  %v10600_v36 = vsub.s32 1, %v10595_v33 }
 0x66a   : > { %22472 = vmatprep.mubr.bf16.mxu0 %v27961_v39 }
 0x66b   : > { %20595 = vmatpush1.bf16.msra.mxu1 %v27953_v40  ;;  %v33039_v37 = vrot.slane %v10592_v35, %v10596_v34  ;;  %v33041_v38 = vrot.slane %v10592_v35, %v10600_v36 }
 0x66c   : > { %22516 = vmatpush1.bf16.msra.mxu0 %v27956_v41  ;;  %20596 = vmatprep.subr.bf16.mxu1 %v27966_v42 }
 0x66d   : > { %22517 = vmatprep.subr.bf16.mxu0 %v27970_v44 }
 0x66e   : > { %20552 = vmatmul.mubr.bf16.gmra.mrb[24].mxu1 %v27963_v43 }
 0x66f   : > { %22473 = vmatmul.mubr.bf16.gmra.mrb[24].mxu0 %v27967_v46  ;;  %20597 = vmatpush1.bf16.msra.mxu1 %v27964_v45 }
 0x670   : > { %22518 = vmatpush1.bf16.msra.mxu0 %v27968_v47  ;;  %20598 = vmatprep.subr.bf16.mxu1 %v27973_v48 }
 0x671   : > { %22519 = vmatprep.subr.bf16.mxu0 %v27976_v49  ;;  %20561 = vmatprep.mubr.bf16.mxu1 %v27977_v50 }
 0x672   : > { %22482 = vmatprep.mubr.bf16.mxu0 %v27979_v51 }
 0x673   : > { %20599 = vmatpush1.bf16.msra.mxu1 %v27971_v52 }
 0x674   : > { %22520 = vmatpush1.bf16.msra.mxu0 %v27974_v53  ;;  %20600 = vmatprep.subr.bf16.mxu1 %v27984_v54 }
 0x675   : > { %22521 = vmatprep.subr.bf16.mxu0 %v27988_v56 }
 0x676   : > { %20562 = vmatmul.mubr.bf16.gmra.mrb[28].mxu1 %v27981_v55 }
 0x677   : > { %22483 = vmatmul.mubr.bf16.gmra.mrb[28].mxu0 %v27985_v58  ;;  %20601 = vmatpush1.bf16.msra.mxu1 %v27982_v57 }
 0x678   : > { %22522 = vmatpush1.bf16.msra.mxu0 %v27986_v59  ;;  %20602 = vmatprep.subr.bf16.mxu1 %v27991_v60 }
 0x679   : > { %22523 = vmatprep.subr.bf16.mxu0 %v27994_v61  ;;  %20604 = vmatprep.mubr.bf16.mxu1 %v27997_v62 }
 0x67a   : > { %22525 = vmatprep.mubr.bf16.mxu0 %v28000_v63 }
 0x67b   : > { %20603 = vmatpush1.bf16.msra.mxu1 %v27989_v0 }
 0x67c   : > { %22524 = vmatpush1.bf16.msra.mxu0 %v27992_v1 }
 0x67e   : > { %20605 = vmatmul.mubr.bf16.vlgmr.msra.gmra.mrb[0].mxu1 %v27995_v2 }
 0x67f   : > { %22526 = vmatmul.mubr.bf16.vlgmr.msra.gmra.mrb[0].mxu0 %v27998_v3  ;;  %20614 = vmatprep.mubr.bf16.mxu1 %v28001_v4 }
 0x680   : > { %22535 = vmatprep.mubr.bf16.mxu0 %v28003_v5 }
 0x686   : > { %20615 = vmatmul.mubr.bf16.gmra.mrb[4].mxu1 %v28005_v6 }
 0x687   : > { %22536 = vmatmul.mubr.bf16.gmra.mrb[4].mxu0 %v28006_v7  ;;  %20624 = vmatprep.mubr.bf16.mxu1 %v28007_v8 }
 0x688   : > { %22545 = vmatprep.mubr.bf16.mxu0 %v28009_v9 }
 0x68e   : > { %20625 = vmatmul.mubr.bf16.gmra.mrb[8].mxu1 %v28011_v10 }
 0x68f   : > { %22546 = vmatmul.mubr.bf16.gmra.mrb[8].mxu0 %v28012_v11  ;;  %20634 = vmatprep.mubr.bf16.mxu1 %v28013_v12 }
 0x690   : > { %22555 = vmatprep.mubr.bf16.mxu0 %v28015_v13 }
 0x696   : > { %20635 = vmatmul.mubr.bf16.gmra.mrb[12].mxu1 %v28017_v14 }
 0x697   : > { %22556 = vmatmul.mubr.bf16.gmra.mrb[12].mxu0 %v28018_v15  ;;  %20644 = vmatprep.mubr.bf16.mxu1 %v28019_v16 }
 0x698   : > { %22565 = vmatprep.mubr.bf16.mxu0 %v28021_v17 }
 0x69e   : > { %20645 = vmatmul.mubr.bf16.gmra.mrb[16].mxu1 %v28023_v18 }
 0x69f   : > { %22566 = vmatmul.mubr.bf16.gmra.mrb[16].mxu0 %v28024_v19  ;;  %20654 = vmatprep.mubr.bf16.mxu1 %v28025_v20 }
 0x6a0   : > { %22575 = vmatprep.mubr.bf16.mxu0 %v28027_v21 }
 0x6a6   : > { %20655 = vmatmul.mubr.bf16.gmra.mrb[20].mxu1 %v28029_v22 }
 0x6a7   : > { %22576 = vmatmul.mubr.bf16.gmra.mrb[20].mxu0 %v28030_v23  ;;  %20664 = vmatprep.mubr.bf16.mxu1 %v28031_v24 }
 0x6a8   : > { %22585 = vmatprep.mubr.bf16.mxu0 %v28033_v25 }
 0x6ae   : > { %20665 = vmatmul.mubr.bf16.gmra.mrb[24].mxu1 %v28035_v26 }
 0x6af   : > { %22586 = vmatmul.mubr.bf16.gmra.mrb[24].mxu0 %v28036_v27  ;;  %20674 = vmatprep.mubr.bf16.mxu1 %v28037_v28 }
 0x6b0   : > { %22595 = vmatprep.mubr.bf16.mxu0 %v28039_v29 }
 0x6b6   : > { %20675 = vmatmul.mubr.bf16.gmra.mrb[28].mxu1 %v28041_v30 }
 0x6b7   : > { %22596 = vmatmul.mubr.bf16.gmra.mrb[28].mxu0 %v28042_v31 }
 0x751   : > { %v20606_v39 = vpop.f32.mrb[0].mxu1 }
 0x752   : > { %v22527_v40 = vpop.f32.mrb[0].mxu0  ;;  %v24481_v41 = vadd.f32 %v20606_v39, %v33039_v37  ;;  %v20608_v42 = vpop.f32.mrb[1].mxu1 }
 0x753   : > { %v22529_v43 = vpop.f32.mrb[1].mxu0  ;;  %v24483_v44 = vadd.f32 %v20608_v42, %v33041_v38  ;;  %v20610_v45 = vpop.f32.mrb[2].mxu1 }
 0x754   : > { %v22531_v46 = vpop.f32.mrb[2].mxu0  ;;  %v24482_v47 = vadd.f32 %v24481_v41, %v22527_v40  ;;  %v24485_v48 = vadd.f32 %v20610_v45, %v33039_v37  ;;  %v20612_v49 = vpop.f32.mrb[3].mxu1 }
 0x755   : > { %v22533_v50 = vpop.f32.mrb[3].mxu0  ;;  %v24484_v51 = vadd.f32 %v24483_v44, %v22529_v43  ;;  %v24487_v52 = vadd.f32 %v20612_v49, %v33041_v38 }
 0x756   : > { %v22606_v53 = vmax.f32 %v24482_v47, 0.0  ;;  %v24486_v54 = vadd.f32 %v24485_v48, %v22531_v46 }
 0x757   : > { %v22607_v55 = vmax.f32 %v24484_v51, 0.0  ;;  %v24488_v56 = vadd.f32 %v24487_v52, %v22533_v50 }
 0x758   : > { %22638 = vst [vmem:[%s33049_s12] sm:$0xff] %v22606_v53  ;;  %v22608_v57 = vmax.f32 %v24486_v54, 0.0 }
 0x759   : > { %22639 = vst [vmem:[%s33049_s12 + $0x8] sm:$0xff] %v22607_v55  ;;  %v22609_v58 = vmax.f32 %v24488_v56, 0.0  ;;  %v20616_v59 = vpop.f32.mrb[4].mxu1 }
 0x75a   : > { %v22537_v60 = vpop.f32.mrb[4].mxu0  ;;  %22640 = vst [vmem:[%s33049_s12 + $0x10] sm:$0xff] %v22608_v57  ;;  %v24489_v61 = vadd.f32 %v20616_v59, %v33039_v37  ;;  %v20618_v62 = vpop.f32.mrb[5].mxu1 }
 0x75b   : > { %v22539_v63 = vpop.f32.mrb[5].mxu0  ;;  %22641 = vst [vmem:[%s33049_s12 + $0x18] sm:$0xff] %v22609_v58  ;;  %v24491_v0 = vadd.f32 %v20618_v62, %v33041_v38  ;;  %v20620_v1 = vpop.f32.mrb[6].mxu1 }
 0x75c   : > { %v22541_v2 = vpop.f32.mrb[6].mxu0  ;;  %v24490_v3 = vadd.f32 %v24489_v61, %v22537_v60  ;;  %v24493_v4 = vadd.f32 %v20620_v1, %v33039_v37  ;;  %v20622_v5 = vpop.f32.mrb[7].mxu1 }
 0x75d   : > { %v22543_v6 = vpop.f32.mrb[7].mxu0  ;;  %v24492_v7 = vadd.f32 %v24491_v0, %v22539_v63  ;;  %v24495_v8 = vadd.f32 %v20622_v5, %v33041_v38 }
 0x75e   : > { %v22610_v9 = vmax.f32 %v24490_v3, 0.0  ;;  %v24494_v10 = vadd.f32 %v24493_v4, %v22541_v2 }
 0x75f   : > { %v22611_v11 = vmax.f32 %v24492_v7, 0.0  ;;  %v24496_v12 = vadd.f32 %v24495_v8, %v22543_v6 }
 0x760   : > { %22642 = vst [vmem:[%s33049_s12 + $0x20] sm:$0xff] %v22610_v9  ;;  %v22612_v13 = vmax.f32 %v24494_v10, 0.0 }
 0x761   : > { %22643 = vst [vmem:[%s33049_s12 + $0x28] sm:$0xff] %v22611_v11  ;;  %v22613_v14 = vmax.f32 %v24496_v12, 0.0  ;;  %v20626_v15 = vpop.f32.mrb[8].mxu1 }
 0x762   : > { %v22547_v16 = vpop.f32.mrb[8].mxu0  ;;  %22644 = vst [vmem:[%s33049_s12 + $0x30] sm:$0xff] %v22612_v13  ;;  %v24497_v17 = vadd.f32 %v20626_v15, %v33039_v37  ;;  %v20628_v18 = vpop.f32.mrb[9].mxu1 }
 0x763   : > { %v22549_v19 = vpop.f32.mrb[9].mxu0  ;;  %22645 = vst [vmem:[%s33049_s12 + $0x38] sm:$0xff] %v22613_v14  ;;  %v24499_v20 = vadd.f32 %v20628_v18, %v33041_v38  ;;  %v20630_v21 = vpop.f32.mrb[10].mxu1 }
 0x764   : > { %v22551_v22 = vpop.f32.mrb[10].mxu0  ;;  %v24498_v23 = vadd.f32 %v24497_v17, %v22547_v16  ;;  %v24501_v24 = vadd.f32 %v20630_v21, %v33039_v37  ;;  %v20632_v25 = vpop.f32.mrb[11].mxu1 }
 0x765   : > { %v22553_v26 = vpop.f32.mrb[11].mxu0  ;;  %v24500_v27 = vadd.f32 %v24499_v20, %v22549_v19  ;;  %v24503_v28 = vadd.f32 %v20632_v25, %v33041_v38 }
 0x766   : > { %v22614_v29 = vmax.f32 %v24498_v23, 0.0  ;;  %v24502_v30 = vadd.f32 %v24501_v24, %v22551_v22 }
 0x767   : > { %v22615_v31 = vmax.f32 %v24500_v27, 0.0  ;;  %v24504_v32 = vadd.f32 %v24503_v28, %v22553_v26 }
 0x768   : > { %22646 = vst [vmem:[%s33049_s12 + $0x40] sm:$0xff] %v22614_v29  ;;  %v22616_v33 = vmax.f32 %v24502_v30, 0.0 }
 0x769   : > { %22647 = vst [vmem:[%s33049_s12 + $0x48] sm:$0xff] %v22615_v31  ;;  %v22617_v34 = vmax.f32 %v24504_v32, 0.0  ;;  %v20636_v35 = vpop.f32.mrb[12].mxu1 }
 0x76a   : > { %v22557_v36 = vpop.f32.mrb[12].mxu0  ;;  %22648 = vst [vmem:[%s33049_s12 + $0x50] sm:$0xff] %v22616_v33  ;;  %v24505_v39 = vadd.f32 %v20636_v35, %v33039_v37  ;;  %v20638_v40 = vpop.f32.mrb[13].mxu1 }
 0x76b   : > { %v22559_v41 = vpop.f32.mrb[13].mxu0  ;;  %22649 = vst [vmem:[%s33049_s12 + $0x58] sm:$0xff] %v22617_v34  ;;  %v24507_v42 = vadd.f32 %v20638_v40, %v33041_v38  ;;  %v20640_v43 = vpop.f32.mrb[14].mxu1 }
 0x76c   : > { %v22561_v44 = vpop.f32.mrb[14].mxu0  ;;  %v24506_v45 = vadd.f32 %v24505_v39, %v22557_v36  ;;  %v24509_v46 = vadd.f32 %v20640_v43, %v33039_v37  ;;  %v20642_v47 = vpop.f32.mrb[15].mxu1 }
 0x76d   : > { %v22563_v48 = vpop.f32.mrb[15].mxu0  ;;  %v24508_v49 = vadd.f32 %v24507_v42, %v22559_v41  ;;  %v24511_v50 = vadd.f32 %v20642_v47, %v33041_v38 }
 0x76e   : > { %v22618_v51 = vmax.f32 %v24506_v45, 0.0  ;;  %v24510_v52 = vadd.f32 %v24509_v46, %v22561_v44 }
 0x76f   : > { %v22619_v53 = vmax.f32 %v24508_v49, 0.0  ;;  %v24512_v54 = vadd.f32 %v24511_v50, %v22563_v48 }
 0x770   : > { %22650 = vst [vmem:[%s33049_s12 + $0x60] sm:$0xff] %v22618_v51  ;;  %v22620_v55 = vmax.f32 %v24510_v52, 0.0 }
 0x771   : > { %22651 = vst [vmem:[%s33049_s12 + $0x68] sm:$0xff] %v22619_v53  ;;  %v22621_v56 = vmax.f32 %v24512_v54, 0.0  ;;  %v20646_v57 = vpop.f32.mrb[16].mxu1 }
 0x772   : > { %v22567_v58 = vpop.f32.mrb[16].mxu0  ;;  %22652 = vst [vmem:[%s33049_s12 + $0x70] sm:$0xff] %v22620_v55  ;;  %v24513_v59 = vadd.f32 %v20646_v57, %v33039_v37  ;;  %v20648_v60 = vpop.f32.mrb[17].mxu1 }
 0x773   : > { %v22569_v61 = vpop.f32.mrb[17].mxu0  ;;  %22653 = vst [vmem:[%s33049_s12 + $0x78] sm:$0xff] %v22621_v56  ;;  %v24515_v62 = vadd.f32 %v20648_v60, %v33041_v38  ;;  %v20650_v63 = vpop.f32.mrb[18].mxu1 }
 0x774   : > { %v22571_v0 = vpop.f32.mrb[18].mxu0  ;;  %v24514_v1 = vadd.f32 %v24513_v59, %v22567_v58  ;;  %v24517_v2 = vadd.f32 %v20650_v63, %v33039_v37  ;;  %v20652_v3 = vpop.f32.mrb[19].mxu1 }
 0x775   : > { %v22573_v4 = vpop.f32.mrb[19].mxu0  ;;  %v24516_v5 = vadd.f32 %v24515_v62, %v22569_v61  ;;  %v24519_v6 = vadd.f32 %v20652_v3, %v33041_v38 }
 0x776   : > { %v22622_v7 = vmax.f32 %v24514_v1, 0.0  ;;  %v24518_v8 = vadd.f32 %v24517_v2, %v22571_v0 }
 0x777   : > { %v22623_v9 = vmax.f32 %v24516_v5, 0.0  ;;  %v24520_v10 = vadd.f32 %v24519_v6, %v22573_v4 }
 0x778   : > { %22654 = vst [vmem:[%s33049_s12 + $0x80] sm:$0xff] %v22622_v7  ;;  %v22624_v11 = vmax.f32 %v24518_v8, 0.0 }
 0x779   : > { %22655 = vst [vmem:[%s33049_s12 + $0x88] sm:$0xff] %v22623_v9  ;;  %v22625_v12 = vmax.f32 %v24520_v10, 0.0  ;;  %v20656_v13 = vpop.f32.mrb[20].mxu1 }
 0x77a   : > { %v22577_v14 = vpop.f32.mrb[20].mxu0  ;;  %22656 = vst [vmem:[%s33049_s12 + $0x90] sm:$0xff] %v22624_v11  ;;  %v24521_v15 = vadd.f32 %v20656_v13, %v33039_v37  ;;  %v20658_v16 = vpop.f32.mrb[21].mxu1  ;;  %v22696_v11 = vld [vmem:[%s33049_s12 + $0x10] sm:$0xff] (%p28118_p5)  ;;  %v22700_v13 = vld [vmem:[%s33049_s12 + $0x20] sm:$0xff] (%p28118_p5) }
 0x77b   : > { %v22579_v17 = vpop.f32.mrb[21].mxu0  ;;  %22657 = vst [vmem:[%s33049_s12 + $0x98] sm:$0xff] %v22625_v12  ;;  %v24523_v18 = vadd.f32 %v20658_v16, %v33041_v38  ;;  %v20660_v19 = vpop.f32.mrb[22].mxu1  ;;  %v22698_v12 = vld [vmem:[%s33049_s12 + $0x18] sm:$0xff] (%p28118_p5)  ;;  %22697 = vst [vmem:[%s33120_s7 + $0x20] sm:$0xff] (%p28118_p5), %v22696_v11 }
 0x77c   : > { %v22581_v20 = vpop.f32.mrb[22].mxu0  ;;  %v24522_v21 = vadd.f32 %v24521_v15, %v22577_v14  ;;  %v24525_v22 = vadd.f32 %v20660_v19, %v33039_v37  ;;  %v20662_v23 = vpop.f32.mrb[23].mxu1  ;;  %v22702_v14 = vld [vmem:[%s33049_s12 + $0x28] sm:$0xff] (%p28118_p5)  ;;  %22699 = vst [vmem:[%s33120_s7 + $0x28] sm:$0xff] (%p28118_p5), %v22698_v12  ;;  %22701 = vst [vmem:[%s33120_s7 + $0x40] sm:$0xff] (%p28118_p5), %v22700_v13  ;;  %v22704_v15 = vld [vmem:[%s33049_s12 + $0x30] sm:$0xff] (%p28118_p5) }
 0x77d   : > { %v22583_v24 = vpop.f32.mrb[23].mxu0  ;;  %v24524_v25 = vadd.f32 %v24523_v18, %v22579_v17  ;;  %v24527_v26 = vadd.f32 %v20662_v23, %v33041_v38  ;;  %22703 = vst [vmem:[%s33120_s7 + $0x48] sm:$0xff] (%p28118_p5), %v22702_v14  ;;  %v22706_v16 = vld [vmem:[%s33049_s12 + $0x38] sm:$0xff] (%p28118_p5)  ;;  %v22708_v17 = vld [vmem:[%s33049_s12 + $0x40] sm:$0xff] (%p28118_p5)  ;;  %22705 = vst [vmem:[%s33120_s7 + $0x60] sm:$0xff] (%p28118_p5), %v22704_v15 }
 0x77e   : > { %v22626_v27 = vmax.f32 %v24522_v21, 0.0  ;;  %v24526_v28 = vadd.f32 %v24525_v22, %v22581_v20  ;;  %22707 = vst [vmem:[%s33120_s7 + $0x68] sm:$0xff] (%p28118_p5), %v22706_v16  ;;  %22709 = vst [vmem:[%s33120_s7 + $0x80] sm:$0xff] (%p28118_p5), %v22708_v17  ;;  %v22710_v18 = vld [vmem:[%s33049_s12 + $0x48] sm:$0xff] (%p28118_p5)  ;;  %v22712_v19 = vld [vmem:[%s33049_s12 + $0x50] sm:$0xff] (%p28118_p5) }
 0x77f   : > { %v22627_v29 = vmax.f32 %v24524_v25, 0.0  ;;  %v24528_v30 = vadd.f32 %v24527_v26, %v22583_v24  ;;  %v22714_v20 = vld [vmem:[%s33049_s12 + $0x58] sm:$0xff] (%p28118_p5)  ;;  %22711 = vst [vmem:[%s33120_s7 + $0x88] sm:$0xff] (%p28118_p5), %v22710_v18  ;;  %22713 = vst [vmem:[%s33120_s7 + $0xa0] sm:$0xff] (%p28118_p5), %v22712_v19  ;;  %v22716_v21 = vld [vmem:[%s33049_s12 + $0x60] sm:$0xff] (%p28118_p5) }
 0x780   : > { %22658 = vst [vmem:[%s33049_s12 + $0xa0] sm:$0xff] %v22626_v27  ;;  %v22628_v31 = vmax.f32 %v24526_v28, 0.0  ;;  %22715 = vst [vmem:[%s33120_s7 + $0xa8] sm:$0xff] (%p28118_p5), %v22714_v20  ;;  %v22718_v22 = vld [vmem:[%s33049_s12 + $0x68] sm:$0xff] (%p28118_p5)  ;;  %v22720_v23 = vld [vmem:[%s33049_s12 + $0x70] sm:$0xff] (%p28118_p5) }
 0x781   : > { %22659 = vst [vmem:[%s33049_s12 + $0xa8] sm:$0xff] %v22627_v29  ;;  %v22629_v32 = vmax.f32 %v24528_v30, 0.0  ;;  %v20666_v33 = vpop.f32.mrb[24].mxu1  ;;  %22717 = vst [vmem:[%s33120_s7 + $0xc0] sm:$0xff] (%p28118_p5), %v22716_v21  ;;  %v22722_v24 = vld [vmem:[%s33049_s12 + $0x78] sm:$0xff] (%p28118_p5)  ;;  %v22724_v25 = vld [vmem:[%s33049_s12 + $0x80] sm:$0xff] (%p28118_p5) }
 0x782   : > { %v22587_v34 = vpop.f32.mrb[24].mxu0  ;;  %22660 = vst [vmem:[%s33049_s12 + $0xb0] sm:$0xff] %v22628_v31  ;;  %v24529_v35 = vadd.f32 %v20666_v33, %v33039_v37  ;;  %v20668_v36 = vpop.f32.mrb[25].mxu1  ;;  %22719 = vst [vmem:[%s33120_s7 + $0xc8] sm:$0xff] (%p28118_p5), %v22718_v22  ;;  %v22726_v26 = vld [vmem:[%s33049_s12 + $0x88] sm:$0xff] (%p28118_p5)  ;;  %v22728_v27 = vld [vmem:[%s33049_s12 + $0x90] sm:$0xff] (%p28118_p5) }
 0x783   : > { %v22589_v39 = vpop.f32.mrb[25].mxu0  ;;  %22661 = vst [vmem:[%s33049_s12 + $0xb8] sm:$0xff] %v22629_v32  ;;  %v24531_v40 = vadd.f32 %v20668_v36, %v33041_v38  ;;  %v20670_v41 = vpop.f32.mrb[26].mxu1  ;;  %22721 = vst [vmem:[%s33120_s7 + $0xe0] sm:$0xff] (%p28118_p5), %v22720_v23  ;;  %v22730_v28 = vld [vmem:[%s33049_s12 + $0x98] sm:$0xff] (%p28118_p5) }
 0x784   : > { %v22591_v42 = vpop.f32.mrb[26].mxu0  ;;  %v24530_v43 = vadd.f32 %v24529_v35, %v22587_v34  ;;  %v24533_v44 = vadd.f32 %v20670_v41, %v33039_v37  ;;  %v20672_v45 = vpop.f32.mrb[27].mxu1  ;;  %22723 = vst [vmem:[%s33120_s7 + $0xe8] sm:$0xff] (%p28118_p5), %v22722_v24  ;;  %22725 = vst [vmem:[%s33120_s7 + $0x100] sm:$0xff] (%p28118_p5), %v22724_v25 }
 0x785   : > { %v22593_v46 = vpop.f32.mrb[27].mxu0  ;;  %v24532_v47 = vadd.f32 %v24531_v40, %v22589_v39  ;;  %v24535_v48 = vadd.f32 %v20672_v45, %v33041_v38  ;;  %22727 = vst [vmem:[%s33120_s7 + $0x108] sm:$0xff] (%p28118_p5), %v22726_v26  ;;  %22729 = vst [vmem:[%s33120_s7 + $0x120] sm:$0xff] (%p28118_p5), %v22728_v27 }
 0x786   : > { %v22630_v49 = vmax.f32 %v24530_v43, 0.0  ;;  %v24534_v50 = vadd.f32 %v24533_v44, %v22591_v42  ;;  %22731 = vst [vmem:[%s33120_s7 + $0x128] sm:$0xff] (%p28118_p5), %v22730_v28 }
 0x787   : > { %v22631_v51 = vmax.f32 %v24532_v47, 0.0  ;;  %v24536_v52 = vadd.f32 %v24535_v48, %v22593_v46  ;;  %v22732_v29 = vld [vmem:[%s33049_s12 + $0xa0] sm:$0xff] (%p28118_p5) }
 0x788   : > { %22662 = vst [vmem:[%s33049_s12 + $0xc0] sm:$0xff] %v22630_v49  ;;  %v22632_v53 = vmax.f32 %v24534_v50, 0.0  ;;  %22733 = vst [vmem:[%s33120_s7 + $0x140] sm:$0xff] (%p28118_p5), %v22732_v29  ;;  %v22734_v30 = vld [vmem:[%s33049_s12 + $0xa8] sm:$0xff] (%p28118_p5) }
 0x789   : > { %22663 = vst [vmem:[%s33049_s12 + $0xc8] sm:$0xff] %v22631_v51  ;;  %v22633_v54 = vmax.f32 %v24536_v52, 0.0  ;;  %v20676_v55 = vpop.f32.mrb[28].mxu1  ;;  %v22736_v31 = vld [vmem:[%s33049_s12 + $0xb0] sm:$0xff] (%p28118_p5)  ;;  %22735 = vst [vmem:[%s33120_s7 + $0x148] sm:$0xff] (%p28118_p5), %v22734_v30 }
 0x78a   : > { %v22597_v56 = vpop.f32.mrb[28].mxu0  ;;  %22664 = vst [vmem:[%s33049_s12 + $0xd0] sm:$0xff] %v22632_v53  ;;  %v24537_v57 = vadd.f32 %v20676_v55, %v33039_v37  ;;  %v20678_v58 = vpop.f32.mrb[29].mxu1  ;;  %v22738_v32 = vld [vmem:[%s33049_s12 + $0xb8] sm:$0xff] (%p28118_p5)  ;;  %22737 = vst [vmem:[%s33120_s7 + $0x160] sm:$0xff] (%p28118_p5), %v22736_v31 }
 0x78b   : > { %v22599_v59 = vpop.f32.mrb[29].mxu0  ;;  %22665 = vst [vmem:[%s33049_s12 + $0xd8] sm:$0xff] %v22633_v54  ;;  %v24539_v60 = vadd.f32 %v20678_v58, %v33041_v38  ;;  %v20680_v61 = vpop.f32.mrb[30].mxu1  ;;  %22739 = vst [vmem:[%s33120_s7 + $0x168] sm:$0xff] (%p28118_p5), %v22738_v32 }
 0x78c   : > { %v22601_v62 = vpop.f32.mrb[30].mxu0  ;;  %v24538_v63 = vadd.f32 %v24537_v57, %v22597_v56  ;;  %v24541_v0 = vadd.f32 %v20680_v61, %v33039_v37  ;;  %v20682_v1 = vpop.f32.mrb[31].mxu1  ;;  %v22692_v37 = vld [vmem:[%s33049_s12] sm:$0xff] (%p28118_p5) }
 0x78d   : > { %v22603_v2 = vpop.f32.mrb[31].mxu0  ;;  %v24540_v3 = vadd.f32 %v24539_v60, %v22599_v59  ;;  %v24543_v4 = vadd.f32 %v20682_v1, %v33041_v38  ;;  %22676 = sbr.rel (!%p28118_p5) target bundleno = 1948 (0x79c), region = 88  ;;  %v22694_v38 = vld [vmem:[%s33049_s12 + $0x8] sm:$0xff] (%p28118_p5)  ;;  %22693 = vst [vmem:[%s33120_s7] sm:$0xff] (%p28118_p5), %v22692_v37 }
 0x78e   : > { %v22634_v5 = vmax.f32 %v24538_v63, 0.0  ;;  %v24542_v6 = vadd.f32 %v24541_v0, %v22601_v62  ;;  %22695 = vst [vmem:[%s33120_s7 + $0x8] sm:$0xff] (%p28118_p5), %v22694_v38 }
 0x78f   : > { %v22635_v7 = vmax.f32 %v24540_v3, 0.0  ;;  %v24544_v8 = vadd.f32 %v24543_v4, %v22603_v2  ;;  %v22740_v33 = vld [vmem:[%s33049_s12 + $0xc0] sm:$0xff] (%p28118_p5) }
 0x790   : > { %22666 = vst [vmem:[%s33049_s12 + $0xe0] sm:$0xff] %v22634_v5  ;;  %v22636_v9 = vmax.f32 %v24542_v6, 0.0  ;;  %v22742_v34 = vld [vmem:[%s33049_s12 + $0xc8] sm:$0xff] (%p28118_p5)  ;;  %22741 = vst [vmem:[%s33120_s7 + $0x180] sm:$0xff] (%p28118_p5), %v22740_v33 }
 0x791   : > { %22667 = vst [vmem:[%s33049_s12 + $0xe8] sm:$0xff] %v22635_v7  ;;  %v22637_v10 = vmax.f32 %v24544_v8, 0.0  ;;  %v22744_v35 = vld [vmem:[%s33049_s12 + $0xd0] sm:$0xff] (%p28118_p5)  ;;  %22743 = vst [vmem:[%s33120_s7 + $0x188] sm:$0xff] (%p28118_p5), %v22742_v34 }
 0x792   : > { %22668 = vst [vmem:[%s33049_s12 + $0xf0] sm:$0xff] %v22636_v9  ;;  %22745 = vst [vmem:[%s33120_s7 + $0x1a0] sm:$0xff] (%p28118_p5), %v22744_v35  ;;  %v22746_v36 = vld [vmem:[%s33049_s12 + $0xd8] sm:$0xff] (%p28118_p5) }
 0x793   : > { %22669 = vst [vmem:[%s33049_s12 + $0xf8] sm:$0xff] %v22637_v10  ;;  %22747 = vst [vmem:[%s33120_s7 + $0x1a8] sm:$0xff] (%p28118_p5), %v22746_v36 }
 0x797   : > { %v22748_v39 = vld [vmem:[%s33049_s12 + $0xe0] sm:$0xff] }
 0x798   : > { %v22750_v40 = vld [vmem:[%s33049_s12 + $0xe8] sm:$0xff]  ;;  %22749 = vst [vmem:[%s33120_s7 + $0x1c0] sm:$0xff] %v22748_v39 }
 0x799   : > { %22751 = vst [vmem:[%s33120_s7 + $0x1c8] sm:$0xff] %v22750_v40  ;;  %v22752_v41 = vld [vmem:[%s33049_s12 + $0xf0] sm:$0xff] }
 0x79a   : > { %v22754_v42 = vld [vmem:[%s33049_s12 + $0xf8] sm:$0xff]  ;;  %22753 = vst [vmem:[%s33120_s7 + $0x1e0] sm:$0xff] %v22752_v41 }
 0x79b   : > { %22755 = vst [vmem:[%s33120_s7 + $0x1e8] sm:$0xff] %v22754_v42 }
 0x79c PF: > { %p10_p11 = scmp.ge.s32.totalorder %s28106_s16, 4   ;;  %s33198_s12 = smov %s28061_s13 }
 0x79d   : > { %s33199_s13 = smov %s28116_s19  ;;  %s33200_s14 = smov %s28106_s16 }
 0x79e   :  { %12 = sbr.rel (!%p10_p11) target bundleno = 2 (0x2), region = 151 }

</bundles_post_ra>
